<compile_context>
chip_gen: v7x
topology: tpu7x:2x2x1
jax: 0.10.0
libtpu: 0.0.40
codegen_flags: <defaults>
</compile_context>

<pallas_src>
import functools

import numpy as np

import jax
import jax.numpy as jnp
from jax.experimental import pallas as pl
from jax.experimental.pallas import tpu as pltpu


def _vari_length_kernel(x_ref, w_all_ref, sred_ref, sel_ref, wfc_ref, bfc_ref,
                        aln_ref, gamma_ref, beta_ref, out_ref, attn_ref, *,
                        modal_num, hdk, hdv, n_head, eps):
    M = modal_num
    mhdk, mhdv = M * hdk, M * hdv

    # ---- one fused projection matmul (bf16 MXU, f32 accumulation) ----------
    x = x_ref[...].astype(jnp.bfloat16)                               # (tb, D)
    proj = jnp.dot(x, w_all_ref[...], preferred_element_type=jnp.float32)
    # 128-lane-aligned column groups -> views, no relayout.
    q_all = proj[:, :mhdk]                               # q / temp   (tb, M*hdk)
    k_rep = proj[:, mhdk:mhdk + M * mhdk]                # k_j replicated over i
    v_all = proj[:, mhdk + M * mhdk:mhdk + M * mhdk + mhdv]   # residual layout
    v_rep = proj[:, mhdk + M * mhdk + mhdv:]             # v_j replicated over i

    # ---- attention scores in the "expanded" lane-dense layout --------------
    # scores[j][b, i*hdv + h*d_v + d] = sum_dk q[b,i,h,dk]/temp * k[b,j,h,dk]
    # (per-head d_k reduction is the 0/1 bf16 `sred` matmul -> MXU, no reshapes)
    sred = sred_ref[...]                                 # (M*hdk, M*hdv) bf16
    scores = []
    for j in range(M):
        kj = k_rep[:, j * mhdk:(j + 1) * mhdk]           # aligned view
        scores.append(jnp.dot((q_all * kj).astype(jnp.bfloat16), sred,
                              preferred_element_type=jnp.float32))

    # NOTE: torch's `attn = attn / abs(attn.min())` (positive global scalar) is
    # immediately followed by F.normalize(dim=-1), which is invariant to a
    # positive global scale -> exact no-op for both outputs; skipped (differs
    # only in the degenerate attn.min()==0 case where torch itself emits inf/nan).

    # ---- F.normalize(dim=-1) over key modality j, then softmax over j ------
    norm_sq = scores[0] * scores[0]
    for j in range(1, M):
        norm_sq = norm_sq + scores[j] * scores[j]
    inv_norm = jax.lax.rsqrt(jnp.maximum(norm_sq, 1e-24))  # == 1/max(||.||, 1e-12)
    normed = [s * inv_norm for s in scores]
    m = normed[0]
    for j in range(1, M):
        m = jnp.maximum(m, normed[j])
    exps = [jnp.exp(n - m) for n in normed]
    z = exps[0]
    for j in range(1, M):
        z = z + exps[j]
    inv_z = pl.reciprocal(z, approx=True)
    attn = [e * inv_z for e in exps]
    # TODO(synk): training-mode attention dropout (pltpu.prng_random_bits mask)
    # not emitted; eval semantics only.
    # TODO(synk): on v6e/v7x this elementwise chain could run in bf16 (bf16 VPU/EUP).

    # ---- compact attn writeback: n_head*M*M lanes, (h, i, j) lane order ----
    # 0/1 bf16 selection matmuls strip the d_v-replicated lanes on the MXU so the
    # HBM attn stream shrinks ~8x vs the expanded slab.
    sel = sel_ref[...]                                   # (M*M*hdv, H*M*M) bf16
    attn_c = jnp.dot(attn[0].astype(jnp.bfloat16), sel[:mhdv, :],
                     preferred_element_type=jnp.float32)
    for j in range(1, M):
        attn_c = attn_c + jnp.dot(attn[j].astype(jnp.bfloat16),
                                  sel[j * mhdv:(j + 1) * mhdv, :],
                                  preferred_element_type=jnp.float32)
    attn_ref[...] = attn_c.astype(attn_ref.dtype)

    # ---- output = attn @ v (expanded layout: elementwise mul + sum over j) --
    acc = attn[0] * v_rep[:, :mhdv]
    for j in range(1, M):
        acc = acc + attn[j] * v_rep[:, j * mhdv:(j + 1) * mhdv]
    # acc rows are already in the PyTorch (modal, n_head*d_v) row layout.

    # ---- fc (block-diag over modalities) + residual + LayerNorm -------------
    y = jnp.dot(acc.astype(jnp.bfloat16), wfc_ref[...],
                preferred_element_type=jnp.float32) + bfc_ref[...]
    # TODO(synk): training-mode dropout on the fc output not emitted (eval = id).
    y = y + v_all                                        # residual == v
    a_ln = aln_ref[...]                                  # 1/hdv block-average, bf16
    mu = jnp.dot(y.astype(jnp.bfloat16), a_ln, preferred_element_type=jnp.float32)
    d = y - mu
    var = jnp.dot((d * d).astype(jnp.bfloat16), a_ln,
                  preferred_element_type=jnp.float32)    # biased variance
    y = d * jax.lax.rsqrt(var + eps)
    out_ref[...] = (y * gamma_ref[...] + beta_ref[...]).astype(out_ref.dtype)


def pack_params(params, dims, n_head, d_k, d_v):
    """One-time host-side packing of per-modality weights into the fused /
    structural matrices used by the kernel (bf16 for all MXU operands)."""
    M = len(dims)
    hdk, hdv = n_head * d_k, n_head * d_v
    d_total = int(sum(dims))
    temp = float(d_k) ** 0.5
    offs = np.concatenate([[0], np.cumsum(dims)]).astype(int)

    wq = [np.asarray(w, np.float32) for w in params["wq"]]
    wk = [np.asarray(w, np.float32) for w in params["wk"]]
    wv = [np.asarray(w, np.float32) for w in params["wv"]]

    wq_big = np.zeros((d_total, M * hdk), np.float32)          # 1/temp folded in
    wv_big = np.zeros((d_total, M * hdv), np.float32)
    wk_rep = np.zeros((d_total, M * M * hdk), np.float32)      # k_j tiled over i
    wv_rep = np.zeros((d_total, M * M * hdv), np.float32)      # v_j tiled over i
    for i in range(M):
        r0, r1 = offs[i], offs[i + 1]
        wq_big[r0:r1, i * hdk:(i + 1) * hdk] = wq[i].T / temp
        wv_big[r0:r1, i * hdv:(i + 1) * hdv] = wv[i].T
    for j in range(M):
        r0, r1 = offs[j], offs[j + 1]
        for i in range(M):
            wk_rep[r0:r1, j * M * hdk + i * hdk:j * M * hdk + (i + 1) * hdk] = wk[j].T
            wv_rep[r0:r1, j * M * hdv + i * hdv:j * M * hdv + (i + 1) * hdv] = wv[j].T
    w_all = np.concatenate([wq_big, wk_rep, wv_big, wv_rep], axis=1)

    # per-head d_k segment sum into the expanded (i, h, d_v) lane layout (0/1)
    sred = np.zeros((M * hdk, M * hdv), np.float32)
    for i in range(M):
        for h in range(n_head):
            sred[i * hdk + h * d_k:i * hdk + (h + 1) * d_k,
                 i * hdv + h * d_v:i * hdv + (h + 1) * d_v] = 1.0

    # attn compaction selector: expanded lane (i*hdv + h*d_v) -> lane h*M*M + i*M + j
    sel = np.zeros((M * M * hdv, n_head * M * M), np.float32)
    for j in range(M):
        for i in range(M):
            for h in range(n_head):
                sel[j * M * hdv + i * hdv + h * d_v, h * M * M + i * M + j] = 1.0

    w_fc = np.asarray(params["w_fc"], np.float32)
    wfc_big = np.zeros((M * hdv, M * hdv), np.float32)
    aln = np.zeros((M * hdv, M * hdv), np.float32)
    for i in range(M):
        wfc_big[i * hdv:(i + 1) * hdv, i * hdv:(i + 1) * hdv] = w_fc.T
        aln[i * hdv:(i + 1) * hdv, i * hdv:(i + 1) * hdv] = 1.0 / hdv

    return dict(
        w_all=jnp.asarray(w_all, jnp.bfloat16),
        sred=jnp.asarray(sred, jnp.bfloat16),
        sel=jnp.asarray(sel, jnp.bfloat16),
        wfc=jnp.asarray(wfc_big, jnp.bfloat16),
        bfc=jnp.asarray(np.tile(np.asarray(params["b_fc"], np.float32), M)
                        .reshape(1, M * hdv), jnp.float32),
        aln=jnp.asarray(aln, jnp.bfloat16),
        gamma=jnp.asarray(np.tile(np.asarray(params["gamma"], np.float32), M)
                          .reshape(1, M * hdv), jnp.float32),
        beta=jnp.asarray(np.tile(np.asarray(params["beta"], np.float32), M)
                         .reshape(1, M * hdv), jnp.float32),
    )


def _device_kind():
    try:
        return jax.devices()[0].device_kind.lower()
    except Exception:
        return ""


def _device_vmem_bytes():
    try:
        v = int(pltpu.get_tpu_info().vmem_capacity_bytes)
        if v > 0:
            return v
    except Exception:
        pass
    return 64 * 1024 * 1024


def _pick_tile_b(bs, device_kind=None):
    """Largest batch tile that divides bs (per-step overhead amortization, MXU
    fill).  On dual-TensorCore parts (v4/v5p/v7x) additionally prefer an even
    grid of >= 2 steps so both cores get equal work."""
    if device_kind is None:
        device_kind = _device_kind()
    dual_core = any(t in device_kind for t in ("v4", "v5p", "7x", "tpu7", "tpu v7"))
    cands = [t for t in (1024, 512, 256, 128, 64, 32, 16, 8) if bs % t == 0]
    if not cands:
        raise ValueError("batch size must be a multiple of 8")
    if dual_core:
        for t in cands:
            g = bs // t
            if g >= 2 and g % 2 == 0:
                return t
    return cands[0]


def vari_length_input_layer(x, packed, dims, n_head, d_k, d_v,
                            *, tile_b=None, eps=1e-6):
    """x: (bs, sum(dims)) f32.  Returns (q, attn) matching the PyTorch module."""
    bs, d_total = x.shape
    M = len(dims)
    hdk, hdv = n_head * d_k, n_head * d_v
    assert d_total == sum(dims)
    if tile_b is None:
        tile_b = _pick_tile_b(bs)
    assert bs % tile_b == 0 and tile_b % 8 == 0
    grid = (bs // tile_b,)

    w_cols = packed["w_all"].shape[1]
    n_attn = n_head * M * M                               # compact attn lane count

    weight_bytes = sum(int(np.prod(packed[k].shape)) * packed[k].dtype.itemsize
                       for k in ("w_all", "sred", "sel", "wfc", "bfc", "aln",
                                 "gamma", "beta"))
    io_tile_bytes = tile_b * (d_total + M * hdv + n_attn) * 4
    interm_bytes = tile_b * (w_cols + 16 * M * hdv) * 4
    vmem_limit = int(min(_device_vmem_bytes(),
                         max(32 * 1024 * 1024,
                             2 * (io_tile_bytes + weight_bytes)
                             + interm_bytes + (8 << 20))))

    flops = 2 * bs * d_total * w_cols                     # fused q/k/k_rep/v/v_rep
    flops += 2 * bs * M * (M * hdk) * (M * hdv)           # expanded score reduce
    flops += 2 * bs * M * (M * hdv) * n_attn              # attn compaction
    flops += 2 * bs * (M * hdv) * (M * hdv) * 3           # fc + LN statistics
    cost = pl.CostEstimate(
        flops=int(flops),
        transcendentals=int(bs * M * M * hdv + 2 * bs * M * hdv),
        bytes_accessed=int(bs * d_total * 4 + bs * M * hdv * 4
                           + bs * n_attn * 4 + weight_bytes))

    kernel = functools.partial(_vari_length_kernel, modal_num=M, hdk=hdk,
                               hdv=hdv, n_head=n_head, eps=eps)

    out2d, attn_c = pl.pallas_call(
        kernel,
        out_shape=(jax.ShapeDtypeStruct((bs, M * hdv), jnp.float32),
                   jax.ShapeDtypeStruct((bs, n_attn), jnp.float32)),
        grid_spec=pltpu.PrefetchScalarGridSpec(
            num_scalar_prefetch=0,
            grid=grid,
            in_specs=[
                pl.BlockSpec((tile_b, d_total), lambda i: (i, 0)),        # x
                pl.BlockSpec((d_total, w_cols), lambda i: (0, 0)),        # W_all
                pl.BlockSpec((M * hdk, M * hdv), lambda i: (0, 0)),       # sred
                pl.BlockSpec((M * M * hdv, n_attn), lambda i: (0, 0)),    # sel
                pl.BlockSpec((M * hdv, M * hdv), lambda i: (0, 0)),       # Wfc
                pl.BlockSpec((1, M * hdv), lambda i: (0, 0)),             # b_fc
                pl.BlockSpec((M * hdv, M * hdv), lambda i: (0, 0)),       # A_ln
                pl.BlockSpec((1, M * hdv), lambda i: (0, 0)),             # gamma
                pl.BlockSpec((1, M * hdv), lambda i: (0, 0)),             # beta
            ],
            out_specs=(
                pl.BlockSpec((tile_b, M * hdv), lambda i: (i, 0)),
                pl.BlockSpec((tile_b, n_attn), lambda i: (i, 0)),
            ),
        ),
        compiler_params=pltpu.CompilerParams(
            dimension_semantics=("parallel",),
            vmem_limit_bytes=vmem_limit),
        cost_estimate=cost,
    )(x, packed["w_all"], packed["sred"], packed["sel"], packed["wfc"],
      packed["bfc"], packed["aln"], packed["gamma"], packed["beta"])

    q_out = out2d.reshape(bs, M, hdv)
    attn = attn_c.reshape(bs, n_head, M, M)   # lanes already in (h, i, j) order
    return q_out, attn


def init_params(key, dims, n_head, d_k, d_v):
    """Deterministic init mimicking nn.Linear defaults U(+/-1/sqrt(fan_in));
    LayerNorm weight=1, bias=0."""
    M = len(dims)
    hdk, hdv = n_head * d_k, n_head * d_v
    keys = jax.random.split(key, 3 * M + 2)
    wq, wk, wv = [], [], []
    for i, dim in enumerate(dims):
        lim = 1.0 / float(np.sqrt(dim))
        wq.append(jax.random.uniform(keys[3 * i + 0], (hdk, dim), jnp.float32, -lim, lim))
        wk.append(jax.random.uniform(keys[3 * i + 1], (hdk, dim), jnp.float32, -lim, lim))
        wv.append(jax.random.uniform(keys[3 * i + 2], (hdv, dim), jnp.float32, -lim, lim))
    limf = 1.0 / float(np.sqrt(hdv))
    return dict(
        wq=wq, wk=wk, wv=wv,
        w_fc=jax.random.uniform(keys[-2], (hdv, hdv), jnp.float32, -limf, limf),
        b_fc=jax.random.uniform(keys[-1], (hdv,), jnp.float32, -limf, limf),
        gamma=jnp.ones((hdv,), jnp.float32),
        beta=jnp.zeros((hdv,), jnp.float32))


def _reference(x, params, dims, n_head, d_k, d_v, eps=1e-6):
    """Faithful pure-JAX port of the PyTorch forward (eval mode, mask=None)."""
    bs = x.shape[0]
    M = len(dims)
    temp = float(d_k) ** 0.5
    qs, ks, vs = [], [], []
    off = 0
    for i, dim in enumerate(dims):
        data = x[:, off:off + dim]
        off += dim
        qs.append(data @ params["wq"][i].T)
        ks.append(data @ params["wk"][i].T)
        vs.append(data @ params["wv"][i].T)
    q = jnp.stack(qs, 1).reshape(bs, M, n_head, d_k).transpose(0, 2, 1, 3)
    k = jnp.stack(ks, 1).reshape(bs, M, n_head, d_k).transpose(0, 2, 1, 3)
    v = jnp.stack(vs, 1).reshape(bs, M, n_head, d_v).transpose(0, 2, 1, 3)
    attn = jnp.einsum("bhid,bhjd->bhij", q / temp, k)
    attn = attn / jnp.abs(attn.min())                                   # global scalar
    nrm = jnp.maximum(jnp.sqrt(jnp.sum(attn * attn, -1, keepdims=True)), 1e-12)
    attn = jax.nn.softmax(attn / nrm, axis=-1)                          # dropout = id
    out = jnp.einsum("bhij,bhjd->bhid", attn, v)
    out = out.transpose(0, 2, 1, 3).reshape(bs, M, n_head * d_v)
    residual = v.transpose(0, 2, 1, 3).reshape(bs, M, n_head * d_v)
    y = out @ params["w_fc"].T + params["b_fc"] + residual
    mu = y.mean(-1, keepdims=True)
    var = ((y - mu) ** 2).mean(-1, keepdims=True)
    y = (y - mu) * jax.lax.rsqrt(var + eps) * params["gamma"] + params["beta"]
    return y, attn


if __name__ == "__main__":
    DIMS = (16, 24, 40, 48)          # variable per-modality widths, sum = 128
    N_HEAD, D_K, D_V = 4, 8, 8       # n_head * d_v = 32
    BS = 256                         # tile_b chosen per TPU generation

    key = jax.random.PRNGKey(0)
    kx, kp = jax.random.split(key)
    x = jax.random.normal(kx, (BS, sum(DIMS)), jnp.float32)
    params = init_params(kp, DIMS, N_HEAD, D_K, D_V)
    packed = pack_params(params, DIMS, N_HEAD, D_K, D_V)

    q_out, attn = vari_length_input_layer(x, packed, DIMS, N_HEAD, D_K, D_V)
    q_out, attn = jax.block_until_ready((q_out, attn))

    q_ref, attn_ref = _reference(x, params, DIMS, N_HEAD, D_K, D_V)

    assert q_out.shape == (BS, len(DIMS), N_HEAD * D_V)
    assert attn.shape == (BS, N_HEAD, len(DIMS), len(DIMS))
    assert bool(jnp.all(jnp.isfinite(q_out))) and bool(jnp.all(jnp.isfinite(attn)))
    # bf16 MXU operands (per perf review) -> tolerances loosened vs f32 reference.
    assert jnp.allclose(attn, attn_ref, atol=2e-2, rtol=2e-2), "attn mismatch"
    assert jnp.allclose(q_out, q_ref, atol=3e-2, rtol=3e-2), "output mismatch"
    rel = jnp.linalg.norm(q_out - q_ref) / jnp.linalg.norm(q_ref)
    assert rel < 2.5e-2, f"relative error too large: {rel}"
    print("KERNEL_OK")
</pallas_src>

<mosaic_0001>
module attributes {stable_mosaic.version = 11 : i64} {
  func.func @_vari_length_kernel(%arg0: i32, %arg1: memref<256x128xf32, #tpu.memory_space<vmem>>, %arg2: memref<128x1280xbf16, #tpu.memory_space<vmem>>, %arg3: memref<128x128xbf16, #tpu.memory_space<vmem>>, %arg4: memref<512x64xbf16, #tpu.memory_space<vmem>>, %arg5: memref<128x128xbf16, #tpu.memory_space<vmem>>, %arg6: memref<1x128xf32, #tpu.memory_space<vmem>>, %arg7: memref<128x128xbf16, #tpu.memory_space<vmem>>, %arg8: memref<1x128xf32, #tpu.memory_space<vmem>>, %arg9: memref<1x128xf32, #tpu.memory_space<vmem>>, %arg10: memref<256x128xf32, #tpu.memory_space<vmem>>, %arg11: memref<256x64xf32, #tpu.memory_space<vmem>>) attributes {dimension_semantics = [#tpu.dimension_semantics<parallel>], iteration_bounds = array<i64: 1>, scalar_prefetch = 0 : i64, scratch_operands = 0 : i64, tpu.core_type = #tpu.core_type<tc>, window_params = [{transform_indices = @transform_0, window_bounds = array<i64: 256, 128>}, {pipeline_mode = #tpu.pipeline_mode<synchronous>, transform_indices = @transform_1, window_bounds = array<i64: 128, 1280>}, {pipeline_mode = #tpu.pipeline_mode<synchronous>, transform_indices = @transform_2, window_bounds = array<i64: 128, 128>}, {pipeline_mode = #tpu.pipeline_mode<synchronous>, transform_indices = @transform_3, window_bounds = array<i64: 512, 64>}, {pipeline_mode = #tpu.pipeline_mode<synchronous>, transform_indices = @transform_4, window_bounds = array<i64: 128, 128>}, {pipeline_mode = #tpu.pipeline_mode<synchronous>, transform_indices = @transform_5, window_bounds = array<i64: 1, 128>}, {pipeline_mode = #tpu.pipeline_mode<synchronous>, transform_indices = @transform_6, window_bounds = array<i64: 128, 128>}, {pipeline_mode = #tpu.pipeline_mode<synchronous>, transform_indices = @transform_7, window_bounds = array<i64: 1, 128>}, {pipeline_mode = #tpu.pipeline_mode<synchronous>, transform_indices = @transform_8, window_bounds = array<i64: 1, 128>}, {transform_indices = @transform_9, window_bounds = array<i64: 256, 128>}, {transform_indices = @transform_10, window_bounds = array<i64: 256, 64>}]} {
    %c0 = arith.constant 0 : index
    %c0_0 = arith.constant 0 : index
    %0 = vector.load %arg1[%c0, %c0_0] : memref<256x128xf32, #tpu.memory_space<vmem>>, vector<256x128xf32>
    %1 = arith.truncf %0 : vector<256x128xf32> to vector<256x128xbf16>
    %c0_1 = arith.constant 0 : index
    %c0_2 = arith.constant 0 : index
    %2 = vector.load %arg2[%c0_1, %c0_2] : memref<128x1280xbf16, #tpu.memory_space<vmem>>, vector<128x1280xbf16>
    %cst = arith.constant dense<0.000000e+00> : vector<256x1280xf32>
    %3 = tpu.matmul %1, %2, %cst {dimension_numbers = #tpu.dot_dimension_numbers<[1], [0], [0], [1], [0, 0, 1, 1], [], []>} : vector<256x128xbf16>, vector<128x1280xbf16>, vector<256x1280xf32> -> vector<256x1280xf32>
    %4 = vector.extract_strided_slice %3 {offsets = [0, 0], sizes = [256, 128], strides = [1, 1]} : vector<256x1280xf32> to vector<256x128xf32>
    %5 = vector.extract_strided_slice %3 {offsets = [0, 128], sizes = [256, 512], strides = [1, 1]} : vector<256x1280xf32> to vector<256x512xf32>
    %6 = vector.extract_strided_slice %3 {offsets = [0, 640], sizes = [256, 128], strides = [1, 1]} : vector<256x1280xf32> to vector<256x128xf32>
    %7 = vector.extract_strided_slice %3 {offsets = [0, 768], sizes = [256, 512], strides = [1, 1]} : vector<256x1280xf32> to vector<256x512xf32>
    %c0_3 = arith.constant 0 : index
    %c0_4 = arith.constant 0 : index
    %8 = vector.load %arg3[%c0_3, %c0_4] : memref<128x128xbf16, #tpu.memory_space<vmem>>, vector<128x128xbf16>
    %9 = vector.extract_strided_slice %5 {offsets = [0, 0], sizes = [256, 128], strides = [1, 1]} : vector<256x512xf32> to vector<256x128xf32>
    %10 = arith.mulf %4, %9 : vector<256x128xf32>
    %11 = arith.truncf %10 : vector<256x128xf32> to vector<256x128xbf16>
    %cst_5 = arith.constant dense<0.000000e+00> : vector<256x128xf32>
    %12 = tpu.matmul %11, %8, %cst_5 {dimension_numbers = #tpu.dot_dimension_numbers<[1], [0], [0], [1], [0, 0, 1, 1], [], []>} : vector<256x128xbf16>, vector<128x128xbf16>, vector<256x128xf32> -> vector<256x128xf32>
    %13 = vector.extract_strided_slice %5 {offsets = [0, 128], sizes = [256, 128], strides = [1, 1]} : vector<256x512xf32> to vector<256x128xf32>
    %14 = arith.mulf %4, %13 : vector<256x128xf32>
    %15 = arith.truncf %14 : vector<256x128xf32> to vector<256x128xbf16>
    %cst_6 = arith.constant dense<0.000000e+00> : vector<256x128xf32>
    %16 = tpu.matmul %15, %8, %cst_6 {dimension_numbers = #tpu.dot_dimension_numbers<[1], [0], [0], [1], [0, 0, 1, 1], [], []>} : vector<256x128xbf16>, vector<128x128xbf16>, vector<256x128xf32> -> vector<256x128xf32>
    %17 = vector.extract_strided_slice %5 {offsets = [0, 256], sizes = [256, 128], strides = [1, 1]} : vector<256x512xf32> to vector<256x128xf32>
    %18 = arith.mulf %4, %17 : vector<256x128xf32>
    %19 = arith.truncf %18 : vector<256x128xf32> to vector<256x128xbf16>
    %cst_7 = arith.constant dense<0.000000e+00> : vector<256x128xf32>
    %20 = tpu.matmul %19, %8, %cst_7 {dimension_numbers = #tpu.dot_dimension_numbers<[1], [0], [0], [1], [0, 0, 1, 1], [], []>} : vector<256x128xbf16>, vector<128x128xbf16>, vector<256x128xf32> -> vector<256x128xf32>
    %21 = vector.extract_strided_slice %5 {offsets = [0, 384], sizes = [256, 128], strides = [1, 1]} : vector<256x512xf32> to vector<256x128xf32>
    %22 = arith.mulf %4, %21 : vector<256x128xf32>
    %23 = arith.truncf %22 : vector<256x128xf32> to vector<256x128xbf16>
    %cst_8 = arith.constant dense<0.000000e+00> : vector<256x128xf32>
    %24 = tpu.matmul %23, %8, %cst_8 {dimension_numbers = #tpu.dot_dimension_numbers<[1], [0], [0], [1], [0, 0, 1, 1], [], []>} : vector<256x128xbf16>, vector<128x128xbf16>, vector<256x128xf32> -> vector<256x128xf32>
    %25 = arith.mulf %12, %12 : vector<256x128xf32>
    %26 = arith.mulf %16, %16 : vector<256x128xf32>
    %27 = arith.addf %25, %26 : vector<256x128xf32>
    %28 = arith.mulf %20, %20 : vector<256x128xf32>
    %29 = arith.addf %27, %28 : vector<256x128xf32>
    %30 = arith.mulf %24, %24 : vector<256x128xf32>
    %31 = arith.addf %29, %30 : vector<256x128xf32>
    %cst_9 = arith.constant 1.000000e-24 : f32
    %32 = vector.broadcast %cst_9 : f32 to vector<256x128xf32>
    %33 = arith.maximumf %31, %32 : vector<256x128xf32>
    %34 = math.rsqrt %33 : vector<256x128xf32>
    %35 = arith.mulf %12, %34 : vector<256x128xf32>
    %36 = arith.mulf %16, %34 : vector<256x128xf32>
    %37 = arith.mulf %20, %34 : vector<256x128xf32>
    %38 = arith.mulf %24, %34 : vector<256x128xf32>
    %39 = arith.maximumf %35, %36 : vector<256x128xf32>
    %40 = arith.maximumf %39, %37 : vector<256x128xf32>
    %41 = arith.maximumf %40, %38 : vector<256x128xf32>
    %42 = arith.subf %35, %41 : vector<256x128xf32>
    %43 = math.exp %42 : vector<256x128xf32>
    %44 = arith.subf %36, %41 : vector<256x128xf32>
    %45 = math.exp %44 : vector<256x128xf32>
    %46 = arith.subf %37, %41 : vector<256x128xf32>
    %47 = math.exp %46 : vector<256x128xf32>
    %48 = arith.subf %38, %41 : vector<256x128xf32>
    %49 = math.exp %48 : vector<256x128xf32>
    %50 = arith.addf %43, %45 : vector<256x128xf32>
    %51 = arith.addf %50, %47 : vector<256x128xf32>
    %52 = arith.addf %51, %49 : vector<256x128xf32>
    %53 = tpu.reciprocal %52 {approx = true} : vector<256x128xf32> -> vector<256x128xf32>
    %54 = arith.mulf %43, %53 : vector<256x128xf32>
    %55 = arith.mulf %45, %53 : vector<256x128xf32>
    %56 = arith.mulf %47, %53 : vector<256x128xf32>
    %57 = arith.mulf %49, %53 : vector<256x128xf32>
    %c0_10 = arith.constant 0 : index
    %c0_11 = arith.constant 0 : index
    %58 = vector.load %arg4[%c0_10, %c0_11] : memref<512x64xbf16, #tpu.memory_space<vmem>>, vector<512x64xbf16>
    %59 = arith.truncf %54 : vector<256x128xf32> to vector<256x128xbf16>
    %60 = vector.extract_strided_slice %58 {offsets = [0, 0], sizes = [128, 64], strides = [1, 1]} : vector<512x64xbf16> to vector<128x64xbf16>
    %cst_12 = arith.constant dense<0.000000e+00> : vector<256x64xf32>
    %61 = tpu.matmul %59, %60, %cst_12 {dimension_numbers = #tpu.dot_dimension_numbers<[1], [0], [0], [1], [0, 0, 1, 1], [], []>} : vector<256x128xbf16>, vector<128x64xbf16>, vector<256x64xf32> -> vector<256x64xf32>
    %62 = arith.truncf %55 : vector<256x128xf32> to vector<256x128xbf16>
    %63 = vector.extract_strided_slice %58 {offsets = [128, 0], sizes = [128, 64], strides = [1, 1]} : vector<512x64xbf16> to vector<128x64xbf16>
    %cst_13 = arith.constant dense<0.000000e+00> : vector<256x64xf32>
    %64 = tpu.matmul %62, %63, %cst_13 {dimension_numbers = #tpu.dot_dimension_numbers<[1], [0], [0], [1], [0, 0, 1, 1], [], []>} : vector<256x128xbf16>, vector<128x64xbf16>, vector<256x64xf32> -> vector<256x64xf32>
    %65 = arith.addf %61, %64 : vector<256x64xf32>
    %66 = arith.truncf %56 : vector<256x128xf32> to vector<256x128xbf16>
    %67 = vector.extract_strided_slice %58 {offsets = [256, 0], sizes = [128, 64], strides = [1, 1]} : vector<512x64xbf16> to vector<128x64xbf16>
    %cst_14 = arith.constant dense<0.000000e+00> : vector<256x64xf32>
    %68 = tpu.matmul %66, %67, %cst_14 {dimension_numbers = #tpu.dot_dimension_numbers<[1], [0], [0], [1], [0, 0, 1, 1], [], []>} : vector<256x128xbf16>, vector<128x64xbf16>, vector<256x64xf32> -> vector<256x64xf32>
    %69 = arith.addf %65, %68 : vector<256x64xf32>
    %70 = arith.truncf %57 : vector<256x128xf32> to vector<256x128xbf16>
    %71 = vector.extract_strided_slice %58 {offsets = [384, 0], sizes = [128, 64], strides = [1, 1]} : vector<512x64xbf16> to vector<128x64xbf16>
    %cst_15 = arith.constant dense<0.000000e+00> : vector<256x64xf32>
    %72 = tpu.matmul %70, %71, %cst_15 {dimension_numbers = #tpu.dot_dimension_numbers<[1], [0], [0], [1], [0, 0, 1, 1], [], []>} : vector<256x128xbf16>, vector<128x64xbf16>, vector<256x64xf32> -> vector<256x64xf32>
    %73 = arith.addf %69, %72 : vector<256x64xf32>
    %c0_16 = arith.constant 0 : index
    %c0_17 = arith.constant 0 : index
    %74 = vector.load %arg11[%c0_16, %c0_17] : memref<256x64xf32, #tpu.memory_space<vmem>>, vector<256x64xf32>
    tpu.vector_store %arg11[%c0_16, %c0_17], %73 {strides = array<i32>} : memref<256x64xf32, #tpu.memory_space<vmem>>, vector<256x64xf32>,
    %75 = vector.extract_strided_slice %7 {offsets = [0, 0], sizes = [256, 128], strides = [1, 1]} : vector<256x512xf32> to vector<256x128xf32>
    %76 = arith.mulf %54, %75 : vector<256x128xf32>
    %77 = vector.extract_strided_slice %7 {offsets = [0, 128], sizes = [256, 128], strides = [1, 1]} : vector<256x512xf32> to vector<256x128xf32>
    %78 = arith.mulf %55, %77 : vector<256x128xf32>
    %79 = arith.addf %76, %78 : vector<256x128xf32>
    %80 = vector.extract_strided_slice %7 {offsets = [0, 256], sizes = [256, 128], strides = [1, 1]} : vector<256x512xf32> to vector<256x128xf32>
    %81 = arith.mulf %56, %80 : vector<256x128xf32>
    %82 = arith.addf %79, %81 : vector<256x128xf32>
    %83 = vector.extract_strided_slice %7 {offsets = [0, 384], sizes = [256, 128], strides = [1, 1]} : vector<256x512xf32> to vector<256x128xf32>
    %84 = arith.mulf %57, %83 : vector<256x128xf32>
    %85 = arith.addf %82, %84 : vector<256x128xf32>
    %86 = arith.truncf %85 : vector<256x128xf32> to vector<256x128xbf16>
    %c0_18 = arith.constant 0 : index
    %c0_19 = arith.constant 0 : index
    %87 = vector.load %arg5[%c0_18, %c0_19] : memref<128x128xbf16, #tpu.memory_space<vmem>>, vector<128x128xbf16>
    %cst_20 = arith.constant dense<0.000000e+00> : vector<256x128xf32>
    %88 = tpu.matmul %86, %87, %cst_20 {dimension_numbers = #tpu.dot_dimension_numbers<[1], [0], [0], [1], [0, 0, 1, 1], [], []>} : vector<256x128xbf16>, vector<128x128xbf16>, vector<256x128xf32> -> vector<256x128xf32>
    %c0_21 = arith.constant 0 : index
    %c0_22 = arith.constant 0 : index
    %89 = vector.load %arg6[%c0_21, %c0_22] : memref<1x128xf32, #tpu.memory_space<vmem>>, vector<1x128xf32>
    %90 = vector.broadcast %89 : vector<1x128xf32> to vector<256x128xf32>
    %91 = arith.addf %88, %90 : vector<256x128xf32>
    %92 = arith.addf %91, %6 : vector<256x128xf32>
    %c0_23 = arith.constant 0 : index
    %c0_24 = arith.constant 0 : index
    %93 = vector.load %arg7[%c0_23, %c0_24] : memref<128x128xbf16, #tpu.memory_space<vmem>>, vector<128x128xbf16>
    %94 = arith.truncf %92 : vector<256x128xf32> to vector<256x128xbf16>
    %cst_25 = arith.constant dense<0.000000e+00> : vector<256x128xf32>
    %95 = tpu.matmul %94, %93, %cst_25 {dimension_numbers = #tpu.dot_dimension_numbers<[1], [0], [0], [1], [0, 0, 1, 1], [], []>} : vector<256x128xbf16>, vector<128x128xbf16>, vector<256x128xf32> -> vector<256x128xf32>
    %96 = arith.subf %92, %95 : vector<256x128xf32>
    %97 = arith.mulf %96, %96 : vector<256x128xf32>
    %98 = arith.truncf %97 : vector<256x128xf32> to vector<256x128xbf16>
    %cst_26 = arith.constant dense<0.000000e+00> : vector<256x128xf32>
    %99 = tpu.matmul %98, %93, %cst_26 {dimension_numbers = #tpu.dot_dimension_numbers<[1], [0], [0], [1], [0, 0, 1, 1], [], []>} : vector<256x128xbf16>, vector<128x128xbf16>, vector<256x128xf32> -> vector<256x128xf32>
    %cst_27 = arith.constant 9.99999997E-7 : f32
    %100 = vector.broadcast %cst_27 : f32 to vector<256x128xf32>
    %101 = arith.addf %99, %100 : vector<256x128xf32>
    %102 = math.rsqrt %101 : vector<256x128xf32>
    %103 = arith.mulf %96, %102 : vector<256x128xf32>
    %c0_28 = arith.constant 0 : index
    %c0_29 = arith.constant 0 : index
    %104 = vector.load %arg8[%c0_28, %c0_29] : memref<1x128xf32, #tpu.memory_space<vmem>>, vector<1x128xf32>
    %105 = vector.broadcast %104 : vector<1x128xf32> to vector<256x128xf32>
    %106 = arith.mulf %103, %105 : vector<256x128xf32>
    %c0_30 = arith.constant 0 : index
    %c0_31 = arith.constant 0 : index
    %107 = vector.load %arg9[%c0_30, %c0_31] : memref<1x128xf32, #tpu.memory_space<vmem>>, vector<1x128xf32>
    %108 = vector.broadcast %107 : vector<1x128xf32> to vector<256x128xf32>
    %109 = arith.addf %106, %108 : vector<256x128xf32>
    %c0_32 = arith.constant 0 : index
    %c0_33 = arith.constant 0 : index
    %110 = vector.load %arg10[%c0_32, %c0_33] : memref<256x128xf32, #tpu.memory_space<vmem>>, vector<256x128xf32>
    tpu.vector_store %arg10[%c0_32, %c0_33], %109 {strides = array<i32>} : memref<256x128xf32, #tpu.memory_space<vmem>>, vector<256x128xf32>,
    return
  }
  func.func @transform_0(%arg0: i32) -> (i32, i32) {
    %c0_i32 = arith.constant 0 : i32
    %c0_i32_0 = arith.constant 0 : i32
    return %arg0, %c0_i32 : i32, i32
  }
  func.func @transform_1(%arg0: i32) -> (i32, i32) {
    %c0_i32 = arith.constant 0 : i32
    %c0_i32_0 = arith.constant 0 : i32
    %c0_i32_1 = arith.constant 0 : i32
    return %c0_i32, %c0_i32_0 : i32, i32
  }
  func.func @transform_2(%arg0: i32) -> (i32, i32) {
    %c0_i32 = arith.constant 0 : i32
    %c0_i32_0 = arith.constant 0 : i32
    %c0_i32_1 = arith.constant 0 : i32
    return %c0_i32, %c0_i32_0 : i32, i32
  }
  func.func @transform_3(%arg0: i32) -> (i32, i32) {
    %c0_i32 = arith.constant 0 : i32
    %c0_i32_0 = arith.constant 0 : i32
    %c0_i32_1 = arith.constant 0 : i32
    return %c0_i32, %c0_i32_0 : i32, i32
  }
  func.func @transform_4(%arg0: i32) -> (i32, i32) {
    %c0_i32 = arith.constant 0 : i32
    %c0_i32_0 = arith.constant 0 : i32
    %c0_i32_1 = arith.constant 0 : i32
    return %c0_i32, %c0_i32_0 : i32, i32
  }
  func.func @transform_5(%arg0: i32) -> (i32, i32) {
    %c0_i32 = arith.constant 0 : i32
    %c0_i32_0 = arith.constant 0 : i32
    %c0_i32_1 = arith.constant 0 : i32
    return %c0_i32, %c0_i32_0 : i32, i32
  }
  func.func @transform_6(%arg0: i32) -> (i32, i32) {
    %c0_i32 = arith.constant 0 : i32
    %c0_i32_0 = arith.constant 0 : i32
    %c0_i32_1 = arith.constant 0 : i32
    return %c0_i32, %c0_i32_0 : i32, i32
  }
  func.func @transform_7(%arg0: i32) -> (i32, i32) {
    %c0_i32 = arith.constant 0 : i32
    %c0_i32_0 = arith.constant 0 : i32
    %c0_i32_1 = arith.constant 0 : i32
    return %c0_i32, %c0_i32_0 : i32, i32
  }
  func.func @transform_8(%arg0: i32) -> (i32, i32) {
    %c0_i32 = arith.constant 0 : i32
    %c0_i32_0 = arith.constant 0 : i32
    %c0_i32_1 = arith.constant 0 : i32
    return %c0_i32, %c0_i32_0 : i32, i32
  }
  func.func @transform_9(%arg0: i32) -> (i32, i32) {
    %c0_i32 = arith.constant 0 : i32
    %c0_i32_0 = arith.constant 0 : i32
    return %arg0, %c0_i32 : i32, i32
  }
  func.func @transform_10(%arg0: i32) -> (i32, i32) {
    %c0_i32 = arith.constant 0 : i32
    %c0_i32_0 = arith.constant 0 : i32
    return %arg0, %c0_i32 : i32, i32
  }
}

</mosaic_0001>

<bundles_post_ra>
// kernel: tpu_custom_call.1
= control target key start
LH: loop header
LB: loop body
LE: loop exit
PB: predicated region body
PF: predicated region fallthrough
CT: control target
= control target key end

     0   :  { %16 = vsyncpa [#allocation3], 0  ;;  %s12383_s0 = inlined_call_operand.vmem [shape: f32[256,128], index: 0, kind: input, shape index: {}]   ;;  %s12384_s1 = inlined_call_operand.hbm [shape: bf16[128,1280], index: 1, kind: input, shape index: {}]   ;;  %s12385_s2 = inlined_call_operand.vmem [shape: bf16[128,128], index: 2, kind: input, shape index: {}]   ;;  %s12386_s3 = inlined_call_operand.vmem [shape: bf16[512,64], index: 3, kind: input, shape index: {}]   ;;  %s12387_s4 = inlined_call_operand.vmem [shape: bf16[128,128], index: 4, kind: input, shape index: {}]   ;;  %s12388_s5 = inlined_call_operand.vmem [shape: f32[1,128], index: 5, kind: input, shape index: {}]   ;;  %s12389_s6 = inlined_call_operand.hbm [shape: bf16[128,128], index: 6, kind: input, shape index: {}]   ;;  %s12390_s7 = inlined_call_operand.vmem [shape: f32[1,128], index: 7, kind: input, shape index: {}]   ;;  %s12391_s8 = inlined_call_operand.vmem [shape: f32[1,128], index: 8, kind: input, shape index: {}]   ;;  %s12392_s9 = inlined_call_operand.hbm [shape: f32[256,128], index: 9, kind: output, shape index: {0}]   ;;  %s12393_s10 = inlined_call_operand.vmem [shape: f32[256,64], index: 10, kind: output, shape index: {1}]  }
   0x1   :  { %17 = vsyncpa [#allocation6], 0 }
   0x2   :  { %18 = vsyncpa [#allocation4], 0  ;;  %s7602_s13 = smov [#allocation2]   ;;  %s7530_s17 = scalar_lea.hbm %s12384_s1, 10240 }
   0x3   :  { %s26_s14 = sshll.u32 %s7602_s13, 4  ;;  %p7531_p0 = scmp.ne.s32.totalorder %s12384_s1, %s7530_s17  ;;  %s27_s14 = int_to_ptr.vmem [resolvable:$true] %s26_s14 }
   0x4   :  { %p7534_p1 = scmp.lt.u32.totalorder %s7530_s17, %s12384_s1 }
   0x6   :  { %p7536_p2 = pnand %p7534_p1, %p7531_p0 }
   0x8   :  { %7539 = shalt.err (!%p7536_p2)
}
   0x9   :  { %s7540_s22 = scalar_lea.vmem %s27_s14, 10240  ;;  %p7545_p4 = scmp.lt.s32.totalorder %s27_s14, %s27_s14 }
   0xa   :  { %p7541_p3 = scmp.ne.s32.totalorder %s27_s14, %s7540_s22  ;;  %p7546_p5 = scmp.lt.s32.totalorder %s7540_s22, %s7540_s22 }
   0xc   :  { %p7547_p6 = por %p7546_p5, %p7545_p4 }
   0xe   :  { %p7548_p7 = pnand %p7547_p6, %p7541_p3 }
  0x10   :  { %7551 = shalt.err (!%p7548_p7)
}
  0x11   :  { %s7603_s23 = smov 640   ;;  %s7604_s24 = smov 40  }
  0x12   :  { %32 = dma.hbm_to_vmem [thread:$0]  %s12384_s1, 10240, %s27_s14, [#allocation3], %s7603_s23, %s7603_s23, %s7604_s24  }
  0x13   :  { %s7605_s27 = smov [#allocation5]   ;;  %s7552_s11 = scalar_lea.hbm %s12389_s6, 1024 }
  0x14   :  { %s46_s28 = sshll.u32 %s7605_s27, 4  ;;  %p7553_p8 = scmp.ne.s32.totalorder %s12389_s6, %s7552_s11  ;;  %s47_s28 = int_to_ptr.vmem [resolvable:$true] %s46_s28 }
  0x15   :  { %p7556_p9 = scmp.lt.u32.totalorder %s7552_s11, %s12389_s6 }
  0x17   :  { %p7558_p10 = pnand %p7556_p9, %p7553_p8 }
  0x19   :  { %7561 = shalt.err (!%p7558_p10)
}
  0x1a   :  { %s7562_s17 = scalar_lea.vmem %s47_s28, 1024  ;;  %p7567_p12 = scmp.lt.s32.totalorder %s47_s28, %s47_s28 }
  0x1b   :  { %p7563_p11 = scmp.ne.s32.totalorder %s47_s28, %s7562_s17  ;;  %p7568_p13 = scmp.lt.s32.totalorder %s7562_s17, %s7562_s17 }
  0x1d   :  { %p7569_p0 = por %p7568_p13, %p7567_p12 }
  0x1f   :  { %p7570_p1 = pnand %p7569_p0, %p7563_p11 }
  0x21   :  { %7573 = shalt.err (!%p7570_p1)
}
  0x22   :  { %s7606_s1 = smov 64   ;;  %s7607_s14 = smov 4  }
  0x23   :  { %52 = dma.hbm_to_vmem [thread:$0]  %s12389_s6, 1024, %s47_s28, [#allocation6], %s7606_s1, %s7606_s1, %s7607_s14  }
  0x24   :  { %7596 = dma.done.wait [#allocation3], 10240  }
  0x25   :  { %7597 = vsyncadd [#allocation3], 4294957056 }
  0x26   :  { %7598 = dma.done.wait [#allocation6], 1024  }
  0x27   :  { %7599 = vsyncadd [#allocation6], 4294966272  ;;  %v12394_v0 = vmov 0   ;;  %v6905_v1 = vld [vmem:[#allocation2 + $0x4] ss:$40 sps:$4 sm:$0xff]   ;;  %v66_v28 = vld [vmem:[%s12383_s0 + $0x10] sm:$0xff] }
  0x28   :  { %624 = vmatprep.mubr.bf16.mxu0 %v12394_v0  ;;  %744 = vmatprep.mubr.bf16.mxu1 %v12394_v0  ;;  %v6907_v2 = vld [vmem:[#allocation2] ss:$40 sps:$4 sm:$0xff]   ;;  %v6908_v3 = vld [vmem:[#allocation2 + $0x54] ss:$40 sps:$4 sm:$0xff]   ;;  %v6910_v4 = vld [vmem:[#allocation2 + $0x50] ss:$40 sps:$4 sm:$0xff]  }
  0x29   :  { %592 = vmatprep.subr.bf16.mxu0 %v6905_v1  ;;  %6783 = vmatprep.subr.bf16.mxu1 %v6905_v1  ;;  %v6911_v5 = vld [vmem:[#allocation2 + $0xa4] ss:$40 sps:$4 sm:$0xff]   ;;  %v6913_v6 = vld [vmem:[#allocation2 + $0xa0] ss:$40 sps:$4 sm:$0xff]   ;;  %v6914_v7 = vld [vmem:[#allocation2 + $0xf4] ss:$40 sps:$4 sm:$0xff]  }
  0x2a   :  { %593 = vmatpush1.bf16.msra.mxu0 %v6907_v2  ;;  %6791 = vmatpush1.bf16.msra.mxu1 %v6907_v2  ;;  %v6916_v8 = vld [vmem:[#allocation2 + $0xf0] ss:$40 sps:$4 sm:$0xff]   ;;  %v6917_v9 = vld [vmem:[#allocation2 + $0x144] ss:$40 sps:$4 sm:$0xff]   ;;  %v6919_v10 = vld [vmem:[#allocation2 + $0x140] ss:$40 sps:$4 sm:$0xff]  }
  0x2b   :  { %594 = vmatprep.subr.bf16.mxu0 %v6908_v3  ;;  %6784 = vmatprep.subr.bf16.mxu1 %v6908_v3  ;;  %v6920_v11 = vld [vmem:[#allocation2 + $0x194] ss:$40 sps:$4 sm:$0xff]   ;;  %v6922_v12 = vld [vmem:[#allocation2 + $0x190] ss:$40 sps:$4 sm:$0xff]   ;;  %v6923_v13 = vld [vmem:[#allocation2 + $0x1e4] ss:$40 sps:$4 sm:$0xff]  }
  0x2c   :  { %v6925_v14 = vld [vmem:[#allocation2 + $0x1e0] ss:$40 sps:$4 sm:$0xff]   ;;  %v6926_v15 = vld [vmem:[#allocation2 + $0x234] ss:$40 sps:$4 sm:$0xff]   ;;  %v6928_v16 = vld [vmem:[#allocation2 + $0x230] ss:$40 sps:$4 sm:$0xff]  }
  0x2d   :  { %v64_v17 = vld [vmem:[%s12383_s0] sm:$0xff]  ;;  %v65_v18 = vld [vmem:[%s12383_s0 + $0x8] sm:$0xff]  ;;  %v6958_v22 = vld [vmem:[#allocation2 + $0x14] ss:$40 sps:$4 sm:$0xff]   ;;  %vm4637_vm0 = vcmask 523264  }
  0x2e   :  { %595 = vmatpush1.bf16.msra.mxu0 %v6910_v4  ;;  %6792 = vmatpush1.bf16.msra.mxu1 %v6910_v4  ;;  %v88_v19 = vld [vmem:[%s12383_s0 + $0xc0] sm:$0xff]  ;;  %v89_v20 = vld [vmem:[%s12383_s0 + $0xc8] sm:$0xff]  ;;  %v7705_v23 = vpack.c.bf16 %v65_v18, %v64_v17  ;;  %v6956_v29 = vld [vmem:[#allocation2 + $0x10] ss:$40 sps:$4 sm:$0xff]  }
  0x2f   :  { %596 = vmatprep.subr.bf16.mxu0 %v6911_v5  ;;  %6785 = vmatprep.subr.bf16.mxu1 %v6911_v5  ;;  %v6931_v21 = vld [vmem:[#allocation2 + $0xc] ss:$40 sps:$4 sm:$0xff]   ;;  %v7707_v24 = vpack.c.bf16 %v89_v20, %v88_v19  ;;  %v6929_v25 = vld [vmem:[#allocation2 + $0x8] ss:$40 sps:$4 sm:$0xff]   ;;  %v6934_v26 = vld [vmem:[#allocation2 + $0x5c] ss:$40 sps:$4 sm:$0xff]  }
  0x30   :  { %v6932_v27 = vld [vmem:[#allocation2 + $0x58] ss:$40 sps:$4 sm:$0xff]   ;;  %v6964_v31 = vld [vmem:[#allocation2 + $0x64] ss:$40 sps:$4 sm:$0xff]   ;;  %v90_v32 = vld [vmem:[%s12383_s0 + $0xd0] sm:$0xff] }
  0x31   :  { %v67_v30 = vld [vmem:[%s12383_s0 + $0x18] sm:$0xff]  ;;  %v6937_v34 = vld [vmem:[#allocation2 + $0xac] ss:$40 sps:$4 sm:$0xff]   ;;  %v6962_v35 = vld [vmem:[#allocation2 + $0x60] ss:$40 sps:$4 sm:$0xff]  }
  0x32   :  { %597 = vmatpush1.bf16.msra.mxu0 %v6913_v6  ;;  %6793 = vmatpush1.bf16.msra.mxu1 %v6913_v6  ;;  %v91_v33 = vld [vmem:[%s12383_s0 + $0xd8] sm:$0xff]  ;;  %v7725_v36 = vpack.c.bf16 %v67_v30, %v66_v28  ;;  %v6935_v38 = vld [vmem:[#allocation2 + $0xa8] ss:$40 sps:$4 sm:$0xff]   ;;  %v68_v41 = vld [vmem:[%s12383_s0 + $0x20] sm:$0xff] }
  0x33   :  { %598 = vmatprep.subr.bf16.mxu0 %v6914_v7  ;;  %6786 = vmatprep.subr.bf16.mxu1 %v6914_v7  ;;  %v7727_v37 = vpack.c.bf16 %v91_v33, %v90_v32  ;;  %v6940_v39 = vld [vmem:[#allocation2 + $0xfc] ss:$40 sps:$4 sm:$0xff]   ;;  %v6938_v40 = vld [vmem:[#allocation2 + $0xf8] ss:$40 sps:$4 sm:$0xff]   ;;  %v69_v42 = vld [vmem:[%s12383_s0 + $0x28] sm:$0xff] }
  0x34   :  { %v92_v43 = vld [vmem:[%s12383_s0 + $0xe0] sm:$0xff]  ;;  %v93_v44 = vld [vmem:[%s12383_s0 + $0xe8] sm:$0xff]  ;;  %v6967_v45 = vld [vmem:[#allocation2 + $0xb4] ss:$40 sps:$4 sm:$0xff]   ;;  %v7745_v49 = vpack.c.bf16 %v69_v42, %v68_v41 }
  0x35   :  { %v6965_v46 = vld [vmem:[#allocation2 + $0xb0] ss:$40 sps:$4 sm:$0xff]   ;;  %v6973_v47 = vld [vmem:[#allocation2 + $0x104] ss:$40 sps:$4 sm:$0xff]   ;;  %v7747_v50 = vpack.c.bf16 %v93_v44, %v92_v43  ;;  %v6971_v55 = vld [vmem:[#allocation2 + $0x100] ss:$40 sps:$4 sm:$0xff]  }
  0x36   :  { %599 = vmatpush1.bf16.msra.mxu0 %v6916_v8  ;;  %6794 = vmatpush1.bf16.msra.mxu1 %v6916_v8  ;;  %v6943_v48 = vld [vmem:[#allocation2 + $0x14c] ss:$40 sps:$4 sm:$0xff]   ;;  %v6941_v51 = vld [vmem:[#allocation2 + $0x148] ss:$40 sps:$4 sm:$0xff]   ;;  %v6946_v52 = vld [vmem:[#allocation2 + $0x19c] ss:$40 sps:$4 sm:$0xff]  }
  0x37   :  { %600 = vmatprep.subr.bf16.mxu0 %v6917_v9  ;;  %6787 = vmatprep.subr.bf16.mxu1 %v6917_v9  ;;  %12778 = vst [vmem:[#allocation11_spill] sm:$0xff] %v7747_v50  ;;  %v6944_v53 = vld [vmem:[#allocation2 + $0x198] ss:$40 sps:$4 sm:$0xff]   ;;  %v70_v54 = vld [vmem:[%s12383_s0 + $0x30] sm:$0xff]  ;;  %v6952_v2 = vld [vmem:[#allocation2 + $0x23c] ss:$40 sps:$4 sm:$0xff]  }
  0x38   :  { %v71_v56 = vld [vmem:[%s12383_s0 + $0x38] sm:$0xff]  ;;  %v94_v58 = vld [vmem:[%s12383_s0 + $0xf0] sm:$0xff]  ;;  %v6982_v3 = vld [vmem:[#allocation2 + $0x1a4] ss:$40 sps:$4 sm:$0xff]  }
  0x39   :  { %v6976_v57 = vld [vmem:[#allocation2 + $0x154] ss:$40 sps:$4 sm:$0xff]   ;;  %v6947_v61 = vld [vmem:[#allocation2 + $0x1e8] ss:$40 sps:$4 sm:$0xff]   ;;  %v7765_v63 = vpack.c.bf16 %v71_v56, %v70_v54  ;;  %v6950_v4 = vld [vmem:[#allocation2 + $0x238] ss:$40 sps:$4 sm:$0xff]  }
  0x3a   :  { %601 = vmatpush1.bf16.msra.mxu0 %v6919_v10  ;;  %6795 = vmatpush1.bf16.msra.mxu1 %v6919_v10  ;;  %v95_v59 = vld [vmem:[%s12383_s0 + $0xf8] sm:$0xff]  ;;  %v6949_v60 = vld [vmem:[#allocation2 + $0x1ec] ss:$40 sps:$4 sm:$0xff]   ;;  %v72_v5 = vld [vmem:[%s12383_s0 + $0x40] sm:$0xff] }
  0x3b   :  { %602 = vmatprep.subr.bf16.mxu0 %v6920_v11  ;;  %6788 = vmatprep.subr.bf16.mxu1 %v6920_v11  ;;  %v6974_v62 = vld [vmem:[#allocation2 + $0x150] ss:$40 sps:$4 sm:$0xff]   ;;  %v7767_v1 = vpack.c.bf16 %v95_v59, %v94_v58  ;;  %v73_v6 = vld [vmem:[%s12383_s0 + $0x48] sm:$0xff]  ;;  %v6955_v7 = vld [vmem:[#allocation2 + $0x1c] ss:$40 sps:$4 sm:$0xff]  }
  0x3c   :  { %v6980_v8 = vld [vmem:[#allocation2 + $0x1a0] ss:$40 sps:$4 sm:$0xff]   ;;  %v6985_v9 = vld [vmem:[#allocation2 + $0x1f4] ss:$40 sps:$4 sm:$0xff]   ;;  %v7779_v11 = vpack.c.bf16 %v73_v6, %v72_v5  ;;  %v6988_v18 = vld [vmem:[#allocation2 + $0x244] ss:$40 sps:$4 sm:$0xff]  }
  0x3d   :  { %12779 = vst [vmem:[#allocation12_spill] sm:$0xff] %v7767_v1  ;;  %v6953_v10 = vld [vmem:[#allocation2 + $0x18] ss:$40 sps:$4 sm:$0xff]   ;;  %v6970_v17 = vld [vmem:[#allocation2 + $0xbc] ss:$40 sps:$4 sm:$0xff]   ;;  %v78_v33 = vld [vmem:[%s12383_s0 + $0x70] sm:$0xff] }
  0x3e   :  { %603 = vmatpush1.bf16.msra.mxu0 %v6922_v12  ;;  %6796 = vmatpush1.bf16.msra.mxu1 %v6922_v12  ;;  %v6961_v12 = vld [vmem:[#allocation2 + $0x6c] ss:$40 sps:$4 sm:$0xff]   ;;  %v6986_v19 = vld [vmem:[#allocation2 + $0x240] ss:$40 sps:$4 sm:$0xff]   ;;  %v87_v56 = vld [vmem:[%s12383_s0 + $0xb8] sm:$0xff] }
  0x3f   :  { %604 = vmatprep.subr.bf16.mxu0 %v6923_v13  ;;  %6789 = vmatprep.subr.bf16.mxu1 %v6923_v13  ;;  %v6983_v13 = vld [vmem:[#allocation2 + $0x1f0] ss:$40 sps:$4 sm:$0xff]   ;;  %v6994_v32 = vld [vmem:[#allocation2 + $0x1ac] ss:$40 sps:$4 sm:$0xff]   ;;  %v80_v42 = vld [vmem:[%s12383_s0 + $0x80] sm:$0xff] }
  0x40   :  { %v6977_v28 = vld [vmem:[#allocation2 + $0x108] ss:$40 sps:$4 sm:$0xff]   ;;  %v7000_v41 = vld [vmem:[#allocation2 + $0x24c] ss:$40 sps:$4 sm:$0xff]  }
  0x41   :  { %v81_v43 = vld [vmem:[%s12383_s0 + $0x88] sm:$0xff]  ;;  %v7007_v59 = vld [vmem:[#allocation2 + $0x74] ss:$40 sps:$4 sm:$0xff]  }
  0x42   :  { %605 = vmatpush1.bf16.msra.mxu0 %v6925_v14  ;;  %6797 = vmatpush1.bf16.msra.mxu1 %v6925_v14  ;;  %v74_v14 = vld [vmem:[%s12383_s0 + $0x50] sm:$0xff]  ;;  %v7001_v58 = vld [vmem:[#allocation2 + $0x20] ss:$40 sps:$4 sm:$0xff]  }
  0x43   :  { %606 = vmatprep.subr.bf16.mxu0 %v6926_v15  ;;  %6790 = vmatprep.subr.bf16.mxu1 %v6926_v15  ;;  %v75_v15 = vld [vmem:[%s12383_s0 + $0x58] sm:$0xff]  ;;  %v6998_v44 = vld [vmem:[#allocation2 + $0x248] ss:$40 sps:$4 sm:$0xff]  }
  0x44   :  { %v7791_v20 = vpack.c.bf16 %v75_v15, %v74_v14  ;;  %v7016_v5 = vld [vmem:[#allocation2 + $0x160] ss:$40 sps:$4 sm:$0xff]   ;;  %v7022_v6 = vld [vmem:[#allocation2 + $0x1b4] ss:$40 sps:$4 sm:$0xff]  }
  0x45   :  { %v7922_v14 = vld [vmem:[%s12385_s2 + $0x10] sm:$0xff]   ;;  %v7929_v15 = vld [vmem:[%s12385_s2 + $0x18] sm:$0xff]  }
  0x46   :  { %607 = vmatpush1.bf16.msra.mxu0 %v6928_v16  ;;  %6798 = vmatpush1.bf16.msra.mxu1 %v6928_v16  ;;  %v6959_v16 = vld [vmem:[#allocation2 + $0x68] ss:$40 sps:$4 sm:$0xff]  }
  0x47   :  { %785 = vmatprep.subr.bf16.mxu1 %v6931_v21  ;;  %978 = vmatprep.subr.bf16.mxu0 %v6958_v22  ;;  %v6968_v21 = vld [vmem:[#allocation2 + $0xb8] ss:$40 sps:$4 sm:$0xff]   ;;  %v7003_v22 = vld [vmem:[#allocation2 + $0x24] ss:$40 sps:$4 sm:$0xff]  }
  0x49   :  { %625 = vmatmul.mubr.bf16.vlgmr.msra.gmra.mrb[0].mxu0 %v7705_v23  ;;  %745 = vmatmul.mubr.bf16.vlgmr.msra.gmra.mrb[0].mxu1 %v7707_v24 }
  0x4a   :  { %786 = vmatpush1.bf16.msra.mxu1 %v6929_v25  ;;  %634 = vmatprep.mubr.bf16.mxu0 %v12394_v0  ;;  %v6979_v25 = vld [vmem:[#allocation2 + $0x10c] ss:$40 sps:$4 sm:$0xff]  }
  0x4b   :  { %787 = vmatprep.subr.bf16.mxu1 %v6934_v26  ;;  %754 = vmatprep.mubr.bf16.mxu1 %v12394_v0  ;;  %v76_v26 = vld [vmem:[%s12383_s0 + $0x60] sm:$0xff] }
  0x4c   :  { %979 = vmatpush1.bf16.msra.mxu0 %v6956_v29  ;;  %v6991_v29 = vld [vmem:[#allocation2 + $0x15c] ss:$40 sps:$4 sm:$0xff]  }
  0x4d   :  { %980 = vmatprep.subr.bf16.mxu0 %v6964_v31  ;;  %v6989_v31 = vld [vmem:[#allocation2 + $0x158] ss:$40 sps:$4 sm:$0xff]  }
  0x4e   :  { %788 = vmatpush1.bf16.msra.mxu1 %v6932_v27  ;;  %v77_v27 = vld [vmem:[%s12383_s0 + $0x68] sm:$0xff] }
  0x4f   :  { %789 = vmatprep.subr.bf16.mxu1 %v6937_v34  ;;  %v7803_v30 = vpack.c.bf16 %v77_v27, %v76_v26  ;;  %v79_v34 = vld [vmem:[%s12383_s0 + $0x78] sm:$0xff] }
  0x50   :  { %981 = vmatpush1.bf16.msra.mxu0 %v6962_v35  ;;  %v6992_v35 = vld [vmem:[#allocation2 + $0x1a8] ss:$40 sps:$4 sm:$0xff]  }
  0x51   :  { %635 = vmatmul.mubr.bf16.gmra.mrb[4].mxu0 %v7725_v36  ;;  %755 = vmatmul.mubr.bf16.gmra.mrb[4].mxu1 %v7727_v37 }
  0x52   :  { %790 = vmatpush1.bf16.msra.mxu1 %v6935_v38  ;;  %644 = vmatprep.mubr.bf16.mxu0 %v12394_v0  ;;  %v6997_v38 = vld [vmem:[#allocation2 + $0x1fc] ss:$40 sps:$4 sm:$0xff]  }
  0x53   :  { %791 = vmatprep.subr.bf16.mxu1 %v6940_v39  ;;  %764 = vmatprep.mubr.bf16.mxu1 %v12394_v0  ;;  %v7815_v39 = vpack.c.bf16 %v79_v34, %v78_v33 }
  0x54   :  { %982 = vmatprep.subr.bf16.mxu0 %v6967_v45  ;;  %v7830_v45 = vld [vmem:[%s12385_s2] sm:$0xff]  }
  0x55   :  { %983 = vmatpush1.bf16.msra.mxu0 %v6965_v46  ;;  %v7832_v46 = vpack.c.bf16 %v81_v43, %v80_v42 }
  0x56   :  { %792 = vmatpush1.bf16.msra.mxu1 %v6938_v40  ;;  %984 = vmatprep.subr.bf16.mxu0 %v6973_v47  ;;  %v6995_v40 = vld [vmem:[#allocation2 + $0x1f8] ss:$40 sps:$4 sm:$0xff]   ;;  %v82_v47 = vld [vmem:[%s12383_s0 + $0x90] sm:$0xff] }
  0x57   :  { %793 = vmatprep.subr.bf16.mxu1 %v6943_v48  ;;  %v83_v48 = vld [vmem:[%s12383_s0 + $0x98] sm:$0xff] }
  0x59   :  { %645 = vmatmul.mubr.bf16.gmra.mrb[8].mxu0 %v7745_v49  ;;  %765 = vmatmul.mubr.bf16.gmra.mrb[8].mxu1 %v7747_v50 }
  0x5a   :  { %794 = vmatpush1.bf16.msra.mxu1 %v6941_v51  ;;  %654 = vmatprep.mubr.bf16.mxu0 %v12394_v0  ;;  %v7845_v51 = vpack.c.bf16 %v83_v48, %v82_v47 }
  0x5b   :  { %795 = vmatprep.subr.bf16.mxu1 %v6946_v52  ;;  %774 = vmatprep.mubr.bf16.mxu1 %v12394_v0  ;;  %v84_v52 = vld [vmem:[%s12383_s0 + $0xa0] sm:$0xff] }
  0x5c   :  { %985 = vmatpush1.bf16.msra.mxu0 %v6971_v55  ;;  %v86_v55 = vld [vmem:[%s12383_s0 + $0xb0] sm:$0xff] }
  0x5d   :  { %986 = vmatprep.subr.bf16.mxu0 %v6976_v57  ;;  %v7869_v57 = vpack.c.bf16 %v87_v56, %v86_v55 }
  0x5e   :  { %796 = vmatpush1.bf16.msra.mxu1 %v6944_v53  ;;  %v85_v53 = vld [vmem:[%s12383_s0 + $0xa8] sm:$0xff] }
  0x5f   :  { %797 = vmatprep.subr.bf16.mxu1 %v6949_v60  ;;  %v7857_v54 = vpack.c.bf16 %v85_v53, %v84_v52  ;;  %v7005_v60 = vld [vmem:[#allocation2 + $0x70] ss:$40 sps:$4 sm:$0xff]  }
  0x60   :  { %987 = vmatpush1.bf16.msra.mxu0 %v6974_v62  ;;  %v7009_v62 = vld [vmem:[#allocation2 + $0xc0] ss:$40 sps:$4 sm:$0xff]  }
  0x61   :  { %655 = vmatmul.mubr.bf16.gmra.mrb[12].mxu0 %v7765_v63  ;;  %775 = vmatmul.mubr.bf16.gmra.mrb[12].mxu1 %v7767_v1 }
  0x62   :  { %798 = vmatpush1.bf16.msra.mxu1 %v6947_v61  ;;  %664 = vmatprep.mubr.bf16.mxu0 %v12394_v0  ;;  %v7011_v61 = vld [vmem:[#allocation2 + $0xc4] ss:$40 sps:$4 sm:$0xff]  }
  0x63   :  { %799 = vmatprep.subr.bf16.mxu1 %v6952_v2  ;;  %817 = vmatprep.mubr.bf16.mxu1 %v12394_v0  ;;  %v7015_v2 = vld [vmem:[#allocation2 + $0x114] ss:$40 sps:$4 sm:$0xff]  }
  0x64   :  { %988 = vmatprep.subr.bf16.mxu0 %v6982_v3  ;;  %v7013_v3 = vld [vmem:[#allocation2 + $0x110] ss:$40 sps:$4 sm:$0xff]  }
  0x65   :  { %989 = vmatpush1.bf16.msra.mxu0 %v6980_v8  ;;  %v7025_v8 = vld [vmem:[#allocation2 + $0x204] ss:$40 sps:$4 sm:$0xff]  }
  0x66   :  { %800 = vmatpush1.bf16.msra.mxu1 %v6950_v4  ;;  %990 = vmatprep.subr.bf16.mxu0 %v6985_v9  ;;  %v7018_v4 = vld [vmem:[#allocation2 + $0x164] ss:$40 sps:$4 sm:$0xff]   ;;  %v7023_v9 = vld [vmem:[#allocation2 + $0x200] ss:$40 sps:$4 sm:$0xff]  }
  0x67   :  { %1171 = vmatprep.subr.bf16.mxu1 %v6955_v7  ;;  %v7020_v7 = vld [vmem:[#allocation2 + $0x1b0] ss:$40 sps:$4 sm:$0xff]  }
  0x69   :  { %665 = vmatmul.mubr.bf16.gmra.mrb[16].mxu0 %v7779_v11  ;;  %818 = vmatmul.mubr.bf16.vlgmr.msra.gmra.mrb[16].mxu1 %v7705_v23 }
  0x6a   :  { %1172 = vmatpush1.bf16.msra.mxu1 %v6953_v10  ;;  %674 = vmatprep.mubr.bf16.mxu0 %v12394_v0  ;;  %v7028_v10 = vld [vmem:[#allocation2 + $0x254] ss:$40 sps:$4 sm:$0xff]  }
  0x6b   :  { %827 = vmatprep.mubr.bf16.mxu1 %v12394_v0  ;;  %1173 = vmatprep.subr.bf16.mxu1 %v6961_v12  ;;  %v7026_v12 = vld [vmem:[#allocation2 + $0x250] ss:$40 sps:$4 sm:$0xff]  }
  0x6c   :  { %991 = vmatpush1.bf16.msra.mxu0 %v6983_v13  ;;  %v7911_v13 = vld [vmem:[%s12385_s2 + $0x8] sm:$0xff]  }
  0x6d   :  { %992 = vmatprep.subr.bf16.mxu0 %v6988_v18  ;;  %v7958_v18 = vld [vmem:[%s12385_s2 + $0x30] sm:$0xff]  }
  0x6e   :  { %1174 = vmatpush1.bf16.msra.mxu1 %v6959_v16  ;;  %v7940_v16 = vld [vmem:[%s12385_s2 + $0x20] sm:$0xff]  }
  0x6f   :  { %1175 = vmatprep.subr.bf16.mxu1 %v6970_v17  ;;  %v7947_v17 = vld [vmem:[%s12385_s2 + $0x28] sm:$0xff]  }
  0x70   :  { %993 = vmatpush1.bf16.msra.mxu0 %v6986_v19  ;;  %v7965_v19 = vld [vmem:[%s12385_s2 + $0x38] sm:$0xff]  }
  0x71   :  { %675 = vmatmul.mubr.bf16.gmra.mrb[20].mxu0 %v7791_v20  ;;  %828 = vmatmul.mubr.bf16.gmra.mrb[20].mxu1 %v7725_v36 }
  0x72   :  { %684 = vmatprep.mubr.bf16.mxu0 %v12394_v0  ;;  %837 = vmatprep.mubr.bf16.mxu1 %v12394_v0 }
  0x73   :  { %1176 = vmatpush1.bf16.msra.mxu1 %v6968_v21  ;;  %1364 = vmatprep.subr.bf16.mxu0 %v7003_v22 }
  0x74   :  { %1177 = vmatprep.subr.bf16.mxu1 %v6979_v25 }
  0x77   :  { %1178 = vmatpush1.bf16.msra.mxu1 %v6977_v28 }
  0x78   :  { %1179 = vmatprep.subr.bf16.mxu1 %v6991_v29 }
  0x79   :  { %685 = vmatmul.mubr.bf16.gmra.mrb[24].mxu0 %v7803_v30  ;;  %838 = vmatmul.mubr.bf16.gmra.mrb[24].mxu1 %v7745_v49 }
  0x7a   :  { %694 = vmatprep.mubr.bf16.mxu0 %v12394_v0  ;;  %847 = vmatprep.mubr.bf16.mxu1 %v12394_v0 }
  0x7b   :  { %1180 = vmatpush1.bf16.msra.mxu1 %v6989_v31 }
  0x7c   :  { %1181 = vmatprep.subr.bf16.mxu1 %v6994_v32 }
  0x7f   :  { %1182 = vmatpush1.bf16.msra.mxu1 %v6992_v35 }
  0x80   :  { %1183 = vmatprep.subr.bf16.mxu1 %v6997_v38 }
  0x81   :  { %695 = vmatmul.mubr.bf16.gmra.mrb[28].mxu0 %v7815_v39  ;;  %848 = vmatmul.mubr.bf16.gmra.mrb[28].mxu1 %v7765_v63 }
  0x82   :  { %704 = vmatprep.mubr.bf16.mxu0 %v12394_v0  ;;  %857 = vmatprep.mubr.bf16.mxu1 %v12394_v0 }
  0x83   :  { %1184 = vmatpush1.bf16.msra.mxu1 %v6995_v40 }
  0x84   :  { %1185 = vmatprep.subr.bf16.mxu1 %v7000_v41 }
  0x87   :  { %1186 = vmatpush1.bf16.msra.mxu1 %v6998_v44 }
  0x88   :  { %6255 = vmatprep.subr.bf16.mxu1 %v7830_v45 }
  0x89   :  { %705 = vmatmul.mubr.bf16.gmra.mrb[32].mxu0 %v7832_v46  ;;  %858 = vmatmul.mubr.bf16.gmra.mrb[32].mxu1 %v7779_v11 }
  0x8a   :  { %714 = vmatprep.mubr.bf16.mxu0 %v12394_v0  ;;  %867 = vmatprep.mubr.bf16.mxu1 %v12394_v0 }
  0x91   :  { %715 = vmatmul.mubr.bf16.gmra.mrb[36].mxu0 %v7845_v51  ;;  %868 = vmatmul.mubr.bf16.gmra.mrb[36].mxu1 %v7791_v20 }
  0x92   :  { %724 = vmatprep.mubr.bf16.mxu0 %v12394_v0  ;;  %877 = vmatprep.mubr.bf16.mxu1 %v12394_v0 }
  0x99   :  { %725 = vmatmul.mubr.bf16.gmra.mrb[40].mxu0 %v7857_v54  ;;  %878 = vmatmul.mubr.bf16.gmra.mrb[40].mxu1 %v7803_v30 }
  0x9a   :  { %734 = vmatprep.mubr.bf16.mxu0 %v12394_v0  ;;  %887 = vmatprep.mubr.bf16.mxu1 %v12394_v0 }
  0xa1   :  { %735 = vmatmul.mubr.bf16.gmra.mrb[44].mxu0 %v7869_v57  ;;  %888 = vmatmul.mubr.bf16.gmra.mrb[44].mxu1 %v7815_v39 }
  0xa2   :  { %897 = vmatprep.mubr.bf16.mxu1 %v12394_v0  ;;  %1010 = vmatprep.mubr.bf16.mxu0 %v12394_v0 }
  0xa9   :  { %898 = vmatmul.mubr.bf16.gmra.mrb[48].mxu1 %v7832_v46  ;;  %1011 = vmatmul.mubr.bf16.vlgmr.msra.gmra.mrb[48].mxu0 %v7705_v23 }
  0xaa   :  { %907 = vmatprep.mubr.bf16.mxu1 %v12394_v0  ;;  %1020 = vmatprep.mubr.bf16.mxu0 %v12394_v0 }
  0xab   :  { %1365 = vmatpush1.bf16.msra.mxu0 %v7001_v58 }
  0xac   :  { %1366 = vmatprep.subr.bf16.mxu0 %v7007_v59 }
  0xaf   :  { %1367 = vmatpush1.bf16.msra.mxu0 %v7005_v60 }
  0xb0   :  { %1368 = vmatprep.subr.bf16.mxu0 %v7011_v61 }
  0xb1   :  { %908 = vmatmul.mubr.bf16.gmra.mrb[52].mxu1 %v7845_v51  ;;  %1021 = vmatmul.mubr.bf16.gmra.mrb[52].mxu0 %v7725_v36 }
  0xb2   :  { %917 = vmatprep.mubr.bf16.mxu1 %v12394_v0  ;;  %1030 = vmatprep.mubr.bf16.mxu0 %v12394_v0 }
  0xb3   :  { %1369 = vmatpush1.bf16.msra.mxu0 %v7009_v62 }
  0xb4   :  { %1370 = vmatprep.subr.bf16.mxu0 %v7015_v2 }
  0xb7   :  { %1371 = vmatpush1.bf16.msra.mxu0 %v7013_v3 }
  0xb8   :  { %1372 = vmatprep.subr.bf16.mxu0 %v7018_v4 }
  0xb9   :  { %918 = vmatmul.mubr.bf16.gmra.mrb[56].mxu1 %v7857_v54  ;;  %1031 = vmatmul.mubr.bf16.gmra.mrb[56].mxu0 %v7745_v49 }
  0xba   :  { %927 = vmatprep.mubr.bf16.mxu1 %v12394_v0  ;;  %1040 = vmatprep.mubr.bf16.mxu0 %v12394_v0 }
  0xbb   :  { %1373 = vmatpush1.bf16.msra.mxu0 %v7016_v5 }
  0xbc   :  { %1374 = vmatprep.subr.bf16.mxu0 %v7022_v6 }
  0xbf   :  { %1375 = vmatpush1.bf16.msra.mxu0 %v7020_v7 }
  0xc0   :  { %1376 = vmatprep.subr.bf16.mxu0 %v7025_v8 }
  0xc1   :  { %928 = vmatmul.mubr.bf16.gmra.mrb[60].mxu1 %v7869_v57  ;;  %1041 = vmatmul.mubr.bf16.gmra.mrb[60].mxu0 %v7765_v63 }
  0xc2   :  { %937 = vmatprep.mubr.bf16.mxu1 %v12394_v0  ;;  %1050 = vmatprep.mubr.bf16.mxu0 %v12394_v0 }
  0xc3   :  { %1377 = vmatpush1.bf16.msra.mxu0 %v7023_v9 }
  0xc4   :  { %1378 = vmatprep.subr.bf16.mxu0 %v7028_v10 }
  0xc7   :  { %1379 = vmatpush1.bf16.msra.mxu0 %v7026_v12 }
  0xc8   :  { %6351 = vmatprep.subr.bf16.mxu0 %v7830_v45 }
  0xc9   :  { %938 = vmatmul.mubr.bf16.gmra.mrb[64].mxu1 %v7707_v24  ;;  %1051 = vmatmul.mubr.bf16.gmra.mrb[64].mxu0 %v7779_v11 }
  0xca   :  { %947 = vmatprep.mubr.bf16.mxu1 %v12394_v0  ;;  %1060 = vmatprep.mubr.bf16.mxu0 %v12394_v0 }
  0xd1   :  { %948 = vmatmul.mubr.bf16.gmra.mrb[68].mxu1 %v7727_v37  ;;  %1061 = vmatmul.mubr.bf16.gmra.mrb[68].mxu0 %v7791_v20 }
  0xd2   :  { %957 = vmatprep.mubr.bf16.mxu1 %v12394_v0  ;;  %1070 = vmatprep.mubr.bf16.mxu0 %v12394_v0 }
  0xd9   :  { %958 = vmatmul.mubr.bf16.gmra.mrb[72].mxu1 %v7747_v50  ;;  %1071 = vmatmul.mubr.bf16.gmra.mrb[72].mxu0 %v7803_v30 }
  0xda   :  { %967 = vmatprep.mubr.bf16.mxu1 %v12394_v0  ;;  %1080 = vmatprep.mubr.bf16.mxu0 %v12394_v0 }
  0xe1   :  { %968 = vmatmul.mubr.bf16.gmra.mrb[76].mxu1 %v7767_v1  ;;  %1081 = vmatmul.mubr.bf16.gmra.mrb[76].mxu0 %v7815_v39 }
  0xe2   :  { %1090 = vmatprep.mubr.bf16.mxu0 %v12394_v0  ;;  %1203 = vmatprep.mubr.bf16.mxu1 %v12394_v0 }
  0xe9   :  { %1091 = vmatmul.mubr.bf16.gmra.mrb[80].mxu0 %v7832_v46  ;;  %1204 = vmatmul.mubr.bf16.vlgmr.msra.gmra.mrb[80].mxu1 %v7705_v23 }
  0xea   :  { %6256 = vmatpush3.bf16.msra.mxu1 %v7830_v45  ;;  %1100 = vmatprep.mubr.bf16.mxu0 %v12394_v0 }
  0xeb   :  { %1213 = vmatprep.mubr.bf16.mxu1 %v12394_v0  ;;  %6257 = vmatprep.subr.bf16.mxu1 %v7911_v13 }
  0xee   :  { %6258 = vmatpush3.bf16.msra.mxu1 %v7911_v13 }
  0xef   :  { %6259 = vmatprep.subr.bf16.mxu1 %v7922_v14 }
  0xf1   :  { %1101 = vmatmul.mubr.bf16.gmra.mrb[84].mxu0 %v7845_v51  ;;  %1214 = vmatmul.mubr.bf16.gmra.mrb[84].mxu1 %v7725_v36 }
  0xf2   :  { %1110 = vmatprep.mubr.bf16.mxu0 %v12394_v0  ;;  %1223 = vmatprep.mubr.bf16.mxu1 %v12394_v0 }
  0xf3   :  { %6260 = vmatpush3.bf16.msra.mxu1 %v7922_v14 }
  0xf4   :  { %6261 = vmatprep.subr.bf16.mxu1 %v7929_v15 }
  0xf7   :  { %6262 = vmatpush3.bf16.msra.mxu1 %v7929_v15 }
  0xf8   :  { %6263 = vmatprep.subr.bf16.mxu1 %v7940_v16 }
  0xf9   :  { %1111 = vmatmul.mubr.bf16.gmra.mrb[88].mxu0 %v7857_v54  ;;  %1224 = vmatmul.mubr.bf16.gmra.mrb[88].mxu1 %v7745_v49 }
  0xfa   :  { %1120 = vmatprep.mubr.bf16.mxu0 %v12394_v0  ;;  %1233 = vmatprep.mubr.bf16.mxu1 %v12394_v0 }
  0xfb   :  { %6264 = vmatpush3.bf16.msra.mxu1 %v7940_v16 }
  0xfc   :  { %6265 = vmatprep.subr.bf16.mxu1 %v7947_v17 }
  0xff   :  { %6266 = vmatpush3.bf16.msra.mxu1 %v7947_v17 }
 0x100   :  { %6267 = vmatprep.subr.bf16.mxu1 %v7958_v18 }
 0x101   :  { %1121 = vmatmul.mubr.bf16.gmra.mrb[92].mxu0 %v7869_v57  ;;  %1234 = vmatmul.mubr.bf16.gmra.mrb[92].mxu1 %v7765_v63 }
 0x102   :  { %1130 = vmatprep.mubr.bf16.mxu0 %v12394_v0  ;;  %1243 = vmatprep.mubr.bf16.mxu1 %v12394_v0 }
 0x103   :  { %6268 = vmatpush3.bf16.msra.mxu1 %v7958_v18 }
 0x104   :  { %6269 = vmatprep.subr.bf16.mxu1 %v7965_v19 }
 0x107   :  { %6270 = vmatpush3.bf16.msra.mxu1 %v7965_v19 }
 0x108   :  { %6303 = vmatprep.subr.bf16.mxu1 %v7830_v45 }
 0x109   :  { %1131 = vmatmul.mubr.bf16.gmra.mrb[96].mxu0 %v7707_v24  ;;  %1244 = vmatmul.mubr.bf16.gmra.mrb[96].mxu1 %v7779_v11 }
 0x10a   :  { %1140 = vmatprep.mubr.bf16.mxu0 %v12394_v0  ;;  %1253 = vmatprep.mubr.bf16.mxu1 %v12394_v0 }
 0x111   :  { %1141 = vmatmul.mubr.bf16.gmra.mrb[100].mxu0 %v7727_v37  ;;  %1254 = vmatmul.mubr.bf16.gmra.mrb[100].mxu1 %v7791_v20 }
 0x112   :  { %1150 = vmatprep.mubr.bf16.mxu0 %v12394_v0  ;;  %1263 = vmatprep.mubr.bf16.mxu1 %v12394_v0 }
 0x119   :  { %1151 = vmatmul.mubr.bf16.gmra.mrb[104].mxu0 %v7747_v50  ;;  %1264 = vmatmul.mubr.bf16.gmra.mrb[104].mxu1 %v7803_v30 }
 0x11a   :  { %1160 = vmatprep.mubr.bf16.mxu0 %v12394_v0  ;;  %1273 = vmatprep.mubr.bf16.mxu1 %v12394_v0 }
 0x11c   :  { %v7987_v21 = vpop.f32.mrb[0].mxu1  ;;  %v7989_v22 = vpop.f32.mrb[0].mxu0 }
 0x11d   :  { %12780 = vst [vmem:[#allocation13_spill] sm:$0xff] %v7987_v21  ;;  %v748_v25 = vpop.f32.mrb[1].mxu1  ;;  %v628_v26 = vpop.f32.mrb[1].mxu0 }
 0x11e   :  { %v7992_v27 = vmul.f32 %v748_v25, %v7987_v21  ;;  %v7994_v28 = vpop.f32.mrb[2].mxu1  ;;  %v7997_v29 = vmul.f32 %v628_v26, %v7989_v22  ;;  %v7999_v31 = vpop.f32.mrb[2].mxu0 }
 0x11f   :  { %12781 = vst [vmem:[#allocation14_spill] sm:$0xff] %v7994_v28  ;;  %v752_v32 = vpop.f32.mrb[3].mxu1  ;;  %v632_v33 = vpop.f32.mrb[3].mxu0 }
 0x120   :  { %v8002_v34 = vmul.f32 %v752_v32, %v7994_v28  ;;  %v8005_v35 = vmul.f32 %v632_v33, %v7999_v31 }
 0x121   :  { %1161 = vmatmul.mubr.bf16.gmra.mrb[108].mxu0 %v7767_v1  ;;  %1274 = vmatmul.mubr.bf16.gmra.mrb[108].mxu1 %v7815_v39 }
 0x122   :  { %1283 = vmatprep.mubr.bf16.mxu1 %v12394_v0  ;;  %1396 = vmatprep.mubr.bf16.mxu0 %v12394_v0 }
 0x124   :  { %v8015_v41 = vpop.f32.mrb[4].mxu1  ;;  %v8017_v42 = vpop.f32.mrb[4].mxu0 }
 0x125   :  { %12782 = vst [vmem:[#allocation15_spill] sm:$0xff] %v8015_v41  ;;  %v758_v43 = vpop.f32.mrb[5].mxu1  ;;  %v638_v44 = vpop.f32.mrb[5].mxu0 }
 0x126   :  { %v8020_v47 = vmul.f32 %v758_v43, %v8015_v41  ;;  %v8022_v48 = vpop.f32.mrb[6].mxu1  ;;  %v8025_v52 = vmul.f32 %v638_v44, %v8017_v42  ;;  %v8027_v53 = vpop.f32.mrb[6].mxu0 }
 0x127   :  { %12784 = vst [vmem:[#allocation17_spill] sm:$0xff] %v8022_v48  ;;  %v762_v55 = vpop.f32.mrb[7].mxu1  ;;  %v642_v56 = vpop.f32.mrb[7].mxu0 }
 0x128   :  { %12783 = vst [vmem:[#allocation16_spill] sm:$0xff] %v8020_v47  ;;  %v8030_v58 = vmul.f32 %v762_v55, %v8022_v48  ;;  %v8033_v59 = vmul.f32 %v642_v56, %v8027_v53 }
 0x129   :  { %1284 = vmatmul.mubr.bf16.gmra.mrb[112].mxu1 %v7832_v46  ;;  %1397 = vmatmul.mubr.bf16.vlgmr.msra.gmra.mrb[112].mxu0 %v7705_v23 }
 0x12a   :  { %12785 = vst [vmem:[#allocation18_spill] sm:$0xff] %v8030_v58  ;;  %1293 = vmatprep.mubr.bf16.mxu1 %v12394_v0  ;;  %1406 = vmatprep.mubr.bf16.mxu0 %v12394_v0 }
 0x12b   :  { %6352 = vmatpush3.bf16.msra.mxu0 %v7830_v45 }
 0x12c   :  { %v8044_v62 = vpop.f32.mrb[8].mxu1  ;;  %v8046_v2 = vpop.f32.mrb[8].mxu0  ;;  %6353 = vmatprep.subr.bf16.mxu0 %v7911_v13 }
 0x12d   :  { %12786 = vst [vmem:[#allocation19_spill] sm:$0xff] %v8044_v62  ;;  %v768_v3 = vpop.f32.mrb[9].mxu1  ;;  %v648_v23 = vpop.f32.mrb[9].mxu0 }
 0x12e   :  { %v8050_v4 = vmul.f32 %v768_v3, %v8044_v62  ;;  %v8052_v5 = vpop.f32.mrb[10].mxu1  ;;  %v8055_v6 = vmul.f32 %v648_v23, %v8046_v2  ;;  %v8057_v7 = vpop.f32.mrb[10].mxu0 }
 0x12f   :  { %12788 = vst [vmem:[#allocation21_spill] sm:$0xff] %v8052_v5  ;;  %v772_v8 = vpop.f32.mrb[11].mxu1  ;;  %v652_v9 = vpop.f32.mrb[11].mxu0  ;;  %6354 = vmatpush3.bf16.msra.mxu0 %v7911_v13 }
 0x130   :  { %12787 = vst [vmem:[#allocation20_spill] sm:$0xff] %v8050_v4  ;;  %v8061_v10 = vmul.f32 %v772_v8, %v8052_v5  ;;  %v8064_v12 = vmul.f32 %v652_v9, %v8057_v7  ;;  %6355 = vmatprep.subr.bf16.mxu0 %v7922_v14 }
 0x131   :  { %1294 = vmatmul.mubr.bf16.gmra.mrb[116].mxu1 %v7845_v51  ;;  %1407 = vmatmul.mubr.bf16.gmra.mrb[116].mxu0 %v7725_v36 }
 0x132   :  { %12789 = vst [vmem:[#allocation22_spill] sm:$0xff] %v8061_v10  ;;  %1303 = vmatprep.mubr.bf16.mxu1 %v12394_v0  ;;  %1416 = vmatprep.mubr.bf16.mxu0 %v12394_v0 }
 0x133   :  { %6356 = vmatpush3.bf16.msra.mxu0 %v7922_v14 }
 0x134   :  { %v8076_v32 = vpop.f32.mrb[12].mxu1  ;;  %v8078_v33 = vpop.f32.mrb[12].mxu0  ;;  %6357 = vmatprep.subr.bf16.mxu0 %v7929_v15 }
 0x135   :  { %12790 = vst [vmem:[#allocation23_spill] sm:$0xff] %v8076_v32  ;;  %v778_v43 = vpop.f32.mrb[13].mxu1  ;;  %v658_v36 = vpop.f32.mrb[13].mxu0 }
 0x136   :  { %v8082_v44 = vmul.f32 %v778_v43, %v8076_v32  ;;  %v8084_v55 = vpop.f32.mrb[14].mxu1  ;;  %v8087_v56 = vmul.f32 %v658_v36, %v8078_v33  ;;  %v8089_v3 = vpop.f32.mrb[14].mxu0 }
 0x137   :  { %12792 = vst [vmem:[#allocation25_spill] sm:$0xff] %v8084_v55  ;;  %v782_v23 = vpop.f32.mrb[15].mxu1  ;;  %v662_v8 = vpop.f32.mrb[15].mxu0  ;;  %6358 = vmatpush3.bf16.msra.mxu0 %v7929_v15 }
 0x138   :  { %12791 = vst [vmem:[#allocation24_spill] sm:$0xff] %v8082_v44  ;;  %v8093_v9 = vmul.f32 %v782_v23, %v8084_v55  ;;  %v8096_v26 = vmul.f32 %v662_v8, %v8089_v3  ;;  %6359 = vmatprep.subr.bf16.mxu0 %v7940_v16 }
 0x139   :  { %1304 = vmatmul.mubr.bf16.gmra.mrb[120].mxu1 %v7857_v54  ;;  %1417 = vmatmul.mubr.bf16.gmra.mrb[120].mxu0 %v7745_v49 }
 0x13a   :  { %12793 = vst [vmem:[#allocation26_spill] sm:$0xff] %v8093_v9  ;;  %1313 = vmatprep.mubr.bf16.mxu1 %v12394_v0  ;;  %1426 = vmatprep.mubr.bf16.mxu0 %v12394_v0 }
 0x13b   :  { %6360 = vmatpush3.bf16.msra.mxu0 %v7940_v16 }
 0x13c   :  { %v819_v23 = vpop.f32.mrb[16].mxu1  ;;  %v8108_v8 = vpop.f32.mrb[16].mxu0  ;;  %6361 = vmatprep.subr.bf16.mxu0 %v7947_v17 }
 0x13d   :  { %v8112_v61 = vmul.f32 %v819_v23, %v7989_v22  ;;  %v821_v49 = vpop.f32.mrb[17].mxu1  ;;  %v668_v40 = vpop.f32.mrb[17].mxu0 }
 0x13e   :  { %v8115_v25 = vmul.f32 %v821_v49, %v7989_v22  ;;  %v823_v60 = vpop.f32.mrb[18].mxu1  ;;  %v8118_v43 = vmul.f32 %v668_v40, %v8108_v8  ;;  %v8120_v36 = vpop.f32.mrb[18].mxu0 }
 0x13f   :  { %12794 = vst [vmem:[#allocation27_spill] sm:$0xff] %v8112_v61  ;;  %12796 = vst [vmem:[#allocation29_spill] sm:$0xff] %v8120_v36  ;;  %v8123_v38 = vmul.f32 %v823_v60, %v7999_v31  ;;  %v825_v0 = vpop.f32.mrb[19].mxu1  ;;  %v672_v55 = vpop.f32.mrb[19].mxu0  ;;  %6362 = vmatpush3.bf16.msra.mxu0 %v7947_v17  ;;  %v12799_v60 = vmov 0  }
 0x140   :  { %12795 = vst [vmem:[#allocation28_spill] sm:$0xff] %v8115_v25  ;;  %v8127_v23 = vmul.f32 %v825_v0, %v7999_v31  ;;  %v8130_v32 = vmul.f32 %v672_v55, %v8120_v36  ;;  %6363 = vmatprep.subr.bf16.mxu0 %v7958_v18 }
 0x141   :  { %12797 = vst [vmem:[#allocation30_spill] sm:$0xff] %v8123_v38  ;;  %1314 = vmatmul.mubr.bf16.gmra.mrb[124].mxu1 %v7869_v57  ;;  %1427 = vmatmul.mubr.bf16.gmra.mrb[124].mxu0 %v7765_v63 }
 0x142   :  { %12798 = vst [vmem:[#allocation31_spill] sm:$0xff] %v8127_v23  ;;  %1323 = vmatprep.mubr.bf16.mxu1 %v12799_v60  ;;  %1436 = vmatprep.mubr.bf16.mxu0 %v12799_v60 }
 0x143   :  { %6364 = vmatpush3.bf16.msra.mxu0 %v7958_v18 }
 0x144   :  { %v829_v49 = vpop.f32.mrb[20].mxu1  ;;  %v8144_v5 = vpop.f32.mrb[20].mxu0  ;;  %6365 = vmatprep.subr.bf16.mxu0 %v7965_v19 }
 0x145   :  { %v8148_v63 = vmul.f32 %v829_v49, %v8017_v42  ;;  %v831_v40 = vpop.f32.mrb[21].mxu1  ;;  %v678_v62 = vpop.f32.mrb[21].mxu0 }
 0x146   :  { %v8151_v48 = vmul.f32 %v831_v40, %v8017_v42  ;;  %v833_v41 = vpop.f32.mrb[22].mxu1  ;;  %v8154_v0 = vmul.f32 %v678_v62, %v8144_v5  ;;  %v8156_v55 = vpop.f32.mrb[22].mxu0 }
 0x147   :  { %12800 = vst [vmem:[#allocation32_spill] sm:$0xff] %v8148_v63  ;;  %v8159_v25 = vmul.f32 %v833_v41, %v8027_v53  ;;  %v835_v23 = vpop.f32.mrb[23].mxu1  ;;  %v682_v61 = vpop.f32.mrb[23].mxu0  ;;  %6366 = vmatpush3.bf16.msra.mxu0 %v7965_v19 }
 0x148   :  { %12801 = vst [vmem:[#allocation33_spill] sm:$0xff] %v8151_v48  ;;  %v8163_v49 = vmul.f32 %v835_v23, %v8027_v53  ;;  %v8166_v38 = vmul.f32 %v682_v61, %v8156_v55 }
 0x149   :  { %12802 = vst [vmem:[#allocation34_spill] sm:$0xff] %v8159_v25  ;;  %1324 = vmatmul.mubr.bf16.gmra.mrb[128].mxu1 %v7707_v24  ;;  %1437 = vmatmul.mubr.bf16.gmra.mrb[128].mxu0 %v7779_v11 }
 0x14a   :  { %12803 = vst [vmem:[#allocation35_spill] sm:$0xff] %v8163_v49  ;;  %1333 = vmatprep.mubr.bf16.mxu1 %v12799_v60  ;;  %1446 = vmatprep.mubr.bf16.mxu0 %v12799_v60 }
 0x14c   :  { %v839_v23 = vpop.f32.mrb[24].mxu1  ;;  %v8178_v61 = vpop.f32.mrb[24].mxu0 }
 0x14d   :  { %v8181_v44 = vmul.f32 %v839_v23, %v8046_v2  ;;  %v841_v40 = vpop.f32.mrb[25].mxu1  ;;  %v688_v63 = vpop.f32.mrb[25].mxu0 }
 0x14e   :  { %v8184_v11 = vmul.f32 %v841_v40, %v8046_v2  ;;  %v843_v25 = vpop.f32.mrb[26].mxu1  ;;  %v8187_v41 = vmul.f32 %v688_v63, %v8178_v61  ;;  %v8189_v48 = vpop.f32.mrb[26].mxu0 }
 0x14f   :  { %12804 = vst [vmem:[#allocation36_spill] sm:$0xff] %v8181_v44  ;;  %v8192_v49 = vmul.f32 %v843_v25, %v8057_v7  ;;  %v845_v62 = vpop.f32.mrb[27].mxu1  ;;  %v692_v9 = vpop.f32.mrb[27].mxu0 }
 0x150   :  { %12805 = vst [vmem:[#allocation37_spill] sm:$0xff] %v8184_v11  ;;  %v8195_v28 = vmul.f32 %v845_v62, %v8057_v7  ;;  %v8198_v23 = vmul.f32 %v692_v9, %v8189_v48 }
 0x151   :  { %12806 = vst [vmem:[#allocation38_spill] sm:$0xff] %v8192_v49  ;;  %1334 = vmatmul.mubr.bf16.gmra.mrb[132].mxu1 %v7727_v37  ;;  %1447 = vmatmul.mubr.bf16.gmra.mrb[132].mxu0 %v7791_v20 }
 0x152   :  { %12807 = vst [vmem:[#allocation39_spill] sm:$0xff] %v8195_v28  ;;  %1343 = vmatprep.mubr.bf16.mxu1 %v12799_v60  ;;  %1456 = vmatprep.mubr.bf16.mxu0 %v12799_v60 }
 0x154   :  { %v849_v62 = vpop.f32.mrb[28].mxu1  ;;  %v8210_v9 = vpop.f32.mrb[28].mxu0 }
 0x155   :  { %v8213_v21 = vmul.f32 %v849_v62, %v8078_v33  ;;  %v851_v20 = vpop.f32.mrb[29].mxu1  ;;  %v698_v4 = vpop.f32.mrb[29].mxu0 }
 0x156   :  { %v8216_v63 = vmul.f32 %v851_v20, %v8078_v33  ;;  %v853_v44 = vpop.f32.mrb[30].mxu1  ;;  %v8219_v49 = vmul.f32 %v698_v4, %v8210_v9  ;;  %v8221_v10 = vpop.f32.mrb[30].mxu0 }
 0x157   :  { %12808 = vst [vmem:[#allocation40_spill] sm:$0xff] %v8213_v21  ;;  %v8224_v25 = vmul.f32 %v853_v44, %v8089_v3  ;;  %v855_v40 = vpop.f32.mrb[31].mxu1  ;;  %v702_v11 = vpop.f32.mrb[31].mxu0 }
 0x158   :  { %12809 = vst [vmem:[#allocation41_spill] sm:$0xff] %v8216_v63  ;;  %v8227_v28 = vmul.f32 %v855_v40, %v8089_v3  ;;  %v8230_v62 = vmul.f32 %v702_v11, %v8221_v10 }
 0x159   :  { %12810 = vst [vmem:[#allocation42_spill] sm:$0xff] %v8224_v25  ;;  %1344 = vmatmul.mubr.bf16.gmra.mrb[136].mxu1 %v7747_v50  ;;  %1457 = vmatmul.mubr.bf16.gmra.mrb[136].mxu0 %v7803_v30 }
 0x15a   :  { %12811 = vst [vmem:[#allocation43_spill] sm:$0xff] %v8227_v28  ;;  %1353 = vmatprep.mubr.bf16.mxu1 %v12799_v60  ;;  %1466 = vmatprep.mubr.bf16.mxu0 %v12799_v60 }
 0x15c   :  { %v859_v20 = vpop.f32.mrb[32].mxu1  ;;  %v8242_v11 = vpop.f32.mrb[32].mxu0 }
 0x15d   :  { %v8245_v47 = vmul.f32 %v859_v20, %v8108_v8  ;;  %v861_v30 = vpop.f32.mrb[33].mxu1  ;;  %v708_v58 = vpop.f32.mrb[33].mxu0 }
 0x15e   :  { %v8248_v4 = vmul.f32 %v861_v30, %v8108_v8  ;;  %v863_v21 = vpop.f32.mrb[34].mxu1  ;;  %v8251_v25 = vmul.f32 %v708_v58, %v8242_v11  ;;  %v8253_v50 = vpop.f32.mrb[34].mxu0  ;;  %v12815_v30 = vpack.c.bf16 %v8005_v35, %v7997_v29 }
 0x15f   :  { %12812 = vst [vmem:[#allocation44_spill] sm:$0xff] %v8245_v47  ;;  %v8256_v44 = vmul.f32 %v863_v21, %v8120_v36  ;;  %v865_v40 = vpop.f32.mrb[35].mxu1  ;;  %v712_v63 = vpop.f32.mrb[35].mxu0 }
 0x160   :  { %12813 = vst [vmem:[#allocation45_spill] sm:$0xff] %v8248_v4  ;;  %v8259_v28 = vmul.f32 %v865_v40, %v8120_v36  ;;  %v8262_v20 = vmul.f32 %v712_v63, %v8253_v50 }
 0x161   :  { %1354 = vmatmul.mubr.bf16.gmra.mrb[140].mxu1 %v7767_v1  ;;  %1467 = vmatmul.mubr.bf16.gmra.mrb[140].mxu0 %v7815_v39 }
 0x162   :  { %12814 = vst [vmem:[#allocation46_spill] sm:$0xff] %v8259_v28  ;;  %6271 = vmatprep.mubr.bf16.mxu1 %v12815_v30  ;;  %1476 = vmatprep.mubr.bf16.mxu0 %v12799_v60 }
 0x164   :  { %v869_v40 = vpop.f32.mrb[36].mxu1  ;;  %v8276_v36 = vpop.f32.mrb[36].mxu0 }
 0x165   :  { %v8279_v39 = vmul.f32 %v869_v40, %v8144_v5  ;;  %v871_v1 = vpop.f32.mrb[37].mxu1  ;;  %v718_v58 = vpop.f32.mrb[37].mxu0 }
 0x166   :  { %v8282_v47 = vmul.f32 %v871_v1, %v8144_v5  ;;  %v873_v29 = vpop.f32.mrb[38].mxu1  ;;  %v8285_v35 = vmul.f32 %v718_v58, %v8276_v36  ;;  %v8287_v30 = vpop.f32.mrb[38].mxu0  ;;  %v12819_v1 = vpack.c.bf16 %v8033_v59, %v8025_v52 }
 0x167   :  { %12816 = vst [vmem:[#allocation47_spill] sm:$0xff] %v8279_v39  ;;  %v8290_v21 = vmul.f32 %v873_v29, %v8156_v55  ;;  %v875_v63 = vpop.f32.mrb[39].mxu1  ;;  %v722_v4 = vpop.f32.mrb[39].mxu0  ;;  %v12820_v29 = vpack.c.bf16 %v8064_v12, %v8055_v6  ;;  %v12825_v39 = vpack.c.bf16 %v8130_v32, %v8118_v43 }
 0x168   :  { %12817 = vst [vmem:[#allocation48_spill] sm:$0xff] %v8282_v47  ;;  %v8293_v28 = vmul.f32 %v875_v63, %v8156_v55  ;;  %v8296_v40 = vmul.f32 %v722_v4, %v8287_v30 }
 0x169   :  { %1477 = vmatmul.mubr.bf16.gmra.mrb[144].mxu0 %v7832_v46  ;;  %6272 = vmatmul.mubr.bf16.vlgmr.msra.gmra.mrb[144].mxu1 %v12819_v1 }
 0x16a   :  { %12818 = vst [vmem:[#allocation49_spill] sm:$0xff] %v8293_v28  ;;  %6275 = vmatprep.mubr.bf16.mxu1 %v12820_v29  ;;  %6304 = vmatpush3.bf16.msra.mxu1 %v7830_v45 }
 0x16b   :  { %1486 = vmatprep.mubr.bf16.mxu0 %v12799_v60  ;;  %6305 = vmatprep.subr.bf16.mxu1 %v7911_v13 }
 0x16c   :  { %v879_v46 = vpop.f32.mrb[40].mxu1  ;;  %v8314_v52 = vpop.f32.mrb[40].mxu0 }
 0x16d   :  { %v8317_v59 = vmul.f32 %v879_v46, %v8178_v61  ;;  %v881_v6 = vpop.f32.mrb[41].mxu1  ;;  %v728_v12 = vpop.f32.mrb[41].mxu0 }
 0x16e   :  { %v8320_v1 = vmul.f32 %v881_v6, %v8178_v61  ;;  %v883_v29 = vpop.f32.mrb[42].mxu1  ;;  %6306 = vmatpush3.bf16.msra.mxu1 %v7911_v13  ;;  %v8324_v4 = vmul.f32 %v728_v12, %v8314_v52  ;;  %v8326_v58 = vpop.f32.mrb[42].mxu0  ;;  %v12824_v12 = vpack.c.bf16 %v8096_v26, %v8087_v56 }
 0x16f   :  { %12821 = vst [vmem:[#allocation50_spill] sm:$0xff] %v8317_v59  ;;  %v8329_v63 = vmul.f32 %v883_v29, %v8189_v48  ;;  %v885_v47 = vpop.f32.mrb[43].mxu1  ;;  %v732_v28 = vpop.f32.mrb[43].mxu0  ;;  %6307 = vmatprep.subr.bf16.mxu1 %v7922_v14 }
 0x170   :  { %12822 = vst [vmem:[#allocation51_spill] sm:$0xff] %v8320_v1  ;;  %v8333_v46 = vmul.f32 %v885_v47, %v8189_v48  ;;  %v8336_v6 = vmul.f32 %v732_v28, %v8326_v58 }
 0x171   :  { %1487 = vmatmul.mubr.bf16.gmra.mrb[148].mxu0 %v7845_v51  ;;  %6276 = vmatmul.mubr.bf16.gmra.mrb[148].mxu1 %v12824_v12 }
 0x172   :  { %12823 = vst [vmem:[#allocation52_spill] sm:$0xff] %v8333_v46  ;;  %6279 = vmatprep.mubr.bf16.mxu1 %v12825_v39  ;;  %1496 = vmatprep.mubr.bf16.mxu0 %v12799_v60 }
 0x173   :  { %6308 = vmatpush3.bf16.msra.mxu1 %v7922_v14 }
 0x174   :  { %v889_v51 = vpop.f32.mrb[44].mxu1  ;;  %v8353_v26 = vpop.f32.mrb[44].mxu0  ;;  %6309 = vmatprep.subr.bf16.mxu1 %v7929_v15 }
 0x175   :  { %v8357_v56 = vmul.f32 %v889_v51, %v8210_v9  ;;  %v891_v32 = vpop.f32.mrb[45].mxu1  ;;  %v738_v43 = vpop.f32.mrb[45].mxu0 }
 0x176   :  { %v8360_v39 = vmul.f32 %v891_v32, %v8210_v9  ;;  %v893_v12 = vpop.f32.mrb[46].mxu1  ;;  %v8363_v29 = vmul.f32 %v738_v43, %v8353_v26  ;;  %v8365_v28 = vpop.f32.mrb[46].mxu0  ;;  %v12828_v32 = vpack.c.bf16 %v8166_v38, %v8154_v0 }
 0x177   :  { %v8368_v47 = vmul.f32 %v893_v12, %v8221_v10  ;;  %v895_v1 = vpop.f32.mrb[47].mxu1  ;;  %v742_v46 = vpop.f32.mrb[47].mxu0  ;;  %6310 = vmatpush3.bf16.msra.mxu1 %v7929_v15  ;;  %v12829_v12 = vpack.c.bf16 %v8198_v23, %v8187_v41 }
 0x178   :  { %12826 = vst [vmem:[#allocation53_spill] sm:$0xff] %v8360_v39  ;;  %v8372_v51 = vmul.f32 %v895_v1, %v8221_v10  ;;  %v8375_v59 = vmul.f32 %v742_v46, %v8365_v28  ;;  %6311 = vmatprep.subr.bf16.mxu1 %v7940_v16 }
 0x179   :  { %1497 = vmatmul.mubr.bf16.gmra.mrb[152].mxu0 %v7857_v54  ;;  %6280 = vmatmul.mubr.bf16.gmra.mrb[152].mxu1 %v12828_v32 }
 0x17a   :  { %12827 = vst [vmem:[#allocation54_spill] sm:$0xff] %v8372_v51  ;;  %6283 = vmatprep.mubr.bf16.mxu1 %v12829_v12  ;;  %1506 = vmatprep.mubr.bf16.mxu0 %v12799_v60 }
 0x17b   :  { %6312 = vmatpush3.bf16.msra.mxu1 %v7940_v16 }
 0x17c   :  { %v899_v54 = vpop.f32.mrb[48].mxu1  ;;  %v1012_v38 = vpop.f32.mrb[48].mxu0  ;;  %6313 = vmatprep.subr.bf16.mxu1 %v7947_v17 }
 0x17d   :  { %v8395_v0 = vmul.f32 %v899_v54, %v8242_v11  ;;  %v8398_v41 = vmul.f32 %v1012_v38, %v7989_v22  ;;  %v901_v23 = vpop.f32.mrb[49].mxu1  ;;  %v8400_v32 = vpop.f32.mrb[49].mxu0 }
 0x17e   :  { %12831 = vst [vmem:[#allocation56_spill] sm:$0xff] %v8400_v32  ;;  %v8403_v12 = vmul.f32 %v901_v23, %v8242_v11  ;;  %v903_v43 = vpop.f32.mrb[50].mxu1  ;;  %v1016_v46 = vpop.f32.mrb[50].mxu0 }
 0x17f   :  { %12830 = vst [vmem:[#allocation55_spill] sm:$0xff] %v8398_v41  ;;  %v8406_v1 = vmul.f32 %v903_v43, %v8253_v50  ;;  %v8409_v39 = vmul.f32 %v1016_v46, %v7999_v31  ;;  %v905_v51 = vpop.f32.mrb[51].mxu1  ;;  %v8411_v54 = vpop.f32.mrb[51].mxu0  ;;  %6314 = vmatpush3.bf16.msra.mxu1 %v7947_v17  ;;  %v12834_v43 = vpack.c.bf16 %v8230_v62, %v8219_v49 }
 0x180   :  { %12833 = vst [vmem:[#allocation58_spill] sm:$0xff] %v8411_v54  ;;  %v8415_v22 = vmul.f32 %v905_v51, %v8253_v50  ;;  %6315 = vmatprep.subr.bf16.mxu1 %v7958_v18  ;;  %v12835_v46 = vpack.c.bf16 %v8262_v20, %v8251_v25 }
 0x181   :  { %12832 = vst [vmem:[#allocation57_spill] sm:$0xff] %v8409_v39  ;;  %1507 = vmatmul.mubr.bf16.gmra.mrb[156].mxu0 %v7869_v57  ;;  %6284 = vmatmul.mubr.bf16.gmra.mrb[156].mxu1 %v12834_v43  ;;  %v12886_v39 = vld [vmem:[#allocation33_spill] sm:$0xff] }
 0x182   :  { %6287 = vmatprep.mubr.bf16.mxu1 %v12835_v46  ;;  %1516 = vmatprep.mubr.bf16.mxu0 %v12799_v60 }
 0x183   :  { %6316 = vmatpush3.bf16.msra.mxu1 %v7958_v18 }
 0x184   :  { %v909_v23 = vpop.f32.mrb[52].mxu1  ;;  %v1022_v57 = vpop.f32.mrb[52].mxu0  ;;  %6317 = vmatprep.subr.bf16.mxu1 %v7965_v19 }
 0x185   :  { %v8435_v49 = vmul.f32 %v909_v23, %v8276_v36  ;;  %v8438_v62 = vmul.f32 %v1022_v57, %v8017_v42  ;;  %v911_v43 = vpop.f32.mrb[53].mxu1  ;;  %v8440_v25 = vpop.f32.mrb[53].mxu0 }
 0x186   :  { %12837 = vst [vmem:[#allocation60_spill] sm:$0xff] %v8440_v25  ;;  %v8443_v20 = vmul.f32 %v911_v43, %v8276_v36  ;;  %v913_v46 = vpop.f32.mrb[54].mxu1  ;;  %v1026_v38 = vpop.f32.mrb[54].mxu0  ;;  %v12840_v43 = vpack.c.bf16 %v8296_v40, %v8285_v35  ;;  %v12859_v25 = vld [vmem:[#allocation13_spill] sm:$0xff] }
 0x187   :  { %12836 = vst [vmem:[#allocation59_spill] sm:$0xff] %v8438_v62  ;;  %v8446_v51 = vmul.f32 %v913_v46, %v8287_v30  ;;  %v8449_v31 = vmul.f32 %v1026_v38, %v8027_v53  ;;  %v915_v54 = vpop.f32.mrb[55].mxu1  ;;  %v8451_v23 = vpop.f32.mrb[55].mxu0  ;;  %6318 = vmatpush3.bf16.msra.mxu1 %v7965_v19  ;;  %v12841_v38 = vpack.c.bf16 %v8336_v6, %v8324_v4 }
 0x188   :  { %12839 = vst [vmem:[#allocation62_spill] sm:$0xff] %v8451_v23  ;;  %v8455_v42 = vmul.f32 %v915_v54, %v8287_v30  ;;  %6399 = vmatprep.subr.bf16.mxu1 %v7830_v45 }
 0x189   :  { %12838 = vst [vmem:[#allocation61_spill] sm:$0xff] %v8449_v31  ;;  %1517 = vmatmul.mubr.bf16.gmra.mrb[160].mxu0 %v7707_v24  ;;  %6288 = vmatmul.mubr.bf16.gmra.mrb[160].mxu1 %v12840_v43  ;;  %v12874_v31 = vld [vmem:[#allocation28_spill] sm:$0xff] }
 0x18a   :  { %6291 = vmatprep.mubr.bf16.mxu1 %v12841_v38  ;;  %1526 = vmatprep.mubr.bf16.mxu0 %v12799_v60 }
 0x18c   :  { %v919_v54 = vpop.f32.mrb[56].mxu1  ;;  %v1032_v46 = vpop.f32.mrb[56].mxu0 }
 0x18d   :  { %v8473_v24 = vmul.f32 %v919_v54, %v8314_v52  ;;  %v8476_v35 = vmul.f32 %v1032_v46, %v8046_v2  ;;  %v921_v40 = vpop.f32.mrb[57].mxu1  ;;  %v8478_v43 = vpop.f32.mrb[57].mxu0 }
 0x18e   :  { %12843 = vst [vmem:[#allocation64_spill] sm:$0xff] %v8478_v43  ;;  %v8481_v57 = vmul.f32 %v921_v40, %v8314_v52  ;;  %v923_v4 = vpop.f32.mrb[58].mxu1  ;;  %v1036_v6 = vpop.f32.mrb[58].mxu0  ;;  %v12846_v40 = vpack.c.bf16 %v8375_v59, %v8363_v29  ;;  %v12852_v43 = vld [vmem:[#allocation11_spill] sm:$0xff] }
 0x18f   :  { %12842 = vst [vmem:[#allocation63_spill] sm:$0xff] %v8476_v35  ;;  %v8484_v38 = vmul.f32 %v923_v4, %v8326_v58  ;;  %v8487_v45 = vmul.f32 %v1036_v6, %v8057_v7  ;;  %v925_v53 = vpop.f32.mrb[59].mxu1  ;;  %v8489_v54 = vpop.f32.mrb[59].mxu0  ;;  %v12847_v7 = vpack.c.bf16 %v8002_v34, %v7992_v27  ;;  %v12868_v35 = vld [vmem:[#allocation24_spill] sm:$0xff] }
 0x190   :  { %12845 = vst [vmem:[#allocation66_spill] sm:$0xff] %v8489_v54  ;;  %v8492_v2 = vmul.f32 %v925_v53, %v8326_v58 }
 0x191   :  { %12844 = vst [vmem:[#allocation65_spill] sm:$0xff] %v8487_v45  ;;  %1527 = vmatmul.mubr.bf16.gmra.mrb[164].mxu0 %v7727_v37  ;;  %6292 = vmatmul.mubr.bf16.gmra.mrb[164].mxu1 %v12846_v40 }
 0x192   :  { %6295 = vmatprep.mubr.bf16.mxu1 %v12847_v7  ;;  %1536 = vmatprep.mubr.bf16.mxu0 %v12799_v60 }
 0x194   :  { %v929_v6 = vpop.f32.mrb[60].mxu1  ;;  %v1042_v46 = vpop.f32.mrb[60].mxu0 }
 0x195   :  { %v8509_v37 = vmul.f32 %v929_v6, %v8353_v26  ;;  %v8512_v59 = vmul.f32 %v1042_v46, %v8078_v33  ;;  %v931_v29 = vpop.f32.mrb[61].mxu1  ;;  %v8514_v40 = vpop.f32.mrb[61].mxu0 }
 0x196   :  { %12849 = vst [vmem:[#allocation68_spill] sm:$0xff] %v8514_v40  ;;  %v8517_v4 = vmul.f32 %v931_v29, %v8353_v26  ;;  %v933_v27 = vpop.f32.mrb[62].mxu1  ;;  %v1046_v34 = vpop.f32.mrb[62].mxu0  ;;  %v12853_v29 = vld [vmem:[#allocation18_spill] sm:$0xff]  ;;  %v12854_v40 = vld [vmem:[#allocation16_spill] sm:$0xff] }
 0x197   :  { %12848 = vst [vmem:[#allocation67_spill] sm:$0xff] %v8512_v59  ;;  %v8520_v7 = vmul.f32 %v933_v27, %v8365_v28  ;;  %v8523_v53 = vmul.f32 %v1046_v34, %v8089_v3  ;;  %v935_v54 = vpop.f32.mrb[63].mxu1  ;;  %v8525_v6 = vpop.f32.mrb[63].mxu0  ;;  %v12855_v23 = vpack.c.bf16 %v12853_v29, %v12854_v40  ;;  %v12856_v3 = vld [vmem:[#allocation22_spill] sm:$0xff]  ;;  %v12857_v34 = vld [vmem:[#allocation20_spill] sm:$0xff] }
 0x198   :  { %12851 = vst [vmem:[#allocation70_spill] sm:$0xff] %v8525_v6  ;;  %v8528_v33 = vmul.f32 %v935_v54, %v8365_v28  ;;  %v12858_v32 = vpack.c.bf16 %v12856_v3, %v12857_v34  ;;  %v12863_v54 = vld [vmem:[#allocation29_spill] sm:$0xff] }
 0x199   :  { %12850 = vst [vmem:[#allocation69_spill] sm:$0xff] %v8523_v53  ;;  %1537 = vmatmul.mubr.bf16.gmra.mrb[168].mxu0 %v12852_v43  ;;  %6296 = vmatmul.mubr.bf16.gmra.mrb[168].mxu1 %v12855_v23 }
 0x19a   :  { %6299 = vmatprep.mubr.bf16.mxu1 %v12858_v32  ;;  %1546 = vmatprep.mubr.bf16.mxu0 %v12799_v60  ;;  %v12862_v60 = vld [vmem:[#allocation14_spill] sm:$0xff] }
 0x19c   :  { %v939_v6 = vpop.f32.mrb[64].mxu1  ;;  %v1052_v46 = vpop.f32.mrb[64].mxu0 }
 0x19d   :  { %v8545_v43 = vmul.f32 %v939_v6, %v12859_v25  ;;  %v8548_v40 = vmul.f32 %v1052_v46, %v8108_v8  ;;  %v941_v23 = vpop.f32.mrb[65].mxu1  ;;  %v8550_v29 = vpop.f32.mrb[65].mxu0 }
 0x19e   :  { %12861 = vst [vmem:[#allocation18_spill] sm:$0xff] %v8550_v29  ;;  %v8553_v27 = vmul.f32 %v941_v23, %v12859_v25  ;;  %v943_v32 = vpop.f32.mrb[66].mxu1  ;;  %v1056_v3 = vpop.f32.mrb[66].mxu0  ;;  %v12866_v29 = vld [vmem:[#allocation12_spill] sm:$0xff]  ;;  %v12867_v23 = vld [vmem:[#allocation26_spill] sm:$0xff] }
 0x19f   :  { %12860 = vst [vmem:[#allocation11_spill] sm:$0xff] %v8548_v40  ;;  %v8556_v34 = vmul.f32 %v943_v32, %v12862_v60  ;;  %v8559_v59 = vmul.f32 %v1056_v3, %v12863_v54  ;;  %v945_v53 = vpop.f32.mrb[67].mxu1  ;;  %v8561_v6 = vpop.f32.mrb[67].mxu0  ;;  %v12869_v45 = vpack.c.bf16 %v12867_v23, %v12868_v35  ;;  %v12870_v54 = vld [vmem:[#allocation30_spill] sm:$0xff]  ;;  %v12871_v3 = vld [vmem:[#allocation27_spill] sm:$0xff] }
 0x1a0   :  { %12865 = vst [vmem:[#allocation22_spill] sm:$0xff] %v8561_v6  ;;  %v8564_v8 = vmul.f32 %v945_v53, %v12862_v60  ;;  %v12872_v62 = vpack.c.bf16 %v12870_v54, %v12871_v3  ;;  %v12873_v6 = vld [vmem:[#allocation31_spill] sm:$0xff]  ;;  %v12882_v32 = vld [vmem:[#allocation34_spill] sm:$0xff]  ;;  %v12889_v60 = vld [vmem:[#allocation36_spill] sm:$0xff] }
 0x1a1   :  { %12864 = vst [vmem:[#allocation16_spill] sm:$0xff] %v8559_v59  ;;  %1547 = vmatmul.mubr.bf16.gmra.mrb[172].mxu0 %v12866_v29  ;;  %6300 = vmatmul.mubr.bf16.gmra.mrb[172].mxu1 %v12869_v45  ;;  %v12875_v53 = vpack.c.bf16 %v12873_v6, %v12874_v31  ;;  %v12876_v59 = vld [vmem:[#allocation15_spill] sm:$0xff]  ;;  %v12879_v6 = vld [vmem:[#allocation17_spill] sm:$0xff] }
 0x1a2   :  { %6319 = vmatprep.mubr.bf16.mxu1 %v12872_v62 }
 0x1a3   :  { %6367 = vmatprep.mubr.bf16.mxu0 %v12875_v53 }
 0x1a4   :  { %v949_v40 = vpop.f32.mrb[68].mxu1  ;;  %v1062_v29 = vpop.f32.mrb[68].mxu0 }
 0x1a5   :  { %v8583_v41 = vmul.f32 %v949_v40, %v12876_v59  ;;  %v8586_v45 = vmul.f32 %v1062_v29, %v8144_v5  ;;  %v951_v35 = vpop.f32.mrb[69].mxu1  ;;  %v8588_v23 = vpop.f32.mrb[69].mxu0 }
 0x1a6   :  { %12878 = vst [vmem:[#allocation29_spill] sm:$0xff] %v8588_v23  ;;  %v8591_v62 = vmul.f32 %v951_v35, %v12876_v59  ;;  %v953_v54 = vpop.f32.mrb[70].mxu1  ;;  %v1066_v31 = vpop.f32.mrb[70].mxu0  ;;  %v12883_v35 = vld [vmem:[#allocation32_spill] sm:$0xff]  ;;  %v12885_v59 = vld [vmem:[#allocation35_spill] sm:$0xff] }
 0x1a7   :  { %12877 = vst [vmem:[#allocation20_spill] sm:$0xff] %v8586_v45  ;;  %v8594_v3 = vmul.f32 %v953_v54, %v12879_v6  ;;  %v8597_v53 = vmul.f32 %v1066_v31, %v8156_v55  ;;  %v955_v46 = vpop.f32.mrb[71].mxu1  ;;  %v8599_v40 = vpop.f32.mrb[71].mxu0  ;;  %v12884_v23 = vpack.c.bf16 %v12882_v32, %v12883_v35  ;;  %v12887_v54 = vpack.c.bf16 %v12885_v59, %v12886_v39  ;;  %v12888_v31 = vld [vmem:[#allocation38_spill] sm:$0xff]  ;;  %v7529_v32 = vld [vmem:[%s12385_s2] sm:$0xff]  }
 0x1a8   :  { %12881 = vst [vmem:[#allocation26_spill] sm:$0xff] %v8599_v40  ;;  %v8602_v5 = vmul.f32 %v955_v46, %v12879_v6  ;;  %v12890_v40 = vpack.c.bf16 %v12888_v31, %v12889_v60  ;;  %v12891_v46 = vld [vmem:[#allocation39_spill] sm:$0xff]  ;;  %v12892_v6 = vld [vmem:[#allocation37_spill] sm:$0xff] }
 0x1a9   :  { %12880 = vst [vmem:[#allocation12_spill] sm:$0xff] %v8597_v53  ;;  %6320 = vmatmul.mubr.bf16.vlgmr.msra.gmra.mrb[176].mxu1 %v12884_v23  ;;  %6368 = vmatmul.mubr.bf16.vlgmr.msra.gmra.mrb[176].mxu0 %v12887_v54  ;;  %v12893_v25 = vpack.c.bf16 %v12891_v46, %v12892_v6  ;;  %v12894_v23 = vld [vmem:[#allocation19_spill] sm:$0xff]  ;;  %v12897_v46 = vld [vmem:[#allocation21_spill] sm:$0xff]  ;;  %v12908_v53 = vld [vmem:[#allocation46_spill] sm:$0xff] }
 0x1aa   :  { %6323 = vmatprep.mubr.bf16.mxu1 %v12890_v40  ;;  %6400 = vmatpush3.bf16.msra.mxu1 %v7529_v32  ;;  %v12903_v45 = vld [vmem:[#allocation43_spill] sm:$0xff] }
 0x1ab   :  { %6371 = vmatprep.mubr.bf16.mxu0 %v12893_v25  ;;  %6401 = vmatprep.subr.bf16.mxu1 %v7911_v13 }
 0x1ac   :  { %v959_v39 = vpop.f32.mrb[72].mxu1  ;;  %v1072_v59 = vpop.f32.mrb[72].mxu0 }
 0x1ad   :  { %v8627_v35 = vmul.f32 %v959_v39, %v12894_v23  ;;  %v8630_v60 = vmul.f32 %v1072_v59, %v8178_v61  ;;  %v961_v6 = vpop.f32.mrb[73].mxu1  ;;  %v8632_v25 = vpop.f32.mrb[73].mxu0 }
 0x1ae   :  { %12896 = vst [vmem:[#allocation30_spill] sm:$0xff] %v8632_v25  ;;  %v8635_v40 = vmul.f32 %v961_v6, %v12894_v23  ;;  %v963_v54 = vpop.f32.mrb[74].mxu1  ;;  %v1076_v31 = vpop.f32.mrb[74].mxu0  ;;  %6402 = vmatpush3.bf16.msra.mxu1 %v7911_v13  ;;  %v12900_v6 = vld [vmem:[#allocation42_spill] sm:$0xff]  ;;  %v12901_v25 = vld [vmem:[#allocation40_spill] sm:$0xff]  ;;  %v12917_v13 = vld [vmem:[#allocation49_spill] sm:$0xff] }
 0x1af   :  { %12895 = vst [vmem:[#allocation24_spill] sm:$0xff] %v8630_v60  ;;  %v8638_v32 = vmul.f32 %v963_v54, %v12897_v46  ;;  %v8641_v29 = vmul.f32 %v1076_v31, %v8189_v48  ;;  %v965_v55 = vpop.f32.mrb[75].mxu1  ;;  %v8644_v39 = vpop.f32.mrb[75].mxu0  ;;  %6403 = vmatprep.subr.bf16.mxu1 %v7922_v14  ;;  %v12902_v54 = vpack.c.bf16 %v12900_v6, %v12901_v25  ;;  %v12904_v48 = vld [vmem:[#allocation41_spill] sm:$0xff]  ;;  %v12923_v60 = vld [vmem:[#allocation51_spill] sm:$0xff] }
 0x1b0   :  { %12899 = vst [vmem:[#allocation31_spill] sm:$0xff] %v8644_v39  ;;  %v8647_v61 = vmul.f32 %v965_v55, %v12897_v46  ;;  %v12905_v31 = vpack.c.bf16 %v12903_v45, %v12904_v48  ;;  %v12906_v39 = vld [vmem:[#allocation44_spill] sm:$0xff]  ;;  %v12909_v46 = vld [vmem:[#allocation45_spill] sm:$0xff]  ;;  %v12911_v45 = vld [vmem:[#allocation23_spill] sm:$0xff] }
 0x1b1   :  { %12898 = vst [vmem:[#allocation27_spill] sm:$0xff] %v8641_v29  ;;  %6324 = vmatmul.mubr.bf16.gmra.mrb[180].mxu1 %v12902_v54  ;;  %v12907_v55 = vpack.c.bf16 %v8256_v44, %v12906_v39  ;;  %v12910_v23 = vpack.c.bf16 %v12908_v53, %v12909_v46 }
 0x1b2   :  { %6372 = vmatmul.mubr.bf16.gmra.mrb[180].mxu0 %v12905_v31  ;;  %6404 = vmatpush3.bf16.msra.mxu1 %v7922_v14  ;;  %v12913_v31 = vld [vmem:[#allocation25_spill] sm:$0xff] }
 0x1b3   :  { %6327 = vmatprep.mubr.bf16.mxu1 %v12907_v55  ;;  %6375 = vmatprep.mubr.bf16.mxu0 %v12910_v23 }
 0x1b4   :  { %v969_v25 = vpop.f32.mrb[76].mxu1  ;;  %v1082_v6 = vpop.f32.mrb[76].mxu0  ;;  %6405 = vmatprep.subr.bf16.mxu1 %v7929_v15 }
 0x1b5   :  { %v8671_v54 = vmul.f32 %v969_v25, %v12911_v45  ;;  %v8674_v48 = vmul.f32 %v1082_v6, %v8210_v9  ;;  %v971_v44 = vpop.f32.mrb[77].mxu1  ;;  %v8676_v39 = vpop.f32.mrb[77].mxu0 }
 0x1b6   :  { %12912 = vst [vmem:[#allocation28_spill] sm:$0xff] %v8676_v39  ;;  %v8679_v53 = vmul.f32 %v971_v44, %v12911_v45  ;;  %v973_v23 = vpop.f32.mrb[78].mxu1  ;;  %v1086_v46 = vpop.f32.mrb[78].mxu0  ;;  %6406 = vmatpush3.bf16.msra.mxu1 %v7929_v15  ;;  %v12915_v44 = vld [vmem:[#allocation47_spill] sm:$0xff]  ;;  %v12920_v15 = vld [vmem:[#allocation50_spill] sm:$0xff]  ;;  %v12922_v39 = vld [vmem:[#allocation52_spill] sm:$0xff] }
 0x1b7   :  { %v8682_v14 = vmul.f32 %v973_v23, %v12913_v31  ;;  %v8685_v55 = vmul.f32 %v1086_v46, %v8221_v10  ;;  %v975_v59 = vpop.f32.mrb[79].mxu1  ;;  %v8687_v25 = vpop.f32.mrb[79].mxu0  ;;  %6407 = vmatprep.subr.bf16.mxu1 %v7940_v16  ;;  %v12916_v23 = vpack.c.bf16 %v8290_v21, %v12915_v44  ;;  %v12918_v10 = vld [vmem:[#allocation48_spill] sm:$0xff]  ;;  %v12924_v29 = vpack.c.bf16 %v12922_v39, %v12923_v60 }
 0x1b8   :  { %12914 = vst [vmem:[#allocation34_spill] sm:$0xff] %v8687_v25  ;;  %v8691_v9 = vmul.f32 %v975_v59, %v12913_v31  ;;  %v12919_v46 = vpack.c.bf16 %v12917_v13, %v12918_v10  ;;  %v12921_v59 = vpack.c.bf16 %v8329_v63, %v12920_v15  ;;  %v12932_v15 = vld [vmem:[#allocation54_spill] sm:$0xff] }
 0x1b9   :  { %6328 = vmatmul.mubr.bf16.gmra.mrb[184].mxu1 %v12916_v23  ;;  %v1877_v25 = vpack.c.bf16 %v8682_v14, %v8671_v54 }
 0x1ba   :  { %6376 = vmatmul.mubr.bf16.gmra.mrb[184].mxu0 %v12919_v46  ;;  %6331 = vmatprep.mubr.bf16.mxu1 %v12921_v59  ;;  %v2086_v6 = vpack.c.bf16 %v8691_v9, %v8679_v53  ;;  %v12931_v46 = vpack.c.bf16 %v8368_v47, %v8357_v56  ;;  %v12933_v59 = vld [vmem:[#allocation53_spill] sm:$0xff] }
 0x1bb   :  { %6379 = vmatprep.mubr.bf16.mxu0 %v12924_v29  ;;  %6408 = vmatpush3.bf16.msra.mxu1 %v7940_v16 }
 0x1bc   :  { %v1092_v21 = vpop.f32.mrb[80].mxu0  ;;  %v8713_v44 = vpop.f32.mrb[80].mxu1  ;;  %6409 = vmatprep.subr.bf16.mxu1 %v7947_v17 }
 0x1bd   :  { %12925 = vst [vmem:[#allocation32_spill] sm:$0xff] %v8713_v44  ;;  %v8717_v13 = vmul.f32 %v1092_v21, %v8242_v11  ;;  %v8719_v23 = vpop.f32.mrb[81].mxu0  ;;  %v8721_v63 = vpop.f32.mrb[81].mxu1  ;;  %v12934_v21 = vpack.c.bf16 %v12932_v15, %v12933_v59  ;;  %v12943_v15 = vpack.c.bf16 %v8446_v51, %v8435_v49  ;;  %v12944_v59 = vpack.c.bf16 %v8455_v42, %v8443_v20 }
 0x1be   :  { %12926 = vst [vmem:[#allocation35_spill] sm:$0xff] %v8719_v23  ;;  %12927 = vst [vmem:[#allocation33_spill] sm:$0xff] %v8721_v63  ;;  %v1096_v10 = vpop.f32.mrb[82].mxu0  ;;  %v8723_v60 = vpop.f32.mrb[82].mxu1 }
 0x1bf   :  { %12928 = vst [vmem:[#allocation38_spill] sm:$0xff] %v8723_v60  ;;  %v8726_v29 = vmul.f32 %v1096_v10, %v8253_v50  ;;  %v8728_v39 = vpop.f32.mrb[83].mxu1  ;;  %v8730_v16 = vpop.f32.mrb[83].mxu0  ;;  %6410 = vmatpush3.bf16.msra.mxu1 %v7947_v17  ;;  %v12935_v50 = vpack.c.bf16 %v8406_v1, %v8395_v0  ;;  %v12936_v17 = vpack.c.bf16 %v8415_v22, %v8403_v12 }
 0x1c0   :  { %12929 = vst [vmem:[#allocation36_spill] sm:$0xff] %v8728_v39  ;;  %12930 = vst [vmem:[#allocation39_spill] sm:$0xff] %v8730_v16  ;;  %6411 = vmatprep.subr.bf16.mxu1 %v7958_v18 }
 0x1c1   :  { %6332 = vmatmul.mubr.bf16.gmra.mrb[188].mxu1 %v12931_v46 }
 0x1c2   :  { %6380 = vmatmul.mubr.bf16.gmra.mrb[188].mxu0 %v12934_v21  ;;  %6335 = vmatprep.mubr.bf16.mxu1 %v12935_v50  ;;  %v12946_v21 = vpack.c.bf16 %v8492_v2, %v8481_v57 }
 0x1c3   :  { %6383 = vmatprep.mubr.bf16.mxu0 %v12936_v17  ;;  %6412 = vmatpush3.bf16.msra.mxu1 %v7958_v18 }
 0x1c4   :  { %v1102_v10 = vpop.f32.mrb[84].mxu0  ;;  %v8749_v11 = vpop.f32.mrb[84].mxu1  ;;  %6413 = vmatprep.subr.bf16.mxu1 %v7965_v19 }
 0x1c5   :  { %12937 = vst [vmem:[#allocation37_spill] sm:$0xff] %v8749_v11  ;;  %v8753_v47 = vmul.f32 %v1102_v10, %v8276_v36  ;;  %v8755_v56 = vpop.f32.mrb[85].mxu0  ;;  %v8757_v46 = vpop.f32.mrb[85].mxu1  ;;  %v12954_v10 = vpack.c.bf16 %v8528_v33, %v8517_v4 }
 0x1c6   :  { %12938 = vst [vmem:[#allocation42_spill] sm:$0xff] %v8755_v56  ;;  %12939 = vst [vmem:[#allocation40_spill] sm:$0xff] %v8757_v46  ;;  %v1106_v1 = vpop.f32.mrb[86].mxu0  ;;  %v8759_v0 = vpop.f32.mrb[86].mxu1 }
 0x1c7   :  { %12940 = vst [vmem:[#allocation43_spill] sm:$0xff] %v8759_v0  ;;  %v8762_v12 = vmul.f32 %v1106_v1, %v8287_v30  ;;  %v8764_v22 = vpop.f32.mrb[87].mxu1  ;;  %v8766_v18 = vpop.f32.mrb[87].mxu0  ;;  %6414 = vmatpush3.bf16.msra.mxu1 %v7965_v19  ;;  %v12945_v30 = vpack.c.bf16 %v8484_v38, %v8473_v24  ;;  %v12955_v1 = vpack.c.bf16 %v8556_v34, %v8545_v43 }
 0x1c8   :  { %12941 = vst [vmem:[#allocation41_spill] sm:$0xff] %v8764_v22  ;;  %12942 = vst [vmem:[#allocation44_spill] sm:$0xff] %v8766_v18 }
 0x1c9   :  { %6336 = vmatmul.mubr.bf16.gmra.mrb[192].mxu1 %v12943_v15 }
 0x1ca   :  { %6384 = vmatmul.mubr.bf16.gmra.mrb[192].mxu0 %v12944_v59  ;;  %6339 = vmatprep.mubr.bf16.mxu1 %v12945_v30 }
 0x1cb   :  { %6387 = vmatprep.mubr.bf16.mxu0 %v12946_v21  ;;  %v12964_v21 = vpack.c.bf16 %v8602_v5, %v8591_v62 }
 0x1cc   :  { %v1112_v19 = vpop.f32.mrb[88].mxu0  ;;  %v8783_v50 = vpop.f32.mrb[88].mxu1 }
 0x1cd   :  { %12947 = vst [vmem:[#allocation46_spill] sm:$0xff] %v8783_v50  ;;  %v8786_v17 = vmul.f32 %v1112_v19, %v8314_v52  ;;  %v8788_v51 = vpop.f32.mrb[89].mxu0  ;;  %v8790_v49 = vpop.f32.mrb[89].mxu1  ;;  %v12953_v52 = vpack.c.bf16 %v8520_v7, %v8509_v37  ;;  %v12965_v19 = vpack.c.bf16 %v8638_v32, %v8627_v35 }
 0x1ce   :  { %12948 = vst [vmem:[#allocation45_spill] sm:$0xff] %v8788_v51  ;;  %12949 = vst [vmem:[#allocation23_spill] sm:$0xff] %v8790_v49  ;;  %v1116_v20 = vpop.f32.mrb[90].mxu0  ;;  %v8792_v42 = vpop.f32.mrb[90].mxu1 }
 0x1cf   :  { %12950 = vst [vmem:[#allocation25_spill] sm:$0xff] %v8792_v42  ;;  %v8795_v24 = vmul.f32 %v1116_v20, %v8326_v58  ;;  %v8797_v38 = vpop.f32.mrb[91].mxu1  ;;  %v8799_v57 = vpop.f32.mrb[91].mxu0  ;;  %v12956_v58 = vpack.c.bf16 %v8564_v8, %v8553_v27 }
 0x1d0   :  { %12951 = vst [vmem:[#allocation47_spill] sm:$0xff] %v8797_v38  ;;  %12952 = vst [vmem:[#allocation49_spill] sm:$0xff] %v8799_v57 }
 0x1d1   :  { %6340 = vmatmul.mubr.bf16.gmra.mrb[196].mxu1 %v12953_v52 }
 0x1d2   :  { %6388 = vmatmul.mubr.bf16.gmra.mrb[196].mxu0 %v12954_v10  ;;  %6343 = vmatprep.mubr.bf16.mxu1 %v12955_v1  ;;  %v12968_v10 = vld [vmem:[#allocation13_spill] sm:$0xff] }
 0x1d3   :  { %6391 = vmatprep.mubr.bf16.mxu0 %v12956_v58  ;;  %v12972_v58 = vld [vmem:[#allocation14_spill] sm:$0xff] }
 0x1d4   :  { %v1122_v15 = vpop.f32.mrb[92].mxu0  ;;  %v8815_v59 = vpop.f32.mrb[92].mxu1 }
 0x1d5   :  { %12957 = vst [vmem:[#allocation48_spill] sm:$0xff] %v8815_v59  ;;  %v8818_v30 = vmul.f32 %v1122_v15, %v8353_v26  ;;  %v8820_v37 = vpop.f32.mrb[93].mxu0  ;;  %v8822_v7 = vpop.f32.mrb[93].mxu1  ;;  %v12963_v26 = vpack.c.bf16 %v8594_v3, %v8583_v41  ;;  %v12975_v15 = vld [vmem:[#allocation57_spill] sm:$0xff] }
 0x1d6   :  { %12958 = vst [vmem:[#allocation50_spill] sm:$0xff] %v8820_v37  ;;  %12959 = vst [vmem:[#allocation52_spill] sm:$0xff] %v8822_v7  ;;  %v1126_v4 = vpop.f32.mrb[94].mxu0  ;;  %v8824_v33 = vpop.f32.mrb[94].mxu1 }
 0x1d7   :  { %12960 = vst [vmem:[#allocation51_spill] sm:$0xff] %v8824_v33  ;;  %v8827_v43 = vmul.f32 %v1126_v4, %v8365_v28  ;;  %v8829_v34 = vpop.f32.mrb[95].mxu1  ;;  %v8831_v27 = vpop.f32.mrb[95].mxu0  ;;  %v12966_v28 = vpack.c.bf16 %v8647_v61, %v8635_v40  ;;  %v12976_v4 = vld [vmem:[#allocation55_spill] sm:$0xff] }
 0x1d8   :  { %12961 = vst [vmem:[#allocation54_spill] sm:$0xff] %v8829_v34  ;;  %12962 = vst [vmem:[#allocation53_spill] sm:$0xff] %v8831_v27 }
 0x1d9   :  { %6344 = vmatmul.mubr.bf16.gmra.mrb[200].mxu1 %v12963_v26  ;;  %v12977_v26 = vpack.c.bf16 %v12975_v15, %v12976_v4  ;;  %v12986_v15 = vld [vmem:[#allocation61_spill] sm:$0xff]  ;;  %v12987_v4 = vld [vmem:[#allocation59_spill] sm:$0xff] }
 0x1da   :  { %6392 = vmatmul.mubr.bf16.gmra.mrb[200].mxu0 %v12964_v21  ;;  %6347 = vmatprep.mubr.bf16.mxu1 %v12965_v19 }
 0x1db   :  { %6395 = vmatprep.mubr.bf16.mxu0 %v12966_v28  ;;  %v12979_v28 = vld [vmem:[#allocation15_spill] sm:$0xff] }
 0x1dc   :  { %v1132_v20 = vpop.f32.mrb[96].mxu0  ;;  %v8847_v52 = vpop.f32.mrb[96].mxu1 }
 0x1dd   :  { %12967 = vst [vmem:[#allocation71_spill] sm:$0xff] %v8847_v52  ;;  %v8850_v1 = vmul.f32 %v1132_v20, %v12968_v10  ;;  %v8852_v41 = vpop.f32.mrb[97].mxu0  ;;  %v8854_v3 = vpop.f32.mrb[97].mxu1 }
 0x1de   :  { %12969 = vst [vmem:[#allocation13_spill] sm:$0xff] %v8852_v41  ;;  %12970 = vst [vmem:[#allocation72_spill] sm:$0xff] %v8854_v3  ;;  %v1136_v62 = vpop.f32.mrb[98].mxu0  ;;  %v8856_v5 = vpop.f32.mrb[98].mxu1  ;;  %v12997_v41 = vld [vmem:[#allocation21_spill] sm:$0xff] }
 0x1df   :  { %12971 = vst [vmem:[#allocation73_spill] sm:$0xff] %v8856_v5  ;;  %v8859_v35 = vmul.f32 %v1136_v62, %v12972_v58  ;;  %v8861_v32 = vpop.f32.mrb[99].mxu1  ;;  %v8863_v40 = vpop.f32.mrb[99].mxu0 }
 0x1e0   :  { %12973 = vst [vmem:[#allocation14_spill] sm:$0xff] %v8861_v32  ;;  %12974 = vst [vmem:[#allocation74_spill] sm:$0xff] %v8863_v40 }
 0x1e1   :  { %6348 = vmatmul.mubr.bf16.gmra.mrb[204].mxu1 %v1877_v25  ;;  %v12983_v25 = vld [vmem:[#allocation17_spill] sm:$0xff] }
 0x1e2   :  { %6396 = vmatmul.mubr.bf16.gmra.mrb[204].mxu0 %v2086_v6  ;;  %6415 = vmatprep.mubr.bf16.mxu1 %v12977_v26  ;;  %v12988_v26 = vpack.c.bf16 %v12986_v15, %v12987_v4 }
 0x1e4   :  { %v1142_v21 = vpop.f32.mrb[100].mxu0  ;;  %v8876_v19 = vpop.f32.mrb[100].mxu1 }
 0x1e5   :  { %12978 = vst [vmem:[#allocation57_spill] sm:$0xff] %v8876_v19  ;;  %v8879_v20 = vmul.f32 %v1142_v21, %v12979_v28  ;;  %v8881_v10 = vpop.f32.mrb[101].mxu0  ;;  %v8883_v62 = vpop.f32.mrb[101].mxu1  ;;  %v12989_v21 = vld [vmem:[#allocation65_spill] sm:$0xff]  ;;  %v12990_v28 = vld [vmem:[#allocation63_spill] sm:$0xff] }
 0x1e6   :  { %12980 = vst [vmem:[#allocation55_spill] sm:$0xff] %v8881_v10  ;;  %12981 = vst [vmem:[#allocation15_spill] sm:$0xff] %v8883_v62  ;;  %v1146_v54 = vpop.f32.mrb[102].mxu0  ;;  %v8885_v14 = vpop.f32.mrb[102].mxu1  ;;  %v12991_v61 = vpack.c.bf16 %v12989_v21, %v12990_v28  ;;  %v13000_v21 = vld [vmem:[#allocation69_spill] sm:$0xff]  ;;  %v13001_v28 = vld [vmem:[#allocation67_spill] sm:$0xff] }
 0x1e7   :  { %12982 = vst [vmem:[#allocation75_spill] sm:$0xff] %v8885_v14  ;;  %v8888_v53 = vmul.f32 %v1146_v54, %v12983_v25  ;;  %v8890_v9 = vpop.f32.mrb[103].mxu1  ;;  %v8892_v6 = vpop.f32.mrb[103].mxu0  ;;  %v12993_v54 = vld [vmem:[#allocation19_spill] sm:$0xff]  ;;  %v13002_v10 = vpack.c.bf16 %v13000_v21, %v13001_v28  ;;  %v13013_v28 = vld [vmem:[#allocation20_spill] sm:$0xff] }
 0x1e8   :  { %12984 = vst [vmem:[#allocation17_spill] sm:$0xff] %v8890_v9  ;;  %12985 = vst [vmem:[#allocation76_spill] sm:$0xff] %v8892_v6 }
 0x1e9   :  { %6416 = vmatmul.mubr.bf16.vlgmr.msra.gmra.mrb[208].mxu1 %v12988_v26 }
 0x1ea   :  { %6419 = vmatprep.mubr.bf16.mxu1 %v12991_v61 }
 0x1ec   :  { %v1152_v8 = vpop.f32.mrb[104].mxu0  ;;  %v8902_v2 = vpop.f32.mrb[104].mxu1 }
 0x1ed   :  { %12992 = vst [vmem:[#allocation61_spill] sm:$0xff] %v8902_v2  ;;  %v8905_v25 = vmul.f32 %v1152_v8, %v12993_v54  ;;  %v8907_v36 = vpop.f32.mrb[105].mxu0  ;;  %v8909_v40 = vpop.f32.mrb[105].mxu1  ;;  %v13003_v8 = vld [vmem:[#allocation16_spill] sm:$0xff]  ;;  %v13004_v54 = vld [vmem:[#allocation11_spill] sm:$0xff] }
 0x1ee   :  { %12994 = vst [vmem:[#allocation59_spill] sm:$0xff] %v8907_v36  ;;  %12995 = vst [vmem:[#allocation65_spill] sm:$0xff] %v8909_v40  ;;  %v1156_v6 = vpop.f32.mrb[106].mxu0  ;;  %v8911_v58 = vpop.f32.mrb[106].mxu1  ;;  %v13005_v36 = vpack.c.bf16 %v13003_v8, %v13004_v54  ;;  %v13015_v54 = vld [vmem:[#allocation27_spill] sm:$0xff] }
 0x1ef   :  { %12996 = vst [vmem:[#allocation63_spill] sm:$0xff] %v8911_v58  ;;  %v2277_v15 = vmul.f32 %v1156_v6, %v12997_v41  ;;  %v8914_v4 = vpop.f32.mrb[107].mxu1  ;;  %v8916_v26 = vpop.f32.mrb[107].mxu0 }
 0x1f0   :  { %12998 = vst [vmem:[#allocation19_spill] sm:$0xff] %v8914_v4  ;;  %12999 = vst [vmem:[#allocation21_spill] sm:$0xff] %v8916_v26 }
 0x1f1   :  { %v2294_v61 = vpack.c.bf16 %v2277_v15, %v8905_v25  ;;  %6420 = vmatmul.mubr.bf16.gmra.mrb[212].mxu1 %v13002_v10 }
 0x1f2   :  { %6423 = vmatprep.mubr.bf16.mxu1 %v13005_v36  ;;  %v13012_v36 = vld [vmem:[#allocation12_spill] sm:$0xff] }
 0x1f3   :  { %v13014_v8 = vpack.c.bf16 %v13012_v36, %v13013_v28  ;;  %v13026_v36 = vpack.c.bf16 %v8685_v55, %v8674_v48  ;;  %v13027_v28 = vpack.c.bf16 %v8726_v29, %v8717_v13  ;;  %v13036_v55 = vpack.c.bf16 %v8762_v12, %v8753_v47 }
 0x1f4   :  { %v1162_v57 = vpop.f32.mrb[108].mxu0  ;;  %v8925_v27 = vpop.f32.mrb[108].mxu1  ;;  %v13037_v13 = vpack.c.bf16 %v8795_v24, %v8786_v17  ;;  %v13046_v12 = vpack.c.bf16 %v8827_v43, %v8818_v30  ;;  %v13047_v17 = vpack.c.bf16 %v8859_v35, %v8850_v1  ;;  %v13056_v43 = vpack.c.bf16 %v8888_v53, %v8879_v20 }
 0x1f5   :  { %13006 = vst [vmem:[#allocation69_spill] sm:$0xff] %v8925_v27  ;;  %v2278_v51 = vmul.f32 %v1162_v57, %v12911_v45  ;;  %v8928_v41 = vpop.f32.mrb[109].mxu0  ;;  %v8930_v6 = vpop.f32.mrb[109].mxu1  ;;  %v13016_v45 = vld [vmem:[#allocation24_spill] sm:$0xff] }
 0x1f6   :  { %13007 = vst [vmem:[#allocation67_spill] sm:$0xff] %v8928_v41  ;;  %13008 = vst [vmem:[#allocation16_spill] sm:$0xff] %v8930_v6  ;;  %v1166_v26 = vpop.f32.mrb[110].mxu0  ;;  %v8932_v37 = vpop.f32.mrb[110].mxu1  ;;  %v13017_v57 = vpack.c.bf16 %v13015_v54, %v13016_v45 }
 0x1f7   :  { %13009 = vst [vmem:[#allocation11_spill] sm:$0xff] %v8932_v37  ;;  %v2279_v25 = vmul.f32 %v1166_v26, %v12913_v31  ;;  %v8935_v15 = vpop.f32.mrb[111].mxu1  ;;  %v8937_v10 = vpop.f32.mrb[111].mxu0 }
 0x1f8   :  { %13010 = vst [vmem:[#allocation77_spill] sm:$0xff] %v8935_v15  ;;  %13011 = vst [vmem:[#allocation78_spill] sm:$0xff] %v8937_v10 }
 0x1f9   :  { %v2295_v21 = vpack.c.bf16 %v2279_v25, %v2278_v51  ;;  %6424 = vmatmul.mubr.bf16.gmra.mrb[216].mxu1 %v13014_v8 }
 0x1fa   :  { %6427 = vmatprep.mubr.bf16.mxu1 %v13017_v57 }
 0x1fc   :  { %v8945_v41 = vpop.f32.mrb[112].mxu1  ;;  %v8947_v16 = vpop.f32.mrb[112].mxu0 }
 0x1fd   :  { %13018 = vst [vmem:[#allocation12_spill] sm:$0xff] %v8945_v41  ;;  %13019 = vst [vmem:[#allocation20_spill] sm:$0xff] %v8947_v16  ;;  %v8949_v18 = vpop.f32.mrb[113].mxu1  ;;  %v8951_v31 = vpop.f32.mrb[113].mxu0 }
 0x1fe   :  { %13020 = vst [vmem:[#allocation27_spill] sm:$0xff] %v8949_v18  ;;  %13021 = vst [vmem:[#allocation24_spill] sm:$0xff] %v8951_v31  ;;  %v8953_v26 = vpop.f32.mrb[114].mxu1  ;;  %v8955_v10 = vpop.f32.mrb[114].mxu0 }
 0x1ff   :  { %13022 = vst [vmem:[#allocation79_spill] sm:$0xff] %v8953_v26  ;;  %13023 = vst [vmem:[#allocation80_spill] sm:$0xff] %v8955_v10  ;;  %v8957_v51 = vpop.f32.mrb[115].mxu1  ;;  %v8959_v25 = vpop.f32.mrb[115].mxu0 }
 0x200   :  { %13024 = vst [vmem:[#allocation81_spill] sm:$0xff] %v8957_v51  ;;  %13025 = vst [vmem:[#allocation82_spill] sm:$0xff] %v8959_v25 }
 0x201   :  { %6428 = vmatmul.mubr.bf16.gmra.mrb[220].mxu1 %v13026_v36 }
 0x202   :  { %6431 = vmatprep.mubr.bf16.mxu1 %v13027_v28 }
 0x204   :  { %v8967_v8 = vpop.f32.mrb[116].mxu1  ;;  %v8969_v54 = vpop.f32.mrb[116].mxu0 }
 0x205   :  { %13028 = vst [vmem:[#allocation83_spill] sm:$0xff] %v8967_v8  ;;  %13029 = vst [vmem:[#allocation84_spill] sm:$0xff] %v8969_v54  ;;  %v8971_v45 = vpop.f32.mrb[117].mxu1  ;;  %v8973_v57 = vpop.f32.mrb[117].mxu0 }
 0x206   :  { %13030 = vst [vmem:[#allocation85_spill] sm:$0xff] %v8971_v45  ;;  %13031 = vst [vmem:[#allocation86_spill] sm:$0xff] %v8973_v57  ;;  %v8975_v23 = vpop.f32.mrb[118].mxu1  ;;  %v8977_v56 = vpop.f32.mrb[118].mxu0 }
 0x207   :  { %13032 = vst [vmem:[#allocation87_spill] sm:$0xff] %v8975_v23  ;;  %13033 = vst [vmem:[#allocation88_spill] sm:$0xff] %v8977_v56  ;;  %v8979_v26 = vpop.f32.mrb[119].mxu1  ;;  %v8981_v48 = vpop.f32.mrb[119].mxu0 }
 0x208   :  { %13034 = vst [vmem:[#allocation89_spill] sm:$0xff] %v8979_v26  ;;  %13035 = vst [vmem:[#allocation90_spill] sm:$0xff] %v8981_v48 }
 0x209   :  { %6432 = vmatmul.mubr.bf16.gmra.mrb[224].mxu1 %v13036_v55 }
 0x20a   :  { %6435 = vmatprep.mubr.bf16.mxu1 %v13037_v13 }
 0x20c   :  { %v8989_v29 = vpop.f32.mrb[120].mxu1  ;;  %v8991_v36 = vpop.f32.mrb[120].mxu0 }
 0x20d   :  { %13038 = vst [vmem:[#allocation91_spill] sm:$0xff] %v8989_v29  ;;  %13039 = vst [vmem:[#allocation92_spill] sm:$0xff] %v8991_v36  ;;  %v8993_v28 = vpop.f32.mrb[121].mxu1  ;;  %v8995_v41 = vpop.f32.mrb[121].mxu0 }
 0x20e   :  { %13040 = vst [vmem:[#allocation93_spill] sm:$0xff] %v8993_v28  ;;  %13041 = vst [vmem:[#allocation94_spill] sm:$0xff] %v8995_v41  ;;  %v8997_v37 = vpop.f32.mrb[122].mxu1  ;;  %v8999_v27 = vpop.f32.mrb[122].mxu0 }
 0x20f   :  { %13042 = vst [vmem:[#allocation95_spill] sm:$0xff] %v8997_v37  ;;  %13043 = vst [vmem:[#allocation96_spill] sm:$0xff] %v8999_v27  ;;  %v9001_v26 = vpop.f32.mrb[123].mxu1  ;;  %v9003_v47 = vpop.f32.mrb[123].mxu0 }
 0x210   :  { %13044 = vst [vmem:[#allocation97_spill] sm:$0xff] %v9001_v26  ;;  %13045 = vst [vmem:[#allocation98_spill] sm:$0xff] %v9003_v47 }
 0x211   :  { %6436 = vmatmul.mubr.bf16.gmra.mrb[228].mxu1 %v13046_v12 }
 0x212   :  { %6439 = vmatprep.mubr.bf16.mxu1 %v13047_v17 }
 0x214   :  { %v9011_v24 = vpop.f32.mrb[124].mxu1  ;;  %v9013_v55 = vpop.f32.mrb[124].mxu0 }
 0x215   :  { %13048 = vst [vmem:[#allocation99_spill] sm:$0xff] %v9011_v24  ;;  %13049 = vst [vmem:[#allocation100_spill] sm:$0xff] %v9013_v55  ;;  %v9015_v13 = vpop.f32.mrb[125].mxu1  ;;  %v9017_v37 = vpop.f32.mrb[125].mxu0 }
 0x216   :  { %13050 = vst [vmem:[#allocation101_spill] sm:$0xff] %v9015_v13  ;;  %13051 = vst [vmem:[#allocation102_spill] sm:$0xff] %v9017_v37  ;;  %v9019_v29 = vpop.f32.mrb[126].mxu1  ;;  %v9021_v26 = vpop.f32.mrb[126].mxu0 }
 0x217   :  { %13052 = vst [vmem:[#allocation103_spill] sm:$0xff] %v9019_v29  ;;  %13053 = vst [vmem:[#allocation104_spill] sm:$0xff] %v9021_v26  ;;  %v9023_v28 = vpop.f32.mrb[127].mxu1  ;;  %v9025_v30 = vpop.f32.mrb[127].mxu0 }
 0x218   :  { %13054 = vst [vmem:[#allocation105_spill] sm:$0xff] %v9023_v28  ;;  %13055 = vst [vmem:[#allocation106_spill] sm:$0xff] %v9025_v30 }
 0x219   :  { %6440 = vmatmul.mubr.bf16.gmra.mrb[232].mxu1 %v13056_v43 }
 0x21a   :  { %6443 = vmatprep.mubr.bf16.mxu1 %v2294_v61 }
 0x21c   :  { %v9030_v1 = vpop.f32.mrb[128].mxu1  ;;  %v9032_v35 = vpop.f32.mrb[128].mxu0 }
 0x21d   :  { %13057 = vst [vmem:[#allocation107_spill] sm:$0xff] %v9030_v1  ;;  %13058 = vst [vmem:[#allocation108_spill] sm:$0xff] %v9032_v35  ;;  %v9034_v12 = vpop.f32.mrb[129].mxu1  ;;  %v9036_v17 = vpop.f32.mrb[129].mxu0 }
 0x21e   :  { %13059 = vst [vmem:[#allocation109_spill] sm:$0xff] %v9034_v12  ;;  %13060 = vst [vmem:[#allocation110_spill] sm:$0xff] %v9036_v17  ;;  %v9038_v13 = vpop.f32.mrb[130].mxu1  ;;  %v9040_v29 = vpop.f32.mrb[130].mxu0 }
 0x21f   :  { %13061 = vst [vmem:[#allocation111_spill] sm:$0xff] %v9038_v13  ;;  %13062 = vst [vmem:[#allocation112_spill] sm:$0xff] %v9040_v29  ;;  %v9042_v28 = vpop.f32.mrb[131].mxu1  ;;  %v9044_v24 = vpop.f32.mrb[131].mxu0 }
 0x220   :  { %13063 = vst [vmem:[#allocation113_spill] sm:$0xff] %v9042_v28  ;;  %13064 = vst [vmem:[#allocation114_spill] sm:$0xff] %v9044_v24 }
 0x221   :  { %6444 = vmatmul.mubr.bf16.gmra.mrb[236].mxu1 %v2295_v21 }
 0x224   :  { %v9046_v20 = vpop.f32.mrb[132].mxu1  ;;  %v9048_v53 = vpop.f32.mrb[132].mxu0 }
 0x225   :  { %13065 = vst [vmem:[#allocation115_spill] sm:$0xff] %v9046_v20  ;;  %13066 = vst [vmem:[#allocation116_spill] sm:$0xff] %v9048_v53  ;;  %v9050_v61 = vpop.f32.mrb[133].mxu1  ;;  %v9052_v43 = vpop.f32.mrb[133].mxu0 }
 0x226   :  { %13067 = vst [vmem:[#allocation117_spill] sm:$0xff] %v9050_v61  ;;  %13068 = vst [vmem:[#allocation118_spill] sm:$0xff] %v9052_v43  ;;  %v9054_v1 = vpop.f32.mrb[134].mxu1  ;;  %v9056_v12 = vpop.f32.mrb[134].mxu0 }
 0x227   :  { %13069 = vst [vmem:[#allocation119_spill] sm:$0xff] %v9054_v1  ;;  %13070 = vst [vmem:[#allocation120_spill] sm:$0xff] %v9056_v12  ;;  %v9058_v13 = vpop.f32.mrb[135].mxu1  ;;  %v9060_v45 = vpop.f32.mrb[135].mxu0 }
 0x228   :  { %13071 = vst [vmem:[#allocation121_spill] sm:$0xff] %v9058_v13  ;;  %13072 = vst [vmem:[#allocation122_spill] sm:$0xff] %v9060_v45 }
 0x22c   :  { %v9062_v28 = vpop.f32.mrb[136].mxu1  ;;  %v9064_v23 = vpop.f32.mrb[136].mxu0 }
 0x22d   :  { %13073 = vst [vmem:[#allocation123_spill] sm:$0xff] %v9062_v28  ;;  %13074 = vst [vmem:[#allocation124_spill] sm:$0xff] %v9064_v23  ;;  %v9066_v21 = vpop.f32.mrb[137].mxu1  ;;  %v9068_v20 = vpop.f32.mrb[137].mxu0 }
 0x22e   :  { %13075 = vst [vmem:[#allocation125_spill] sm:$0xff] %v9066_v21  ;;  %13076 = vst [vmem:[#allocation126_spill] sm:$0xff] %v9068_v20  ;;  %v9070_v8 = vpop.f32.mrb[138].mxu1  ;;  %v9072_v61 = vpop.f32.mrb[138].mxu0 }
 0x22f   :  { %13077 = vst [vmem:[#allocation127_spill] sm:$0xff] %v9070_v8  ;;  %13078 = vst [vmem:[#allocation128_spill] sm:$0xff] %v9072_v61  ;;  %v9074_v58 = vpop.f32.mrb[139].mxu1  ;;  %v9076_v1 = vpop.f32.mrb[139].mxu0 }
 0x230   :  { %13079 = vst [vmem:[#allocation129_spill] sm:$0xff] %v9074_v58  ;;  %13080 = vst [vmem:[#allocation130_spill] sm:$0xff] %v9076_v1 }
 0x234   :  { %v9078_v2 = vpop.f32.mrb[140].mxu1  ;;  %v9080_v13 = vpop.f32.mrb[140].mxu0 }
 0x235   :  { %13081 = vst [vmem:[#allocation131_spill] sm:$0xff] %v9078_v2  ;;  %13082 = vst [vmem:[#allocation132_spill] sm:$0xff] %v9080_v13  ;;  %v9082_v51 = vpop.f32.mrb[141].mxu1  ;;  %v9084_v28 = vpop.f32.mrb[141].mxu0 }
 0x236   :  { %13083 = vst [vmem:[#allocation133_spill] sm:$0xff] %v9082_v51  ;;  %13084 = vst [vmem:[#allocation134_spill] sm:$0xff] %v9084_v28  ;;  %v9086_v23 = vpop.f32.mrb[142].mxu1  ;;  %v9088_v21 = vpop.f32.mrb[142].mxu0 }
 0x237   :  { %13085 = vst [vmem:[#allocation135_spill] sm:$0xff] %v9086_v23  ;;  %13086 = vst [vmem:[#allocation136_spill] sm:$0xff] %v9088_v21  ;;  %v9090_v20 = vpop.f32.mrb[143].mxu1  ;;  %v9092_v8 = vpop.f32.mrb[143].mxu0 }
 0x238   :  { %13087 = vst [vmem:[#allocation137_spill] sm:$0xff] %v9090_v20  ;;  %13088 = vst [vmem:[#allocation138_spill] sm:$0xff] %v9092_v8 }
 0x23c   :  { %v9094_v61 = vpop.f32.mrb[144].mxu1  ;;  %v9096_v58 = vpop.f32.mrb[144].mxu0 }
 0x23d   :  { %13089 = vst [vmem:[#allocation139_spill] sm:$0xff] %v9096_v58  ;;  %v9098_v1 = vpop.f32.mrb[145].mxu1  ;;  %v9100_v2 = vpop.f32.mrb[145].mxu0 }
 0x23e   :  { %13090 = vst [vmem:[#allocation140_spill] sm:$0xff] %v9100_v2  ;;  %v9102_v13 = vpop.f32.mrb[146].mxu1  ;;  %v9104_v51 = vpop.f32.mrb[146].mxu0 }
 0x23f   :  { %13091 = vst [vmem:[#allocation141_spill] sm:$0xff] %v9104_v51  ;;  %v9106_v28 = vpop.f32.mrb[147].mxu1  ;;  %v9108_v23 = vpop.f32.mrb[147].mxu0  ;;  %v2460_v3 = vmul.f32 %v9102_v13, %v9102_v13 }
 0x240   :  { %13092 = vst [vmem:[#allocation142_spill] sm:$0xff] %v9108_v23  ;;  %v2458_v57 = vmul.f32 %v9106_v28, %v9106_v28 }
 0x244   :  { %v9110_v21 = vpop.f32.mrb[148].mxu1  ;;  %v9112_v20 = vpop.f32.mrb[148].mxu0 }
 0x245   :  { %13093 = vst [vmem:[#allocation143_spill] sm:$0xff] %v9112_v20  ;;  %v9114_v8 = vpop.f32.mrb[149].mxu1  ;;  %v9116_v18 = vpop.f32.mrb[149].mxu0 }
 0x246   :  { %13094 = vst [vmem:[#allocation144_spill] sm:$0xff] %v9114_v8  ;;  %13095 = vst [vmem:[#allocation145_spill] sm:$0xff] %v9116_v18  ;;  %v9118_v58 = vpop.f32.mrb[150].mxu1  ;;  %v9120_v45 = vpop.f32.mrb[150].mxu0 }
 0x247   :  { %13096 = vst [vmem:[#allocation146_spill] sm:$0xff] %v9118_v58  ;;  %13097 = vst [vmem:[#allocation147_spill] sm:$0xff] %v9120_v45  ;;  %v9122_v2 = vpop.f32.mrb[151].mxu1  ;;  %v9124_v43 = vpop.f32.mrb[151].mxu0 }
 0x248   :  { %13098 = vst [vmem:[#allocation148_spill] sm:$0xff] %v9122_v2  ;;  %13099 = vst [vmem:[#allocation149_spill] sm:$0xff] %v9124_v43  ;;  %v2462_v22 = vmul.f32 %v9122_v2, %v9122_v2 }
 0x24c   :  { %v9126_v51 = vpop.f32.mrb[152].mxu1  ;;  %v9128_v12 = vpop.f32.mrb[152].mxu0 }
 0x24d   :  { %13100 = vst [vmem:[#allocation150_spill] sm:$0xff] %v9126_v51  ;;  %13101 = vst [vmem:[#allocation151_spill] sm:$0xff] %v9128_v12  ;;  %v9130_v23 = vpop.f32.mrb[153].mxu1  ;;  %v9132_v53 = vpop.f32.mrb[153].mxu0 }
 0x24e   :  { %13102 = vst [vmem:[#allocation152_spill] sm:$0xff] %v9130_v23  ;;  %13103 = vst [vmem:[#allocation153_spill] sm:$0xff] %v9132_v53  ;;  %v9134_v20 = vpop.f32.mrb[154].mxu1  ;;  %v9136_v14 = vpop.f32.mrb[154].mxu0 }
 0x24f   :  { %13104 = vst [vmem:[#allocation154_spill] sm:$0xff] %v9134_v20  ;;  %13105 = vst [vmem:[#allocation155_spill] sm:$0xff] %v9136_v14  ;;  %v9138_v18 = vpop.f32.mrb[155].mxu1  ;;  %v9140_v19 = vpop.f32.mrb[155].mxu0 }
 0x250   :  { %13106 = vst [vmem:[#allocation156_spill] sm:$0xff] %v9138_v18  ;;  %13107 = vst [vmem:[#allocation157_spill] sm:$0xff] %v9140_v19 }
 0x254   :  { %v9142_v45 = vpop.f32.mrb[156].mxu1  ;;  %v9144_v15 = vpop.f32.mrb[156].mxu0 }
 0x255   :  { %13108 = vst [vmem:[#allocation158_spill] sm:$0xff] %v9142_v45  ;;  %13109 = vst [vmem:[#allocation159_spill] sm:$0xff] %v9144_v15  ;;  %v9146_v43 = vpop.f32.mrb[157].mxu1  ;;  %v9148_v6 = vpop.f32.mrb[157].mxu0 }
 0x256   :  { %13110 = vst [vmem:[#allocation160_spill] sm:$0xff] %v9146_v43  ;;  %13111 = vst [vmem:[#allocation161_spill] sm:$0xff] %v9148_v6  ;;  %v9150_v12 = vpop.f32.mrb[158].mxu1  ;;  %v9152_v24 = vpop.f32.mrb[158].mxu0 }
 0x257   :  { %13112 = vst [vmem:[#allocation162_spill] sm:$0xff] %v9150_v12  ;;  %13113 = vst [vmem:[#allocation163_spill] sm:$0xff] %v9152_v24  ;;  %v9154_v53 = vpop.f32.mrb[159].mxu1  ;;  %v9156_v17 = vpop.f32.mrb[159].mxu0 }
 0x258   :  { %13114 = vst [vmem:[#allocation164_spill] sm:$0xff] %v9154_v53  ;;  %13115 = vst [vmem:[#allocation165_spill] sm:$0xff] %v9156_v17 }
 0x25c   :  { %v9158_v14 = vpop.f32.mrb[160].mxu1  ;;  %v9160_v29 = vpop.f32.mrb[160].mxu0 }
 0x25d   :  { %13116 = vst [vmem:[#allocation166_spill] sm:$0xff] %v9158_v14  ;;  %13117 = vst [vmem:[#allocation167_spill] sm:$0xff] %v9160_v29  ;;  %v9162_v19 = vpop.f32.mrb[161].mxu1  ;;  %v9164_v35 = vpop.f32.mrb[161].mxu0 }
 0x25e   :  { %13118 = vst [vmem:[#allocation168_spill] sm:$0xff] %v9162_v19  ;;  %13119 = vst [vmem:[#allocation169_spill] sm:$0xff] %v9164_v35  ;;  %v9166_v15 = vpop.f32.mrb[162].mxu1  ;;  %v9168_v5 = vpop.f32.mrb[162].mxu0 }
 0x25f   :  { %13120 = vst [vmem:[#allocation170_spill] sm:$0xff] %v9166_v15  ;;  %13121 = vst [vmem:[#allocation171_spill] sm:$0xff] %v9168_v5  ;;  %v9170_v6 = vpop.f32.mrb[163].mxu1  ;;  %v9172_v52 = vpop.f32.mrb[163].mxu0 }
 0x260   :  { %13122 = vst [vmem:[#allocation172_spill] sm:$0xff] %v9170_v6  ;;  %13123 = vst [vmem:[#allocation173_spill] sm:$0xff] %v9172_v52 }
 0x264   :  { %v9174_v24 = vpop.f32.mrb[164].mxu1  ;;  %v9176_v4 = vpop.f32.mrb[164].mxu0 }
 0x265   :  { %13124 = vst [vmem:[#allocation174_spill] sm:$0xff] %v9174_v24  ;;  %13125 = vst [vmem:[#allocation175_spill] sm:$0xff] %v9176_v4  ;;  %v9178_v17 = vpop.f32.mrb[165].mxu1  ;;  %v9180_v40 = vpop.f32.mrb[165].mxu0 }
 0x266   :  { %13126 = vst [vmem:[#allocation176_spill] sm:$0xff] %v9178_v17  ;;  %13127 = vst [vmem:[#allocation177_spill] sm:$0xff] %v9180_v40  ;;  %v9182_v29 = vpop.f32.mrb[166].mxu1  ;;  %v9184_v30 = vpop.f32.mrb[166].mxu0 }
 0x267   :  { %13128 = vst [vmem:[#allocation178_spill] sm:$0xff] %v9182_v29  ;;  %13129 = vst [vmem:[#allocation179_spill] sm:$0xff] %v9184_v30  ;;  %v9186_v35 = vpop.f32.mrb[167].mxu1  ;;  %v9188_v37 = vpop.f32.mrb[167].mxu0 }
 0x268   :  { %13130 = vst [vmem:[#allocation180_spill] sm:$0xff] %v9186_v35  ;;  %13131 = vst [vmem:[#allocation181_spill] sm:$0xff] %v9188_v37 }
 0x26c   :  { %v9190_v5 = vpop.f32.mrb[168].mxu1  ;;  %v9192_v26 = vpop.f32.mrb[168].mxu0 }
 0x26d   :  { %13132 = vst [vmem:[#allocation182_spill] sm:$0xff] %v9190_v5  ;;  %13133 = vst [vmem:[#allocation183_spill] sm:$0xff] %v9192_v26  ;;  %v9194_v52 = vpop.f32.mrb[169].mxu1  ;;  %v9196_v55 = vpop.f32.mrb[169].mxu0 }
 0x26e   :  { %13134 = vst [vmem:[#allocation184_spill] sm:$0xff] %v9194_v52  ;;  %13135 = vst [vmem:[#allocation185_spill] sm:$0xff] %v9196_v55  ;;  %v9198_v4 = vpop.f32.mrb[170].mxu1  ;;  %v9200_v33 = vpop.f32.mrb[170].mxu0 }
 0x26f   :  { %13136 = vst [vmem:[#allocation186_spill] sm:$0xff] %v9198_v4  ;;  %13137 = vst [vmem:[#allocation187_spill] sm:$0xff] %v9200_v33  ;;  %v9202_v40 = vpop.f32.mrb[171].mxu1  ;;  %v9204_v59 = vpop.f32.mrb[171].mxu0 }
 0x270   :  { %13138 = vst [vmem:[#allocation188_spill] sm:$0xff] %v9202_v40  ;;  %13139 = vst [vmem:[#allocation189_spill] sm:$0xff] %v9204_v59  ;;  %v7033_v59 = vld [vmem:[%s12387_s4] sm:$0xff]  }
 0x271   :  { %6639 = vmatprep.subr.bf16.mxu1 %v7033_v59 }
 0x272   :  { %6640 = vmatpush3.bf16.msra.mxu1 %v7033_v59 }
 0x274   :  { %v9206_v30 = vpop.f32.mrb[172].mxu1  ;;  %v9208_v9 = vpop.f32.mrb[172].mxu0 }
 0x275   :  { %13140 = vst [vmem:[#allocation190_spill] sm:$0xff] %v9206_v30  ;;  %13141 = vst [vmem:[#allocation191_spill] sm:$0xff] %v9208_v9  ;;  %v9210_v37 = vpop.f32.mrb[173].mxu1  ;;  %v9212_v62 = vpop.f32.mrb[173].mxu0 }
 0x276   :  { %13142 = vst [vmem:[#allocation192_spill] sm:$0xff] %v9210_v37  ;;  %13143 = vst [vmem:[#allocation193_spill] sm:$0xff] %v9212_v62  ;;  %v9214_v26 = vpop.f32.mrb[174].mxu1  ;;  %v9216_v47 = vpop.f32.mrb[174].mxu0  ;;  %v2459_v62 = vmul.f32 %v9094_v61, %v9094_v61 }
 0x277   :  { %13144 = vst [vmem:[#allocation194_spill] sm:$0xff] %v9214_v26  ;;  %13145 = vst [vmem:[#allocation195_spill] sm:$0xff] %v9216_v47  ;;  %v9218_v55 = vpop.f32.mrb[175].mxu1  ;;  %v9220_v41 = vpop.f32.mrb[175].mxu0 }
 0x278   :  { %13146 = vst [vmem:[#allocation196_spill] sm:$0xff] %v9218_v55  ;;  %13147 = vst [vmem:[#allocation197_spill] sm:$0xff] %v9220_v41  ;;  %v2457_v41 = vmul.f32 %v9098_v1, %v9098_v1 }
 0x27c   :  { %v9225_v33 = vpop.f32.mrb[176].mxu1  ;;  %v9227_v27 = vpop.f32.mrb[176].mxu0 }
 0x27d   :  { %v2491_v9 = vmul.f32 %v9225_v33, %v9225_v33  ;;  %v9233_v47 = vpop.f32.mrb[177].mxu1  ;;  %v9235_v36 = vpop.f32.mrb[177].mxu0  ;;  %v2555_v56 = vmul.f32 %v9227_v27, %v9227_v27 }
 0x27e   :  { %v2489_v42 = vmul.f32 %v9233_v47, %v9233_v47  ;;  %v9241_v50 = vpop.f32.mrb[178].mxu1  ;;  %v9243_v32 = vpop.f32.mrb[178].mxu0  ;;  %v2553_v34 = vmul.f32 %v9235_v36, %v9235_v36 }
 0x27f   :  { %v2523_v48 = vadd.f32 %v2491_v9, %v2459_v62  ;;  %v2492_v59 = vmul.f32 %v9241_v50, %v9241_v50  ;;  %v9251_v54 = vpop.f32.mrb[179].mxu1  ;;  %v9253_v0 = vpop.f32.mrb[179].mxu0  ;;  %v2556_v25 = vmul.f32 %v9243_v32, %v9243_v32 }
 0x280   :  { %v2521_v11 = vadd.f32 %v2489_v42, %v2457_v41  ;;  %v2490_v62 = vmul.f32 %v9251_v54, %v9251_v54  ;;  %v2554_v16 = vmul.f32 %v9253_v0, %v9253_v0 }
 0x281   :  { %v9261_v9 = vadd.f32 %v2555_v56, %v2523_v48  ;;  %v2524_v7 = vadd.f32 %v2492_v59, %v2460_v3  ;;  %v2463_v56 = vmul.f32 %v9110_v21, %v9110_v21 }
 0x282   :  { %v9265_v31 = vadd.f32 %v2553_v34, %v2521_v11  ;;  %v2522_v10 = vadd.f32 %v2490_v62, %v2458_v57  ;;  %v2464_v57 = vmul.f32 %v9118_v58, %v9118_v58 }
 0x283   :  { %v9269_v60 = vadd.f32 %v2556_v25, %v2524_v7  ;;  %v2461_v7 = vmul.f32 %v9114_v8, %v9114_v8 }
 0x284   :  { %v9271_v42 = vadd.f32 %v2554_v16, %v2522_v10  ;;  %v9273_v41 = vpop.f32.mrb[180].mxu1 }
 0x285   :  { %v9275_v44 = vpop.f32.mrb[180].mxu0  ;;  %v2495_v3 = vmul.f32 %v9273_v41, %v9273_v41  ;;  %v9281_v11 = vpop.f32.mrb[181].mxu1 }
 0x286   :  { %13148 = vst [vmem:[#allocation198_spill] sm:$0xff] %v9281_v11  ;;  %v9283_v34 = vpop.f32.mrb[181].mxu0  ;;  %v2493_v16 = vmul.f32 %v9281_v11, %v9281_v11  ;;  %v9289_v10 = vpop.f32.mrb[182].mxu1  ;;  %v2559_v59 = vmul.f32 %v9275_v44, %v9275_v44 }
 0x287   :  { %13149 = vst [vmem:[#allocation199_spill] sm:$0xff] %v9283_v34  ;;  %13150 = vst [vmem:[#allocation200_spill] sm:$0xff] %v9289_v10  ;;  %v9291_v25 = vpop.f32.mrb[182].mxu0  ;;  %v2527_v48 = vadd.f32 %v2495_v3, %v2463_v56  ;;  %v2496_v62 = vmul.f32 %v9289_v10, %v9289_v10  ;;  %v9299_v38 = vpop.f32.mrb[183].mxu1  ;;  %v2557_v39 = vmul.f32 %v9283_v34, %v9283_v34 }
 0x288   :  { %13151 = vst [vmem:[#allocation201_spill] sm:$0xff] %v9291_v25  ;;  %13152 = vst [vmem:[#allocation202_spill] sm:$0xff] %v9299_v38  ;;  %v9301_v49 = vpop.f32.mrb[183].mxu0  ;;  %v2525_v46 = vadd.f32 %v2493_v16, %v2461_v7  ;;  %v2494_v56 = vmul.f32 %v9299_v38, %v9299_v38  ;;  %v2560_v10 = vmul.f32 %v9291_v25, %v9291_v25 }
 0x289   :  { %13153 = vst [vmem:[#allocation203_spill] sm:$0xff] %v9301_v49  ;;  %v9309_v3 = vadd.f32 %v2559_v59, %v2527_v48  ;;  %v2528_v63 = vadd.f32 %v2496_v62, %v2464_v57  ;;  %v2558_v8 = vmul.f32 %v9301_v49, %v9301_v49  ;;  %v2467_v57 = vmul.f32 %v9126_v51, %v9126_v51 }
 0x28a   :  { %v9313_v58 = vadd.f32 %v2557_v39, %v2525_v46  ;;  %v2526_v11 = vadd.f32 %v2494_v56, %v2462_v22 }
 0x28b   :  { %v9317_v2 = vadd.f32 %v2560_v10, %v2528_v63  ;;  %v2465_v63 = vmul.f32 %v9130_v23, %v9130_v23  ;;  %v2468_v10 = vmul.f32 %v9134_v20, %v9134_v20 }
 0x28c   :  { %v9319_v7 = vadd.f32 %v2558_v8, %v2526_v11  ;;  %v9321_v16 = vpop.f32.mrb[184].mxu1 }
 0x28d   :  { %13154 = vst [vmem:[#allocation204_spill] sm:$0xff] %v9321_v16  ;;  %v9323_v34 = vpop.f32.mrb[184].mxu0  ;;  %v2499_v48 = vmul.f32 %v9321_v16, %v9321_v16  ;;  %v9329_v39 = vpop.f32.mrb[185].mxu1 }
 0x28e   :  { %13155 = vst [vmem:[#allocation205_spill] sm:$0xff] %v9323_v34  ;;  %13156 = vst [vmem:[#allocation206_spill] sm:$0xff] %v9329_v39  ;;  %v9331_v46 = vpop.f32.mrb[185].mxu0  ;;  %v2497_v22 = vmul.f32 %v9329_v39, %v9329_v39  ;;  %v9337_v8 = vpop.f32.mrb[186].mxu1  ;;  %v2563_v62 = vmul.f32 %v9323_v34, %v9323_v34  ;;  %v2466_v39 = vmul.f32 %v9138_v18, %v9138_v18 }
 0x28f   :  { %13157 = vst [vmem:[#allocation207_spill] sm:$0xff] %v9331_v46  ;;  %13158 = vst [vmem:[#allocation208_spill] sm:$0xff] %v9337_v8  ;;  %v9339_v11 = vpop.f32.mrb[186].mxu0  ;;  %v2531_v59 = vadd.f32 %v2499_v48, %v2467_v57  ;;  %v2500_v56 = vmul.f32 %v9337_v8, %v9337_v8  ;;  %v9347_v16 = vpop.f32.mrb[187].mxu1  ;;  %v2561_v49 = vmul.f32 %v9331_v46, %v9331_v46 }
 0x290   :  { %13159 = vst [vmem:[#allocation209_spill] sm:$0xff] %v9339_v11  ;;  %13160 = vst [vmem:[#allocation210_spill] sm:$0xff] %v9347_v16  ;;  %v9349_v23 = vpop.f32.mrb[187].mxu0  ;;  %v2529_v51 = vadd.f32 %v2497_v22, %v2465_v63  ;;  %v2498_v57 = vmul.f32 %v9347_v16, %v9347_v16  ;;  %v2564_v8 = vmul.f32 %v9339_v11, %v9339_v11 }
 0x291   :  { %13161 = vst [vmem:[#allocation211_spill] sm:$0xff] %v9349_v23  ;;  %v9357_v48 = vadd.f32 %v2563_v62, %v2531_v59  ;;  %v2532_v20 = vadd.f32 %v2500_v56, %v2468_v10  ;;  %v2562_v25 = vmul.f32 %v9349_v23, %v9349_v23  ;;  %v2471_v10 = vmul.f32 %v9142_v45, %v9142_v45 }
 0x292   :  { %v9361_v34 = vadd.f32 %v2561_v49, %v2529_v51  ;;  %v2530_v38 = vadd.f32 %v2498_v57, %v2466_v39 }
 0x293   :  { %v9365_v18 = vadd.f32 %v2564_v8, %v2532_v20  ;;  %v2469_v20 = vmul.f32 %v9146_v43, %v9146_v43  ;;  %v2472_v8 = vmul.f32 %v9150_v12, %v9150_v12 }
 0x294   :  { %v9367_v63 = vadd.f32 %v2562_v25, %v2530_v38  ;;  %v9369_v22 = vpop.f32.mrb[188].mxu1 }
 0x295   :  { %13162 = vst [vmem:[#allocation212_spill] sm:$0xff] %v9369_v22  ;;  %v9371_v46 = vpop.f32.mrb[188].mxu0  ;;  %v2503_v59 = vmul.f32 %v9369_v22, %v9369_v22  ;;  %v9377_v49 = vpop.f32.mrb[189].mxu1 }
 0x296   :  { %13163 = vst [vmem:[#allocation213_spill] sm:$0xff] %v9371_v46  ;;  %13164 = vst [vmem:[#allocation214_spill] sm:$0xff] %v9377_v49  ;;  %v9379_v51 = vpop.f32.mrb[189].mxu0  ;;  %v2501_v38 = vmul.f32 %v9377_v49, %v9377_v49  ;;  %v9385_v25 = vpop.f32.mrb[190].mxu1  ;;  %v2567_v56 = vmul.f32 %v9371_v46, %v9371_v46  ;;  %v2470_v49 = vmul.f32 %v9154_v53, %v9154_v53 }
 0x297   :  { %13165 = vst [vmem:[#allocation215_spill] sm:$0xff] %v9379_v51  ;;  %13166 = vst [vmem:[#allocation216_spill] sm:$0xff] %v9385_v25  ;;  %v9387_v39 = vpop.f32.mrb[190].mxu0  ;;  %v2535_v62 = vadd.f32 %v2503_v59, %v2471_v10  ;;  %v2504_v57 = vmul.f32 %v9385_v25, %v9385_v25  ;;  %v9395_v22 = vpop.f32.mrb[191].mxu1  ;;  %v2565_v23 = vmul.f32 %v9379_v51, %v9379_v51 }
 0x298   :  { %13167 = vst [vmem:[#allocation217_spill] sm:$0xff] %v9387_v39  ;;  %13168 = vst [vmem:[#allocation218_spill] sm:$0xff] %v9395_v22  ;;  %v9397_v43 = vpop.f32.mrb[191].mxu0  ;;  %v2533_v45 = vadd.f32 %v2501_v38, %v2469_v20  ;;  %v2502_v10 = vmul.f32 %v9395_v22, %v9395_v22  ;;  %v2568_v25 = vmul.f32 %v9387_v39, %v9387_v39 }
 0x299   :  { %13169 = vst [vmem:[#allocation219_spill] sm:$0xff] %v9397_v43  ;;  %v9405_v59 = vadd.f32 %v2567_v56, %v2535_v62  ;;  %v2536_v12 = vadd.f32 %v2504_v57, %v2472_v8  ;;  %v2566_v11 = vmul.f32 %v9397_v43, %v9397_v43  ;;  %v2475_v8 = vmul.f32 %v9158_v14, %v9158_v14 }
 0x29a   :  { %v9409_v46 = vadd.f32 %v2565_v23, %v2533_v45  ;;  %v2534_v16 = vadd.f32 %v2502_v10, %v2470_v49  ;;  %v2476_v56 = vmul.f32 %v9166_v15, %v9166_v15  ;;  %v2474_v14 = vmul.f32 %v9170_v6, %v9170_v6 }
 0x29b   :  { %v9413_v53 = vadd.f32 %v2568_v25, %v2536_v12  ;;  %v2473_v12 = vmul.f32 %v9162_v19, %v9162_v19  ;;  %v7034_v25 = vld [vmem:[%s12387_s4 + $0x8] sm:$0xff]  }
 0x29c   :  { %v9415_v20 = vadd.f32 %v2566_v11, %v2534_v16  ;;  %v9417_v38 = vpop.f32.mrb[192].mxu1  ;;  %6641 = vmatprep.subr.bf16.mxu1 %v7034_v25 }
 0x29d   :  { %13170 = vst [vmem:[#allocation220_spill] sm:$0xff] %v9417_v38  ;;  %v9419_v51 = vpop.f32.mrb[192].mxu0  ;;  %v2507_v62 = vmul.f32 %v9417_v38, %v9417_v38  ;;  %v9425_v23 = vpop.f32.mrb[193].mxu1  ;;  %6642 = vmatpush3.bf16.msra.mxu1 %v7034_v25 }
 0x29e   :  { %13171 = vst [vmem:[#allocation221_spill] sm:$0xff] %v9419_v51  ;;  %13172 = vst [vmem:[#allocation222_spill] sm:$0xff] %v9425_v23  ;;  %v9427_v45 = vpop.f32.mrb[193].mxu0  ;;  %v2505_v16 = vmul.f32 %v9425_v23, %v9425_v23  ;;  %v9433_v11 = vpop.f32.mrb[194].mxu1  ;;  %v2571_v10 = vmul.f32 %v9419_v51, %v9419_v51 }
 0x29f   :  { %13173 = vst [vmem:[#allocation223_spill] sm:$0xff] %v9427_v45  ;;  %13174 = vst [vmem:[#allocation224_spill] sm:$0xff] %v9433_v11  ;;  %v9435_v49 = vpop.f32.mrb[194].mxu0  ;;  %v2539_v57 = vadd.f32 %v2507_v62, %v2475_v8  ;;  %v2508_v19 = vmul.f32 %v9433_v11, %v9433_v11  ;;  %v9446_v38 = vpop.f32.mrb[195].mxu1  ;;  %v2569_v22 = vmul.f32 %v9427_v45, %v9427_v45 }
 0x2a0   :  { %13175 = vst [vmem:[#allocation225_spill] sm:$0xff] %v9435_v49  ;;  %13176 = vst [vmem:[#allocation226_spill] sm:$0xff] %v9446_v38  ;;  %v9448_v23 = vpop.f32.mrb[195].mxu0  ;;  %v2537_v43 = vadd.f32 %v2505_v16, %v2473_v12  ;;  %v2506_v8 = vmul.f32 %v9446_v38, %v9446_v38  ;;  %v2572_v11 = vmul.f32 %v9435_v49, %v9435_v49 }
 0x2a1   :  { %13177 = vst [vmem:[#allocation227_spill] sm:$0xff] %v9448_v23  ;;  %v9456_v62 = vadd.f32 %v2571_v10, %v2539_v57  ;;  %v2540_v15 = vadd.f32 %v2508_v19, %v2476_v56  ;;  %v2570_v12 = vmul.f32 %v9448_v23, %v9448_v23  ;;  %v2479_v19 = vmul.f32 %v9174_v24, %v9174_v24 }
 0x2a2   :  { %v9460_v51 = vadd.f32 %v2569_v22, %v2537_v43  ;;  %v2538_v39 = vadd.f32 %v2506_v8, %v2474_v14  ;;  %v2480_v56 = vmul.f32 %v9182_v29, %v9182_v29 }
 0x2a3   :  { %v9464_v16 = vadd.f32 %v2572_v11, %v2540_v15  ;;  %v2477_v15 = vmul.f32 %v9178_v17, %v9178_v17 }
 0x2a4   :  { %v9466_v6 = vadd.f32 %v2570_v12, %v2538_v39  ;;  %v9468_v45 = vpop.f32.mrb[196].mxu1 }
 0x2a5   :  { %13178 = vst [vmem:[#allocation228_spill] sm:$0xff] %v9468_v45  ;;  %v9470_v38 = vpop.f32.mrb[196].mxu0  ;;  %v2511_v25 = vmul.f32 %v9468_v45, %v9468_v45  ;;  %v9476_v43 = vpop.f32.mrb[197].mxu1 }
 0x2a6   :  { %13179 = vst [vmem:[#allocation229_spill] sm:$0xff] %v9470_v38  ;;  %13180 = vst [vmem:[#allocation230_spill] sm:$0xff] %v9476_v43  ;;  %v9478_v14 = vpop.f32.mrb[197].mxu0  ;;  %v2509_v22 = vmul.f32 %v9476_v43, %v9476_v43  ;;  %v9484_v39 = vpop.f32.mrb[198].mxu1  ;;  %v2575_v10 = vmul.f32 %v9470_v38, %v9470_v38  ;;  %v2478_v43 = vmul.f32 %v9186_v35, %v9186_v35 }
 0x2a7   :  { %13181 = vst [vmem:[#allocation231_spill] sm:$0xff] %v9478_v14  ;;  %13182 = vst [vmem:[#allocation232_spill] sm:$0xff] %v9484_v39  ;;  %v9486_v11 = vpop.f32.mrb[198].mxu0  ;;  %v2543_v57 = vadd.f32 %v2511_v25, %v2479_v19  ;;  %v2512_v8 = vmul.f32 %v9484_v39, %v9484_v39  ;;  %v9494_v12 = vpop.f32.mrb[199].mxu1  ;;  %v2573_v24 = vmul.f32 %v9478_v14, %v9478_v14 }
 0x2a8   :  { %13183 = vst [vmem:[#allocation233_spill] sm:$0xff] %v9486_v11  ;;  %13184 = vst [vmem:[#allocation234_spill] sm:$0xff] %v9494_v12  ;;  %v9496_v17 = vpop.f32.mrb[199].mxu0  ;;  %v2541_v45 = vadd.f32 %v2509_v22, %v2477_v15  ;;  %v2510_v19 = vmul.f32 %v9494_v12, %v9494_v12  ;;  %v2576_v39 = vmul.f32 %v9486_v11, %v9486_v11 }
 0x2a9   :  { %13185 = vst [vmem:[#allocation235_spill] sm:$0xff] %v9496_v17  ;;  %v9504_v25 = vadd.f32 %v2575_v10, %v2543_v57  ;;  %v2544_v29 = vadd.f32 %v2512_v8, %v2480_v56  ;;  %v2574_v49 = vmul.f32 %v9496_v17, %v9496_v17  ;;  %v2483_v56 = vmul.f32 %v9190_v5, %v9190_v5 }
 0x2aa   :  { %v9508_v38 = vadd.f32 %v2573_v24, %v2541_v45  ;;  %v2542_v23 = vadd.f32 %v2510_v19, %v2478_v43  ;;  %v2484_v10 = vmul.f32 %v9198_v4, %v9198_v4  ;;  %v2482_v5 = vmul.f32 %v9202_v40, %v9202_v40 }
 0x2ab   :  { %v9512_v35 = vadd.f32 %v2576_v39, %v2544_v29  ;;  %v2481_v29 = vmul.f32 %v9194_v52, %v9194_v52  ;;  %v7035_v39 = vld [vmem:[%s12387_s4 + $0x10] sm:$0xff]  }
 0x2ac   :  { %13186 = vst [vmem:[#allocation236_spill] sm:$0xff] %v9508_v38  ;;  %v9514_v15 = vadd.f32 %v2574_v49, %v2542_v23  ;;  %v9516_v22 = vpop.f32.mrb[200].mxu1  ;;  %6643 = vmatprep.subr.bf16.mxu1 %v7035_v39 }
 0x2ad   :  { %13187 = vst [vmem:[#allocation237_spill] sm:$0xff] %v9512_v35  ;;  %13189 = vst [vmem:[#allocation239_spill] sm:$0xff] %v9516_v22  ;;  %v9518_v14 = vpop.f32.mrb[200].mxu0  ;;  %v2515_v57 = vmul.f32 %v9516_v22, %v9516_v22  ;;  %v9524_v24 = vpop.f32.mrb[201].mxu1  ;;  %6644 = vmatpush3.bf16.msra.mxu1 %v7035_v39 }
 0x2ae   :  { %13188 = vst [vmem:[#allocation238_spill] sm:$0xff] %v9514_v15  ;;  %13190 = vst [vmem:[#allocation240_spill] sm:$0xff] %v9518_v14  ;;  %v9526_v45 = vpop.f32.mrb[201].mxu0  ;;  %v2513_v23 = vmul.f32 %v9524_v24, %v9524_v24  ;;  %v9532_v49 = vpop.f32.mrb[202].mxu1  ;;  %v2579_v19 = vmul.f32 %v9518_v14, %v9518_v14 }
 0x2af   :  { %13191 = vst [vmem:[#allocation241_spill] sm:$0xff] %v9524_v24  ;;  %13192 = vst [vmem:[#allocation242_spill] sm:$0xff] %v9526_v45  ;;  %v9534_v43 = vpop.f32.mrb[202].mxu0  ;;  %v2547_v8 = vadd.f32 %v2515_v57, %v2483_v56  ;;  %v2516_v52 = vmul.f32 %v9532_v49, %v9532_v49  ;;  %v9545_v22 = vpop.f32.mrb[203].mxu1  ;;  %v2577_v12 = vmul.f32 %v9526_v45, %v9526_v45 }
 0x2b0   :  { %13193 = vst [vmem:[#allocation243_spill] sm:$0xff] %v9532_v49  ;;  %13194 = vst [vmem:[#allocation244_spill] sm:$0xff] %v9534_v43  ;;  %v9547_v24 = vpop.f32.mrb[203].mxu0  ;;  %v2545_v17 = vadd.f32 %v2513_v23, %v2481_v29  ;;  %v2514_v56 = vmul.f32 %v9545_v22, %v9545_v22  ;;  %v2580_v49 = vmul.f32 %v9534_v43, %v9534_v43 }
 0x2b1   :  { %13195 = vst [vmem:[#allocation245_spill] sm:$0xff] %v9545_v22  ;;  %13196 = vst [vmem:[#allocation246_spill] sm:$0xff] %v9547_v24  ;;  %v9555_v57 = vadd.f32 %v2579_v19, %v2547_v8  ;;  %v2548_v4 = vadd.f32 %v2516_v52, %v2484_v10  ;;  %v2578_v29 = vmul.f32 %v9547_v24, %v9547_v24 }
 0x2b2   :  { %v9559_v14 = vadd.f32 %v2577_v12, %v2545_v17  ;;  %v2546_v11 = vadd.f32 %v2514_v56, %v2482_v5  ;;  %v2487_v52 = vmul.f32 %v9206_v30, %v9206_v30  ;;  %v2488_v10 = vmul.f32 %v9214_v26, %v9214_v26 }
 0x2b3   :  { %13197 = vst [vmem:[#allocation247_spill] sm:$0xff] %v9555_v57  ;;  %v9563_v23 = vadd.f32 %v2580_v49, %v2548_v4  ;;  %v2485_v4 = vmul.f32 %v9210_v37, %v9210_v37 }
 0x2b4   :  { %13198 = vst [vmem:[#allocation248_spill] sm:$0xff] %v9559_v14  ;;  %v9565_v40 = vadd.f32 %v2578_v29, %v2546_v11  ;;  %v9567_v45 = vpop.f32.mrb[204].mxu1 }
 0x2b5   :  { %13199 = vst [vmem:[#allocation249_spill] sm:$0xff] %v9563_v23  ;;  %13201 = vst [vmem:[#allocation251_spill] sm:$0xff] %v9567_v45  ;;  %v9569_v22 = vpop.f32.mrb[204].mxu0  ;;  %v2519_v39 = vmul.f32 %v9567_v45, %v9567_v45  ;;  %v9575_v17 = vpop.f32.mrb[205].mxu1 }
 0x2b6   :  { %13200 = vst [vmem:[#allocation250_spill] sm:$0xff] %v9565_v40  ;;  %13202 = vst [vmem:[#allocation252_spill] sm:$0xff] %v9569_v22  ;;  %v9577_v5 = vpop.f32.mrb[205].mxu0  ;;  %v2517_v11 = vmul.f32 %v9575_v17, %v9575_v17  ;;  %v9583_v12 = vpop.f32.mrb[206].mxu1  ;;  %v2583_v19 = vmul.f32 %v9569_v22, %v9569_v22 }
 0x2b7   :  { %13203 = vst [vmem:[#allocation253_spill] sm:$0xff] %v9575_v17  ;;  %13204 = vst [vmem:[#allocation254_spill] sm:$0xff] %v9577_v5  ;;  %v9585_v49 = vpop.f32.mrb[206].mxu0  ;;  %v2551_v8 = vadd.f32 %v2519_v39, %v2487_v52  ;;  %v2520_v56 = vmul.f32 %v9583_v12, %v9583_v12  ;;  %v9593_v29 = vpop.f32.mrb[207].mxu1  ;;  %v2486_v17 = vmul.f32 %v9218_v55, %v9218_v55 }
 0x2b8   :  { %13205 = vst [vmem:[#allocation255_spill] sm:$0xff] %v9583_v12  ;;  %13206 = vst [vmem:[#allocation256_spill] sm:$0xff] %v9585_v49  ;;  %v9595_v37 = vpop.f32.mrb[207].mxu0  ;;  %v2549_v45 = vadd.f32 %v2517_v11, %v2485_v4  ;;  %v2581_v30 = vmul.f32 %v9577_v5, %v9577_v5  ;;  %v2518_v52 = vmul.f32 %v9593_v29, %v9593_v29 }
 0x2b9   :  { %13207 = vst [vmem:[#allocation257_spill] sm:$0xff] %v9593_v29  ;;  %13208 = vst [vmem:[#allocation258_spill] sm:$0xff] %v9595_v37  ;;  %v9603_v39 = vadd.f32 %v2583_v19, %v2551_v8  ;;  %v2552_v26 = vadd.f32 %v2520_v56, %v2488_v10  ;;  %v2584_v12 = vmul.f32 %v9585_v49, %v9585_v49  ;;  %v7036_v10 = vld [vmem:[%s12386_s3 + $0x40] sm:$0xff]  }
 0x2ba   :  { %v9607_v22 = vadd.f32 %v2581_v30, %v2549_v45  ;;  %v2550_v24 = vadd.f32 %v2518_v52, %v2486_v17  ;;  %v2582_v43 = vmul.f32 %v9595_v37, %v9595_v37  ;;  %6447 = vmatprep.subr.bf16.mxu0 %v7036_v10 }
 0x2bb   :  { %13209 = vst [vmem:[#allocation259_spill] sm:$0xff] %v9603_v39  ;;  %v9611_v55 = vadd.f32 %v2584_v12, %v2552_v26  ;;  %6448 = vmatpush3.bf16.msra.mxu0 %v7036_v10 }
 0x2bc   :  { %13210 = vst [vmem:[#allocation260_spill] sm:$0xff] %v9607_v22  ;;  %v9613_v4 = vadd.f32 %v2582_v43, %v2550_v24  ;;  %v6417_v11 = vpop.f32.mrb[208].mxu1 }
 0x2bd   :  { %13211 = vst [vmem:[#allocation261_spill] sm:$0xff] %v9611_v55  ;;  %v2619_v5 = vmul.f32 %v6417_v11, %v6417_v11  ;;  %v2330_v40 = vpop.f32.mrb[209].mxu1 }
 0x2be   :  { %13212 = vst [vmem:[#allocation262_spill] sm:$0xff] %v9613_v4  ;;  %v2617_v8 = vmul.f32 %v2330_v40, %v2330_v40  ;;  %v9618_v19 = vpop.f32.mrb[210].mxu1 }
 0x2bf   :  { %v2651_v30 = vadd.f32 %v2619_v5, %v9261_v9  ;;  %v2620_v45 = vmul.f32 %v9618_v19, %v9618_v19  ;;  %v9623_v17 = vpop.f32.mrb[211].mxu1 }
 0x2c0   :  { %v2649_v26 = vadd.f32 %v2617_v8, %v9265_v31  ;;  %v2618_v24 = vmul.f32 %v9623_v17, %v9623_v17  ;;  %v7038_v31 = vld [vmem:[%s12386_s3 + $0x48] sm:$0xff]  }
 0x2c1   :  { %v2683_v43 = vmax.f32 %v2651_v30, 1e-24  ;;  %v2652_v12 = vadd.f32 %v2620_v45, %v9269_v60  ;;  %6449 = vmatprep.subr.bf16.mxu0 %v7038_v31 }
 0x2c2   :  { %v2681_v56 = vmax.f32 %v2649_v26, 1e-24  ;;  %v2650_v52 = vadd.f32 %v2618_v24, %v9271_v42  ;;  %6450 = vmatpush3.bf16.msra.mxu0 %v7038_v31 }
 0x2c3   :  { %7081 = vrsqrt.f32 %v2683_v43  ;;  %v2684_v9 = vmax.f32 %v2652_v12, 1e-24 }
 0x2c4   :  { %7083 = vrsqrt.f32 %v2681_v56  ;;  %v2682_v5 = vmax.f32 %v2650_v52, 1e-24  ;;  %v9630_v37 = vpop.f32.mrb[212].mxu1 }
 0x2c5   :  { %7085 = vrsqrt.f32 %v2684_v9  ;;  %v2623_v10 = vmul.f32 %v9630_v37, %v9630_v37  ;;  %v9637_v8 = vpop.f32.mrb[213].mxu1 }
 0x2c6   :  { %7087 = vrsqrt.f32 %v2682_v5  ;;  %v2621_v60 = vmul.f32 %v9637_v8, %v9637_v8  ;;  %v9641_v42 = vpop.f32.mrb[214].mxu1 }
 0x2c7   :  { %v2655_v30 = vadd.f32 %v2623_v10, %v9309_v3  ;;  %v2624_v45 = vmul.f32 %v9641_v42, %v9641_v42  ;;  %v9646_v26 = vpop.f32.mrb[215].mxu1 }
 0x2c8   :  { %v2653_v24 = vadd.f32 %v2621_v60, %v9313_v58  ;;  %v2622_v43 = vmul.f32 %v9646_v26, %v9646_v26 }
 0x2c9   :  { %v2687_v12 = vmax.f32 %v2655_v30, 1e-24  ;;  %v2656_v56 = vadd.f32 %v2624_v45, %v9317_v2 }
 0x2ca   :  { %v2685_v52 = vmax.f32 %v2653_v24, 1e-24  ;;  %v2654_v9 = vadd.f32 %v2622_v43, %v9319_v7 }
 0x2cb   :  { %7089 = vrsqrt.f32 %v2687_v12  ;;  %v2688_v5 = vmax.f32 %v2656_v56, 1e-24 }
 0x2cc   :  { %7091 = vrsqrt.f32 %v2685_v52  ;;  %v9653_v3 = vpop.f32.mrb[216].mxu1  ;;  %v2686_v29 = vmax.f32 %v2654_v9, 1e-24 }
 0x2cd   :  { %13213 = vst [vmem:[#allocation263_spill] sm:$0xff] %v9653_v3  ;;  %v7082_v10 = vpop.eup %7081  ;;  %7093 = vrsqrt.f32 %v2688_v5  ;;  %v2627_v58 = vmul.f32 %v9653_v3, %v9653_v3  ;;  %v9657_v31 = vpop.f32.mrb[217].mxu1 }
 0x2ce   :  { %13214 = vst [vmem:[#allocation264_spill] sm:$0xff] %v9657_v31  ;;  %v7084_v60 = vpop.eup %7083  ;;  %v2747_v30 = vmul.f32 %v7082_v10, %v9094_v61  ;;  %v2779_v2 = vmul.f32 %v7082_v10, %v9225_v33  ;;  %v2811_v7 = vmul.f32 %v7082_v10, %v9227_v27  ;;  %v2843_v45 = vmul.f32 %v7082_v10, %v6417_v11  ;;  %v9662_v24 = vpop.f32.mrb[218].mxu1  ;;  %v7039_v61 = vld [vmem:[%s12386_s3 + $0x50] sm:$0xff]  }
 0x2cf   :  { %13215 = vst [vmem:[#allocation265_spill] sm:$0xff] %v9662_v24  ;;  %v7086_v43 = vpop.eup %7085  ;;  %v2745_v12 = vmul.f32 %v7084_v60, %v9098_v1  ;;  %v2777_v56 = vmul.f32 %v7084_v60, %v9233_v47  ;;  %v2809_v52 = vmul.f32 %v7084_v60, %v9235_v36  ;;  %v2841_v9 = vmul.f32 %v7084_v60, %v2330_v40  ;;  %v9667_v5 = vpop.f32.mrb[219].mxu1 }
 0x2d0   :  { %13216 = vst [vmem:[#allocation266_spill] sm:$0xff] %v9667_v5  ;;  %v7088_v33 = vpop.eup %7087  ;;  %v2875_v49 = vmax.f32 %v2747_v30, %v2779_v2  ;;  %v2748_v27 = vmul.f32 %v7086_v43, %v9102_v13  ;;  %v9674_v11 = vmul.f32 %v7086_v43, %v9241_v50  ;;  %v9677_v1 = vmul.f32 %v7086_v43, %v9243_v32  ;;  %v7037_v13 = vld [vmem:[%s12387_s4 + $0x18] sm:$0xff]  }
 0x2d1   :  { %v2873_v47 = vmax.f32 %v2745_v12, %v2777_v56  ;;  %v9680_v36 = vmul.f32 %v7086_v43, %v9618_v19  ;;  %v9683_v40 = vmul.f32 %v7088_v33, %v9106_v28  ;;  %v9686_v10 = vmul.f32 %v7088_v33, %v9251_v54  ;;  %6451 = vmatprep.subr.bf16.mxu0 %v7039_v61 }
 0x2d2   :  { %v2907_v50 = vmax.f32 %v2875_v49, %v2811_v7  ;;  %v2876_v60 = vmax.f32 %v2748_v27, %v9674_v11  ;;  %v9693_v32 = vmul.f32 %v7088_v33, %v9253_v0  ;;  %v9696_v19 = vmul.f32 %v7088_v33, %v9623_v17  ;;  %6452 = vmatpush3.bf16.msra.mxu0 %v7039_v61 }
 0x2d3   :  { %v2905_v28 = vmax.f32 %v2873_v47, %v2809_v52  ;;  %v2874_v54 = vmax.f32 %v9683_v40, %v9686_v10  ;;  %7095 = vrsqrt.f32 %v2686_v29  ;;  %v9701_v43 = vadd.f32 %v2627_v58, %v9357_v48  ;;  %6645 = vmatprep.subr.bf16.mxu1 %v7037_v13 }
 0x2d4   :  { %v2939_v4 = vmax.f32 %v2907_v50, %v2843_v45  ;;  %v2908_v49 = vmax.f32 %v2876_v60, %v9677_v1  ;;  %v9706_v0 = vmul.f32 %v9657_v31, %v9657_v31  ;;  %v9710_v17 = vmul.f32 %v9662_v24, %v9662_v24  ;;  %v9712_v61 = vpop.f32.mrb[220].mxu1  ;;  %6646 = vmatpush3.bf16.msra.mxu1 %v7037_v13 }
 0x2d5   :  { %v7090_v33 = vpop.eup %7089  ;;  %v2937_v29 = vmax.f32 %v2905_v28, %v2841_v9  ;;  %v2906_v48 = vmax.f32 %v2874_v54, %v9693_v32  ;;  %v9718_v47 = vmul.f32 %v9667_v5, %v9667_v5  ;;  %v9720_v50 = vpop.f32.mrb[221].mxu1 }
 0x2d6   :  { %v9722_v60 = vpop.eup %7091  ;;  %v2971_v55 = vsub.f32 %v2747_v30, %v2939_v4  ;;  %v3067_v22 = vsub.f32 %v2779_v2, %v2939_v4  ;;  %v3163_v39 = vsub.f32 %v2811_v7, %v2939_v4  ;;  %v3259_v23 = vsub.f32 %v2843_v45, %v2939_v4  ;;  %v9724_v24 = vpop.f32.mrb[222].mxu1 }
 0x2d7   :  { %v9726_v13 = vpop.eup %7093  ;;  %v2969_v28 = vsub.f32 %v2745_v12, %v2937_v29  ;;  %v3065_v54 = vsub.f32 %v2777_v56, %v2937_v29  ;;  %v3161_v31 = vsub.f32 %v2809_v52, %v2937_v29  ;;  %v3257_v58 = vsub.f32 %v2841_v9, %v2937_v29  ;;  %v9728_v3 = vpop.f32.mrb[223].mxu1  ;;  %v7041_v12 = vld [vmem:[%s12386_s3 + $0x58] sm:$0xff]  }
 0x2d8   :  { %v3005_v5 = vmul.f32 1.442695, %v2971_v55  ;;  %v3101_v14 = vmul.f32 1.442695, %v3067_v22  ;;  %v3197_v57 = vmul.f32 1.442695, %v3163_v39  ;;  %v2940_v15 = vmax.f32 %v2908_v49, %v9680_v36  ;;  %6453 = vmatprep.subr.bf16.mxu0 %v7041_v12 }
 0x2d9   :  { %v3293_v35 = vmul.f32 1.442695, %v3259_v23  ;;  %v3001_v30 = vmul.f32 1.442695, %v2969_v28  ;;  %v3097_v2 = vmul.f32 1.442695, %v3065_v54  ;;  %v2938_v4 = vmax.f32 %v2906_v48, %v9696_v19  ;;  %6454 = vmatpush3.bf16.msra.mxu0 %v7041_v12 }
 0x2da   :  { %7097 = vpow2.f32 %v3005_v5  ;;  %v3193_v7 = vmul.f32 1.442695, %v3161_v31  ;;  %v3289_v45 = vmul.f32 1.442695, %v3257_v58  ;;  %v2972_v38 = vsub.f32 %v2748_v27, %v2940_v15  ;;  %v13221_v28 = vld [vmem:[#allocation198_spill] sm:$0xff] }
 0x2db   :  { %7099 = vpow2.f32 %v3101_v14  ;;  %v3068_v55 = vsub.f32 %v9674_v11, %v2940_v15  ;;  %v3164_v22 = vsub.f32 %v9677_v1, %v2940_v15  ;;  %v3260_v39 = vsub.f32 %v9680_v36, %v2940_v15 }
 0x2dc   :  { %7101 = vpow2.f32 %v3197_v57  ;;  %v3007_v23 = vmul.f32 1.442695, %v2972_v38  ;;  %v2970_v56 = vsub.f32 %v9683_v40, %v2938_v4  ;;  %v3066_v52 = vsub.f32 %v9686_v10, %v2938_v4  ;;  %v9740_v31 = vpop.f32.mrb[224].mxu1 }
 0x2dd   :  { %v9742_v9 = vpop.eup %7095  ;;  %7103 = vpow2.f32 %v3293_v35  ;;  %v3103_v5 = vmul.f32 1.442695, %v3068_v55  ;;  %v3199_v14 = vmul.f32 1.442695, %v3164_v22  ;;  %v3295_v27 = vmul.f32 1.442695, %v3260_v39 }
 0x2de   :  { %7105 = vpow2.f32 %v3001_v30  ;;  %v3003_v11 = vmul.f32 1.442695, %v2970_v56  ;;  %v3099_v1 = vmul.f32 1.442695, %v3066_v52  ;;  %v3162_v15 = vsub.f32 %v9693_v32, %v2938_v4  ;;  %v9745_v38 = vpop.f32.mrb[225].mxu1  ;;  %v7040_v35 = vld [vmem:[%s12387_s4 + $0x20] sm:$0xff]  }
 0x2df   :  { %13217 = vst [vmem:[#allocation267_spill] sm:$0xff] %v9745_v38  ;;  %7107 = vpow2.f32 %v3097_v2  ;;  %v3258_v57 = vsub.f32 %v9696_v19, %v2938_v4  ;;  %v2751_v36 = vmul.f32 %v7090_v33, %v9110_v21  ;;  %v2783_v40 = vmul.f32 %v7090_v33, %v9273_v41  ;;  %v9750_v10 = vpop.f32.mrb[226].mxu1  ;;  %v13220_v21 = vld [vmem:[#allocation144_spill] sm:$0xff]  ;;  %6647 = vmatprep.subr.bf16.mxu1 %v7040_v35  ;;  %v13222_v30 = vld [vmem:[#allocation199_spill] sm:$0xff]  ;;  %v13226_v22 = vld [vmem:[#allocation201_spill] sm:$0xff] }
 0x2e0   :  { %13218 = vst [vmem:[#allocation268_spill] sm:$0xff] %v9750_v10  ;;  %7109 = vpow2.f32 %v3193_v7  ;;  %v3195_v49 = vmul.f32 1.442695, %v3162_v15  ;;  %v2815_v29 = vmul.f32 %v7090_v33, %v9275_v44  ;;  %v2847_v32 = vmul.f32 %v7090_v33, %v9630_v37  ;;  %v9757_v48 = vpop.f32.mrb[227].mxu1  ;;  %6648 = vmatpush3.bf16.msra.mxu1 %v7040_v35  ;;  %v13223_v33 = vld [vmem:[#allocation146_spill] sm:$0xff]  ;;  %v13224_v7 = vld [vmem:[#allocation200_spill] sm:$0xff] }
 0x2e1   :  { %13219 = vst [vmem:[#allocation269_spill] sm:$0xff] %v9757_v48  ;;  %7111 = vpow2.f32 %v3289_v45  ;;  %v3291_v19 = vmul.f32 1.442695, %v3258_v57  ;;  %v2879_v58 = vmax.f32 %v2751_v36, %v2783_v40  ;;  %v2749_v41 = vmul.f32 %v9722_v60, %v13220_v21  ;;  %v13232_v35 = vld [vmem:[#allocation202_spill] sm:$0xff] }
 0x2e2   :  { %7113 = vpow2.f32 %v3007_v23  ;;  %v2781_v54 = vmul.f32 %v9722_v60, %v13221_v28  ;;  %v2813_v2 = vmul.f32 %v9722_v60, %v13222_v30  ;;  %v2845_v44 = vmul.f32 %v9722_v60, %v9637_v8 }
 0x2e3   :  { %7115 = vpow2.f32 %v3103_v5  ;;  %v2911_v37 = vmax.f32 %v2879_v58, %v2815_v29  ;;  %v9769_v4 = vmul.f32 %v9726_v13, %v13223_v33  ;;  %v9773_v45 = vmul.f32 %v9726_v13, %v13224_v7  ;;  %v13229_v5 = vld [vmem:[#allocation148_spill] sm:$0xff] }
 0x2e4   :  { %v9775_v12 = vpop.eup %7097  ;;  %7117 = vpow2.f32 %v3199_v14  ;;  %v2877_v55 = vmax.f32 %v2749_v41, %v2781_v54  ;;  %v9779_v39 = vmul.f32 %v9726_v13, %v13226_v22  ;;  %v9783_v8 = vmul.f32 %v9726_v13, %v9641_v42  ;;  %v9785_v60 = vpop.f32.mrb[228].mxu1 }
 0x2e5   :  { %13225 = vst [vmem:[#allocation144_spill] sm:$0xff] %v9775_v12  ;;  %13227 = vst [vmem:[#allocation198_spill] sm:$0xff] %v9785_v60  ;;  %v9787_v23 = vpop.eup %7099  ;;  %7119 = vpow2.f32 %v3295_v27  ;;  %v2943_v56 = vmax.f32 %v2911_v37, %v2847_v32  ;;  %v2880_v52 = vmax.f32 %v9769_v4, %v9773_v45  ;;  %v9793_v14 = vmul.f32 %v9742_v9, %v13229_v5  ;;  %v9795_v15 = vpop.f32.mrb[229].mxu1 }
 0x2e6   :  { %13228 = vst [vmem:[#allocation199_spill] sm:$0xff] %v9787_v23  ;;  %13230 = vst [vmem:[#allocation146_spill] sm:$0xff] %v9795_v15  ;;  %v9797_v57 = vpop.eup %7101  ;;  %v3355_v42 = vadd.f32 %v9787_v23, %v9775_v12  ;;  %7121 = vpow2.f32 %v3003_v11  ;;  %v2909_v13 = vmax.f32 %v2877_v55, %v2813_v2  ;;  %v9803_v27 = vmul.f32 %v9742_v9, %v13232_v35  ;;  %v9805_v58 = vpop.f32.mrb[230].mxu1 }
 0x2e7   :  { %13231 = vst [vmem:[#allocation200_spill] sm:$0xff] %v9797_v57  ;;  %13233 = vst [vmem:[#allocation201_spill] sm:$0xff] %v9805_v58  ;;  %v9807_v21 = vpop.eup %7103  ;;  %7123 = vpow2.f32 %v3099_v1  ;;  %v2975_v28 = vsub.f32 %v2751_v36, %v2943_v56  ;;  %v3071_v30 = vsub.f32 %v2783_v40, %v2943_v56  ;;  %v3167_v37 = vsub.f32 %v2815_v29, %v2943_v56  ;;  %v9809_v33 = vpop.f32.mrb[231].mxu1 }
 0x2e8   :  { %13234 = vst [vmem:[#allocation148_spill] sm:$0xff] %v9809_v33  ;;  %v9811_v7 = vpop.eup %7105  ;;  %v3387_v22 = vadd.f32 %v9797_v57, %v3355_v42  ;;  %7125 = vpow2.f32 %v3195_v49  ;;  %v3263_v11 = vsub.f32 %v2847_v32, %v2943_v56  ;;  %v2941_v55 = vmax.f32 %v2909_v13, %v2845_v44 }
 0x2e9   :  { %13235 = vst [vmem:[#allocation202_spill] sm:$0xff] %v9811_v7  ;;  %v9814_v5 = vpop.eup %7107  ;;  %7127 = vpow2.f32 %v3291_v19  ;;  %v3013_v35 = vmul.f32 1.442695, %v2975_v28  ;;  %v3109_v12 = vmul.f32 1.442695, %v3071_v30  ;;  %v2912_v28 = vmax.f32 %v2880_v52, %v9779_v39 }
 0x2ea   :  { %v3205_v23 = vmul.f32 1.442695, %v3167_v37  ;;  %v9816_v58 = vpop.eup %7109  ;;  %v3419_v1 = vadd.f32 %v9807_v21, %v3387_v22  ;;  %v3353_v36 = vadd.f32 %v9814_v5, %v9811_v7  ;;  %v3301_v40 = vmul.f32 1.442695, %v3263_v11 }
 0x2eb   :  { %13236 = vst [vmem:[#allocation270_spill] sm:$0xff] %v9816_v58  ;;  %v2973_v29 = vsub.f32 %v2749_v41, %v2941_v55  ;;  %v9821_v33 = vpop.eup %7111  ;;  %7129 = vpow2.f32 %v3013_v35  ;;  %v3069_v49 = vsub.f32 %v2781_v54, %v2941_v55  ;;  %v3165_v32 = vsub.f32 %v2813_v2, %v2941_v55 }
 0x2ec   :  { %13237 = vst [vmem:[#allocation271_spill] sm:$0xff] %v9821_v33  ;;  %v3261_v56 = vsub.f32 %v2845_v44, %v2941_v55  ;;  %v9823_v42 = vpop.eup %7113  ;;  %7131 = vrcp.f32 %v3419_v1  ;;  %v3385_v19 = vadd.f32 %v9816_v58, %v3353_v36  ;;  %v9827_v30 = vpop.f32.mrb[232].mxu1  ;;  %v2944_v44 = vmax.f32 %v2912_v28, %v9783_v8  ;;  %v13243_v1 = vld [vmem:[#allocation203_spill] sm:$0xff] }
 0x2ed   :  { %13238 = vst [vmem:[#allocation272_spill] sm:$0xff] %v9823_v42  ;;  %v3009_v13 = vmul.f32 1.442695, %v2973_v29  ;;  %13239 = vst [vmem:[#allocation273_spill] sm:$0xff] %v9827_v30  ;;  %v9829_v37 = vpop.eup %7115  ;;  %7133 = vpow2.f32 %v3109_v12  ;;  %v3105_v41 = vmul.f32 1.442695, %v3069_v49  ;;  %v2814_v12 = vmul.f32 %v9742_v9, %v13243_v1 }
 0x2ee   :  { %13240 = vst [vmem:[#allocation274_spill] sm:$0xff] %v9829_v37  ;;  %v3201_v22 = vmul.f32 1.442695, %v3165_v32  ;;  %v3297_v11 = vmul.f32 1.442695, %v3261_v56  ;;  %v9831_v35 = vpop.eup %7117  ;;  %v3417_v54 = vadd.f32 %v9821_v33, %v3385_v19  ;;  %v3356_v2 = vadd.f32 %v9829_v37, %v9823_v42  ;;  %v9837_v55 = vpop.f32.mrb[233].mxu1 }
 0x2ef   :  { %13241 = vst [vmem:[#allocation275_spill] sm:$0xff] %v9831_v35  ;;  %7135 = vpow2.f32 %v3205_v23  ;;  %13242 = vst [vmem:[#allocation276_spill] sm:$0xff] %v9837_v55  ;;  %v9839_v52 = vpop.eup %7119  ;;  %v2846_v36 = vmul.f32 %v9742_v9, %v9646_v26  ;;  %v2878_v29 = vmax.f32 %v9793_v14, %v9803_v27  ;;  %v9847_v49 = vpop.f32.mrb[234].mxu1  ;;  %v2976_v56 = vsub.f32 %v9769_v4, %v2944_v44  ;;  %v13287_v42 = vld [vmem:[#allocation206_spill] sm:$0xff] }
 0x2f0   :  { %7137 = vpow2.f32 %v3301_v40  ;;  %13244 = vst [vmem:[#allocation203_spill] sm:$0xff] %v9847_v49  ;;  %v9849_v32 = vpop.eup %7121  ;;  %v3388_v23 = vadd.f32 %v9831_v35, %v3356_v2  ;;  %v3072_v40 = vsub.f32 %v9773_v45, %v2944_v44  ;;  %v3168_v28 = vsub.f32 %v9779_v39, %v2944_v44 }
 0x2f1   :  { %13245 = vst [vmem:[#allocation277_spill] sm:$0xff] %v9849_v32  ;;  %7139 = vrcp.f32 %v3417_v54  ;;  %v9854_v19 = vpop.eup %7123  ;;  %v3264_v26 = vsub.f32 %v9783_v8, %v2944_v44  ;;  %v2910_v9 = vmax.f32 %v2878_v29, %v2814_v12  ;;  %v3015_v2 = vmul.f32 1.442695, %v2976_v56 }
 0x2f2   :  { %7141 = vpow2.f32 %v3009_v13  ;;  %v9858_v1 = vpop.eup %7125  ;;  %v3420_v57 = vadd.f32 %v9839_v52, %v3388_v23  ;;  %v3354_v54 = vadd.f32 %v9854_v19, %v9849_v32  ;;  %v3111_v45 = vmul.f32 1.442695, %v3072_v40  ;;  %v13302_v32 = vld [vmem:[#allocation213_spill] sm:$0xff] }
 0x2f3   :  { %13246 = vst [vmem:[#allocation278_spill] sm:$0xff] %v9858_v1  ;;  %7143 = vpow2.f32 %v3105_v41  ;;  %v9863_v4 = vpop.eup %7127  ;;  %v3207_v35 = vmul.f32 1.442695, %v3168_v28  ;;  %v3303_v13 = vmul.f32 1.442695, %v3264_v26  ;;  %v2942_v8 = vmax.f32 %v2910_v9, %v2846_v36 }
 0x2f4   :  { %13247 = vst [vmem:[#allocation279_spill] sm:$0xff] %v9863_v4  ;;  %7145 = vpow2.f32 %v3201_v22  ;;  %v3386_v39 = vadd.f32 %v9858_v1, %v3354_v54  ;;  %v9868_v44 = vadd.f32 %v9706_v0, %v9361_v34  ;;  %v9874_v41 = vadd.f32 %v9710_v17, %v9365_v18 }
 0x2f5   :  { %7147 = vrcp.f32 %v3420_v57  ;;  %v9870_v29 = vpop.eup %7129  ;;  %v9878_v22 = vadd.f32 %v9718_v47, %v9367_v63  ;;  %v2631_v57 = vmul.f32 %v9712_v61, %v9712_v61  ;;  %v2974_v34 = vsub.f32 %v9793_v14, %v2942_v8  ;;  %v7042_v47 = vld [vmem:[%s12386_s3 + $0x60] sm:$0xff]  }
 0x2f6   :  { %13248 = vst [vmem:[#allocation280_spill] sm:$0xff] %v9870_v29  ;;  %7149 = vpow2.f32 %v3297_v11  ;;  %v9882_v23 = vpop.eup %7131  ;;  %v3418_v56 = vadd.f32 %v9863_v4, %v3386_v39  ;;  %v3070_v0 = vsub.f32 %v9803_v27, %v2942_v8  ;;  %v3166_v63 = vsub.f32 %v2814_v12, %v2942_v8  ;;  %6455 = vmatprep.subr.bf16.mxu0 %v7042_v47  ;;  %v9908_v39 = vpop.f32.mrb[235].mxu1 }
 0x2f7   :  { %13249 = vst [vmem:[#allocation281_spill] sm:$0xff] %v9882_v23  ;;  %7151 = vpow2.f32 %v3015_v2  ;;  %v9887_v11 = vpop.eup %7133  ;;  %v9891_v18 = vmul.f32 %v9882_v23, %v9807_v21  ;;  %v3262_v17 = vsub.f32 %v2846_v36, %v2942_v8  ;;  %v3011_v27 = vmul.f32 1.442695, %v2974_v34  ;;  %6456 = vmatpush3.bf16.msra.mxu0 %v7042_v47 }
 0x2f8   :  { %13250 = vst [vmem:[#allocation282_spill] sm:$0xff] %v9887_v11  ;;  %7153 = vpow2.f32 %v3111_v45  ;;  %v3359_v14 = vadd.f32 %v9887_v11, %v9870_v29  ;;  %v3107_v28 = vmul.f32 1.442695, %v3070_v0  ;;  %v3203_v21 = vmul.f32 1.442695, %v3166_v63 }
 0x2f9   :  { %13251 = vst [vmem:[#allocation283_spill] sm:$0xff] %v9891_v18  ;;  %v9896_v40 = vpop.eup %7135  ;;  %7155 = vrcp.f32 %v3418_v56  ;;  %v3299_v9 = vmul.f32 1.442695, %v3262_v17  ;;  %v2689_v12 = vmax.f32 %v9868_v44, 1e-24  ;;  %v2629_v44 = vmul.f32 %v9720_v50, %v9720_v50  ;;  %v13284_v18 = vld [vmem:[#allocation205_spill] sm:$0xff] }
 0x2fa   :  { %13252 = vst [vmem:[#allocation284_spill] sm:$0xff] %v9896_v40  ;;  %v9900_v26 = vpop.eup %7137  ;;  %7157 = vpow2.f32 %v3207_v35  ;;  %v3391_v54 = vadd.f32 %v9896_v40, %v3359_v14  ;;  %v2692_v2 = vmax.f32 %v9874_v41, 1e-24  ;;  %v2690_v45 = vmax.f32 %v9878_v22, 1e-24 }
 0x2fb   :  { %13253 = vst [vmem:[#allocation285_spill] sm:$0xff] %v9900_v26  ;;  %v9903_v36 = vpop.eup %7139  ;;  %7159 = vpow2.f32 %v3303_v13  ;;  %v2663_v35 = vadd.f32 %v2631_v57, %v9405_v59  ;;  %v2632_v56 = vmul.f32 %v9724_v24, %v9724_v24  ;;  %v2630_v41 = vmul.f32 %v9728_v3, %v9728_v3 }
 0x2fc   :  { %v9910_v8 = vpop.eup %7141  ;;  %7161 = vpow2.f32 %v3011_v27  ;;  %v3423_v13 = vadd.f32 %v9900_v26, %v3391_v54  ;;  %v2635_v22 = vmul.f32 %v9740_v31, %v9740_v31  ;;  %v2661_v63 = vadd.f32 %v2629_v44, %v9409_v46  ;;  %v13267_v26 = vld [vmem:[#allocation236_spill] sm:$0xff] }
 0x2fd   :  { %13254 = vst [vmem:[#allocation286_spill] sm:$0xff] %v9910_v8  ;;  %v9917_v34 = vpop.eup %7143  ;;  %7163 = vpow2.f32 %v3107_v28  ;;  %v2695_v57 = vmax.f32 %v2663_v35, 1e-24  ;;  %v2664_v47 = vadd.f32 %v2632_v56, %v9413_v53  ;;  %v2662_v14 = vadd.f32 %v2630_v41, %v9415_v20 }
 0x2fe   :  { %13255 = vst [vmem:[#allocation287_spill] sm:$0xff] %v9917_v34  ;;  %v9924_v0 = vpop.eup %7145  ;;  %v3357_v59 = vadd.f32 %v9917_v34, %v9910_v8  ;;  %7165 = vpow2.f32 %v3203_v21  ;;  %v9934_v27 = vadd.f32 %v2635_v22, %v9456_v62  ;;  %v2693_v46 = vmax.f32 %v2661_v63, 1e-24 }
 0x2ff   :  { %13256 = vst [vmem:[#allocation288_spill] sm:$0xff] %v9924_v0  ;;  %v9929_v17 = vpop.eup %7147  ;;  %7167 = vrcp.f32 %v3423_v13  ;;  %v13261_v44 = vmax.f32 %v9701_v43, 1e-24  ;;  %v2696_v53 = vmax.f32 %v2664_v47, 1e-24  ;;  %v7044_v43 = vld [vmem:[%s12386_s3 + $0x68] sm:$0xff]  }
 0x300   :  { %13257 = vst [vmem:[#allocation289_spill] sm:$0xff] %v9929_v17  ;;  %v9936_v28 = vpop.eup %7149  ;;  %v9940_v54 = vmul.f32 %v9929_v17, %v9839_v52  ;;  %v3389_v21 = vadd.f32 %v9924_v0, %v3357_v59  ;;  %7169 = vpow2.f32 %v3299_v9  ;;  %v2694_v20 = vmax.f32 %v2662_v14, 1e-24  ;;  %6457 = vmatprep.subr.bf16.mxu0 %v7044_v43 }
 0x301   :  { %13258 = vst [vmem:[#allocation290_spill] sm:$0xff] %v9936_v28  ;;  %v9943_v35 = vpop.eup %7151  ;;  %7171 = vrsqrt.f32 %v13261_v44  ;;  %v2699_v62 = vmax.f32 %v9934_v27, 1e-24  ;;  %v2633_v52 = vmul.f32 %v9745_v38, %v9745_v38  ;;  %v2636_v9 = vmul.f32 %v9750_v10, %v9750_v10  ;;  %6458 = vmatpush3.bf16.msra.mxu0 %v7044_v43  ;;  %v13298_v10 = vld [vmem:[#allocation211_spill] sm:$0xff] }
 0x302   :  { %13259 = vst [vmem:[#allocation291_spill] sm:$0xff] %v9940_v54  ;;  %13260 = vst [vmem:[#allocation292_spill] sm:$0xff] %v9943_v35  ;;  %v9948_v56 = vpop.eup %7153  ;;  %v3421_v13 = vadd.f32 %v9936_v28, %v3389_v21  ;;  %7173 = vrsqrt.f32 %v2689_v12  ;;  %v2634_v59 = vmul.f32 %v9757_v48, %v9757_v48  ;;  %v2639_v12 = vmul.f32 %v9785_v60, %v9785_v60  ;;  %v13279_v28 = vld [vmem:[#allocation247_spill] sm:$0xff]  ;;  %v13297_v60 = vld [vmem:[#allocation210_spill] sm:$0xff] }
 0x303   :  { %13262 = vst [vmem:[#allocation293_spill] sm:$0xff] %v9948_v56  ;;  %v9958_v41 = vpop.eup %7155  ;;  %v3360_v22 = vadd.f32 %v9948_v56, %v9943_v35  ;;  %7175 = vrsqrt.f32 %v2692_v2  ;;  %v9969_v47 = vadd.f32 %v2633_v52, %v9460_v51  ;;  %v9972_v14 = vadd.f32 %v2636_v9, %v9464_v16  ;;  %v7043_v2 = vld [vmem:[%s12387_s4 + $0x28] sm:$0xff]   ;;  %v13278_v35 = vld [vmem:[#allocation238_spill] sm:$0xff] }
 0x304   :  { %v9966_v63 = vpop.eup %7157  ;;  %7177 = vrcp.f32 %v3421_v13  ;;  %v2637_v27 = vmul.f32 %v9795_v15, %v9795_v15  ;;  %v9983_v13 = vadd.f32 %v2634_v59, %v9466_v6  ;;  %v9986_v51 = vadd.f32 %v2639_v12, %v9504_v25  ;;  %6649 = vmatprep.subr.bf16.mxu1 %v7043_v2  ;;  %v13277_v12 = vld [vmem:[#allocation237_spill] sm:$0xff] }
 0x305   :  { %13263 = vst [vmem:[#allocation294_spill] sm:$0xff] %v9966_v63  ;;  %v9979_v21 = vpop.eup %7159  ;;  %v3392_v44 = vadd.f32 %v9966_v63, %v3360_v22  ;;  %7179 = vrsqrt.f32 %v2690_v45  ;;  %v9995_v22 = vpop.f32.mrb[236].mxu1  ;;  %6650 = vmatpush3.bf16.msra.mxu1 %v7043_v2  ;;  %v2643_v2 = vmul.f32 %v9827_v30, %v9827_v30  ;;  %v2641_v25 = vmul.f32 %v9837_v55, %v9837_v55 }
 0x306   :  { %13264 = vst [vmem:[#allocation295_spill] sm:$0xff] %v9979_v21  ;;  %13265 = vst [vmem:[#allocation296_spill] sm:$0xff] %v9986_v51  ;;  %v9988_v16 = vpop.eup %7161  ;;  %7181 = vrsqrt.f32 %v2695_v57  ;;  %v9993_v40 = vadd.f32 %v2637_v27, %v13267_v26  ;;  %v10002_v57 = vpop.f32.mrb[237].mxu1  ;;  %v13273_v27 = vld [vmem:[#allocation201_spill] sm:$0xff] }
 0x307   :  { %13266 = vst [vmem:[#allocation297_spill] sm:$0xff] %v9988_v16  ;;  %13269 = vst [vmem:[#allocation298_spill] sm:$0xff] %v9995_v22  ;;  %v9997_v45 = vpop.eup %7163  ;;  %v3424_v6 = vadd.f32 %v9979_v21, %v3392_v44  ;;  %7183 = vrsqrt.f32 %v2693_v46  ;;  %v2640_v9 = vmul.f32 %v13273_v27, %v13273_v27  ;;  %v13275_v46 = vld [vmem:[#allocation148_spill] sm:$0xff]  ;;  %v10033_v0 = vadd.f32 %v2643_v2, %v13279_v28 }
 0x308   :  { %13268 = vst [vmem:[#allocation236_spill] sm:$0xff] %v9993_v40  ;;  %13270 = vst [vmem:[#allocation299_spill] sm:$0xff] %v9997_v45  ;;  %v10004_v59 = vpop.eup %7165  ;;  %v3358_v26 = vadd.f32 %v9997_v45, %v9988_v16  ;;  %7185 = vrsqrt.f32 %v2696_v53  ;;  %v2638_v43 = vmul.f32 %v13275_v46, %v13275_v46  ;;  %v13280_v16 = vld [vmem:[#allocation248_spill] sm:$0xff] }
 0x309   :  { %13271 = vst [vmem:[#allocation300_spill] sm:$0xff] %v10002_v57  ;;  %13272 = vst [vmem:[#allocation301_spill] sm:$0xff] %v10004_v59  ;;  %v10011_v44 = vpop.eup %7167  ;;  %7187 = vrcp.f32 %v3424_v6  ;;  %v10023_v21 = vadd.f32 %v2640_v9, %v13277_v12  ;;  %v10027_v6 = vmul.f32 %v9847_v49, %v9847_v49  ;;  %v10036_v8 = vadd.f32 %v2641_v25, %v13280_v16  ;;  %v13282_v12 = vld [vmem:[#allocation150_spill] sm:$0xff]  ;;  %v13283_v49 = vld [vmem:[#allocation204_spill] sm:$0xff] }
 0x30a   :  { %13274 = vst [vmem:[#allocation302_spill] sm:$0xff] %v10011_v44  ;;  %v10019_v52 = vpop.eup %7169  ;;  %v3390_v53 = vadd.f32 %v10004_v59, %v3358_v26  ;;  %7189 = vrsqrt.f32 %v2694_v20  ;;  %v10030_v29 = vadd.f32 %v2638_v43, %v13278_v35  ;;  %v10038_v26 = vpop.f32.mrb[238].mxu1  ;;  %v7045_v35 = vld [vmem:[%s12386_s3 + $0x70] sm:$0xff]   ;;  %v13285_v43 = vld [vmem:[#allocation263_spill] sm:$0xff]  ;;  %v13286_v16 = vld [vmem:[#allocation152_spill] sm:$0xff] }
 0x30b   :  { %13276 = vst [vmem:[#allocation303_spill] sm:$0xff] %v10019_v52  ;;  %v7172_v63 = vpop.eup %7171  ;;  %7191 = vrsqrt.f32 %v2699_v62  ;;  %13281 = vst [vmem:[#allocation237_spill] sm:$0xff] %v10038_v26  ;;  %v13288_v44 = vld [vmem:[#allocation207_spill] sm:$0xff]  ;;  %6459 = vmatprep.subr.bf16.mxu0 %v7045_v35  ;;  %v13292_v27 = vld [vmem:[#allocation208_spill] sm:$0xff]  ;;  %v10066_v15 = vpop.f32.mrb[239].mxu1 }
 0x30c   :  { %v7174_v20 = vpop.eup %7173  ;;  %v3422_v9 = vadd.f32 %v10019_v52, %v3390_v53  ;;  %v2755_v59 = vmul.f32 %v7172_v63, %v13282_v12  ;;  %v2787_v54 = vmul.f32 %v7172_v63, %v13283_v49  ;;  %v2819_v62 = vmul.f32 %v7172_v63, %v13284_v18  ;;  %v13290_v49 = vld [vmem:[#allocation264_spill] sm:$0xff]  ;;  %v13291_v18 = vld [vmem:[#allocation154_spill] sm:$0xff]  ;;  %13295 = vst [vmem:[#allocation247_spill] sm:$0xff] %v10066_v15 }
 0x30d   :  { %v7176_v28 = vpop.eup %7175  ;;  %v2851_v2 = vmul.f32 %v7172_v63, %v13285_v43  ;;  %v2753_v25 = vmul.f32 %v7174_v20, %v13286_v16  ;;  %v2785_v56 = vmul.f32 %v7174_v20, %v13287_v42  ;;  %v2817_v11 = vmul.f32 %v7174_v20, %v13288_v44  ;;  %v13293_v43 = vld [vmem:[#allocation209_spill] sm:$0xff]  ;;  %6460 = vmatpush3.bf16.msra.mxu0 %v7045_v35  ;;  %v13300_v35 = vld [vmem:[#allocation158_spill] sm:$0xff] }
 0x30e   :  { %v10051_v53 = vpop.eup %7177  ;;  %7193 = vrcp.f32 %v3422_v9  ;;  %v2883_v12 = vmax.f32 %v2755_v59, %v2787_v54  ;;  %v2849_v52 = vmul.f32 %v7174_v20, %v13290_v49  ;;  %v10055_v55 = vmul.f32 %v7176_v28, %v13291_v18  ;;  %v13294_v42 = vld [vmem:[#allocation265_spill] sm:$0xff]  ;;  %v13296_v49 = vld [vmem:[#allocation156_spill] sm:$0xff] }
 0x30f   :  { %13289 = vst [vmem:[#allocation238_spill] sm:$0xff] %v10051_v53  ;;  %v7180_v30 = vpop.eup %7179  ;;  %v2881_v46 = vmax.f32 %v2753_v25, %v2785_v56  ;;  %v10058_v63 = vmul.f32 %v7176_v28, %v13292_v27  ;;  %v10061_v16 = vmul.f32 %v7176_v28, %v13293_v43  ;;  %v10064_v44 = vmul.f32 %v7176_v28, %v13294_v42  ;;  %v13299_v42 = vld [vmem:[#allocation266_spill] sm:$0xff] }
 0x310   :  { %v7182_v9 = vpop.eup %7181  ;;  %v2915_v20 = vmax.f32 %v2883_v12, %v2819_v62  ;;  %v10069_v18 = vmul.f32 %v7180_v30, %v13296_v49  ;;  %v10072_v48 = vmul.f32 %v7180_v30, %v13297_v60  ;;  %v10075_v27 = vmul.f32 %v7180_v30, %v13298_v10  ;;  %v13301_v10 = vld [vmem:[#allocation212_spill] sm:$0xff] }
 0x311   :  { %v10077_v4 = vpop.eup %7183  ;;  %v2913_v43 = vmax.f32 %v2881_v46, %v2817_v11  ;;  %v2884_v28 = vmax.f32 %v10055_v55, %v10058_v63  ;;  %v10082_v33 = vmul.f32 %v7180_v30, %v13299_v42  ;;  %v10085_v12 = vmul.f32 %v7182_v9, %v13300_v35  ;;  %v13304_v35 = vld [vmem:[#allocation160_spill] sm:$0xff] }
 0x312   :  { %v10087_v49 = vpop.eup %7185  ;;  %v2947_v1 = vmax.f32 %v2915_v20, %v2851_v2  ;;  %v2882_v60 = vmax.f32 %v10069_v18, %v10072_v48  ;;  %v10092_v58 = vmul.f32 %v7182_v9, %v13301_v10  ;;  %v10095_v46 = vmul.f32 %v7182_v9, %v13302_v32  ;;  %v7046_v32 = vld [vmem:[%s12387_s4 + $0x30] sm:$0xff]  }
 0x313   :  { %v10097_v38 = vpop.eup %7187  ;;  %v2945_v7 = vmax.f32 %v2913_v43, %v2849_v52  ;;  %v2916_v30 = vmax.f32 %v2884_v28, %v10061_v16  ;;  %v10101_v42 = vmul.f32 %v7182_v9, %v9712_v61  ;;  %v10105_v20 = vmul.f32 %v10077_v4, %v13304_v35  ;;  %v7047_v43 = vld [vmem:[%s12386_s3 + $0x78] sm:$0xff]   ;;  %6651 = vmatprep.subr.bf16.mxu1 %v7046_v32 }
 0x314   :  { %13303 = vst [vmem:[#allocation248_spill] sm:$0xff] %v10097_v38  ;;  %v10107_v45 = vpop.eup %7189  ;;  %v2979_v40 = vsub.f32 %v2755_v59, %v2947_v1  ;;  %v3075_v10 = vsub.f32 %v2787_v54, %v2947_v1  ;;  %v3171_v53 = vsub.f32 %v2819_v62, %v2947_v1  ;;  %v3267_v34 = vsub.f32 %v2851_v2, %v2947_v1 }
 0x315   :  { %v10115_v61 = vpop.eup %7191  ;;  %v2977_v9 = vsub.f32 %v2753_v25, %v2945_v7  ;;  %v3073_v28 = vsub.f32 %v2785_v56, %v2945_v7  ;;  %v3169_v35 = vsub.f32 %v2817_v11, %v2945_v7  ;;  %v3265_v38 = vsub.f32 %v2849_v52, %v2945_v7  ;;  %6461 = vmatprep.subr.bf16.mxu0 %v7047_v43 }
 0x316   :  { %v3021_v17 = vmul.f32 1.442695, %v2979_v40  ;;  %v3117_v37 = vmul.f32 1.442695, %v3075_v10  ;;  %v3213_v59 = vmul.f32 1.442695, %v3171_v53  ;;  %v2948_v54 = vmax.f32 %v2916_v30, %v10064_v44  ;;  %6652 = vmatpush3.bf16.msra.mxu1 %v7046_v32  ;;  %6462 = vmatpush3.bf16.msra.mxu0 %v7047_v43 }
 0x317   :  { %v3309_v1 = vmul.f32 1.442695, %v3267_v34  ;;  %v3017_v62 = vmul.f32 1.442695, %v2977_v9  ;;  %v3113_v2 = vmul.f32 1.442695, %v3073_v28  ;;  %v2914_v51 = vmax.f32 %v2882_v60, %v10075_v27 }
 0x318   :  { %v10119_v23 = vpop.eup %7193  ;;  %7195 = vpow2.f32 %v3021_v17  ;;  %v3209_v56 = vmul.f32 1.442695, %v3169_v35  ;;  %v3305_v11 = vmul.f32 1.442695, %v3265_v38  ;;  %v2980_v7 = vsub.f32 %v10055_v55, %v2948_v54  ;;  %v13305_v10 = vld [vmem:[#allocation214_spill] sm:$0xff]  ;;  %v13306_v28 = vld [vmem:[#allocation215_spill] sm:$0xff] }
 0x319   :  { %7197 = vpow2.f32 %v3117_v37  ;;  %v3076_v40 = vsub.f32 %v10058_v63, %v2948_v54  ;;  %v3172_v52 = vsub.f32 %v10061_v16, %v2948_v54  ;;  %v3268_v34 = vsub.f32 %v10064_v44, %v2948_v54  ;;  %v7048_v16 = vld [vmem:[%s12387_s4 + $0x38] sm:$0xff]  }
 0x31a   :  { %7199 = vpow2.f32 %v3213_v59  ;;  %v3023_v25 = vmul.f32 1.442695, %v2980_v7  ;;  %v2946_v53 = vmax.f32 %v2914_v51, %v10082_v33  ;;  %v2887_v60 = vmax.f32 %v10085_v12, %v10092_v58  ;;  %6653 = vmatprep.subr.bf16.mxu1 %v7048_v16  ;;  %v13307_v54 = vld [vmem:[#allocation162_spill] sm:$0xff] }
 0x31b   :  { %7201 = vpow2.f32 %v3309_v1  ;;  %v3119_v17 = vmul.f32 1.442695, %v3076_v40  ;;  %v3215_v30 = vmul.f32 1.442695, %v3172_v52  ;;  %v3311_v38 = vmul.f32 1.442695, %v3268_v34  ;;  %6654 = vmatpush3.bf16.msra.mxu1 %v7048_v16 }
 0x31c   :  { %7203 = vpow2.f32 %v3017_v62  ;;  %v2978_v37 = vsub.f32 %v10069_v18, %v2946_v53  ;;  %v3074_v55 = vsub.f32 %v10072_v48, %v2946_v53  ;;  %v3170_v63 = vsub.f32 %v10075_v27, %v2946_v53 }
 0x31d   :  { %7205 = vpow2.f32 %v3113_v2  ;;  %v3266_v51 = vsub.f32 %v10082_v33, %v2946_v53  ;;  %v2919_v44 = vmax.f32 %v2887_v60, %v10095_v46  ;;  %v2789_v32 = vmul.f32 %v10077_v4, %v13305_v10 }
 0x31e   :  { %7207 = vpow2.f32 %v3209_v56  ;;  %v3019_v43 = vmul.f32 1.442695, %v2978_v37  ;;  %v3115_v9 = vmul.f32 1.442695, %v3074_v55  ;;  %v3211_v18 = vmul.f32 1.442695, %v3170_v63 }
 0x31f   :  { %7209 = vpow2.f32 %v3305_v11  ;;  %v3307_v48 = vmul.f32 1.442695, %v3266_v51  ;;  %v2951_v27 = vmax.f32 %v2919_v44, %v10101_v42  ;;  %v2821_v35 = vmul.f32 %v10077_v4, %v13306_v28 }
 0x320   :  { %7211 = vpow2.f32 %v3023_v25  ;;  %v2853_v33 = vmul.f32 %v10077_v4, %v9720_v50  ;;  %v2885_v59 = vmax.f32 %v10105_v20, %v2789_v32  ;;  %v10146_v1 = vmul.f32 %v10087_v49, %v13307_v54  ;;  %v13309_v50 = vld [vmem:[#allocation216_spill] sm:$0xff] }
 0x321   :  { %7213 = vpow2.f32 %v3119_v17  ;;  %v2983_v62 = vsub.f32 %v10085_v12, %v2951_v27  ;;  %v3079_v2 = vsub.f32 %v10092_v58, %v2951_v27  ;;  %v3175_v56 = vsub.f32 %v10095_v46, %v2951_v27  ;;  %v13313_v17 = vld [vmem:[#allocation217_spill] sm:$0xff] }
 0x322   :  { %v10151_v11 = vpop.eup %7195  ;;  %7215 = vpow2.f32 %v3215_v30  ;;  %v3271_v7 = vsub.f32 %v10101_v42, %v2951_v27  ;;  %v2917_v40 = vmax.f32 %v2885_v59, %v2821_v35  ;;  %v10156_v4 = vmul.f32 %v10087_v49, %v13309_v50 }
 0x323   :  { %13308 = vst [vmem:[#allocation150_spill] sm:$0xff] %v10151_v11  ;;  %v10158_v52 = vpop.eup %7197  ;;  %7217 = vpow2.f32 %v3311_v38  ;;  %v3029_v34 = vmul.f32 1.442695, %v2983_v62  ;;  %v3125_v25 = vmul.f32 1.442695, %v3079_v2  ;;  %v2824_v30 = vmul.f32 %v10087_v49, %v13313_v17 }
 0x324   :  { %13310 = vst [vmem:[#allocation204_spill] sm:$0xff] %v10158_v52  ;;  %v3221_v12 = vmul.f32 1.442695, %v3175_v56  ;;  %v10160_v53 = vpop.eup %7199  ;;  %v3363_v58 = vadd.f32 %v10158_v52, %v10151_v11  ;;  %7219 = vpow2.f32 %v3019_v43  ;;  %v3317_v46 = vmul.f32 1.442695, %v3271_v7  ;;  %v13320_v56 = vld [vmem:[#allocation218_spill] sm:$0xff] }
 0x325   :  { %13311 = vst [vmem:[#allocation205_spill] sm:$0xff] %v10160_v53  ;;  %v2949_v60 = vmax.f32 %v2917_v40, %v2853_v33  ;;  %v10164_v42 = vpop.eup %7201  ;;  %7221 = vpow2.f32 %v3115_v9  ;;  %v2856_v38 = vmul.f32 %v10087_v49, %v9724_v24  ;;  %v2888_v37 = vmax.f32 %v10146_v1, %v10156_v4  ;;  %v13321_v40 = vld [vmem:[#allocation219_spill] sm:$0xff]  ;;  %v13410_v52 = vld [vmem:[#allocation174_spill] sm:$0xff] }
 0x326   :  { %13312 = vst [vmem:[#allocation263_spill] sm:$0xff] %v10164_v42  ;;  %v10172_v55 = vpop.eup %7203  ;;  %v3395_v63 = vadd.f32 %v10160_v53, %v3363_v58  ;;  %7223 = vpow2.f32 %v3211_v18  ;;  %v2790_v7 = vmul.f32 %v10107_v45, %v13320_v56  ;;  %v2822_v50 = vmul.f32 %v10107_v45, %v13321_v40  ;;  %v13376_v53 = vld [vmem:[#allocation222_spill] sm:$0xff] }
 0x327   :  { %13314 = vst [vmem:[#allocation152_spill] sm:$0xff] %v10172_v55  ;;  %v2981_v16 = vsub.f32 %v10105_v20, %v2949_v60  ;;  %v3077_v51 = vsub.f32 %v2789_v32, %v2949_v60  ;;  %v10176_v44 = vpop.eup %7205  ;;  %7225 = vpow2.f32 %v3307_v48  ;;  %v3173_v10 = vsub.f32 %v2821_v35, %v2949_v60 }
 0x328   :  { %v3269_v43 = vsub.f32 %v2853_v33, %v2949_v60  ;;  %v2920_v9 = vmax.f32 %v2888_v37, %v2824_v30  ;;  %v10178_v27 = vpop.eup %7207  ;;  %v3427_v24 = vadd.f32 %v10164_v42, %v3395_v63  ;;  %v3361_v49 = vadd.f32 %v10176_v44, %v10172_v55  ;;  %v13318_v33 = vld [vmem:[#allocation164_spill] sm:$0xff]  ;;  %v13371_v42 = vld [vmem:[#allocation299_spill] sm:$0xff] }
 0x329   :  { %13315 = vst [vmem:[#allocation206_spill] sm:$0xff] %v10178_v27  ;;  %7227 = vpow2.f32 %v3029_v34  ;;  %v3025_v28 = vmul.f32 1.442695, %v2981_v16  ;;  %v10183_v59 = vpop.eup %7209  ;;  %v3121_v20 = vmul.f32 1.442695, %v3077_v51  ;;  %v2758_v62 = vmul.f32 %v10107_v45, %v13318_v33  ;;  %v13329_v33 = vld [vmem:[#allocation221_spill] sm:$0xff] }
 0x32a   :  { %13316 = vst [vmem:[#allocation207_spill] sm:$0xff] %v10183_v59  ;;  %7229 = vpow2.f32 %v3125_v25  ;;  %v3217_v32 = vmul.f32 1.442695, %v3173_v10  ;;  %v3313_v18 = vmul.f32 1.442695, %v3269_v43  ;;  %v10185_v54 = vpop.eup %7211  ;;  %v3393_v48 = vadd.f32 %v10178_v27, %v3361_v49 }
 0x32b   :  { %13317 = vst [vmem:[#allocation264_spill] sm:$0xff] %v10185_v54  ;;  %7231 = vrcp.f32 %v3427_v24  ;;  %v2952_v35 = vmax.f32 %v2920_v9, %v2856_v38  ;;  %v10190_v2 = vpop.eup %7213  ;;  %v2854_v34 = vmul.f32 %v10107_v45, %v9728_v3  ;;  %v2886_v10 = vmax.f32 %v2758_v62, %v2790_v7 }
 0x32c   :  { %13319 = vst [vmem:[#allocation154_spill] sm:$0xff] %v10190_v2  ;;  %7233 = vpow2.f32 %v3221_v12  ;;  %v10198_v25 = vpop.eup %7215  ;;  %v3425_v58 = vadd.f32 %v10183_v59, %v3393_v48  ;;  %v3364_v60 = vadd.f32 %v10190_v2, %v10185_v54  ;;  %v2827_v56 = vmul.f32 %v10115_v61, %v13329_v33 }
 0x32d   :  { %13322 = vst [vmem:[#allocation208_spill] sm:$0xff] %v10198_v25  ;;  %7235 = vpow2.f32 %v3317_v46  ;;  %v2984_v17 = vsub.f32 %v10146_v1, %v2952_v35  ;;  %v10204_v12 = vpop.eup %7217  ;;  %v3080_v37 = vsub.f32 %v10156_v4, %v2952_v35  ;;  %v3176_v63 = vsub.f32 %v2824_v30, %v2952_v35 }
 0x32e   :  { %13323 = vst [vmem:[#allocation209_spill] sm:$0xff] %v10204_v12  ;;  %7237 = vpow2.f32 %v3025_v28  ;;  %v3272_v16 = vsub.f32 %v2856_v38, %v2952_v35  ;;  %v10207_v51 = vpop.eup %7219  ;;  %v3396_v3 = vadd.f32 %v10198_v25, %v3364_v60  ;;  %v2918_v30 = vmax.f32 %v2886_v10, %v2822_v50  ;;  %v13327_v28 = vld [vmem:[#allocation166_spill] sm:$0xff]  ;;  %v13328_v35 = vld [vmem:[#allocation220_spill] sm:$0xff] }
 0x32f   :  { %13324 = vst [vmem:[#allocation265_spill] sm:$0xff] %v10207_v51  ;;  %7239 = vrcp.f32 %v3425_v58  ;;  %v3031_v45 = vmul.f32 1.442695, %v2984_v17  ;;  %v10210_v43 = vpop.eup %7221  ;;  %v3127_v46 = vmul.f32 1.442695, %v3080_v37  ;;  %v2763_v48 = vmul.f32 %v10115_v61, %v13327_v28 }
 0x330   :  { %7241 = vpow2.f32 %v3121_v20  ;;  %v3223_v9 = vmul.f32 1.442695, %v3176_v63  ;;  %v3319_v1 = vmul.f32 1.442695, %v3272_v16  ;;  %v10212_v24 = vpop.eup %7223  ;;  %v3428_v49 = vadd.f32 %v10204_v12, %v3396_v3  ;;  %v13368_v12 = vld [vmem:[#allocation236_spill] sm:$0xff] }
 0x331   :  { %13325 = vst [vmem:[#allocation156_spill] sm:$0xff] %v10212_v24  ;;  %v3362_v4 = vadd.f32 %v10210_v43, %v10207_v51  ;;  %7243 = vpow2.f32 %v3217_v32  ;;  %v10217_v38 = vpop.eup %7225  ;;  %v2795_v20 = vmul.f32 %v10115_v61, %v13328_v35  ;;  %v2950_v60 = vmax.f32 %v2918_v30, %v2854_v34  ;;  %v13407_v51 = vld [vmem:[#allocation226_spill] sm:$0xff] }
 0x332   :  { %13326 = vst [vmem:[#allocation210_spill] sm:$0xff] %v10217_v38  ;;  %7245 = vpow2.f32 %v3313_v18  ;;  %v2859_v32 = vmul.f32 %v10115_v61, %v9740_v31 }
 0x333   :  { %v10225_v40 = vpop.eup %7227  ;;  %7247 = vrcp.f32 %v3428_v49  ;;  %v3394_v58 = vadd.f32 %v10212_v24, %v3362_v4  ;;  %v2891_v18 = vmax.f32 %v2763_v48, %v2795_v20  ;;  %v2982_v49 = vsub.f32 %v2758_v62, %v2950_v60  ;;  %v13405_v24 = vld [vmem:[#allocation268_spill] sm:$0xff] }
 0x334   :  { %13330 = vst [vmem:[#allocation211_spill] sm:$0xff] %v10225_v40  ;;  %v10230_v17 = vpop.eup %7229  ;;  %7249 = vpow2.f32 %v3031_v45  ;;  %v3078_v31 = vsub.f32 %v2790_v7, %v2950_v60  ;;  %v3174_v61 = vsub.f32 %v2822_v50, %v2950_v60  ;;  %v3270_v45 = vsub.f32 %v2854_v34, %v2950_v60 }
 0x335   :  { %13331 = vst [vmem:[#allocation266_spill] sm:$0xff] %v10230_v17  ;;  %v10234_v16 = vpop.eup %7231  ;;  %v3426_v3 = vadd.f32 %v10217_v38, %v3394_v58  ;;  %v3367_v10 = vadd.f32 %v10230_v17, %v10225_v40  ;;  %7251 = vpow2.f32 %v3127_v46  ;;  %v3027_v35 = vmul.f32 1.442695, %v2982_v49 }
 0x336   :  { %13332 = vst [vmem:[#allocation158_spill] sm:$0xff] %v10234_v16  ;;  %v10239_v4 = vpop.eup %7233  ;;  %7253 = vpow2.f32 %v3223_v9  ;;  %v2923_v33 = vmax.f32 %v2891_v18, %v2827_v56  ;;  %v3123_v58 = vmul.f32 1.442695, %v3078_v31  ;;  %v3219_v37 = vmul.f32 1.442695, %v3174_v61  ;;  %v13337_v18 = vld [vmem:[#allocation249_spill] sm:$0xff] }
 0x337   :  { %13333 = vst [vmem:[#allocation212_spill] sm:$0xff] %v10239_v4  ;;  %v10241_v30 = vpop.eup %7235  ;;  %7255 = vrcp.f32 %v3426_v3  ;;  %v3399_v28 = vadd.f32 %v10239_v4, %v3367_v10  ;;  %v3315_v46 = vmul.f32 1.442695, %v3270_v45  ;;  %v10255_v3 = vadd.f32 %v10027_v6, %v13337_v18 }
 0x338   :  { %13334 = vst [vmem:[#allocation213_spill] sm:$0xff] %v10241_v30  ;;  %v10244_v63 = vpop.eup %7237  ;;  %7257 = vpow2.f32 %v3319_v1  ;;  %v2955_v7 = vmax.f32 %v2923_v33, %v2859_v32  ;;  %v2642_v1 = vmul.f32 %v9908_v39, %v9908_v39 }
 0x339   :  { %13335 = vst [vmem:[#allocation160_spill] sm:$0xff] %v10244_v63  ;;  %v10246_v62 = vpop.eup %7239  ;;  %v3431_v9 = vadd.f32 %v10241_v30, %v3399_v28  ;;  %7259 = vpow2.f32 %v3027_v35 }
 0x33a   :  { %v10250_v34 = vpop.eup %7241  ;;  %7261 = vpow2.f32 %v3123_v58  ;;  %v2987_v31 = vsub.f32 %v2763_v48, %v2955_v7  ;;  %v3083_v61 = vsub.f32 %v2795_v20, %v2955_v7  ;;  %v3179_v28 = vsub.f32 %v2827_v56, %v2955_v7  ;;  %v13343_v20 = vld [vmem:[#allocation250_spill] sm:$0xff] }
 0x33b   :  { %13336 = vst [vmem:[#allocation214_spill] sm:$0xff] %v10250_v34  ;;  %v10259_v10 = vpop.eup %7243  ;;  %7263 = vrcp.f32 %v3431_v9  ;;  %v3365_v49 = vadd.f32 %v10250_v34, %v10244_v63  ;;  %v3275_v35 = vsub.f32 %v2859_v32, %v2955_v7  ;;  %v13342_v48 = vmax.f32 %v9969_v47, 1e-24  ;;  %v13367_v63 = vld [vmem:[#allocation238_spill] sm:$0xff]  ;;  %v13408_v34 = vld [vmem:[#allocation227_spill] sm:$0xff] }
 0x33c   :  { %13338 = vst [vmem:[#allocation215_spill] sm:$0xff] %v10259_v10  ;;  %v10263_v45 = vpop.eup %7245  ;;  %7265 = vpow2.f32 %v3219_v37  ;;  %v3037_v18 = vmul.f32 1.442695, %v2987_v31  ;;  %v3133_v60 = vmul.f32 1.442695, %v3083_v61  ;;  %v10274_v37 = vadd.f32 %v2642_v1, %v13343_v20  ;;  %v13349_v1 = vld [vmem:[#allocation261_spill] sm:$0xff] }
 0x33d   :  { %13339 = vst [vmem:[#allocation162_spill] sm:$0xff] %v10263_v45  ;;  %v10266_v6 = vpop.eup %7247  ;;  %v3397_v58 = vadd.f32 %v10259_v10, %v3365_v49  ;;  %7267 = vpow2.f32 %v3315_v46  ;;  %v3229_v50 = vmul.f32 1.442695, %v3179_v28  ;;  %v3325_v30 = vmul.f32 1.442695, %v3275_v35  ;;  %v13346_v28 = vld [vmem:[#allocation259_spill] sm:$0xff] }
 0x33e   :  { %13340 = vst [vmem:[#allocation216_spill] sm:$0xff] %v10266_v6  ;;  %v10269_v9 = vpop.eup %7249  ;;  %7269 = vrsqrt.f32 %v13342_v48  ;;  %v2647_v46 = vmul.f32 %v9995_v22, %v9995_v22  ;;  %v2645_v7 = vmul.f32 %v10002_v57, %v10002_v57  ;;  %v2648_v31 = vmul.f32 %v10038_v26, %v10038_v26  ;;  %v13409_v6 = vld [vmem:[#allocation269_spill] sm:$0xff] }
 0x33f   :  { %13341 = vst [vmem:[#allocation217_spill] sm:$0xff] %v10269_v9  ;;  %v10276_v56 = vpop.eup %7251  ;;  %v3429_v32 = vadd.f32 %v10263_v45, %v3397_v58  ;;  %7271 = vpow2.f32 %v3037_v18  ;;  %v13347_v58 = vld [vmem:[#allocation260_spill] sm:$0xff]  ;;  %v2646_v48 = vmul.f32 %v10066_v15, %v10066_v15 }
 0x340   :  { %13344 = vst [vmem:[#allocation164_spill] sm:$0xff] %v10276_v56  ;;  %v10283_v49 = vpop.eup %7253  ;;  %v3368_v47 = vadd.f32 %v10276_v56, %v10269_v9  ;;  %7273 = vpow2.f32 %v3133_v60  ;;  %v10293_v35 = vadd.f32 %v2647_v46, %v13346_v28  ;;  %v10296_v18 = vadd.f32 %v2645_v7, %v13347_v58  ;;  %v13351_v28 = vld [vmem:[#allocation262_spill] sm:$0xff]  ;;  %v13356_v7 = vld [vmem:[#allocation33_spill] sm:$0xff] }
 0x341   :  { %13345 = vst [vmem:[#allocation218_spill] sm:$0xff] %v10283_v49  ;;  %v10290_v61 = vpop.eup %7255  ;;  %7275 = vrcp.f32 %v3429_v32  ;;  %v10304_v33 = vadd.f32 %v2648_v31, %v13349_v1  ;;  %v3513_v32 = vmul.f32 %v9903_v36, %v9814_v5  ;;  %v10313_v58 = vadd.f32 %v2646_v48, %v13351_v28  ;;  %v13358_v1 = vld [vmem:[#allocation36_spill] sm:$0xff]  ;;  %v13364_v28 = vld [vmem:[#allocation274_spill] sm:$0xff] }
 0x342   :  { %v10300_v20 = vpop.eup %7257  ;;  %v3400_v60 = vadd.f32 %v10283_v49, %v3368_v47  ;;  %7277 = vpow2.f32 %v3229_v50  ;;  %v13353_v47 = vmax.f32 %v9972_v14, 1e-24  ;;  %v3514_v5 = vmul.f32 %v9958_v41, %v9854_v19  ;;  %v13359_v19 = vld [vmem:[#allocation199_spill] sm:$0xff] }
 0x343   :  { %13348 = vst [vmem:[#allocation219_spill] sm:$0xff] %v10300_v20  ;;  %v10308_v4 = vpop.eup %7259  ;;  %7279 = vpow2.f32 %v3325_v30  ;;  %v13355_v48 = vmax.f32 %v9983_v13, 1e-24 }
 0x344   :  { %13350 = vst [vmem:[#allocation166_spill] sm:$0xff] %v10308_v4  ;;  %v10315_v9 = vpop.eup %7261  ;;  %v3432_v50 = vadd.f32 %v10300_v20, %v3400_v60  ;;  %7281 = vrsqrt.f32 %v13353_v47  ;;  %v10331_v60 = vmul.f32 %v3513_v32, %v13356_v7  ;;  %v3689_v47 = vpack.c.bf16 %v3514_v5, %v3513_v32  ;;  %v13360_v20 = vld [vmem:[#allocation281_spill] sm:$0xff] }
 0x345   :  { %13352 = vst [vmem:[#allocation220_spill] sm:$0xff] %v10315_v9  ;;  %v10323_v30 = vpop.eup %7263  ;;  %v3366_v31 = vadd.f32 %v10315_v9, %v10308_v4  ;;  %7283 = vrsqrt.f32 %v13355_v48  ;;  %v10336_v46 = vmul.f32 %v3514_v5, %v13358_v1  ;;  %v3515_v49 = vmul.f32 %v13360_v20, %v13359_v19  ;;  %v13362_v48 = vld [vmem:[#allocation296_spill] sm:$0xff]  ;;  %v13365_v7 = vld [vmem:[#allocation289_spill] sm:$0xff]  ;;  %v13366_v4 = vld [vmem:[#allocation287_spill] sm:$0xff] }
 0x346   :  { %13354 = vst [vmem:[#allocation221_spill] sm:$0xff] %v10323_v30  ;;  %v10333_v14 = vpop.eup %7265  ;;  %7285 = vrcp.f32 %v3432_v50  ;;  %v13363_v45 = vmax.f32 %v13362_v48, 1e-24  ;;  %v3516_v10 = vmul.f32 %v13365_v7, %v13364_v28  ;;  %v3517_v50 = vmul.f32 %v13367_v63, %v13366_v4  ;;  %6463 = vmatprep.mubr.bf16.mxu0 %v3689_v47  ;;  %v13370_v5 = vld [vmem:[#allocation40_spill] sm:$0xff] }
 0x347   :  { %13357 = vst [vmem:[#allocation249_spill] sm:$0xff] %v10333_v14  ;;  %v10340_v40 = vpop.eup %7267  ;;  %v3398_v13 = vadd.f32 %v10333_v14, %v3366_v31  ;;  %v13369_v1 = vmax.f32 %v13368_v12, 1e-24  ;;  %v10352_v19 = vmul.f32 %v3515_v49, %v13370_v5  ;;  %v3518_v31 = vmul.f32 %v10119_v23, %v13371_v42  ;;  %v13372_v14 = vld [vmem:[#allocation202_spill] sm:$0xff]  ;;  %v13375_v4 = vld [vmem:[#allocation168_spill] sm:$0xff]  ;;  %v13379_v5 = vld [vmem:[#allocation267_spill] sm:$0xff] }
 0x348   :  { %13361 = vst [vmem:[#allocation250_spill] sm:$0xff] %v10340_v40  ;;  %7287 = vrsqrt.f32 %v13363_v45  ;;  %v7270_v32 = vpop.eup %7269  ;;  %v10358_v45 = vmul.f32 %v9903_v36, %v13372_v14  ;;  %v13380_v42 = vmax.f32 %v10023_v21, 1e-24  ;;  %v3690_v56 = vpack.c.bf16 %v3516_v10, %v3515_v49  ;;  %v13381_v14 = vld [vmem:[#allocation41_spill] sm:$0xff]  ;;  %v13385_v21 = vld [vmem:[#allocation23_spill] sm:$0xff] }
 0x349   :  { %7289 = vrsqrt.f32 %v13369_v1  ;;  %v10360_v48 = vpop.eup %7271  ;;  %v3430_v28 = vadd.f32 %v10340_v40, %v3398_v13  ;;  %v2761_v25 = vmul.f32 %v7270_v32, %v13375_v4  ;;  %v2793_v12 = vmul.f32 %v7270_v32, %v13376_v53  ;;  %v13377_v1 = vld [vmem:[#allocation223_spill] sm:$0xff] }
 0x34a   :  { %13373 = vst [vmem:[#allocation259_spill] sm:$0xff] %v10358_v45  ;;  %13374 = vst [vmem:[#allocation260_spill] sm:$0xff] %v10360_v48  ;;  %v2825_v47 = vmul.f32 %v7270_v32, %v13377_v1  ;;  %v10366_v54 = vpop.eup %7273  ;;  %v2857_v11 = vmul.f32 %v7270_v32, %v13379_v5  ;;  %7291 = vrsqrt.f32 %v13380_v42  ;;  %v10372_v30 = vmul.f32 %v3516_v10, %v13381_v14  ;;  %v13387_v49 = vld [vmem:[#allocation47_spill] sm:$0xff]  ;;  %v13389_v5 = vld [vmem:[#allocation277_spill] sm:$0xff] }
 0x34b   :  { %13378 = vst [vmem:[#allocation261_spill] sm:$0xff] %v10366_v54  ;;  %v10374_v17 = vpop.eup %7275  ;;  %7293 = vrcp.f32 %v3430_v28  ;;  %v3371_v13 = vadd.f32 %v10366_v54, %v10360_v48  ;;  %v2889_v53 = vmax.f32 %v2761_v25, %v2793_v12  ;;  %v3691_v4 = vpack.c.bf16 %v3518_v31, %v3517_v50  ;;  %6464 = vmatmul.mubr.bf16.vlgmr.msra.gmra.mrb[208].mxu0 %v3690_v56 }
 0x34c   :  { %13382 = vst [vmem:[#allocation262_spill] sm:$0xff] %v10374_v17  ;;  %v10378_v1 = vpop.eup %7277  ;;  %v13384_v40 = vmax.f32 %v10030_v29, 1e-24  ;;  %v10383_v32 = vmul.f32 %v3517_v50, %v13385_v21  ;;  %v10386_v10 = vmul.f32 %v3518_v31, %v13387_v49  ;;  %v10390_v28 = vmul.f32 %v9958_v41, %v13389_v5  ;;  %v13392_v29 = vld [vmem:[#allocation270_spill] sm:$0xff]  ;;  %v13397_v49 = vld [vmem:[#allocation271_spill] sm:$0xff] }
 0x34d   :  { %13383 = vst [vmem:[#allocation33_spill] sm:$0xff] %v10378_v1  ;;  %v10392_v42 = vpop.eup %7279  ;;  %v3403_v14 = vadd.f32 %v10378_v1, %v3371_v13  ;;  %v2921_v54 = vmax.f32 %v2889_v53, %v2825_v47  ;;  %v13391_v48 = vmax.f32 %v10033_v0, 1e-24  ;;  %6467 = vmatprep.mubr.bf16.mxu0 %v3691_v4  ;;  %v13394_v50 = vmax.f32 %v10036_v8, 1e-24  ;;  %v13395_v31 = vld [vmem:[#allocation278_spill] sm:$0xff] }
 0x34e   :  { %7295 = vrsqrt.f32 %v13384_v40  ;;  %13386 = vst [vmem:[#allocation36_spill] sm:$0xff] %v10383_v32  ;;  %13388 = vst [vmem:[#allocation199_spill] sm:$0xff] %v10386_v10  ;;  %v10399_v40 = vmul.f32 %v9903_v36, %v13392_v29  ;;  %v7282_v56 = vpop.eup %7281  ;;  %v10405_v21 = vmul.f32 %v9958_v41, %v13395_v31  ;;  %v10409_v13 = vmul.f32 %v9903_v36, %v13397_v49  ;;  %v13399_v53 = vld [vmem:[#allocation279_spill] sm:$0xff]  ;;  %v13401_v29 = vld [vmem:[#allocation170_spill] sm:$0xff] }
 0x34f   :  { %13390 = vst [vmem:[#allocation281_spill] sm:$0xff] %v10390_v28  ;;  %7297 = vrsqrt.f32 %v13391_v48  ;;  %v10413_v0 = vmul.f32 %v9958_v41, %v13399_v53  ;;  %v7284_v48 = vpop.eup %7283  ;;  %v3435_v4 = vadd.f32 %v10392_v42, %v3403_v14  ;;  %v2953_v5 = vmax.f32 %v2921_v54, %v2857_v11  ;;  %v13402_v8 = vld [vmem:[#allocation224_spill] sm:$0xff]  ;;  %v13404_v31 = vld [vmem:[#allocation225_spill] sm:$0xff] }
 0x350   :  { %13393 = vst [vmem:[#allocation296_spill] sm:$0xff] %v10399_v40  ;;  %7299 = vrsqrt.f32 %v13394_v50  ;;  %13396 = vst [vmem:[#allocation274_spill] sm:$0xff] %v10405_v21  ;;  %v2764_v1 = vmul.f32 %v7282_v56, %v13401_v29  ;;  %v2796_v50 = vmul.f32 %v7282_v56, %v13402_v8  ;;  %v10418_v38 = vpop.eup %7285  ;;  %v2828_v59 = vmul.f32 %v7282_v56, %v13404_v31  ;;  %v13406_v36 = vld [vmem:[#allocation172_spill] sm:$0xff] }
 0x351   :  { %13398 = vst [vmem:[#allocation289_spill] sm:$0xff] %v10409_v13  ;;  %13400 = vst [vmem:[#allocation287_spill] sm:$0xff] %v10413_v0  ;;  %v2860_v27 = vmul.f32 %v7282_v56, %v13405_v24  ;;  %v2762_v49 = vmul.f32 %v7284_v48, %v13406_v36  ;;  %v2794_v55 = vmul.f32 %v7284_v48, %v13407_v51  ;;  %7301 = vrcp.f32 %v3435_v4 }
 0x352   :  { %13403 = vst [vmem:[#allocation238_spill] sm:$0xff] %v10418_v38  ;;  %v7288_v41 = vpop.eup %7287  ;;  %v2985_v53 = vsub.f32 %v2761_v25, %v2953_v5  ;;  %v3081_v9 = vsub.f32 %v2793_v12, %v2953_v5  ;;  %v3177_v14 = vsub.f32 %v2825_v47, %v2953_v5  ;;  %v3273_v17 = vsub.f32 %v2857_v11, %v2953_v5  ;;  %v13411_v25 = vld [vmem:[#allocation228_spill] sm:$0xff]  ;;  %v13413_v47 = vld [vmem:[#allocation229_spill] sm:$0xff] }
 0x353   :  { %v7290_v54 = vpop.eup %7289  ;;  %v2892_v29 = vmax.f32 %v2764_v1, %v2796_v50  ;;  %v2826_v8 = vmul.f32 %v7284_v48, %v13408_v34  ;;  %v2858_v38 = vmul.f32 %v7284_v48, %v13409_v6  ;;  %v2890_v24 = vmax.f32 %v2762_v49, %v2794_v55 }
 0x354   :  { %v3033_v2 = vmul.f32 1.442695, %v2985_v53  ;;  %v3129_v31 = vmul.f32 1.442695, %v3081_v9  ;;  %v3225_v16 = vmul.f32 1.442695, %v3177_v14  ;;  %v10426_v56 = vpop.eup %7291  ;;  %v10429_v4 = vmul.f32 %v7288_v41, %v13410_v52 }
 0x355   :  { %v3321_v36 = vmul.f32 1.442695, %v3273_v17  ;;  %v2924_v51 = vmax.f32 %v2892_v29, %v2828_v59  ;;  %v10432_v12 = vmul.f32 %v7288_v41, %v13411_v25  ;;  %v10434_v11 = vpop.eup %7293  ;;  %v2922_v34 = vmax.f32 %v2890_v24, %v2826_v8  ;;  %v13414_v9 = vld [vmem:[#allocation198_spill] sm:$0xff]  ;;  %v13415_v53 = vld [vmem:[#allocation176_spill] sm:$0xff] }
 0x356   :  { %13412 = vst [vmem:[#allocation236_spill] sm:$0xff] %v10434_v11  ;;  %7303 = vpow2.f32 %v3033_v2  ;;  %v10437_v6 = vmul.f32 %v7288_v41, %v13413_v47  ;;  %v10440_v48 = vmul.f32 %v7288_v41, %v13414_v9  ;;  %v10447_v14 = vmul.f32 %v7290_v54, %v13415_v53  ;;  %v13416_v24 = vld [vmem:[#allocation230_spill] sm:$0xff]  ;;  %v13417_v47 = vld [vmem:[#allocation231_spill] sm:$0xff] }
 0x357   :  { %7305 = vpow2.f32 %v3129_v31  ;;  %v2956_v17 = vmax.f32 %v2924_v51, %v2860_v27  ;;  %v2895_v52 = vmax.f32 %v10429_v4, %v10432_v12  ;;  %v2954_v2 = vmax.f32 %v2922_v34, %v2858_v38  ;;  %v7049_v53 = vld [vmem:[%s12386_s3] sm:$0xff]  }
 0x358   :  { %v10442_v5 = vpop.eup %7295  ;;  %7307 = vpow2.f32 %v3225_v16  ;;  %v10452_v25 = vmul.f32 %v7290_v54, %v13416_v24  ;;  %v10455_v41 = vmul.f32 %v7290_v54, %v13417_v47  ;;  %6495 = vmatprep.subr.bf16.mxu0 %v7049_v53 }
 0x359   :  { %v10449_v29 = vpop.eup %7297  ;;  %7309 = vpow2.f32 %v3321_v36  ;;  %v2988_v31 = vsub.f32 %v2764_v1, %v2956_v17  ;;  %v3084_v51 = vsub.f32 %v2796_v50, %v2956_v17  ;;  %v3180_v11 = vsub.f32 %v2828_v59, %v2956_v17  ;;  %6496 = vmatpush3.bf16.msra.mxu0 %v7049_v53 }
 0x35a   :  { %v10457_v9 = vpop.eup %7299  ;;  %v3276_v10 = vsub.f32 %v2860_v27, %v2956_v17  ;;  %v2986_v32 = vsub.f32 %v2762_v49, %v2954_v2  ;;  %v3082_v16 = vsub.f32 %v2794_v55, %v2954_v2  ;;  %v3178_v34 = vsub.f32 %v2826_v8, %v2954_v2  ;;  %v13421_v17 = vld [vmem:[#allocation232_spill] sm:$0xff] }
 0x35b   :  { %v3039_v15 = vmul.f32 1.442695, %v2988_v31  ;;  %v3135_v24 = vmul.f32 1.442695, %v3084_v51  ;;  %v3231_v26 = vmul.f32 1.442695, %v3180_v11  ;;  %v3274_v57 = vsub.f32 %v2858_v38, %v2954_v2  ;;  %v10462_v47 = vpop.eup %7301 }
 0x35c   :  { %v3327_v22 = vmul.f32 1.442695, %v3276_v10  ;;  %v3035_v36 = vmul.f32 1.442695, %v2986_v32  ;;  %v3131_v1 = vmul.f32 1.442695, %v3082_v16  ;;  %v2927_v59 = vmax.f32 %v2895_v52, %v10437_v6 }
 0x35d   :  { %v10467_v50 = vmul.f32 %v10462_v47, %v10392_v42  ;;  %7311 = vpow2.f32 %v3039_v15  ;;  %v3227_v55 = vmul.f32 1.442695, %v3178_v34  ;;  %v3323_v27 = vmul.f32 1.442695, %v3274_v57  ;;  %v13419_v38 = vld [vmem:[#allocation146_spill] sm:$0xff]  ;;  %v13422_v15 = vld [vmem:[#allocation233_spill] sm:$0xff] }
 0x35e   :  { %7313 = vpow2.f32 %v3135_v24  ;;  %v2959_v49 = vmax.f32 %v2927_v59, %v10440_v48  ;;  %v2861_v8 = vmul.f32 %v7290_v54, %v13419_v38  ;;  %v2893_v10 = vmax.f32 %v10447_v14, %v10452_v25  ;;  %v13420_v32 = vld [vmem:[#allocation178_spill] sm:$0xff]  ;;  %v7050_v31 = vld [vmem:[%s12386_s3 + $0x8] sm:$0xff]   ;;  %v13424_v34 = vld [vmem:[#allocation201_spill] sm:$0xff] }
 0x35f   :  { %13418 = vst [vmem:[#allocation40_spill] sm:$0xff] %v10467_v50  ;;  %7315 = vpow2.f32 %v3231_v26  ;;  %v10475_v11 = vmul.f32 %v10426_v56, %v13420_v32  ;;  %v10479_v42 = vmul.f32 %v10426_v56, %v13421_v17  ;;  %v10483_v57 = vmul.f32 %v10426_v56, %v13422_v15  ;;  %6497 = vmatprep.subr.bf16.mxu0 %v7050_v31 }
 0x360   :  { %v10485_v52 = vpop.eup %7303  ;;  %7317 = vpow2.f32 %v3327_v22  ;;  %v2991_v54 = vsub.f32 %v10429_v4, %v2959_v49  ;;  %v3087_v2 = vsub.f32 %v10432_v12, %v2959_v49  ;;  %v3183_v26 = vsub.f32 %v10437_v6, %v2959_v49  ;;  %6498 = vmatpush3.bf16.msra.mxu0 %v7050_v31 }
 0x361   :  { %13423 = vst [vmem:[#allocation299_spill] sm:$0xff] %v10485_v52  ;;  %v10493_v51 = vpop.eup %7305  ;;  %7319 = vpow2.f32 %v3035_v36  ;;  %v3279_v53 = vsub.f32 %v10440_v48, %v2959_v49  ;;  %v2925_v16 = vmax.f32 %v2893_v10, %v10455_v41  ;;  %v10499_v22 = vmul.f32 %v10426_v56, %v13424_v34  ;;  %v13427_v10 = vld [vmem:[#allocation180_spill] sm:$0xff]  ;;  %v13428_v34 = vld [vmem:[#allocation234_spill] sm:$0xff] }
 0x362   :  { %v10501_v4 = vpop.eup %7307  ;;  %v3369_v12 = vadd.f32 %v10493_v51, %v10485_v52  ;;  %7321 = vpow2.f32 %v3131_v1  ;;  %v3045_v6 = vmul.f32 1.442695, %v2991_v54  ;;  %v3141_v24 = vmul.f32 1.442695, %v3087_v2 }
 0x363   :  { %13425 = vst [vmem:[#allocation202_spill] sm:$0xff] %v10501_v4  ;;  %v10505_v59 = vpop.eup %7309  ;;  %7323 = vpow2.f32 %v3227_v55  ;;  %v3237_v36 = vmul.f32 1.442695, %v3183_v26  ;;  %v3333_v48 = vmul.f32 1.442695, %v3279_v53  ;;  %v2957_v49 = vmax.f32 %v2925_v16, %v2861_v8 }
 0x364   :  { %13426 = vst [vmem:[#allocation168_spill] sm:$0xff] %v10505_v59  ;;  %v3401_v38 = vadd.f32 %v10501_v4, %v3369_v12  ;;  %7325 = vpow2.f32 %v3323_v27  ;;  %v2896_v56 = vmax.f32 %v10475_v11, %v10479_v42  ;;  %v10512_v32 = vmul.f32 %v10442_v5, %v13427_v10 }
 0x365   :  { %7327 = vpow2.f32 %v3045_v6  ;;  %v2989_v1 = vsub.f32 %v10447_v14, %v2957_v49  ;;  %v3085_v17 = vsub.f32 %v10452_v25, %v2957_v49  ;;  %v3181_v55 = vsub.f32 %v10455_v41, %v2957_v49  ;;  %v13429_v6 = vld [vmem:[#allocation235_spill] sm:$0xff] }
 0x366   :  { %v3433_v15 = vadd.f32 %v10505_v59, %v3401_v38  ;;  %7329 = vpow2.f32 %v3141_v24  ;;  %v3277_v54 = vsub.f32 %v2861_v8, %v2957_v49  ;;  %v2928_v27 = vmax.f32 %v2896_v56, %v10483_v57  ;;  %v7051_v38 = vld [vmem:[%s12386_s3 + $0x10] sm:$0xff]   ;;  %v7052_v56 = vld [vmem:[%s12386_s3 + $0x18] sm:$0xff]  }
 0x367   :  { %v10519_v2 = vpop.eup %7311  ;;  %7331 = vpow2.f32 %v3237_v36  ;;  %v3041_v26 = vmul.f32 1.442695, %v2989_v1  ;;  %v3137_v31 = vmul.f32 1.442695, %v3085_v17  ;;  %v3233_v53 = vmul.f32 1.442695, %v3181_v55  ;;  %6499 = vmatprep.subr.bf16.mxu0 %v7051_v38 }
 0x368   :  { %v10521_v16 = vpop.eup %7313  ;;  %7333 = vrcp.f32 %v3433_v15  ;;  %v3329_v14 = vmul.f32 1.442695, %v3277_v54  ;;  %v2960_v25 = vmax.f32 %v2928_v27, %v10499_v22  ;;  %v10526_v41 = vmul.f32 %v10442_v5, %v13428_v34  ;;  %v13430_v36 = vld [vmem:[#allocation148_spill] sm:$0xff]  ;;  %6500 = vmatpush3.bf16.msra.mxu0 %v7051_v38 }
 0x369   :  { %v10528_v12 = vpop.eup %7315  ;;  %v3372_v8 = vadd.f32 %v10521_v16, %v10519_v2  ;;  %7335 = vpow2.f32 %v3333_v48  ;;  %v2830_v24 = vmul.f32 %v10442_v5, %v13429_v6  ;;  %v10536_v49 = vmul.f32 %v10442_v5, %v13430_v36  ;;  %6501 = vmatprep.subr.bf16.mxu0 %v7052_v56  ;;  %v13434_v6 = vld [vmem:[#allocation182_spill] sm:$0xff]  ;;  %v13435_v36 = vld [vmem:[#allocation239_spill] sm:$0xff] }
 0x36a   :  { %v10544_v10 = vpop.eup %7317  ;;  %7337 = vpow2.f32 %v3041_v26  ;;  %v2992_v48 = vsub.f32 %v10475_v11, %v2960_v25  ;;  %v3088_v1 = vsub.f32 %v10479_v42, %v2960_v25  ;;  %v3184_v17 = vsub.f32 %v10483_v57, %v2960_v25 }
 0x36b   :  { %v10549_v55 = vpop.eup %7319  ;;  %v3404_v5 = vadd.f32 %v10528_v12, %v3372_v8  ;;  %7339 = vpow2.f32 %v3137_v31  ;;  %v3280_v15 = vsub.f32 %v10499_v22, %v2960_v25  ;;  %v2894_v54 = vmax.f32 %v10512_v32, %v10526_v41 }
 0x36c   :  { %13431 = vst [vmem:[#allocation222_spill] sm:$0xff] %v10549_v55  ;;  %v10555_v27 = vpop.eup %7321  ;;  %7341 = vpow2.f32 %v3233_v53  ;;  %v3047_v26 = vmul.f32 1.442695, %v2992_v48  ;;  %v3143_v11 = vmul.f32 1.442695, %v3088_v1  ;;  %v2771_v53 = vmul.f32 %v10449_v29, %v13434_v6  ;;  %v13440_v6 = vld [vmem:[#allocation184_spill] sm:$0xff]  ;;  %6502 = vmatpush3.bf16.msra.mxu0 %v7052_v56 }
 0x36d   :  { %v3239_v34 = vmul.f32 1.442695, %v3184_v17  ;;  %v10557_v42 = vpop.eup %7323  ;;  %v3436_v57 = vadd.f32 %v10544_v10, %v3404_v5  ;;  %v3370_v31 = vadd.f32 %v10555_v27, %v10549_v55  ;;  %7343 = vpow2.f32 %v3329_v14  ;;  %v13437_v17 = vld [vmem:[#allocation240_spill] sm:$0xff]  ;;  %v13438_v5 = vld [vmem:[#allocation273_spill] sm:$0xff]  ;;  %v13444_v55 = vld [vmem:[#allocation242_spill] sm:$0xff] }
 0x36e   :  { %13432 = vst [vmem:[#allocation223_spill] sm:$0xff] %v10557_v42  ;;  %v3335_v22 = vmul.f32 1.442695, %v3280_v15  ;;  %v10562_v25 = vpop.eup %7325  ;;  %7345 = vpow2.f32 %v3047_v26  ;;  %v2926_v8 = vmax.f32 %v2894_v54, %v2830_v24  ;;  %v2803_v38 = vmul.f32 %v10449_v29, %v13435_v36 }
 0x36f   :  { %13433 = vst [vmem:[#allocation267_spill] sm:$0xff] %v10562_v25  ;;  %v10568_v48 = vpop.eup %7327  ;;  %7347 = vrcp.f32 %v3436_v57  ;;  %v3402_v1 = vadd.f32 %v10557_v42, %v3370_v31  ;;  %v2835_v14 = vmul.f32 %v10449_v29, %v13437_v17  ;;  %v2867_v15 = vmul.f32 %v10449_v29, %v13438_v5  ;;  %v13442_v29 = vld [vmem:[#allocation241_spill] sm:$0xff] }
 0x370   :  { %13436 = vst [vmem:[#allocation41_spill] sm:$0xff] %v10568_v48  ;;  %v10575_v59 = vpop.eup %7329  ;;  %7349 = vpow2.f32 %v3143_v11  ;;  %v2958_v54 = vmax.f32 %v2926_v8, %v10536_v49  ;;  %v2899_v26 = vmax.f32 %v2771_v53, %v2803_v38  ;;  %v10580_v36 = vmul.f32 %v10457_v9, %v13440_v6 }
 0x371   :  { %13439 = vst [vmem:[#allocation23_spill] sm:$0xff] %v10575_v59  ;;  %v10582_v57 = vpop.eup %7331  ;;  %v3434_v31 = vadd.f32 %v10562_v25, %v3402_v1  ;;  %v3375_v17 = vadd.f32 %v10575_v59, %v10568_v48  ;;  %7351 = vpow2.f32 %v3239_v34  ;;  %v10589_v5 = vmul.f32 %v10457_v9, %v13442_v29 }
 0x372   :  { %13441 = vst [vmem:[#allocation47_spill] sm:$0xff] %v10582_v57  ;;  %v10591_v11 = vpop.eup %7333  ;;  %7353 = vpow2.f32 %v3335_v22  ;;  %v2990_v8 = vsub.f32 %v10512_v32, %v2958_v54  ;;  %v3086_v6 = vsub.f32 %v10526_v41, %v2958_v54  ;;  %v3182_v56 = vsub.f32 %v2830_v24, %v2958_v54 }
 0x373   :  { %v10595_v42 = vpop.eup %7335  ;;  %7355 = vrcp.f32 %v3434_v31  ;;  %v3407_v1 = vadd.f32 %v10582_v57, %v3375_v17  ;;  %v3278_v59 = vsub.f32 %v10536_v49, %v2958_v54  ;;  %v2931_v34 = vmax.f32 %v2899_v26, %v2835_v14  ;;  %v13446_v31 = vld [vmem:[#allocation276_spill] sm:$0xff]  ;;  %v7053_v49 = vld [vmem:[%s12386_s3 + $0x20] sm:$0xff]  }
 0x374   :  { %v10599_v48 = vpop.eup %7337  ;;  %v3043_v29 = vmul.f32 1.442695, %v2990_v8  ;;  %v3139_v25 = vmul.f32 1.442695, %v3086_v6  ;;  %v3235_v4 = vmul.f32 1.442695, %v3182_v56  ;;  %v2833_v22 = vmul.f32 %v10457_v9, %v13444_v55  ;;  %6503 = vmatprep.subr.bf16.mxu0 %v7053_v49 }
 0x375   :  { %13443 = vst [vmem:[#allocation277_spill] sm:$0xff] %v10599_v48  ;;  %v10603_v32 = vpop.eup %7339  ;;  %v3439_v41 = vadd.f32 %v10595_v42, %v3407_v1  ;;  %v3331_v24 = vmul.f32 1.442695, %v3278_v59  ;;  %v2963_v52 = vmax.f32 %v2931_v34, %v2867_v15  ;;  %v2865_v17 = vmul.f32 %v10457_v9, %v13446_v31  ;;  %v7054_v54 = vld [vmem:[%s12386_s3 + $0x28] sm:$0xff]   ;;  %6504 = vmatpush3.bf16.msra.mxu0 %v7053_v49 }
 0x376   :  { %13445 = vst [vmem:[#allocation270_spill] sm:$0xff] %v10603_v32  ;;  %v10614_v26 = vpop.eup %7341  ;;  %v3373_v55 = vadd.f32 %v10603_v32, %v10599_v48  ;;  %7357 = vpow2.f32 %v3043_v29  ;;  %v2897_v59 = vmax.f32 %v10580_v36, %v10589_v5  ;;  %v13448_v8 = vld [vmem:[#allocation32_spill] sm:$0xff]  ;;  %6505 = vmatprep.subr.bf16.mxu0 %v7054_v54 }
 0x377   :  { %13447 = vst [vmem:[#allocation278_spill] sm:$0xff] %v10614_v26  ;;  %v4670_v9 = vmul.f32 %v10358_v45, %v13448_v8  ;;  %v10622_v6 = vpop.eup %7343  ;;  %7359 = vrcp.f32 %v3439_v41  ;;  %v2995_v56 = vsub.f32 %v2771_v53, %v2963_v52  ;;  %v3091_v1 = vsub.f32 %v2803_v38, %v2963_v52 }
 0x378   :  { %13449 = vst [vmem:[#allocation271_spill] sm:$0xff] %v10622_v6  ;;  %v3187_v34 = vsub.f32 %v2835_v14, %v2963_v52  ;;  %v10624_v31 = vpop.eup %7345  ;;  %v3405_v57 = vadd.f32 %v10614_v26, %v3373_v55  ;;  %7361 = vpow2.f32 %v3139_v25  ;;  %v3283_v48 = vsub.f32 %v2867_v15, %v2963_v52  ;;  %v13454_v15 = vld [vmem:[#allocation38_spill] sm:$0xff] }
 0x379   :  { %13450 = vst [vmem:[#allocation279_spill] sm:$0xff] %v10624_v31  ;;  %v2929_v29 = vmax.f32 %v2897_v59, %v2833_v22  ;;  %v10627_v32 = vpop.eup %7347  ;;  %7363 = vpow2.f32 %v3235_v4  ;;  %v3053_v50 = vmul.f32 1.442695, %v2995_v56  ;;  %v3149_v8 = vmul.f32 1.442695, %v3091_v1  ;;  %v13455_v59 = vld [vmem:[#allocation20_spill] sm:$0xff]  ;;  %6506 = vmatpush3.bf16.msra.mxu0 %v7054_v54 }
 0x37a   :  { %v3245_v45 = vmul.f32 1.442695, %v3187_v34  ;;  %v10629_v41 = vpop.eup %7349  ;;  %v10633_v53 = vmul.f32 %v10627_v32, %v10544_v10  ;;  %v3437_v38 = vadd.f32 %v10622_v6, %v3405_v57  ;;  %7365 = vpow2.f32 %v3331_v24  ;;  %v13456_v24 = vld [vmem:[#allocation80_spill] sm:$0xff]  ;;  %v7055_v54 = vld [vmem:[%s12386_s3 + $0x30] sm:$0xff]  }
 0x37b   :  { %13451 = vst [vmem:[#allocation170_spill] sm:$0xff] %v10629_v41  ;;  %v3341_v25 = vmul.f32 1.442695, %v3283_v48  ;;  %v10636_v52 = vpop.eup %7351  ;;  %v3376_v14 = vadd.f32 %v10629_v41, %v10624_v31  ;;  %7367 = vpow2.f32 %v3053_v50  ;;  %v2961_v4 = vmax.f32 %v2929_v29, %v2865_v17  ;;  %6507 = vmatprep.subr.bf16.mxu0 %v7055_v54 }
 0x37c   :  { %13452 = vst [vmem:[#allocation224_spill] sm:$0xff] %v10633_v53  ;;  %13453 = vst [vmem:[#allocation225_spill] sm:$0xff] %v10636_v52  ;;  %v4671_v49 = vmul.f32 %v10390_v28, %v13454_v15  ;;  %v10642_v55 = vpop.eup %7353  ;;  %7369 = vrcp.f32 %v3437_v38  ;;  %v4734_v10 = vadd.f32 %v10331_v60, %v4670_v9  ;;  %v4766_v57 = vmul.f32 %v10399_v40, %v13455_v59 }
 0x37d   :  { %v4767_v48 = vmul.f32 %v10405_v21, %v13456_v24  ;;  %v10649_v56 = vpop.eup %7355  ;;  %v3408_v50 = vadd.f32 %v10636_v52, %v3376_v14  ;;  %7371 = vpow2.f32 %v3149_v8  ;;  %v2993_v1 = vsub.f32 %v10580_v36, %v2961_v4  ;;  %v7056_v24 = vld [vmem:[%s12386_s3 + $0x38] sm:$0xff]   ;;  %6508 = vmatpush3.bf16.msra.mxu0 %v7055_v54 }
 0x37e   :  { %v3089_v34 = vsub.f32 %v10589_v5, %v2961_v4  ;;  %7373 = vpow2.f32 %v3245_v45  ;;  %v3185_v29 = vsub.f32 %v2833_v22, %v2961_v4  ;;  %v3281_v38 = vsub.f32 %v2865_v17, %v2961_v4  ;;  %v13460_v17 = vld [vmem:[#allocation24_spill] sm:$0xff]  ;;  %v13461_v4 = vld [vmem:[#allocation82_spill] sm:$0xff]  ;;  %6509 = vmatprep.subr.bf16.mxu0 %v7056_v24 }
 0x37f   :  { %v4735_v60 = vadd.f32 %v10336_v46, %v4671_v49  ;;  %v3440_v9 = vadd.f32 %v10642_v55, %v3408_v50  ;;  %7375 = vpow2.f32 %v3341_v25  ;;  %v3049_v15 = vmul.f32 1.442695, %v2993_v1  ;;  %v13466_v1 = vld [vmem:[#allocation293_spill] sm:$0xff] }
 0x380   :  { %v3145_v59 = vmul.f32 1.442695, %v3089_v34  ;;  %v10659_v14 = vpop.eup %7357  ;;  %v3241_v8 = vmul.f32 1.442695, %v3185_v29  ;;  %v3337_v36 = vmul.f32 1.442695, %v3281_v38  ;;  %v4798_v45 = vadd.f32 %v4766_v57, %v4734_v10 }
 0x381   :  { %13457 = vst [vmem:[#allocation268_spill] sm:$0xff] %v10659_v14  ;;  %v13458_v5 = vmax.f32 %v10255_v3, 1e-24  ;;  %v10663_v22 = vpop.eup %7359  ;;  %v4799_v46 = vadd.f32 %v4767_v48, %v4735_v60  ;;  %v4830_v25 = vmul.f32 %v10409_v13, %v13460_v17  ;;  %v4831_v49 = vmul.f32 %v10413_v0, %v13461_v4  ;;  %v13464_v10 = vld [vmem:[#allocation282_spill] sm:$0xff]  ;;  %v13467_v34 = vld [vmem:[#allocation248_spill] sm:$0xff]  ;;  %6510 = vmatpush3.bf16.msra.mxu0 %v7056_v24 }
 0x382   :  { %13459 = vst [vmem:[#allocation172_spill] sm:$0xff] %v10663_v22  ;;  %v10672_v50 = vpop.eup %7361  ;;  %v10676_v3 = vmul.f32 %v10663_v22, %v10595_v42  ;;  %v13465_v57 = vld [vmem:[#allocation302_spill] sm:$0xff]  ;;  %v3520_v29 = vmul.f32 %v13467_v34, %v13466_v1  ;;  %v13492_v24 = vld [vmem:[#allocation88_spill] sm:$0xff] }
 0x383   :  { %7377 = vrsqrt.f32 %v13458_v5  ;;  %13462 = vst [vmem:[#allocation226_spill] sm:$0xff] %v10672_v50  ;;  %v3519_v48 = vmul.f32 %v13465_v57, %v13464_v10  ;;  %v10682_v38 = vpop.eup %7363  ;;  %v3374_v60 = vadd.f32 %v10672_v50, %v10659_v14  ;;  %v4863_v5 = vadd.f32 %v4831_v49, %v4799_v46  ;;  %v13471_v10 = vld [vmem:[#allocation54_spill] sm:$0xff] }
 0x384   :  { %7379 = vrcp.f32 %v3440_v9  ;;  %13463 = vst [vmem:[#allocation227_spill] sm:$0xff] %v10676_v3  ;;  %13468 = vst [vmem:[#allocation269_spill] sm:$0xff] %v10682_v38  ;;  %v4862_v9 = vadd.f32 %v4830_v25, %v4798_v45  ;;  %v10686_v17 = vpop.eup %7365  ;;  %v10692_v0 = vmul.f32 %v3520_v29, %v13471_v10  ;;  %v13477_v25 = vld [vmem:[#allocation272_spill] sm:$0xff]  ;;  %v13486_v10 = vld [vmem:[#allocation86_spill] sm:$0xff] }
 0x385   :  { %7381 = vpow2.f32 %v3049_v15  ;;  %13469 = vst [vmem:[#allocation174_spill] sm:$0xff] %v10686_v17  ;;  %v3692_v42 = vpack.c.bf16 %v3520_v29, %v3519_v48  ;;  %v13470_v15 = vld [vmem:[#allocation52_spill] sm:$0xff]  ;;  %v10694_v54 = vpop.eup %7367  ;;  %v3406_v1 = vadd.f32 %v10682_v38, %v3374_v60  ;;  %v10707_v49 = vmul.f32 %v13365_v7, %v13477_v25  ;;  %v13521_v38 = vld [vmem:[#allocation251_spill] sm:$0xff]  ;;  %v13524_v3 = vld [vmem:[#allocation298_spill] sm:$0xff] }
 0x386   :  { %7383 = vpow2.f32 %v3145_v59  ;;  %v10689_v4 = vmul.f32 %v3519_v48, %v13470_v15  ;;  %13472 = vst [vmem:[#allocation228_spill] sm:$0xff] %v10694_v54  ;;  %v4894_v13 = vpack.c.bf16 %v4863_v5, %v4862_v9  ;;  %v13473_v59 = vld [vmem:[#allocation144_spill] sm:$0xff]  ;;  %v10701_v46 = vpop.eup %7369  ;;  %v13489_v25 = vmax.f32 %v10296_v18, 1e-24 }
 0x387   :  { %7385 = vpow2.f32 %v3241_v8  ;;  %v10699_v45 = vmul.f32 %v13360_v20, %v13473_v59  ;;  %13475 = vst [vmem:[#allocation198_spill] sm:$0xff] %v10701_v46  ;;  %v13476_v8 = vmax.f32 %v10274_v37, 1e-24  ;;  %6468 = vmatmul.mubr.bf16.gmra.mrb[212].mxu0 %v3692_v42  ;;  %13478 = vst [vmem:[#allocation176_spill] sm:$0xff] %v10707_v49  ;;  %v13479_v48 = vld [vmem:[#allocation200_spill] sm:$0xff]  ;;  %v10717_v9 = vpop.eup %7371  ;;  %v3438_v5 = vadd.f32 %v10686_v17, %v3406_v1  ;;  %v13485_v42 = vld [vmem:[#allocation37_spill] sm:$0xff] }
 0x388   :  { %7387 = vpow2.f32 %v3337_v36  ;;  %v10711_v29 = vmul.f32 %v13360_v20, %v13479_v48  ;;  %v13481_v36 = vld [vmem:[#allocation275_spill] sm:$0xff]  ;;  %13483 = vst [vmem:[#allocation146_spill] sm:$0xff] %v10717_v9  ;;  %v13484_v37 = vmax.f32 %v10293_v35, 1e-24  ;;  %6655 = vmatprep.mubr.bf16.mxu1 %v4894_v13  ;;  %v10726_v20 = vpop.eup %7373  ;;  %v13491_v48 = vld [vmem:[#allocation84_spill] sm:$0xff] }
 0x389   :  { %13474 = vst [vmem:[#allocation229_spill] sm:$0xff] %v10699_v45  ;;  %7389 = vrsqrt.f32 %v13476_v8  ;;  %v10715_v60 = vmul.f32 %v13365_v7, %v13481_v36  ;;  %v4672_v15 = vmul.f32 %v10699_v45, %v13485_v42  ;;  %v13487_v59 = vld [vmem:[#allocation283_spill] sm:$0xff]  ;;  %13488 = vst [vmem:[#allocation178_spill] sm:$0xff] %v10726_v20  ;;  %v3379_v7 = vadd.f32 %v10717_v9, %v10694_v54  ;;  %v10736_v36 = vpop.eup %7375  ;;  %v13519_v54 = vld [vmem:[#allocation246_spill] sm:$0xff] }
 0x38a   :  { %13480 = vst [vmem:[#allocation230_spill] sm:$0xff] %v10711_v29  ;;  %7391 = vrsqrt.f32 %v13484_v37  ;;  %v4832_v8 = vmul.f32 %v13487_v59, %v13486_v10  ;;  %v13490_v1 = vld [vmem:[#allocation43_spill] sm:$0xff]  ;;  %v4768_v13 = vmul.f32 %v10711_v29, %v13491_v48  ;;  %v13493_v10 = vld [vmem:[#allocation90_spill] sm:$0xff]  ;;  %v3521_v48 = vmul.f32 %v10246_v62, %v10176_v44 }
 0x38b   :  { %13482 = vst [vmem:[#allocation231_spill] sm:$0xff] %v10715_v60  ;;  %7393 = vrsqrt.f32 %v13489_v25  ;;  %v4673_v35 = vmul.f32 %v10707_v49, %v13490_v1  ;;  %v4736_v37 = vadd.f32 %v10352_v19, %v4672_v15  ;;  %v4769_v42 = vmul.f32 %v10715_v60, %v13492_v24  ;;  %v13494_v59 = vld [vmem:[#allocation291_spill] sm:$0xff]  ;;  %v13497_v19 = vld [vmem:[#allocation186_spill] sm:$0xff]  ;;  %v13499_v60 = vld [vmem:[#allocation244_spill] sm:$0xff] }
 0x38c   :  { %7395 = vrcp.f32 %v3438_v5  ;;  %v4833_v21 = vmul.f32 %v13494_v59, %v13493_v10  ;;  %v3411_v18 = vadd.f32 %v10726_v20, %v3379_v7  ;;  %v13495_v25 = vmax.f32 %v10304_v33, 1e-24  ;;  %v13498_v29 = vld [vmem:[#allocation243_spill] sm:$0xff]  ;;  %v13511_v20 = vld [vmem:[#allocation297_spill] sm:$0xff] }
 0x38d   :  { %v7378_v40 = vpop.eup %7377  ;;  %v4737_v1 = vadd.f32 %v10372_v30, %v4673_v35  ;;  %v13500_v10 = vld [vmem:[#allocation203_spill] sm:$0xff]  ;;  %v13503_v44 = vmax.f32 %v10313_v58, 1e-24  ;;  %v4800_v7 = vadd.f32 %v4768_v13, %v4736_v37  ;;  %v13507_v58 = vld [vmem:[#allocation286_spill] sm:$0xff] }
 0x38e   :  { %7397 = vrsqrt.f32 %v13495_v25  ;;  %v10749_v5 = vpop.eup %7379  ;;  %v2772_v15 = vmul.f32 %v7378_v40, %v13497_v19  ;;  %v2804_v24 = vmul.f32 %v7378_v40, %v13498_v29  ;;  %v2836_v49 = vmul.f32 %v7378_v40, %v13499_v60 }
 0x38f   :  { %13496 = vst [vmem:[#allocation232_spill] sm:$0xff] %v10749_v5  ;;  %v2868_v59 = vmul.f32 %v7378_v40, %v13500_v10  ;;  %v10755_v45 = vpop.eup %7381  ;;  %v10759_v33 = vmul.f32 %v10749_v5, %v10642_v55  ;;  %v3443_v30 = vadd.f32 %v10736_v36, %v3411_v18  ;;  %7399 = vrsqrt.f32 %v13503_v44  ;;  %v13505_v40 = vld [vmem:[#allocation72_spill] sm:$0xff]  ;;  %v13510_v44 = vld [vmem:[#allocation14_spill] sm:$0xff] }
 0x390   :  { %13501 = vst [vmem:[#allocation233_spill] sm:$0xff] %v10755_v45  ;;  %v10764_v35 = vpop.eup %7383  ;;  %v2900_v25 = vmax.f32 %v2772_v15, %v2804_v24  ;;  %v4801_v29 = vadd.f32 %v4769_v42, %v4737_v1  ;;  %v3522_v60 = vmul.f32 %v10290_v61, %v10210_v43  ;;  %v10769_v19 = vmul.f32 %v3521_v48, %v13505_v40  ;;  %v13525_v5 = vld [vmem:[#allocation192_spill] sm:$0xff] }
 0x391   :  { %13502 = vst [vmem:[#allocation201_spill] sm:$0xff] %v10759_v33  ;;  %13504 = vst [vmem:[#allocation180_spill] sm:$0xff] %v10764_v35  ;;  %v10771_v10 = vpop.eup %7385  ;;  %7401 = vrcp.f32 %v3443_v30  ;;  %v3377_v55 = vadd.f32 %v10764_v35, %v10755_v45  ;;  %v10775_v18 = vadd.f32 %v4832_v8, %v4800_v7  ;;  %v10779_v13 = vmul.f32 %v13367_v63, %v13507_v58  ;;  %v13513_v7 = vld [vmem:[#allocation288_spill] sm:$0xff]  ;;  %v13515_v45 = vld [vmem:[#allocation301_spill] sm:$0xff] }
 0x392   :  { %13506 = vst [vmem:[#allocation234_spill] sm:$0xff] %v10771_v10  ;;  %v10781_v37 = vpop.eup %7387  ;;  %v2932_v42 = vmax.f32 %v2900_v25, %v2836_v49  ;;  %v10783_v1 = vadd.f32 %v4833_v21, %v4801_v29  ;;  %v3693_v43 = vpack.c.bf16 %v3522_v60, %v3521_v48  ;;  %v10786_v40 = vmul.f32 %v3522_v60, %v13510_v44  ;;  %v13517_v29 = vld [vmem:[#allocation188_spill] sm:$0xff]  ;;  %v13518_v44 = vld [vmem:[#allocation245_spill] sm:$0xff] }
 0x393   :  { %13508 = vst [vmem:[#allocation235_spill] sm:$0xff] %v10779_v13  ;;  %13509 = vst [vmem:[#allocation148_spill] sm:$0xff] %v10781_v37  ;;  %v7390_v28 = vpop.eup %7389  ;;  %v3409_v30 = vadd.f32 %v10771_v10, %v3377_v55  ;;  %v10791_v8 = vmul.f32 %v10119_v23, %v13511_v20  ;;  %v10795_v58 = vmul.f32 %v13367_v63, %v13513_v7  ;;  %v13520_v7 = vld [vmem:[#allocation190_spill] sm:$0xff] }
 0x394   :  { %v10799_v25 = vmul.f32 %v10119_v23, %v13515_v45  ;;  %v7392_v21 = vpop.eup %7391  ;;  %v2964_v48 = vmax.f32 %v2932_v42, %v2868_v59  ;;  %v2770_v60 = vmul.f32 %v7390_v28, %v13517_v29  ;;  %v2802_v9 = vmul.f32 %v7390_v28, %v13518_v44  ;;  %6471 = vmatprep.mubr.bf16.mxu0 %v3693_v43 }
 0x395   :  { %13512 = vst [vmem:[#allocation182_spill] sm:$0xff] %v10791_v8  ;;  %13514 = vst [vmem:[#allocation239_spill] sm:$0xff] %v10795_v58  ;;  %v2834_v55 = vmul.f32 %v7390_v28, %v13519_v54  ;;  %v7394_v10 = vpop.eup %7393  ;;  %v3441_v20 = vadd.f32 %v10781_v37, %v3409_v30  ;;  %v2866_v17 = vmul.f32 %v7390_v28, %v9908_v39  ;;  %v13523_v54 = vld [vmem:[#allocation252_spill] sm:$0xff] }
 0x396   :  { %13516 = vst [vmem:[#allocation240_spill] sm:$0xff] %v10799_v25  ;;  %v2775_v6 = vmul.f32 %v7392_v21, %v13520_v7  ;;  %v2807_v26 = vmul.f32 %v7392_v21, %v13521_v38  ;;  %v10808_v45 = vpop.eup %7395  ;;  %v2996_v14 = vsub.f32 %v2772_v15, %v2964_v48  ;;  %v3092_v42 = vsub.f32 %v2804_v24, %v2964_v48  ;;  %v13526_v15 = vld [vmem:[#allocation253_spill] sm:$0xff] }
 0x397   :  { %13522 = vst [vmem:[#allocation273_spill] sm:$0xff] %v10808_v45  ;;  %v3188_v35 = vsub.f32 %v2836_v49, %v2964_v48  ;;  %v3284_v29 = vsub.f32 %v2868_v59, %v2964_v48  ;;  %7403 = vrcp.f32 %v3441_v20  ;;  %v2898_v44 = vmax.f32 %v2770_v60, %v2802_v9  ;;  %v13527_v59 = vld [vmem:[#allocation254_spill] sm:$0xff]  ;;  %v13528_v20 = vld [vmem:[#allocation300_spill] sm:$0xff] }
 0x398   :  { %v7398_v33 = vpop.eup %7397  ;;  %v2839_v43 = vmul.f32 %v7392_v21, %v13523_v54  ;;  %v2871_v52 = vmul.f32 %v7392_v21, %v13524_v3  ;;  %v3055_v30 = vmul.f32 1.442695, %v2996_v14  ;;  %v3151_v37 = vmul.f32 1.442695, %v3092_v42 }
 0x399   :  { %v3247_v39 = vmul.f32 1.442695, %v3188_v35  ;;  %v2903_v28 = vmax.f32 %v2775_v6, %v2807_v26  ;;  %v7400_v7 = vpop.eup %7399  ;;  %v3343_v41 = vmul.f32 1.442695, %v3284_v29  ;;  %v2930_v38 = vmax.f32 %v2898_v44, %v2834_v55  ;;  %v13529_v35 = vld [vmem:[#allocation194_spill] sm:$0xff]  ;;  %v13531_v29 = vld [vmem:[#allocation255_spill] sm:$0xff] }
 0x39a   :  { %v2773_v31 = vmul.f32 %v7394_v10, %v13525_v5  ;;  %v2805_v24 = vmul.f32 %v7394_v10, %v13526_v15  ;;  %7405 = vpow2.f32 %v3055_v30  ;;  %v2837_v48 = vmul.f32 %v7394_v10, %v13527_v59 }
 0x39b   :  { %v2935_v49 = vmax.f32 %v2903_v28, %v2839_v43  ;;  %v2869_v22 = vmul.f32 %v7394_v10, %v13528_v20  ;;  %v10816_v54 = vpop.eup %7401  ;;  %7407 = vpow2.f32 %v3151_v37  ;;  %v2962_v14 = vmax.f32 %v2930_v38, %v2866_v17 }
 0x39c   :  { %v2901_v3 = vmax.f32 %v2773_v31, %v2805_v24  ;;  %v10819_v21 = vmul.f32 %v7398_v33, %v13529_v35  ;;  %v10823_v42 = vmul.f32 %v10816_v54, %v10736_v36  ;;  %7409 = vpow2.f32 %v3247_v39 }
 0x39d   :  { %v2967_v5 = vmax.f32 %v2935_v49, %v2871_v52  ;;  %v10826_v44 = vmul.f32 %v7398_v33, %v13531_v29  ;;  %7411 = vpow2.f32 %v3343_v41  ;;  %v2994_v30 = vsub.f32 %v2770_v60, %v2962_v14  ;;  %v13532_v60 = vld [vmem:[#allocation256_spill] sm:$0xff] }
 0x39e   :  { %13530 = vst [vmem:[#allocation184_spill] sm:$0xff] %v10823_v42  ;;  %v3090_v10 = vsub.f32 %v2802_v9, %v2962_v14  ;;  %v3186_v28 = vsub.f32 %v2834_v55, %v2962_v14  ;;  %v3282_v15 = vsub.f32 %v2866_v17, %v2962_v14  ;;  %v2933_v39 = vmax.f32 %v2901_v3, %v2837_v48  ;;  %v13535_v14 = vld [vmem:[#allocation257_spill] sm:$0xff] }
 0x39f   :  { %v2999_v37 = vsub.f32 %v2775_v6, %v2967_v5  ;;  %v3095_v38 = vsub.f32 %v2807_v26, %v2967_v5  ;;  %v3191_v59 = vsub.f32 %v2839_v43, %v2967_v5  ;;  %v3051_v20 = vmul.f32 1.442695, %v2994_v30  ;;  %v13533_v6 = vld [vmem:[#allocation237_spill] sm:$0xff] }
 0x3a0   :  { %v3147_v35 = vmul.f32 1.442695, %v3090_v10  ;;  %v3243_v45 = vmul.f32 1.442695, %v3186_v28  ;;  %v3287_v50 = vsub.f32 %v2871_v52, %v2967_v5  ;;  %v3339_v46 = vmul.f32 1.442695, %v3282_v15 }
 0x3a1   :  { %v3061_v36 = vmul.f32 1.442695, %v2999_v37  ;;  %v3157_v42 = vmul.f32 1.442695, %v3095_v38  ;;  %v10828_v49 = vpop.eup %7403  ;;  %7413 = vpow2.f32 %v3051_v20  ;;  %v3253_v29 = vmul.f32 1.442695, %v3191_v59 }
 0x3a2   :  { %v3349_v41 = vmul.f32 1.442695, %v3287_v50  ;;  %v2840_v9 = vmul.f32 %v7398_v33, %v13532_v60  ;;  %7415 = vpow2.f32 %v3147_v35  ;;  %v2965_v17 = vmax.f32 %v2933_v39, %v2869_v22  ;;  %v13534_v52 = vld [vmem:[#allocation196_spill] sm:$0xff]  ;;  %v13536_v5 = vld [vmem:[#allocation258_spill] sm:$0xff]  ;;  %v13537_v38 = vld [vmem:[#allocation247_spill] sm:$0xff] }
 0x3a3   :  { %v2872_v26 = vmul.f32 %v7398_v33, %v13533_v6  ;;  %v2904_v55 = vmax.f32 %v10819_v21, %v10826_v44  ;;  %7417 = vpow2.f32 %v3243_v45  ;;  %v10835_v43 = vmul.f32 %v7400_v7, %v13534_v52  ;;  %v10851_v20 = vld [vmem:[%s12386_s3 + $0x80] sm:$0xff]  }
 0x3a4   :  { %v10838_v3 = vmul.f32 %v7400_v7, %v13535_v14  ;;  %v10841_v30 = vmul.f32 %v7400_v7, %v13536_v5  ;;  %v10843_v50 = vpop.eup %7405  ;;  %7419 = vpow2.f32 %v3339_v46  ;;  %v2997_v10 = vsub.f32 %v2773_v31, %v2965_v17  ;;  %13538 = vst [vmem:[#allocation241_spill] sm:$0xff] %v10851_v20  ;;  %6543 = vmatprep.subr.bf16.mxu0 %v10851_v20  ;;  %v13577_v20 = vld [vmem:[#allocation100_spill] sm:$0xff] }
 0x3a5   :  { %v3093_v28 = vsub.f32 %v2805_v24, %v2965_v17  ;;  %v3189_v15 = vsub.f32 %v2837_v48, %v2965_v17  ;;  %v10845_v33 = vpop.eup %7407  ;;  %7421 = vpow2.f32 %v3061_v36  ;;  %v3285_v37 = vsub.f32 %v2869_v22, %v2965_v17 }
 0x3a6   :  { %v2936_v45 = vmax.f32 %v2904_v55, %v2840_v9  ;;  %v2870_v59 = vmul.f32 %v7400_v7, %v13537_v38  ;;  %v10853_v35 = vpop.eup %7409  ;;  %v3380_v46 = vadd.f32 %v10845_v33, %v10843_v50  ;;  %7423 = vpow2.f32 %v3157_v42  ;;  %v13543_v38 = vld [vmem:[#allocation46_spill] sm:$0xff] }
 0x3a7   :  { %v3057_v31 = vmul.f32 1.442695, %v2997_v10  ;;  %v3153_v24 = vmul.f32 1.442695, %v3093_v28  ;;  %v10857_v48 = vpop.eup %7411  ;;  %7425 = vpow2.f32 %v3253_v29  ;;  %v3249_v22 = vmul.f32 1.442695, %v3189_v15 }
 0x3a8   :  { %v3345_v36 = vmul.f32 1.442695, %v3285_v37  ;;  %v2968_v39 = vmax.f32 %v2936_v45, %v2872_v26  ;;  %v3412_v7 = vadd.f32 %v10853_v35, %v3380_v46  ;;  %7427 = vpow2.f32 %v3349_v41  ;;  %v13541_v37 = vld [vmem:[#allocation303_spill] sm:$0xff] }
 0x3a9   :  { %v2902_v60 = vmax.f32 %v10835_v43, %v10838_v3  ;;  %v4895_v17 = vpack.c.bf16 %v10783_v1, %v10775_v18  ;;  %7429 = vpow2.f32 %v3057_v31  ;;  %v10883_v45 = vmul.f32 %v10119_v23, %v13541_v37  ;;  %v13544_v23 = vld [vmem:[#allocation25_spill] sm:$0xff]  ;;  %v13550_v37 = vld [vmem:[#allocation96_spill] sm:$0xff] }
 0x3aa   :  { %v3000_v42 = vsub.f32 %v10819_v21, %v2968_v39  ;;  %v3096_v6 = vsub.f32 %v10826_v44, %v2968_v39  ;;  %v3192_v29 = vsub.f32 %v2840_v9, %v2968_v39  ;;  %v3444_v55 = vadd.f32 %v10857_v48, %v3412_v7  ;;  %v13539_v44 = vld [vmem:[#allocation290_spill] sm:$0xff] }
 0x3ab   :  { %7431 = vpow2.f32 %v3153_v24  ;;  %v3288_v52 = vsub.f32 %v2872_v26, %v2968_v39  ;;  %v2934_v14 = vmax.f32 %v2902_v60, %v10841_v30  ;;  %6656 = vmatmul.mubr.bf16.vlgmr.msra.gmra.mrb[240].mxu1 %v4895_v17  ;;  %v10869_v41 = vpop.eup %7413  ;;  %v10875_v9 = vmul.f32 %v13367_v63, %v13539_v44  ;;  %13542 = vst [vmem:[#allocation276_spill] sm:$0xff] %v10883_v45 }
 0x3ac   :  { %7433 = vpow2.f32 %v3249_v22  ;;  %v3063_v5 = vmul.f32 1.442695, %v3000_v42  ;;  %v3159_v10 = vmul.f32 1.442695, %v3096_v6  ;;  %v3255_v28 = vmul.f32 1.442695, %v3192_v29  ;;  %v10871_v18 = vpop.eup %7415 }
 0x3ad   :  { %7435 = vrcp.f32 %v3444_v55  ;;  %v3351_v1 = vmul.f32 1.442695, %v3288_v52  ;;  %v2966_v21 = vmax.f32 %v2934_v14, %v2870_v59  ;;  %13540 = vst [vmem:[#allocation242_spill] sm:$0xff] %v10875_v9  ;;  %v10877_v15 = vpop.eup %7417  ;;  %v3378_v26 = vadd.f32 %v10871_v18, %v10869_v41 }
 0x3ae   :  { %7437 = vpow2.f32 %v3345_v36  ;;  %v4674_v46 = vmul.f32 %v10779_v13, %v13543_v38  ;;  %v10887_v31 = vpop.eup %7419  ;;  %v4675_v60 = vmul.f32 %v10791_v8, %v13544_v23  ;;  %v4771_v38 = vmul.f32 %v10799_v25, %v13550_v37  ;;  %v13554_v23 = vld [vmem:[#allocation158_spill] sm:$0xff]  ;;  %v13558_v37 = vld [vmem:[#allocation15_spill] sm:$0xff]  ;;  %v13578_v8 = vld [vmem:[#allocation104_spill] sm:$0xff] }
 0x3af   :  { %7439 = vpow2.f32 %v3063_v5  ;;  %v2998_v24 = vsub.f32 %v10835_v43, %v2966_v21  ;;  %v3094_v63 = vsub.f32 %v10838_v3, %v2966_v21  ;;  %v3190_v22 = vsub.f32 %v10841_v30, %v2966_v21  ;;  %v10892_v39 = vpop.eup %7421  ;;  %v13547_v5 = vld [vmem:[#allocation199_spill] sm:$0xff] }
 0x3b0   :  { %v3410_v36 = vadd.f32 %v10877_v15, %v3378_v26  ;;  %7441 = vpow2.f32 %v3159_v10  ;;  %v3286_v7 = vsub.f32 %v2870_v59, %v2966_v21  ;;  %v10897_v17 = vpop.eup %7423  ;;  %v13546_v59 = vld [vmem:[#allocation36_spill] sm:$0xff]  ;;  %v4739_v10 = vadd.f32 %v13547_v5, %v4675_v60 }
 0x3b1   :  { %7443 = vpow2.f32 %v3255_v28  ;;  %v3059_v42 = vmul.f32 1.442695, %v2998_v24  ;;  %v3155_v6 = vmul.f32 1.442695, %v3094_v63  ;;  %v3251_v29 = vmul.f32 1.442695, %v3190_v22  ;;  %v10899_v43 = vpop.eup %7425 }
 0x3b2   :  { %13545 = vst [vmem:[#allocation32_spill] sm:$0xff] %v10899_v43  ;;  %v3442_v3 = vadd.f32 %v10887_v31, %v3410_v36  ;;  %v3383_v30 = vadd.f32 %v10897_v17, %v10892_v39  ;;  %7445 = vpow2.f32 %v3351_v1  ;;  %v3347_v55 = vmul.f32 1.442695, %v3286_v7  ;;  %v10904_v52 = vpop.eup %7427  ;;  %v13548_v28 = vld [vmem:[#allocation92_spill] sm:$0xff]  ;;  %v13551_v1 = vld [vmem:[#allocation94_spill] sm:$0xff] }
 0x3b3   :  { %7447 = vpow2.f32 %v3059_v42  ;;  %v4738_v14 = vadd.f32 %v13546_v59, %v4674_v46  ;;  %v4770_v21 = vmul.f32 %v10795_v58, %v13548_v28  ;;  %v10910_v44 = vpop.eup %7429  ;;  %v4834_v24 = vmul.f32 %v10875_v9, %v13551_v1  ;;  %v13552_v22 = vld [vmem:[#allocation98_spill] sm:$0xff]  ;;  %v13553_v7 = vld [vmem:[#allocation204_spill] sm:$0xff] }
 0x3b4   :  { %13549 = vst [vmem:[#allocation38_spill] sm:$0xff] %v10910_v44  ;;  %7449 = vrcp.f32 %v3442_v3  ;;  %v3415_v26 = vadd.f32 %v10899_v43, %v3383_v30  ;;  %v4835_v36 = vmul.f32 %v10883_v45, %v13552_v22  ;;  %v3523_v60 = vmul.f32 %v13554_v23, %v13553_v7  ;;  %v13557_v28 = vld [vmem:[#allocation216_spill] sm:$0xff] }
 0x3b5   :  { %v10917_v63 = vpop.eup %7431  ;;  %7451 = vpow2.f32 %v3155_v6  ;;  %v4802_v46 = vadd.f32 %v4770_v21, %v4738_v14  ;;  %v4803_v59 = vadd.f32 %v4771_v38, %v4739_v10  ;;  %v13556_v14 = vld [vmem:[#allocation154_spill] sm:$0xff]  ;;  %v13561_v7 = vld [vmem:[#allocation280_spill] sm:$0xff] }
 0x3b6   :  { %v10923_v42 = vpop.eup %7433  ;;  %v3447_v3 = vadd.f32 %v10904_v52, %v3415_v26  ;;  %v3381_v30 = vadd.f32 %v10917_v63, %v10910_v44  ;;  %7453 = vpow2.f32 %v3251_v29  ;;  %v3524_v21 = vmul.f32 %v13557_v28, %v13556_v14  ;;  %v13593_v44 = vld [vmem:[#allocation65_spill] sm:$0xff]  ;;  %v13596_v43 = vld [vmem:[#allocation156_spill] sm:$0xff] }
 0x3b7   :  { %13555 = vst [vmem:[#allocation20_spill] sm:$0xff] %v10923_v42  ;;  %v10928_v5 = vpop.eup %7435  ;;  %7455 = vpow2.f32 %v3347_v55  ;;  %v4866_v6 = vadd.f32 %v4834_v24, %v4802_v46  ;;  %v10933_v1 = vmul.f32 %v3523_v60, %v13558_v37  ;;  %v4867_v10 = vadd.f32 %v4835_v36, %v4803_v59  ;;  %v13560_v24 = vld [vmem:[#allocation17_spill] sm:$0xff]  ;;  %v13563_v37 = vld [vmem:[#allocation292_spill] sm:$0xff] }
 0x3b8   :  { %v10935_v22 = vpop.eup %7437  ;;  %v10939_v26 = vmul.f32 %v10928_v5, %v10857_v48  ;;  %7457 = vrcp.f32 %v3447_v3  ;;  %v3413_v29 = vadd.f32 %v10923_v42, %v3381_v30  ;;  %v3694_v55 = vpack.c.bf16 %v3524_v21, %v3523_v60  ;;  %v13566_v36 = vld [vmem:[#allocation284_spill] sm:$0xff]  ;;  %v13568_v60 = vld [vmem:[#allocation294_spill] sm:$0xff] }
 0x3b9   :  { %13559 = vst [vmem:[#allocation80_spill] sm:$0xff] %v10935_v22  ;;  %v10942_v38 = vpop.eup %7439  ;;  %v10945_v46 = vmul.f32 %v3524_v21, %v13560_v24  ;;  %v10949_v14 = vmul.f32 %v13465_v57, %v13561_v7  ;;  %v10953_v45 = vmul.f32 %v13467_v34, %v13563_v37  ;;  %v4896_v30 = vpack.c.bf16 %v4867_v10, %v4866_v6  ;;  %v13571_v37 = vld [vmem:[#allocation285_spill] sm:$0xff]  ;;  %v13575_v10 = vld [vmem:[#allocation48_spill] sm:$0xff] }
 0x3ba   :  { %v10955_v48 = vpop.eup %7441  ;;  %v3445_v3 = vadd.f32 %v10935_v22, %v3413_v29  ;;  %v10960_v59 = vmul.f32 %v13465_v57, %v13566_v36  ;;  %v10964_v21 = vmul.f32 %v13467_v34, %v13568_v60  ;;  %6472 = vmatmul.mubr.bf16.gmra.mrb[216].mxu0 %v3694_v55  ;;  %v10972_v9 = vmul.f32 %v13465_v57, %v13571_v37  ;;  %v13573_v29 = vld [vmem:[#allocation295_spill] sm:$0xff]  ;;  %v13586_v42 = vld [vmem:[#allocation152_spill] sm:$0xff] }
 0x3bb   :  { %13562 = vst [vmem:[#allocation24_spill] sm:$0xff] %v10949_v14  ;;  %13564 = vst [vmem:[#allocation82_spill] sm:$0xff] %v10953_v45  ;;  %v10966_v24 = vpop.eup %7443  ;;  %v3384_v7 = vadd.f32 %v10955_v48, %v10942_v38  ;;  %v10976_v6 = vmul.f32 %v13467_v34, %v13573_v29  ;;  %v4676_v36 = vmul.f32 %v10949_v14, %v13575_v10  ;;  %6659 = vmatprep.mubr.bf16.mxu1 %v4896_v30  ;;  %v13576_v60 = vld [vmem:[#allocation51_spill] sm:$0xff]  ;;  %v13580_v10 = vld [vmem:[#allocation102_spill] sm:$0xff] }
 0x3bc   :  { %13565 = vst [vmem:[#allocation282_spill] sm:$0xff] %v10955_v48  ;;  %13567 = vst [vmem:[#allocation302_spill] sm:$0xff] %v10960_v59  ;;  %v10980_v25 = vpop.eup %7445  ;;  %7459 = vrcp.f32 %v3445_v3  ;;  %v4677_v58 = vmul.f32 %v10953_v45, %v13576_v60  ;;  %v4772_v55 = vmul.f32 %v10960_v59, %v13577_v20  ;;  %v4773_v57 = vmul.f32 %v10964_v21, %v13578_v8  ;;  %v13581_v3 = vld [vmem:[#allocation106_spill] sm:$0xff]  ;;  %v13584_v8 = vld [vmem:[#allocation220_spill] sm:$0xff] }
 0x3bd   :  { %13569 = vst [vmem:[#allocation293_spill] sm:$0xff] %v10964_v21  ;;  %13570 = vst [vmem:[#allocation248_spill] sm:$0xff] %v10966_v24  ;;  %v10988_v37 = vpop.eup %7447  ;;  %v3416_v34 = vadd.f32 %v10966_v24, %v3384_v7  ;;  %v4740_v29 = vadd.f32 %v10689_v4, %v4676_v36  ;;  %v4836_v14 = vmul.f32 %v10972_v9, %v13580_v10  ;;  %v13582_v20 = vld [vmem:[#allocation214_spill] sm:$0xff]  ;;  %v13585_v21 = vld [vmem:[#allocation236_spill] sm:$0xff] }
 0x3be   :  { %13572 = vst [vmem:[#allocation52_spill] sm:$0xff] %v10972_v9  ;;  %13574 = vst [vmem:[#allocation54_spill] sm:$0xff] %v10976_v6  ;;  %v4837_v30 = vmul.f32 %v10976_v6, %v13581_v3  ;;  %v10996_v13 = vpop.eup %7449  ;;  %v4741_v60 = vadd.f32 %v10692_v0, %v4677_v58  ;;  %v13583_v59 = vld [vmem:[#allocation262_spill] sm:$0xff]  ;;  %v3526_v22 = vmul.f32 %v13585_v21, %v13584_v8  ;;  %v13588_v3 = vld [vmem:[#allocation265_spill] sm:$0xff] }
 0x3bf   :  { %13579 = vst [vmem:[#allocation144_spill] sm:$0xff] %v10988_v37  ;;  %v3525_v45 = vmul.f32 %v13583_v59, %v13582_v20  ;;  %v11005_v7 = vmul.f32 %v10246_v62, %v13586_v42  ;;  %v11007_v4 = vpop.eup %7451  ;;  %v3448_v36 = vadd.f32 %v10980_v25, %v3416_v34  ;;  %v4804_v10 = vadd.f32 %v4772_v55, %v4740_v29  ;;  %v13590_v0 = vld [vmem:[#allocation206_spill] sm:$0xff]  ;;  %v13595_v29 = vld [vmem:[#allocation19_spill] sm:$0xff] }
 0x3c0   :  { %v11012_v6 = vmul.f32 %v10290_v61, %v13588_v3  ;;  %v11016_v58 = vmul.f32 %v10246_v62, %v13590_v0  ;;  %v11018_v20 = vpop.eup %7453  ;;  %v3382_v8 = vadd.f32 %v11007_v4, %v10988_v37  ;;  %v4805_v42 = vadd.f32 %v4773_v57, %v4741_v60  ;;  %v13598_v60 = vld [vmem:[#allocation207_spill] sm:$0xff] }
 0x3c1   :  { %13587 = vst [vmem:[#allocation272_spill] sm:$0xff] %v11005_v7  ;;  %13592 = vst [vmem:[#allocation37_spill] sm:$0xff] %v11018_v20  ;;  %v3695_v9 = vpack.c.bf16 %v3526_v22, %v3525_v45  ;;  %v11023_v24 = vmul.f32 %v3525_v45, %v13593_v44  ;;  %v11025_v34 = vpop.eup %7455  ;;  %7461 = vrcp.f32 %v3448_v36  ;;  %v4868_v55 = vadd.f32 %v4836_v14, %v4804_v10  ;;  %v13600_v44 = vld [vmem:[#allocation210_spill] sm:$0xff]  ;;  %v13604_v10 = vld [vmem:[#allocation73_spill] sm:$0xff] }
 0x3c2   :  { %13589 = vst [vmem:[#allocation200_spill] sm:$0xff] %v11012_v6  ;;  %13591 = vst [vmem:[#allocation275_spill] sm:$0xff] %v11016_v58  ;;  %v11028_v3 = vmul.f32 %v3526_v22, %v13595_v29  ;;  %v11032_v0 = vmul.f32 %v10290_v61, %v13596_v43  ;;  %v11034_v48 = vpop.eup %7457  ;;  %v3414_v37 = vadd.f32 %v11018_v20, %v3382_v8  ;;  %v13603_v43 = vld [vmem:[#allocation71_spill] sm:$0xff]  ;;  %v13606_v29 = vld [vmem:[#allocation112_spill] sm:$0xff] }
 0x3c3   :  { %13594 = vst [vmem:[#allocation86_spill] sm:$0xff] %v11025_v34  ;;  %v4869_v57 = vadd.f32 %v4837_v30, %v4805_v42  ;;  %6475 = vmatprep.mubr.bf16.mxu0 %v3695_v9  ;;  %v11039_v45 = vmul.f32 %v10246_v62, %v13598_v60  ;;  %v11043_v14 = vmul.f32 %v10290_v61, %v13600_v44  ;;  %v13605_v30 = vld [vmem:[#allocation108_spill] sm:$0xff]  ;;  %v13607_v60 = vld [vmem:[#allocation110_spill] sm:$0xff] }
 0x3c4   :  { %13597 = vst [vmem:[#allocation43_spill] sm:$0xff] %v11032_v0  ;;  %v11047_v22 = vmul.f32 %v11034_v48, %v10904_v52  ;;  %v4678_v36 = vmul.f32 %v11005_v7, %v13603_v43  ;;  %v4679_v8 = vmul.f32 %v11012_v6, %v13604_v10  ;;  %v4774_v9 = vmul.f32 %v11016_v58, %v13605_v30  ;;  %v13608_v43 = vld [vmem:[#allocation114_spill] sm:$0xff]  ;;  %v13610_v6 = vld [vmem:[#allocation221_spill] sm:$0xff]  ;;  %v13621_v58 = vld [vmem:[#allocation263_spill] sm:$0xff] }
 0x3c5   :  { %13599 = vst [vmem:[#allocation84_spill] sm:$0xff] %v11039_v45  ;;  %13601 = vst [vmem:[#allocation88_spill] sm:$0xff] %v11043_v14  ;;  %v3446_v62 = vadd.f32 %v11025_v34, %v3414_v37  ;;  %v4897_v42 = vpack.c.bf16 %v4869_v57, %v4868_v55  ;;  %v4775_v61 = vmul.f32 %v11032_v0, %v13606_v29  ;;  %v13609_v10 = vld [vmem:[#allocation266_spill] sm:$0xff]  ;;  %v13611_v37 = vld [vmem:[#allocation164_spill] sm:$0xff] }
 0x3c6   :  { %13602 = vst [vmem:[#allocation90_spill] sm:$0xff] %v11047_v22  ;;  %v4838_v44 = vmul.f32 %v11039_v45, %v13607_v60  ;;  %v4742_v52 = vadd.f32 %v10769_v19, %v4678_v36  ;;  %v4743_v20 = vadd.f32 %v10786_v40, %v4679_v8  ;;  %v4839_v7 = vmul.f32 %v11043_v14, %v13608_v43  ;;  %v11066_v30 = vpop.eup %7459  ;;  %v13612_v55 = vld [vmem:[#allocation238_spill] sm:$0xff]  ;;  %v13614_v19 = vld [vmem:[#allocation264_spill] sm:$0xff]  ;;  %v13618_v45 = vld [vmem:[#allocation77_spill] sm:$0xff] }
 0x3c7   :  { %v3527_v22 = vmul.f32 %v13610_v6, %v13609_v10  ;;  %7463 = vrcp.f32 %v3446_v62  ;;  %6660 = vmatmul.mubr.bf16.gmra.mrb[244].mxu1 %v4897_v42  ;;  %v3528_v57 = vmul.f32 %v13612_v55, %v13611_v37  ;;  %v13613_v29 = vld [vmem:[#allocation150_spill] sm:$0xff]  ;;  %v11076_v40 = vmul.f32 %v13557_v28, %v13614_v19  ;;  %v13615_v43 = vld [vmem:[#allocation16_spill] sm:$0xff]  ;;  %v13616_v10 = vld [vmem:[#allocation205_spill] sm:$0xff] }
 0x3c8   :  { %v11072_v60 = vmul.f32 %v13554_v23, %v13613_v29  ;;  %v4806_v36 = vadd.f32 %v4774_v9, %v4742_v52  ;;  %v4807_v8 = vadd.f32 %v4775_v61, %v4743_v20  ;;  %v11083_v62 = vmul.f32 %v13554_v23, %v13616_v10  ;;  %v13619_v0 = vld [vmem:[#allocation208_spill] sm:$0xff]  ;;  %v13623_v61 = vld [vmem:[#allocation209_spill] sm:$0xff] }
 0x3c9   :  { %v11079_v14 = vmul.f32 %v3527_v22, %v13615_v43  ;;  %v3696_v42 = vpack.c.bf16 %v3528_v57, %v3527_v22  ;;  %v11086_v37 = vmul.f32 %v3528_v57, %v13618_v45  ;;  %v11090_v29 = vmul.f32 %v13557_v28, %v13619_v0  ;;  %v13625_v43 = vld [vmem:[#allocation57_spill] sm:$0xff]  ;;  %v13626_v45 = vld [vmem:[#allocation75_spill] sm:$0xff]  ;;  %v13627_v10 = vld [vmem:[#allocation116_spill] sm:$0xff] }
 0x3ca   :  { %13617 = vst [vmem:[#allocation186_spill] sm:$0xff] %v11083_v62  ;;  %v11094_v19 = vmul.f32 %v13554_v23, %v13621_v58  ;;  %v4870_v20 = vadd.f32 %v4838_v44, %v4806_v36  ;;  %v4871_v9 = vadd.f32 %v4839_v7, %v4807_v8  ;;  %v11098_v52 = vmul.f32 %v13557_v28, %v13623_v61  ;;  %v13628_v34 = vld [vmem:[#allocation120_spill] sm:$0xff]  ;;  %v13629_v58 = vld [vmem:[#allocation118_spill] sm:$0xff] }
 0x3cb   :  { %13620 = vst [vmem:[#allocation243_spill] sm:$0xff] %v11090_v29  ;;  %v4680_v22 = vmul.f32 %v11072_v60, %v13625_v43  ;;  %6476 = vmatmul.mubr.bf16.gmra.mrb[220].mxu0 %v3696_v42  ;;  %v4681_v57 = vmul.f32 %v11076_v40, %v13626_v45  ;;  %v4776_v0 = vmul.f32 %v11083_v62, %v13627_v10  ;;  %v11110_v44 = vpop.eup %7461  ;;  %v13630_v8 = vld [vmem:[#allocation122_spill] sm:$0xff]  ;;  %v13631_v10 = vld [vmem:[#allocation160_spill] sm:$0xff] }
 0x3cc   :  { %13622 = vst [vmem:[#allocation244_spill] sm:$0xff] %v11094_v19  ;;  %13624 = vst [vmem:[#allocation203_spill] sm:$0xff] %v11098_v52  ;;  %v4777_v23 = vmul.f32 %v11090_v29, %v13628_v34  ;;  %v4840_v7 = vmul.f32 %v11094_v19, %v13629_v58  ;;  %v4898_v28 = vpack.c.bf16 %v4871_v9, %v4870_v20  ;;  %v13632_v9 = vld [vmem:[#allocation27_spill] sm:$0xff]  ;;  %v13633_v58 = vld [vmem:[#allocation166_spill] sm:$0xff] }
 0x3cd   :  { %v4744_v36 = vadd.f32 %v10933_v1, %v4680_v22  ;;  %v4841_v42 = vmul.f32 %v11098_v52, %v13630_v8  ;;  %v3529_v61 = vmul.f32 %v10591_v11, %v10493_v51  ;;  %v11119_v43 = vmul.f32 %v11110_v44, %v10980_v25  ;;  %v13634_v25 = vld [vmem:[#allocation215_spill] sm:$0xff]  ;;  %v13648_v29 = vld [vmem:[#allocation130_spill] sm:$0xff]  ;;  %v13649_v62 = vld [vmem:[#allocation260_spill] sm:$0xff] }
 0x3ce   :  { %v4745_v34 = vadd.f32 %v10945_v46, %v4681_v57  ;;  %v3530_v45 = vmul.f32 %v10649_v56, %v10555_v27  ;;  %v11126_v20 = vmul.f32 %v13583_v59, %v13631_v10  ;;  %6663 = vmatprep.mubr.bf16.mxu1 %v4898_v28  ;;  %v11133_v51 = vmul.f32 %v13585_v21, %v13633_v58  ;;  %v13636_v27 = vld [vmem:[#allocation81_spill] sm:$0xff]  ;;  %v13641_v58 = vld [vmem:[#allocation250_spill] sm:$0xff] }
 0x3cf   :  { %v4808_v1 = vadd.f32 %v4776_v0, %v4744_v36  ;;  %v11129_v22 = vmul.f32 %v3529_v61, %v13632_v9  ;;  %v11137_v8 = vmul.f32 %v13583_v59, %v13634_v25  ;;  %v13637_v10 = vld [vmem:[#allocation249_spill] sm:$0xff]  ;;  %v13639_v36 = vld [vmem:[#allocation162_spill] sm:$0xff]  ;;  %v11152_v19 = vmul.f32 %v13585_v21, %v13641_v58 }
 0x3d0   :  { %v4809_v46 = vadd.f32 %v4777_v23, %v4745_v34  ;;  %v3697_v57 = vpack.c.bf16 %v3530_v45, %v3529_v61  ;;  %v11140_v52 = vmul.f32 %v3530_v45, %v13636_v27  ;;  %v11144_v28 = vmul.f32 %v13585_v21, %v13637_v10  ;;  %v13643_v25 = vld [vmem:[#allocation61_spill] sm:$0xff]  ;;  %v13644_v45 = vld [vmem:[#allocation63_spill] sm:$0xff]  ;;  %v13645_v10 = vld [vmem:[#allocation124_spill] sm:$0xff] }
 0x3d1   :  { %13635 = vst [vmem:[#allocation72_spill] sm:$0xff] %v11137_v8  ;;  %v4872_v0 = vadd.f32 %v4840_v7, %v4808_v1  ;;  %v11148_v9 = vmul.f32 %v13583_v59, %v13639_v36  ;;  %13642 = vst [vmem:[#allocation297_spill] sm:$0xff] %v11152_v19  ;;  %v4682_v23 = vmul.f32 %v11126_v20, %v13643_v25  ;;  %v11156_v61 = vpop.eup %7463  ;;  %v13646_v1 = vld [vmem:[#allocation128_spill] sm:$0xff]  ;;  %v13647_v21 = vld [vmem:[#allocation126_spill] sm:$0xff] }
 0x3d2   :  { %13638 = vst [vmem:[#allocation286_spill] sm:$0xff] %v11144_v28  ;;  %v4873_v34 = vadd.f32 %v4841_v42, %v4809_v46  ;;  %6479 = vmatprep.mubr.bf16.mxu0 %v3697_v57  ;;  %v4683_v27 = vmul.f32 %v11133_v51, %v13644_v45  ;;  %v4778_v7 = vmul.f32 %v11137_v8, %v13645_v10  ;;  %v13652_v10 = vld [vmem:[#allocation261_spill] sm:$0xff] }
 0x3d3   :  { %13640 = vst [vmem:[#allocation14_spill] sm:$0xff] %v11148_v9  ;;  %v4779_v59 = vmul.f32 %v11144_v28, %v13646_v1  ;;  %v4746_v36 = vadd.f32 %v11023_v24, %v4682_v23  ;;  %v4842_v58 = vmul.f32 %v11148_v9, %v13647_v21  ;;  %v4843_v25 = vmul.f32 %v11152_v19, %v13648_v29  ;;  %v13653_v21 = vld [vmem:[#allocation33_spill] sm:$0xff] }
 0x3d4   :  { %v11171_v42 = vmul.f32 %v10462_v47, %v13649_v62  ;;  %v4899_v46 = vpack.c.bf16 %v4873_v34, %v4872_v0  ;;  %v4747_v57 = vadd.f32 %v11028_v3, %v4683_v27  ;;  %v11176_v45 = vmul.f32 %v10627_v32, %v10519_v2  ;;  %v13656_v0 = vld [vmem:[#allocation83_spill] sm:$0xff]  ;;  %v13659_v19 = vld [vmem:[#allocation89_spill] sm:$0xff] }
 0x3d5   :  { %v3531_v24 = vmul.f32 %v10462_v47, %v13652_v10  ;;  %v4810_v23 = vadd.f32 %v4778_v7, %v4746_v36  ;;  %v3532_v1 = vmul.f32 %v10627_v32, %v10521_v16  ;;  %v11184_v29 = vmul.f32 %v10462_v47, %v13653_v21  ;;  %v13657_v34 = vld [vmem:[#allocation87_spill] sm:$0xff]  ;;  %v13658_v7 = vld [vmem:[#allocation85_spill] sm:$0xff] }
 0x3d6   :  { %13650 = vst [vmem:[#allocation288_spill] sm:$0xff] %v11171_v42  ;;  %13651 = vst [vmem:[#allocation301_spill] sm:$0xff] %v11176_v45  ;;  %v11188_v62 = vmul.f32 %v10627_v32, %v10528_v12  ;;  %6664 = vmatmul.mubr.bf16.gmra.mrb[248].mxu1 %v4899_v46  ;;  %v4811_v3 = vadd.f32 %v4779_v59, %v4747_v57  ;;  %v4688_v2 = vmul.f32 %v11171_v42, %v13656_v0  ;;  %v13660_v47 = vld [vmem:[#allocation143_spill] sm:$0xff]  ;;  %v13662_v46 = vld [vmem:[#allocation145_spill] sm:$0xff] }
 0x3d7   :  { %13654 = vst [vmem:[#allocation188_spill] sm:$0xff] %v11184_v29  ;;  %v4689_v27 = vmul.f32 %v11176_v45, %v13657_v34  ;;  %v4720_v36 = vmul.f32 %v3531_v24, %v13658_v7  ;;  %v4874_v10 = vadd.f32 %v4842_v58, %v4810_v23  ;;  %v3698_v16 = vpack.c.bf16 %v3532_v1, %v3531_v24  ;;  %v13661_v32 = vld [vmem:[#allocation147_spill] sm:$0xff]  ;;  %v13663_v57 = vld [vmem:[#allocation40_spill] sm:$0xff]  ;;  %v13664_v34 = vld [vmem:[#allocation149_spill] sm:$0xff] }
 0x3d8   :  { %13655 = vst [vmem:[#allocation245_spill] sm:$0xff] %v11188_v62  ;;  %v4721_v9 = vmul.f32 %v3532_v1, %v13659_v19  ;;  %v4784_v21 = vmul.f32 %v11184_v29, %v13660_v47  ;;  %v4875_v28 = vadd.f32 %v4843_v25, %v4811_v3  ;;  %v4785_v59 = vmul.f32 %v11188_v62, %v13661_v32  ;;  %v13665_v58 = vld [vmem:[#allocation211_spill] sm:$0xff]  ;;  %v13666_v19 = vld [vmem:[#allocation217_spill] sm:$0xff]  ;;  %v13667_v3 = vld [vmem:[#allocation212_spill] sm:$0xff] }
 0x3d9   :  { %v4752_v12 = vadd.f32 %v4720_v36, %v4688_v2  ;;  %v4848_v0 = vmul.f32 %v13663_v57, %v13662_v46  ;;  %6480 = vmatmul.mubr.bf16.gmra.mrb[224].mxu0 %v3698_v16  ;;  %v4849_v7 = vmul.f32 %v10633_v53, %v13664_v34  ;;  %v11206_v24 = vmul.f32 %v13610_v6, %v13665_v58  ;;  %v13669_v36 = vld [vmem:[#allocation218_spill] sm:$0xff]  ;;  %v13671_v16 = vld [vmem:[#allocation213_spill] sm:$0xff]  ;;  %v13673_v32 = vld [vmem:[#allocation219_spill] sm:$0xff] }
 0x3da   :  { %v4753_v8 = vadd.f32 %v4721_v9, %v4689_v27  ;;  %v11210_v23 = vmul.f32 %v13612_v55, %v13666_v19  ;;  %v4900_v25 = vpack.c.bf16 %v4875_v28, %v4874_v10  ;;  %v11214_v2 = vmul.f32 %v13610_v6, %v13667_v3  ;;  %v13675_v34 = vld [vmem:[#allocation69_spill] sm:$0xff]  ;;  %v13677_v58 = vld [vmem:[#allocation132_spill] sm:$0xff]  ;;  %v13679_v3 = vld [vmem:[#allocation134_spill] sm:$0xff] }
 0x3db   :  { %v4816_v1 = vadd.f32 %v4784_v21, %v4752_v12  ;;  %v11218_v9 = vmul.f32 %v13612_v55, %v13669_v36  ;;  %v11222_v47 = vmul.f32 %v13610_v6, %v13671_v16  ;;  %v11226_v46 = vmul.f32 %v13612_v55, %v13673_v32  ;;  %v13676_v21 = vld [vmem:[#allocation11_spill] sm:$0xff]  ;;  %v13680_v16 = vld [vmem:[#allocation138_spill] sm:$0xff]  ;;  %v13717_v45 = vld [vmem:[#allocation105_spill] sm:$0xff] }
 0x3dc   :  { %13668 = vst [vmem:[#allocation246_spill] sm:$0xff] %v11214_v2  ;;  %v4817_v27 = vadd.f32 %v4785_v59, %v4753_v8  ;;  %v4684_v28 = vmul.f32 %v11206_v24, %v13675_v34  ;;  %6667 = vmatprep.mubr.bf16.mxu1 %v4900_v25  ;;  %v4685_v12 = vmul.f32 %v11210_v23, %v13676_v21  ;;  %v13678_v59 = vld [vmem:[#allocation136_spill] sm:$0xff]  ;;  %v13682_v32 = vld [vmem:[#allocation198_spill] sm:$0xff]  ;;  %v13685_v57 = vld [vmem:[#allocation299_spill] sm:$0xff] }
 0x3dd   :  { %13670 = vst [vmem:[#allocation190_spill] sm:$0xff] %v11218_v9  ;;  %13672 = vst [vmem:[#allocation251_spill] sm:$0xff] %v11222_v47  ;;  %v11230_v10 = vadd.f32 %v4848_v0, %v4816_v1  ;;  %v4780_v8 = vmul.f32 %v11214_v2, %v13677_v58  ;;  %v4781_v6 = vmul.f32 %v11218_v9, %v13678_v59  ;;  %v13681_v1 = vld [vmem:[#allocation270_spill] sm:$0xff]  ;;  %v13684_v58 = vld [vmem:[#allocation273_spill] sm:$0xff] }
 0x3de   :  { %13674 = vst [vmem:[#allocation252_spill] sm:$0xff] %v11226_v46  ;;  %v11238_v19 = vadd.f32 %v4849_v7, %v4817_v27  ;;  %v4748_v55 = vadd.f32 %v11079_v14, %v4684_v28  ;;  %v4844_v36 = vmul.f32 %v11222_v47, %v13679_v3  ;;  %v4845_v0 = vmul.f32 %v11226_v46, %v13680_v16  ;;  %v13683_v21 = vld [vmem:[#allocation226_spill] sm:$0xff]  ;;  %v13691_v46 = vld [vmem:[#allocation97_spill] sm:$0xff]  ;;  %v13692_v62 = vld [vmem:[#allocation223_spill] sm:$0xff] }
 0x3df   :  { %v4749_v25 = vadd.f32 %v11086_v37, %v4685_v12  ;;  %v3533_v34 = vmul.f32 %v13682_v32, %v13681_v1  ;;  %v3534_v53 = vmul.f32 %v13684_v58, %v13683_v21  ;;  %v11252_v7 = vmul.f32 %v10591_v11, %v13685_v57  ;;  %v13686_v28 = vld [vmem:[#allocation222_spill] sm:$0xff]  ;;  %v13690_v1 = vld [vmem:[#allocation93_spill] sm:$0xff]  ;;  %v13696_v14 = vld [vmem:[#allocation267_spill] sm:$0xff] }
 0x3e0   :  { %v4812_v27 = vadd.f32 %v4780_v8, %v4748_v55  ;;  %v11258_v59 = vmul.f32 %v10649_v56, %v13686_v28  ;;  %v13688_v3 = vld [vmem:[#allocation202_spill] sm:$0xff]  ;;  %v11272_v8 = vmul.f32 %v10649_v56, %v13692_v62  ;;  %v13694_v55 = vld [vmem:[#allocation168_spill] sm:$0xff]  ;;  %v13707_v9 = vld [vmem:[#allocation279_spill] sm:$0xff] }
 0x3e1   :  { %v11262_v37 = vmul.f32 %v10591_v11, %v13688_v3  ;;  %v4813_v12 = vadd.f32 %v4781_v6, %v4749_v25  ;;  %v3699_v16 = vpack.c.bf16 %v3534_v53, %v3533_v34  ;;  %v11265_v21 = vmul.f32 %v3533_v34, %v13690_v1  ;;  %v13698_v25 = vld [vmem:[#allocation12_spill] sm:$0xff]  ;;  %v13703_v29 = vld [vmem:[#allocation142_spill] sm:$0xff]  ;;  %v13716_v2 = vld [vmem:[#allocation101_spill] sm:$0xff] }
 0x3e2   :  { %13687 = vst [vmem:[#allocation298_spill] sm:$0xff] %v11258_v59  ;;  %v11268_v57 = vmul.f32 %v3534_v53, %v13691_v46  ;;  %v4876_v47 = vadd.f32 %v4844_v36, %v4812_v27  ;;  %13693 = vst [vmem:[#allocation253_spill] sm:$0xff] %v11272_v8  ;;  %v11276_v28 = vmul.f32 %v10591_v11, %v13694_v55  ;;  %v13699_v53 = vld [vmem:[#allocation79_spill] sm:$0xff]  ;;  %v13701_v27 = vld [vmem:[#allocation141_spill] sm:$0xff] }
 0x3e3   :  { %13689 = vst [vmem:[#allocation192_spill] sm:$0xff] %v11262_v37  ;;  %v11280_v3 = vmul.f32 %v10649_v56, %v13696_v14  ;;  %v4877_v6 = vadd.f32 %v4845_v0, %v4813_v12  ;;  %6483 = vmatprep.mubr.bf16.mxu0 %v3699_v16  ;;  %v4686_v34 = vmul.f32 %v11252_v7, %v13698_v25  ;;  %v13700_v36 = vld [vmem:[#allocation139_spill] sm:$0xff]  ;;  %v13702_v11 = vld [vmem:[#allocation140_spill] sm:$0xff]  ;;  %v13704_v0 = vld [vmem:[#allocation41_spill] sm:$0xff] }
 0x3e4   :  { %13695 = vst [vmem:[#allocation254_spill] sm:$0xff] %v11276_v28  ;;  %v4687_v46 = vmul.f32 %v11258_v59, %v13699_v53  ;;  %v4782_v62 = vmul.f32 %v11262_v37, %v13700_v36  ;;  %v4783_v1 = vmul.f32 %v11272_v8, %v13701_v27  ;;  %v4846_v55 = vmul.f32 %v11276_v28, %v13702_v11  ;;  %v13705_v14 = vld [vmem:[#allocation172_spill] sm:$0xff]  ;;  %v13710_v27 = vld [vmem:[#allocation23_spill] sm:$0xff]  ;;  %v13711_v11 = vld [vmem:[#allocation170_spill] sm:$0xff] }
 0x3e5   :  { %13697 = vst [vmem:[#allocation300_spill] sm:$0xff] %v11280_v3  ;;  %v4847_v56 = vmul.f32 %v11280_v3, %v13703_v29  ;;  %v11296_v12 = vmul.f32 %v13705_v14, %v13704_v0  ;;  %v4901_v16 = vpack.c.bf16 %v4877_v6, %v4876_v47  ;;  %v4750_v25 = vadd.f32 %v11129_v22, %v4686_v34  ;;  %v13708_v36 = vld [vmem:[#allocation232_spill] sm:$0xff]  ;;  %v13712_v29 = vld [vmem:[#allocation47_spill] sm:$0xff]  ;;  %v13713_v0 = vld [vmem:[#allocation225_spill] sm:$0xff] }
 0x3e6   :  { %v4751_v53 = vadd.f32 %v11140_v52, %v4687_v46  ;;  %v11302_v37 = vmul.f32 %v13708_v36, %v13707_v9  ;;  %v3535_v8 = vmul.f32 %v13705_v14, %v13710_v27  ;;  %v3536_v28 = vmul.f32 %v13708_v36, %v13711_v11  ;;  %v13714_v6 = vld [vmem:[#allocation99_spill] sm:$0xff] }
 0x3e7   :  { %13706 = vst [vmem:[#allocation194_spill] sm:$0xff] %v11296_v12  ;;  %v11310_v3 = vmul.f32 %v13705_v14, %v13712_v29  ;;  %v11314_v47 = vmul.f32 %v13708_v36, %v13713_v0  ;;  %6668 = vmatmul.mubr.bf16.gmra.mrb[252].mxu1 %v4901_v16  ;;  %v4814_v52 = vadd.f32 %v4782_v62, %v4750_v25  ;;  %v13715_v34 = vld [vmem:[#allocation103_spill] sm:$0xff] }
 0x3e8   :  { %13709 = vst [vmem:[#allocation255_spill] sm:$0xff] %v11302_v37  ;;  %v4815_v22 = vadd.f32 %v4783_v1, %v4751_v53  ;;  %v4692_v9 = vmul.f32 %v11296_v12, %v13714_v6  ;;  %v4693_v46 = vmul.f32 %v11302_v37, %v13715_v34  ;;  %v3700_v27 = vpack.c.bf16 %v3536_v28, %v3535_v8  ;;  %v13718_v14 = vld [vmem:[#allocation159_spill] sm:$0xff]  ;;  %v13720_v1 = vld [vmem:[#allocation161_spill] sm:$0xff] }
 0x3e9   :  { %v4724_v11 = vmul.f32 %v3535_v8, %v13716_v2  ;;  %v4725_v42 = vmul.f32 %v3536_v28, %v13717_v45  ;;  %v4788_v29 = vmul.f32 %v11310_v3, %v13718_v14  ;;  %v4878_v59 = vadd.f32 %v4846_v55, %v4814_v52  ;;  %v13719_v0 = vld [vmem:[#allocation163_spill] sm:$0xff]  ;;  %v13722_v34 = vld [vmem:[#allocation165_spill] sm:$0xff]  ;;  %v13724_v2 = vld [vmem:[#allocation180_spill] sm:$0xff] }
 0x3ea   :  { %v4879_v36 = vadd.f32 %v4847_v56, %v4815_v22  ;;  %v4789_v62 = vmul.f32 %v11314_v47, %v13719_v0  ;;  %v13721_v16 = vld [vmem:[#allocation227_spill] sm:$0xff]  ;;  %6484 = vmatmul.mubr.bf16.gmra.mrb[228].mxu0 %v3700_v27  ;;  %v13723_v37 = vld [vmem:[#allocation201_spill] sm:$0xff]  ;;  %v3537_v45 = vmul.f32 %v10828_v49, %v13724_v2  ;;  %v3538_v55 = vmul.f32 %v10996_v13, %v10871_v18  ;;  %v13727_v22 = vld [vmem:[#allocation268_spill] sm:$0xff] }
 0x3eb   :  { %v4852_v25 = vmul.f32 %v13721_v16, %v13720_v1  ;;  %v4756_v53 = vadd.f32 %v4724_v11, %v4692_v9  ;;  %v4757_v6 = vadd.f32 %v4725_v42, %v4693_v46  ;;  %v4853_v12 = vmul.f32 %v13723_v37, %v13722_v34  ;;  %v11332_v8 = vld [vmem:[#allocation5] sm:$0xff]   ;;  %v13726_v56 = vld [vmem:[#allocation277_spill] sm:$0xff]  ;;  %v13729_v14 = vld [vmem:[#allocation278_spill] sm:$0xff] }
 0x3ec   :  { %13725 = vst [vmem:[#allocation256_spill] sm:$0xff] %v11332_v8  ;;  %v4902_v28 = vpack.c.bf16 %v4879_v36, %v4878_v59  ;;  %v11338_v52 = vmul.f32 %v13682_v32, %v13726_v56  ;;  %v11342_v9 = vmul.f32 %v13684_v58, %v13727_v22  ;;  %v13728_v27 = vld [vmem:[#allocation109_spill] sm:$0xff]  ;;  %v11349_v0 = vmul.f32 %v13682_v32, %v13729_v14  ;;  %v13733_v2 = vld [vmem:[#allocation174_spill] sm:$0xff]  ;;  %v13734_v22 = vld [vmem:[#allocation91_spill] sm:$0xff] }
 0x3ed   :  { %v4820_v42 = vadd.f32 %v4788_v29, %v4756_v53  ;;  %v4821_v46 = vadd.f32 %v4789_v62, %v4757_v6  ;;  %v11345_v11 = vmul.f32 %v3537_v45, %v13728_v27  ;;  %6687 = vmatprep.subr.bf16.mxu1 %v11332_v8  ;;  %v3701_v18 = vpack.c.bf16 %v3538_v55, %v3537_v45  ;;  %v13730_v59 = vld [vmem:[#allocation113_spill] sm:$0xff]  ;;  %v13732_v29 = vld [vmem:[#allocation271_spill] sm:$0xff] }
 0x3ee   :  { %6671 = vmatprep.mubr.bf16.mxu1 %v4902_v28  ;;  %v11353_v36 = vmul.f32 %v3538_v55, %v13730_v59  ;;  %v13731_v1 = vld [vmem:[#allocation269_spill] sm:$0xff]  ;;  %v11361_v62 = vmul.f32 %v13682_v32, %v13732_v29  ;;  %v11365_v56 = vmul.f32 %v13684_v58, %v13733_v2  ;;  %v4690_v45 = vmul.f32 %v11338_v52, %v13734_v22  ;;  %v13736_v55 = vld [vmem:[#allocation95_spill] sm:$0xff]  ;;  %v13742_v22 = vld [vmem:[#allocation146_spill] sm:$0xff] }
 0x3ef   :  { %v11357_v34 = vmul.f32 %v13684_v58, %v13731_v1  ;;  %v4884_v53 = vadd.f32 %v4852_v25, %v4820_v42  ;;  %v4885_v6 = vadd.f32 %v4853_v12, %v4821_v46  ;;  %6688 = vmatpush3.bf16.msra.mxu1 %v11332_v8  ;;  %v13735_v28 = vpack.c.bf16 %v11238_v19, %v11230_v10  ;;  %v13737_v27 = vld [vmem:[#allocation151_spill] sm:$0xff]  ;;  %v13739_v14 = vld [vmem:[#allocation153_spill] sm:$0xff]  ;;  %v13752_v8 = vld [vmem:[#allocation184_spill] sm:$0xff] }
 0x3f0   :  { %6487 = vmatprep.mubr.bf16.mxu0 %v3701_v18  ;;  %v4691_v32 = vmul.f32 %v11342_v9, %v13736_v55  ;;  %v4786_v12 = vmul.f32 %v11349_v0, %v13737_v27  ;;  %v13738_v25 = vld [vmem:[#allocation155_spill] sm:$0xff]  ;;  %v4754_v46 = vadd.f32 %v11265_v21, %v4690_v45  ;;  %v4850_v59 = vmul.f32 %v11361_v62, %v13739_v14  ;;  %v13740_v1 = vld [vmem:[#allocation157_spill] sm:$0xff]  ;;  %v13741_v18 = vld [vmem:[#allocation228_spill] sm:$0xff] }
 0x3f1   :  { %6672 = vmatmul.mubr.bf16.gmra.mrb[0].mxu1 %v13735_v28  ;;  %v4787_v58 = vmul.f32 %v11357_v34, %v13738_v25  ;;  %v4905_v42 = vpack.c.bf16 %v4885_v6, %v4884_v53  ;;  %v4851_v10 = vmul.f32 %v11365_v56, %v13740_v1  ;;  %v11387_v29 = vmul.f32 %v10816_v54, %v13741_v18  ;;  %v13743_v45 = vld [vmem:[#allocation178_spill] sm:$0xff]  ;;  %v11405_v55 = vld [vmem:[#allocation5 + $0x8] sm:$0xff]   ;;  %v13746_v25 = vld [vmem:[#allocation119_spill] sm:$0xff] }
 0x3f2   :  { %v4755_v19 = vadd.f32 %v11268_v57, %v4691_v32  ;;  %v11391_v2 = vmul.f32 %v10928_v5, %v10843_v50  ;;  %v3539_v53 = vmul.f32 %v10816_v54, %v13742_v22  ;;  %v4818_v21 = vadd.f32 %v4786_v12, %v4754_v46  ;;  %13744 = vst [vmem:[#allocation237_spill] sm:$0xff] %v11405_v55  ;;  %v13745_v50 = vld [vmem:[#allocation115_spill] sm:$0xff]  ;;  %v13747_v46 = vld [vmem:[#allocation117_spill] sm:$0xff] }
 0x3f3   :  { %v3540_v6 = vmul.f32 %v10928_v5, %v10845_v33  ;;  %v11399_v28 = vmul.f32 %v10816_v54, %v13743_v45  ;;  %v11403_v57 = vmul.f32 %v10928_v5, %v10853_v35  ;;  %v4696_v27 = vmul.f32 %v11387_v29, %v13745_v50  ;;  %v13748_v18 = vld [vmem:[#allocation121_spill] sm:$0xff]  ;;  %v13749_v22 = vld [vmem:[#allocation175_spill] sm:$0xff]  ;;  %6689 = vmatprep.subr.bf16.mxu1 %v11405_v55 }
 0x3f4   :  { %v4819_v32 = vadd.f32 %v4787_v58, %v4755_v19  ;;  %v4697_v12 = vmul.f32 %v11391_v2, %v13746_v25  ;;  %v4728_v14 = vmul.f32 %v3539_v53, %v13747_v46  ;;  %v4882_v33 = vadd.f32 %v4850_v59, %v4818_v21  ;;  %v13750_v58 = vld [vmem:[#allocation179_spill] sm:$0xff]  ;;  %v13751_v50 = vld [vmem:[#allocation177_spill] sm:$0xff]  ;;  %6690 = vmatpush3.bf16.msra.mxu1 %v11405_v55 }
 0x3f5   :  { %v3702_v1 = vpack.c.bf16 %v3540_v6, %v3539_v53  ;;  %v4729_v54 = vmul.f32 %v3540_v6, %v13748_v18  ;;  %v4792_v45 = vmul.f32 %v11399_v28, %v13749_v22  ;;  %v4793_v19 = vmul.f32 %v11403_v57, %v13750_v58  ;;  %v13753_v53 = vld [vmem:[#allocation181_spill] sm:$0xff] }
 0x3f6   :  { %v4883_v35 = vadd.f32 %v4851_v10, %v4819_v32  ;;  %v4760_v5 = vadd.f32 %v4728_v14, %v4696_v27  ;;  %v4856_v37 = vmul.f32 %v13752_v8, %v13751_v50  ;;  %v4857_v21 = vmul.f32 %v10939_v26, %v13753_v53  ;;  %v13754_v25 = vld [vmem:[#allocation233_spill] sm:$0xff]  ;;  %v13761_v53 = vld [vmem:[#allocation111_spill] sm:$0xff] }
 0x3f7   :  { %6488 = vmatmul.mubr.bf16.gmra.mrb[232].mxu0 %v3702_v1  ;;  %v4761_v59 = vadd.f32 %v4729_v54, %v4697_v12  ;;  %v3541_v6 = vmul.f32 %v11066_v30, %v10917_v63  ;;  %v3542_v10 = vmul.f32 %v11156_v61, %v11007_v4  ;;  %v11429_v46 = vmul.f32 %v10828_v49, %v13754_v25  ;;  %v13755_v18 = vld [vmem:[#allocation125_spill] sm:$0xff] }
 0x3f8   :  { %v4904_v32 = vpack.c.bf16 %v4883_v35, %v4882_v33  ;;  %v4824_v27 = vadd.f32 %v4792_v45, %v4760_v5  ;;  %v11433_v14 = vmul.f32 %v10996_v13, %v10869_v41  ;;  %v13756_v22 = vld [vmem:[#allocation129_spill] sm:$0xff]  ;;  %v13757_v33 = vld [vmem:[#allocation234_spill] sm:$0xff]  ;;  %v11447_v35 = vmul.f32 %v10996_v13, %v10877_v15  ;;  %v13758_v41 = vld [vmem:[#allocation148_spill] sm:$0xff] }
 0x3f9   :  { %v4825_v12 = vadd.f32 %v4793_v19, %v4761_v59  ;;  %v3703_v1 = vpack.c.bf16 %v3542_v10, %v3541_v6  ;;  %v11436_v54 = vmul.f32 %v3541_v6, %v13755_v18  ;;  %v11439_v63 = vmul.f32 %v3542_v10, %v13756_v22  ;;  %v11459_v59 = vld [vmem:[#allocation5 + $0x10] sm:$0xff]   ;;  %v13762_v6 = vld [vmem:[#allocation167_spill] sm:$0xff] }
 0x3fa   :  { %6675 = vmatprep.mubr.bf16.mxu1 %v4904_v32  ;;  %v4888_v4 = vadd.f32 %v4856_v37, %v4824_v27  ;;  %v11443_v45 = vmul.f32 %v10828_v49, %v13757_v33  ;;  %v11451_v5 = vmul.f32 %v10828_v49, %v13758_v41  ;;  %v11455_v19 = vmul.f32 %v10996_v13, %v10887_v31  ;;  %v13759_v37 = vld [vmem:[#allocation107_spill] sm:$0xff]  ;;  %v13765_v31 = vld [vmem:[#allocation173_spill] sm:$0xff]  ;;  %v13768_v41 = vld [vmem:[#allocation32_spill] sm:$0xff] }
 0x3fb   :  { %v4889_v58 = vadd.f32 %v4857_v21, %v4825_v12  ;;  %6676 = vmatmul.mubr.bf16.gmra.mrb[4].mxu1 %v4905_v42  ;;  %6491 = vmatprep.mubr.bf16.mxu0 %v3703_v1  ;;  %v4694_v50 = vmul.f32 %v11429_v46, %v13759_v37  ;;  %13760 = vst [vmem:[#allocation196_spill] sm:$0xff] %v11459_v59  ;;  %v13763_v49 = vld [vmem:[#allocation171_spill] sm:$0xff]  ;;  %v13764_v42 = vld [vmem:[#allocation169_spill] sm:$0xff] }
 0x3fc   :  { %v4695_v15 = vmul.f32 %v11433_v14, %v13761_v53  ;;  %v4790_v10 = vmul.f32 %v11443_v45, %v13762_v6  ;;  %v4791_v21 = vmul.f32 %v11447_v35, %v13763_v49  ;;  %v4854_v32 = vmul.f32 %v11451_v5, %v13764_v42  ;;  %6691 = vmatprep.subr.bf16.mxu1 %v11459_v59  ;;  %v13770_v37 = vld [vmem:[#allocation131_spill] sm:$0xff]  ;;  %v13772_v6 = vld [vmem:[#allocation133_spill] sm:$0xff] }
 0x3fd   :  { %v4907_v27 = vpack.c.bf16 %v4889_v58, %v4888_v4  ;;  %v4758_v13 = vadd.f32 %v11345_v11, %v4694_v50  ;;  %v4855_v25 = vmul.f32 %v11455_v19, %v13765_v31  ;;  %v11474_v12 = vmul.f32 %v11034_v48, %v10892_v39  ;;  %v13767_v4 = vld [vmem:[#allocation282_spill] sm:$0xff]  ;;  %6692 = vmatpush3.bf16.msra.mxu1 %v11459_v59  ;;  %v13769_v58 = vld [vmem:[#allocation248_spill] sm:$0xff]  ;;  %v13774_v31 = vld [vmem:[#allocation191_spill] sm:$0xff] }
 0x3fe   :  { %v4759_v1 = vadd.f32 %v11353_v36, %v4695_v15  ;;  %v11480_v18 = vmul.f32 %v11110_v44, %v10942_v38  ;;  %v3543_v22 = vmul.f32 %v11034_v48, %v10897_v17  ;;  %v3544_v11 = vmul.f32 %v11110_v44, %v13767_v4  ;;  %v13771_v17 = vld [vmem:[#allocation135_spill] sm:$0xff]  ;;  %v13778_v59 = vld [vmem:[#allocation197_spill] sm:$0xff] }
 0x3ff   :  { %13766 = vst [vmem:[#allocation257_spill] sm:$0xff] %v11474_v12  ;;  %v4822_v33 = vadd.f32 %v4790_v10, %v4758_v13  ;;  %v11489_v39 = vmul.f32 %v11034_v48, %v13768_v41  ;;  %v11493_v36 = vmul.f32 %v11110_v44, %v13769_v58  ;;  %v4700_v38 = vmul.f32 %v11474_v12, %v13770_v37  ;;  %v13773_v10 = vld [vmem:[#allocation137_spill] sm:$0xff]  ;;  %v13775_v4 = vld [vmem:[#allocation195_spill] sm:$0xff]  ;;  %v13823_v12 = vld [vmem:[#allocation254_spill] sm:$0xff] }
 0x400   :  { %v4823_v50 = vadd.f32 %v4791_v21, %v4759_v1  ;;  %v3704_v53 = vpack.c.bf16 %v3544_v11, %v3543_v22  ;;  %v4701_v15 = vmul.f32 %v11480_v18, %v13771_v17  ;;  %v4732_v49 = vmul.f32 %v3543_v22, %v13772_v6  ;;  %v13776_v37 = vld [vmem:[#allocation193_spill] sm:$0xff]  ;;  %v13777_v21 = vld [vmem:[#allocation90_spill] sm:$0xff]  ;;  %v13779_v22 = vld [vmem:[#allocation259_spill] sm:$0xff] }
 0x401   :  { %v4886_v42 = vadd.f32 %v4854_v32, %v4822_v33  ;;  %v4733_v13 = vmul.f32 %v3544_v11, %v13773_v10  ;;  %v4796_v48 = vmul.f32 %v11489_v39, %v13774_v31  ;;  %v4797_v44 = vmul.f32 %v11493_v36, %v13775_v4  ;;  %v13780_v32 = vld [vmem:[#allocation281_spill] sm:$0xff]  ;;  %v13781_v11 = vld [vmem:[#allocation38_spill] sm:$0xff]  ;;  %v13782_v10 = vld [vmem:[#allocation144_spill] sm:$0xff] }
 0x402   :  { %v4887_v41 = vadd.f32 %v4855_v25, %v4823_v50  ;;  %6492 = vmatmul.mubr.bf16.gmra.mrb[236].mxu0 %v3704_v53  ;;  %v4764_v58 = vadd.f32 %v4732_v49, %v4700_v38  ;;  %v4860_v1 = vmul.f32 %v13777_v21, %v13776_v37  ;;  %v4861_v17 = vmul.f32 %v11119_v43, %v13778_v59  ;;  %v13783_v50 = vld [vmem:[#allocation20_spill] sm:$0xff]  ;;  %v13785_v49 = vld [vmem:[#allocation37_spill] sm:$0xff] }
 0x403   :  { %v4765_v55 = vadd.f32 %v4733_v13, %v4701_v15  ;;  %v3673_v33 = vpack.c.bf16 %v13780_v32, %v13779_v22  ;;  %v11513_v6 = vmul.f32 %v11066_v30, %v13781_v11  ;;  %v11517_v31 = vmul.f32 %v11156_v61, %v13782_v10  ;;  %v11527_v15 = vld [vmem:[#allocation5 + $0x18] sm:$0xff]   ;;  %v13788_v4 = vld [vmem:[#allocation80_spill] sm:$0xff]  ;;  %v13791_v32 = vld [vmem:[#allocation127_spill] sm:$0xff] }
 0x404   :  { %v4906_v25 = vpack.c.bf16 %v4887_v41, %v4886_v42  ;;  %v4828_v38 = vadd.f32 %v4796_v48, %v4764_v58  ;;  %v11521_v53 = vmul.f32 %v11066_v30, %v13783_v50  ;;  %v11525_v59 = vmul.f32 %v11156_v61, %v13785_v49  ;;  %13787 = vst [vmem:[#allocation290_spill] sm:$0xff] %v11527_v15  ;;  %v13789_v22 = vld [vmem:[#allocation86_spill] sm:$0xff]  ;;  %v13790_v48 = vld [vmem:[#allocation123_spill] sm:$0xff] }
 0x405   :  { %v4829_v13 = vadd.f32 %v4797_v44, %v4765_v55  ;;  %6511 = vmatprep.mubr.bf16.mxu0 %v3673_v33  ;;  %v11531_v37 = vmul.f32 %v11066_v30, %v13788_v4  ;;  %v11535_v42 = vmul.f32 %v11156_v61, %v13789_v22  ;;  %v4698_v41 = vmul.f32 %v11513_v6, %v13790_v48  ;;  %v13792_v10 = vld [vmem:[#allocation183_spill] sm:$0xff]  ;;  %v13794_v61 = vld [vmem:[#allocation185_spill] sm:$0xff]  ;;  %v13797_v22 = vld [vmem:[#allocation176_spill] sm:$0xff] }
 0x406   :  { %13784 = vst [vmem:[#allocation258_spill] sm:$0xff] %v11521_v53  ;;  %13786 = vst [vmem:[#allocation247_spill] sm:$0xff] %v11525_v59  ;;  %6679 = vmatprep.mubr.bf16.mxu1 %v4906_v25  ;;  %v4892_v58 = vadd.f32 %v4860_v1, %v4828_v38  ;;  %v4699_v11 = vmul.f32 %v11517_v31, %v13791_v32  ;;  %v4794_v55 = vmul.f32 %v11521_v53, %v13792_v10  ;;  %v13793_v44 = vld [vmem:[#allocation187_spill] sm:$0xff]  ;;  %v13795_v4 = vld [vmem:[#allocation189_spill] sm:$0xff] }
 0x407   :  { %v4795_v33 = vmul.f32 %v11525_v59, %v13793_v44  ;;  %v4893_v30 = vadd.f32 %v4861_v17, %v4829_v13  ;;  %6680 = vmatmul.mubr.bf16.gmra.mrb[8].mxu1 %v4907_v27  ;;  %v4762_v50 = vadd.f32 %v11436_v54, %v4698_v41  ;;  %v4858_v49 = vmul.f32 %v11531_v37, %v13794_v61  ;;  %v13796_v38 = vld [vmem:[#allocation229_spill] sm:$0xff]  ;;  %v7058_v32 = vld [vmem:[%s12386_s3 + $0x88] sm:$0xff]   ;;  %v13798_v54 = vld [vmem:[#allocation235_spill] sm:$0xff] }
 0x408   :  { %v4859_v25 = vmul.f32 %v11535_v42, %v13795_v4  ;;  %v4763_v1 = vadd.f32 %v11439_v63, %v4699_v11  ;;  %v3674_v48 = vpack.c.bf16 %v13797_v22, %v13796_v38  ;;  %6693 = vmatprep.subr.bf16.mxu1 %v11527_v15  ;;  %v13799_v13 = vld [vmem:[#allocation182_spill] sm:$0xff]  ;;  %v3678_v10 = vpack.c.bf16 %v11076_v40, %v11072_v60  ;;  %v13803_v40 = vld [vmem:[#allocation241_spill] sm:$0xff]  ;;  %v13810_v38 = vld [vmem:[#allocation200_spill] sm:$0xff] }
 0x409   :  { %v4909_v27 = vpack.c.bf16 %v4893_v30, %v4892_v58  ;;  %v4826_v17 = vadd.f32 %v4794_v55, %v4762_v50  ;;  %v3675_v41 = vpack.c.bf16 %v13799_v13, %v13798_v54  ;;  %6694 = vmatpush3.bf16.msra.mxu1 %v11527_v15  ;;  %v3679_v11 = vpack.c.bf16 %v11133_v51, %v11126_v20  ;;  %v13800_v61 = vld [vmem:[#allocation298_spill] sm:$0xff]  ;;  %v13801_v30 = vld [vmem:[#allocation288_spill] sm:$0xff]  ;;  %v13802_v50 = vld [vmem:[#allocation301_spill] sm:$0xff] }
 0x40a   :  { %v4827_v63 = vadd.f32 %v4795_v33, %v4763_v1  ;;  %6512 = vmatmul.mubr.bf16.vlgmr.msra.gmra.mrb[208].mxu0 %v3674_v48  ;;  %v11573_v33 = vld [vmem:[#allocation5 + $0x20] sm:$0xff]   ;;  %v13805_v20 = vld [vmem:[#allocation194_spill] sm:$0xff]  ;;  %v13807_v13 = vld [vmem:[#allocation24_spill] sm:$0xff] }
 0x40b   :  { %v4890_v55 = vadd.f32 %v4858_v49, %v4826_v17  ;;  %6515 = vmatprep.mubr.bf16.mxu0 %v3675_v41  ;;  %6544 = vmatpush3.bf16.msra.mxu0 %v13803_v40  ;;  %13804 = vst [vmem:[#allocation303_spill] sm:$0xff] %v11573_v33  ;;  %v13806_v51 = vld [vmem:[#allocation255_spill] sm:$0xff]  ;;  %v7059_v49 = vld [vmem:[%s12386_s3 + $0x90] sm:$0xff]   ;;  %v13808_v41 = vld [vmem:[#allocation82_spill] sm:$0xff] }
 0x40c   :  { %v4891_v1 = vadd.f32 %v4859_v25, %v4827_v63  ;;  %6545 = vmatprep.subr.bf16.mxu0 %v7058_v32  ;;  %6695 = vmatprep.subr.bf16.mxu1 %v11573_v33  ;;  %v3676_v63 = vpack.c.bf16 %v13808_v41, %v13807_v13  ;;  %v13809_v40 = vld [vmem:[#allocation272_spill] sm:$0xff]  ;;  %v13812_v48 = vld [vmem:[#allocation286_spill] sm:$0xff]  ;;  %v13816_v25 = vld [vmem:[#allocation253_spill] sm:$0xff] }
 0x40d   :  { %6696 = vmatpush3.bf16.msra.mxu1 %v11573_v33  ;;  %v3677_v22 = vpack.c.bf16 %v13810_v38, %v13809_v40  ;;  %v13811_v60 = vld [vmem:[#allocation72_spill] sm:$0xff]  ;;  %v13813_v58 = vld [vmem:[#allocation246_spill] sm:$0xff]  ;;  %v13818_v13 = vld [vmem:[#allocation245_spill] sm:$0xff]  ;;  %v4393_v33 = vpack.c.bf16 %v10939_v26, %v13752_v8 }
 0x40e   :  { %v4908_v54 = vpack.c.bf16 %v4891_v1, %v4890_v55  ;;  %v13814_v17 = vld [vmem:[#allocation190_spill] sm:$0xff]  ;;  %v13815_v15 = vld [vmem:[#allocation192_spill] sm:$0xff]  ;;  %v7061_v40 = vld [vmem:[%s12386_s3 + $0xa0] sm:$0xff]  }
 0x40f   :  { %6546 = vmatpush3.bf16.msra.mxu0 %v7058_v32  ;;  %v7060_v55 = vld [vmem:[%s12386_s3 + $0x98] sm:$0xff]   ;;  %v13817_v1 = vld [vmem:[#allocation188_spill] sm:$0xff]  ;;  %v11647_v38 = vld [vmem:[#allocation5 + $0x30] sm:$0xff]  }
 0x410   :  { %6683 = vmatprep.mubr.bf16.mxu1 %v4908_v54  ;;  %6547 = vmatprep.subr.bf16.mxu0 %v7059_v49  ;;  %v11617_v32 = vld [vmem:[#allocation5 + $0x28] sm:$0xff]   ;;  %v13821_v54 = vld [vmem:[#allocation251_spill] sm:$0xff]  ;;  %v7063_v59 = vld [vmem:[%s12386_s3 + $0xb0] sm:$0xff]  }
 0x411   :  { %6684 = vmatmul.mubr.bf16.gmra.mrb[12].mxu1 %v4909_v27  ;;  %v13822_v4 = vld [vmem:[#allocation252_spill] sm:$0xff]  ;;  %6697 = vmatprep.subr.bf16.mxu1 %v11617_v32  ;;  %v13827_v27 = vld [vmem:[#allocation201_spill] sm:$0xff] }
 0x412   :  { %6516 = vmatmul.mubr.bf16.gmra.mrb[212].mxu0 %v3676_v63  ;;  %v13824_v53 = vld [vmem:[#allocation300_spill] sm:$0xff]  ;;  %6698 = vmatpush3.bf16.msra.mxu1 %v11617_v32 }
 0x413   :  { %6519 = vmatprep.mubr.bf16.mxu0 %v3677_v22  ;;  %6548 = vmatpush3.bf16.msra.mxu0 %v7059_v49  ;;  %v13825_v44 = vld [vmem:[#allocation40_spill] sm:$0xff]  ;;  %v4390_v49 = vpack.c.bf16 %v11365_v56, %v11361_v62  ;;  %v13895_v62 = vld [vmem:[#allocation26_spill] sm:$0xff] }
 0x414   :  { %6549 = vmatprep.subr.bf16.mxu0 %v7060_v55  ;;  %v13826_v63 = vld [vmem:[#allocation224_spill] sm:$0xff]  ;;  %6699 = vmatprep.subr.bf16.mxu1 %v11647_v38 }
 0x415   :  { %v7062_v41 = vld [vmem:[%s12386_s3 + $0xa8] sm:$0xff]  }
 0x416   :  { %6700 = vmatpush3.bf16.msra.mxu1 %v11647_v38  ;;  %v13830_v22 = vld [vmem:[#allocation256_spill] sm:$0xff] }
 0x417   :  { %6550 = vmatpush3.bf16.msra.mxu0 %v7060_v55  ;;  %v7064_v55 = vld [vmem:[%s12386_s3 + $0xb8] sm:$0xff]  }
 0x418   :  { %6551 = vmatprep.subr.bf16.mxu0 %v7061_v40 }
 0x41a   :  { %6520 = vmatmul.mubr.bf16.gmra.mrb[216].mxu0 %v3678_v10  ;;  %v13828_v10 = vpack.c.bf16 %v11210_v23, %v11206_v24  ;;  %v13831_v24 = vpack.c.bf16 %v13802_v50, %v13801_v30  ;;  %v13832_v23 = vpack.c.bf16 %v11342_v9, %v11338_v52  ;;  %v13836_v30 = vpack.c.bf16 %v11517_v31, %v11513_v6  ;;  %v13837_v50 = vld [vmem:[#allocation296_spill] sm:$0xff]  ;;  %v13839_v9 = vld [vmem:[#allocation257_spill] sm:$0xff]  ;;  %v13845_v6 = vld [vmem:[#allocation302_spill] sm:$0xff] }
 0x41b   :  { %6523 = vmatprep.mubr.bf16.mxu0 %v3679_v11  ;;  %6552 = vmatpush3.bf16.msra.mxu0 %v7061_v40  ;;  %v13829_v11 = vpack.c.bf16 %v13800_v61, %v11252_v7  ;;  %v11663_v40 = vld [vmem:[#allocation5 + $0x38] sm:$0xff]   ;;  %v13833_v7 = vpack.c.bf16 %v13806_v51, %v13805_v20  ;;  %v13835_v61 = vpack.c.bf16 %v11391_v2, %v11387_v29  ;;  %v13842_v51 = vld [vmem:[#allocation231_spill] sm:$0xff]  ;;  %v7066_v29 = vld [vmem:[%s12386_s3 + $0xc8] sm:$0xff]  }
 0x41c   :  { %6553 = vmatprep.subr.bf16.mxu0 %v7062_v41  ;;  %6701 = vmatprep.subr.bf16.mxu1 %v11663_v40  ;;  %v13841_v20 = vld [vmem:[#allocation230_spill] sm:$0xff]  ;;  %v13843_v2 = vld [vmem:[#allocation239_spill] sm:$0xff]  ;;  %v13846_v31 = vld [vmem:[#allocation293_spill] sm:$0xff] }
 0x41d   :  { %6702 = vmatpush3.bf16.msra.mxu1 %v11663_v40 }
 0x41e   :  { %6735 = vmatprep.subr.bf16.mxu1 %v13830_v22 }
 0x41f   :  { %6554 = vmatpush3.bf16.msra.mxu0 %v7062_v41  ;;  %v7065_v41 = vld [vmem:[%s12386_s3 + $0xc0] sm:$0xff]  }
 0x420   :  { %6555 = vmatprep.subr.bf16.mxu0 %v7063_v59 }
 0x422   :  { %6524 = vmatmul.mubr.bf16.gmra.mrb[220].mxu0 %v13828_v10  ;;  %v13840_v10 = vpack.c.bf16 %v11480_v18, %v13839_v9  ;;  %v7068_v18 = vld [vmem:[%s12386_s3 + $0xd0] sm:$0xff]   ;;  %v13851_v9 = vpack.c.bf16 %v13812_v48, %v13811_v60  ;;  %v13853_v60 = vpack.c.bf16 %v13816_v25, %v13815_v15  ;;  %v13854_v48 = vpack.c.bf16 %v13818_v13, %v13817_v1  ;;  %v13860_v25 = vld [vmem:[#allocation258_spill] sm:$0xff] }
 0x423   :  { %6527 = vmatprep.mubr.bf16.mxu0 %v13829_v11  ;;  %6556 = vmatpush3.bf16.msra.mxu0 %v7063_v59  ;;  %v13834_v59 = vpack.c.bf16 %v11433_v14, %v11429_v46  ;;  %v4124_v46 = vpack.c.bf16 %v13842_v51, %v13841_v20  ;;  %v13844_v14 = vld [vmem:[#allocation240_spill] sm:$0xff]  ;;  %v7075_v20 = vld [vmem:[%s12386_s3 + $0xf8] sm:$0xff]   ;;  %v13852_v51 = vpack.c.bf16 %v13814_v17, %v13813_v58  ;;  %v13859_v17 = vld [vmem:[#allocation247_spill] sm:$0xff] }
 0x424   :  { %6557 = vmatprep.subr.bf16.mxu0 %v7064_v55  ;;  %v4125_v11 = vpack.c.bf16 %v13844_v14, %v13843_v2  ;;  %v13857_v58 = vpack.c.bf16 %v11447_v35, %v11443_v45  ;;  %v13858_v15 = vpack.c.bf16 %v11403_v57, %v11399_v28  ;;  %v13861_v1 = vpack.c.bf16 %v13859_v17, %v13860_v25  ;;  %v13865_v14 = vld [vmem:[#allocation60_spill] sm:$0xff]  ;;  %v13879_v17 = vld [vmem:[#allocation290_spill] sm:$0xff] }
 0x425   :  { %v13864_v45 = vpack.c.bf16 %v11493_v36, %v11489_v39  ;;  %v13867_v36 = vld [vmem:[#allocation62_spill] sm:$0xff]  ;;  %v13880_v25 = vld [vmem:[#allocation244_spill] sm:$0xff] }
 0x427   :  { %6558 = vmatpush3.bf16.msra.mxu0 %v7064_v55  ;;  %v13838_v55 = vld [vmem:[#allocation274_spill] sm:$0xff] }
 0x428   :  { %6591 = vmatprep.subr.bf16.mxu0 %v7065_v41  ;;  %v4123_v52 = vpack.c.bf16 %v13838_v55, %v13837_v50  ;;  %v13850_v50 = vld [vmem:[#allocation243_spill] sm:$0xff] }
 0x42a   :  { %6528 = vmatmul.mubr.bf16.gmra.mrb[224].mxu0 %v13831_v24  ;;  %v4126_v24 = vpack.c.bf16 %v13846_v31, %v13845_v6  ;;  %v13866_v31 = vld [vmem:[#allocation56_spill] sm:$0xff] }
 0x42b   :  { %6531 = vmatprep.mubr.bf16.mxu0 %v13832_v23  ;;  %v7069_v23 = vld [vmem:[%s12386_s3 + $0xd8] sm:$0xff]  }
 0x432   :  { %6532 = vmatmul.mubr.bf16.gmra.mrb[228].mxu0 %v13833_v7  ;;  %v13847_v7 = vld [vmem:[#allocation275_spill] sm:$0xff] }
 0x433   :  { %6535 = vmatprep.mubr.bf16.mxu0 %v13834_v59  ;;  %v13848_v59 = vld [vmem:[#allocation43_spill] sm:$0xff] }
 0x43a   :  { %6536 = vmatmul.mubr.bf16.gmra.mrb[232].mxu0 %v13835_v61  ;;  %v4127_v61 = vpack.c.bf16 %v13848_v59, %v13847_v7  ;;  %v13868_v7 = vld [vmem:[#allocation283_spill] sm:$0xff] }
 0x43b   :  { %6539 = vmatprep.mubr.bf16.mxu0 %v13836_v30  ;;  %v13849_v30 = vld [vmem:[#allocation186_spill] sm:$0xff]  ;;  %v13869_v59 = vld [vmem:[#allocation291_spill] sm:$0xff] }
 0x43c   :  { %v4128_v55 = vpack.c.bf16 %v13850_v50, %v13849_v30  ;;  %v13871_v50 = vld [vmem:[#allocation242_spill] sm:$0xff] }
 0x442   :  { %6540 = vmatmul.mubr.bf16.gmra.mrb[236].mxu0 %v13840_v10  ;;  %v7074_v10 = vld [vmem:[%s12386_s3 + $0xf0] sm:$0xff]  }
 0x443   :  { %6559 = vmatprep.mubr.bf16.mxu0 %v4123_v52  ;;  %v7072_v52 = vld [vmem:[%s12386_s3 + $0xe8] sm:$0xff]  }
 0x44a   :  { %6560 = vmatmul.mubr.bf16.vlgmr.msra.gmra.mrb[208].mxu0 %v4124_v46  ;;  %v13855_v46 = vpack.c.bf16 %v11357_v34, %v11349_v0  ;;  %v11755_v0 = vld [vmem:[%s12388_s5] ss:$0 sm:$0xff]  ;;  %v13862_v34 = vld [vmem:[#allocation289_spill] sm:$0xff] }
 0x44b   :  { %6563 = vmatprep.mubr.bf16.mxu0 %v4125_v11  ;;  %6592 = vmatpush3.bf16.msra.mxu0 %v7065_v41  ;;  %v7071_v41 = vld [vmem:[%s12386_s3 + $0xe0] sm:$0xff]  }
 0x44c   :  { %6593 = vmatprep.subr.bf16.mxu0 %v7066_v29 }
 0x44f   :  { %6594 = vmatpush3.bf16.msra.mxu0 %v7066_v29  ;;  %v13856_v29 = vpack.c.bf16 %v11314_v47, %v11310_v3  ;;  %v13863_v3 = vld [vmem:[#allocation287_spill] sm:$0xff] }
 0x450   :  { %6595 = vmatprep.subr.bf16.mxu0 %v7068_v18  ;;  %v4380_v47 = vpack.c.bf16 %v13863_v3, %v13862_v34  ;;  %v13882_v34 = vld [vmem:[#allocation297_spill] sm:$0xff]  ;;  %v13883_v3 = vld [vmem:[#allocation14_spill] sm:$0xff] }
 0x452   :  { %6564 = vmatmul.mubr.bf16.gmra.mrb[212].mxu0 %v4126_v24 }
 0x453   :  { %6567 = vmatprep.mubr.bf16.mxu0 %v4127_v61  ;;  %6596 = vmatpush3.bf16.msra.mxu0 %v7068_v18  ;;  %v4381_v61 = vpack.c.bf16 %v13869_v59, %v13868_v7  ;;  %v13888_v59 = vpack.c.bf16 %v13822_v4, %v13821_v54 }
 0x454   :  { %6597 = vmatprep.subr.bf16.mxu0 %v7069_v23 }
 0x457   :  { %6598 = vmatpush3.bf16.msra.mxu0 %v7069_v23 }
 0x458   :  { %6599 = vmatprep.subr.bf16.mxu0 %v7071_v41 }
 0x45a   :  { %6568 = vmatmul.mubr.bf16.gmra.mrb[216].mxu0 %v4128_v55  ;;  %v13872_v55 = vld [vmem:[#allocation276_spill] sm:$0xff] }
 0x45b   :  { %6571 = vmatprep.mubr.bf16.mxu0 %v13851_v9  ;;  %6600 = vmatpush3.bf16.msra.mxu0 %v7071_v41  ;;  %v13870_v41 = vld [vmem:[#allocation58_spill] sm:$0xff] }
 0x45c   :  { %6601 = vmatprep.subr.bf16.mxu0 %v7072_v52 }
 0x45f   :  { %6602 = vmatpush3.bf16.msra.mxu0 %v7072_v52  ;;  %v4382_v52 = vpack.c.bf16 %v13872_v55, %v13871_v50  ;;  %v13890_v50 = vpack.c.bf16 %v13824_v53, %v13823_v12  ;;  %v13891_v55 = vld [vmem:[#allocation66_spill] sm:$0xff]  ;;  %v13892_v12 = vpack.c.bf16 %v13826_v63, %v13825_v44 }
 0x460   :  { %6603 = vmatprep.subr.bf16.mxu0 %v7074_v10  ;;  %v13894_v63 = vld [vmem:[#allocation18_spill] sm:$0xff] }
 0x462   :  { %6572 = vmatmul.mubr.bf16.gmra.mrb[220].mxu0 %v13852_v51  ;;  %v13874_v51 = vld [vmem:[#allocation52_spill] sm:$0xff] }
 0x463   :  { %6575 = vmatprep.mubr.bf16.mxu0 %v13853_v60  ;;  %6604 = vmatpush3.bf16.msra.mxu0 %v7074_v10  ;;  %v13875_v60 = vld [vmem:[#allocation54_spill] sm:$0xff] }
 0x464   :  { %6605 = vmatprep.subr.bf16.mxu0 %v7075_v20 }
 0x467   :  { %6606 = vmatpush3.bf16.msra.mxu0 %v7075_v20  ;;  %v13873_v20 = vld [vmem:[#allocation237_spill] sm:$0xff] }
 0x46a   :  { %6576 = vmatmul.mubr.bf16.gmra.mrb[224].mxu0 %v13854_v48  ;;  %v4383_v48 = vpack.c.bf16 %v13875_v60, %v13874_v51 }
 0x46b   :  { %6579 = vmatprep.mubr.bf16.mxu0 %v13855_v46  ;;  %v13876_v46 = vld [vmem:[#allocation84_spill] sm:$0xff] }
 0x472   :  { %6580 = vmatmul.mubr.bf16.gmra.mrb[228].mxu0 %v13856_v29  ;;  %v13877_v29 = vld [vmem:[#allocation88_spill] sm:$0xff] }
 0x473   :  { %6583 = vmatprep.mubr.bf16.mxu0 %v13857_v58  ;;  %v4384_v58 = vpack.c.bf16 %v13877_v29, %v13876_v46  ;;  %v13897_v29 = vpack.c.bf16 %v13827_v27, %v13721_v16  ;;  %v13899_v16 = vpack.c.bf16 %v11535_v42, %v11531_v37  ;;  %v13902_v37 = vld [vmem:[#allocation34_spill] sm:$0xff] }
 0x47a   :  { %6584 = vmatmul.mubr.bf16.gmra.mrb[232].mxu0 %v13858_v15  ;;  %v13878_v15 = vld [vmem:[#allocation196_spill] sm:$0xff] }
 0x47b   :  { %6587 = vmatprep.mubr.bf16.mxu0 %v13861_v1 }
 0x47e   :  { %v6657_v35 = vpop.f32.mrb[240].mxu1 }
 0x47f   :  { %v5024_v28 = vadd.f32 %v6657_v35, %v11755_v0  ;;  %v5015_v57 = vpop.f32.mrb[241].mxu1 }
 0x480   :  { %v5016_v13 = vadd.f32 %v11755_v0, %v5015_v57  ;;  %v6658_v2 = vpop.f32.mrb[242].mxu1 }
 0x481   :  { %v11765_v11 = vadd.f32 %v5024_v28, %v13865_v14  ;;  %v5027_v18 = vadd.f32 %v6658_v2, %v11755_v0  ;;  %v5018_v6 = vpop.f32.mrb[243].mxu1  ;;  %v13886_v14 = vld [vmem:[#allocation68_spill] sm:$0xff] }
 0x482   :  { %6588 = vmatmul.mubr.bf16.gmra.mrb[236].mxu0 %v13864_v45  ;;  %v11769_v24 = vadd.f32 %v5016_v13, %v13866_v31  ;;  %v5019_v39 = vadd.f32 %v11755_v0, %v5018_v6  ;;  %v13885_v45 = vld [vmem:[#allocation303_spill] sm:$0xff] }
 0x483   :  { %6607 = vmatprep.mubr.bf16.mxu0 %v4380_v47  ;;  %v11773_v23 = vadd.f32 %v5027_v18, %v13867_v36  ;;  %v13884_v47 = vpack.c.bf16 %v13882_v34, %v13883_v3 }
 0x484   :  { %v11778_v30 = vadd.f32 %v5019_v39, %v13870_v41  ;;  %v13887_v39 = vld [vmem:[#allocation64_spill] sm:$0xff] }
 0x485   :  { %v5191_v10 = vpack.c.bf16 %v11773_v23, %v11765_v11 }
 0x486   :  { %v5190_v9 = vpack.c.bf16 %v11778_v30, %v11769_v24 }
 0x488   :  { %6703 = vmatprep.mubr.bf16.mxu1 %v5190_v9 }
 0x489   :  { %6704 = vmatmul.mubr.bf16.vlgmr.msra.gmra.mrb[16].mxu1 %v5191_v10 }
 0x48a   :  { %6608 = vmatmul.mubr.bf16.vlgmr.msra.gmra.mrb[208].mxu0 %v4381_v61  ;;  %6736 = vmatpush3.bf16.msra.mxu1 %v13830_v22  ;;  %v13881_v22 = vld [vmem:[#allocation203_spill] sm:$0xff]  ;;  %v13889_v61 = vld [vmem:[#allocation70_spill] sm:$0xff] }
 0x48b   :  { %6611 = vmatprep.mubr.bf16.mxu0 %v4382_v52  ;;  %6737 = vmatprep.subr.bf16.mxu1 %v13873_v20  ;;  %v4385_v1 = vpack.c.bf16 %v13881_v22, %v13880_v25 }
 0x48e   :  { %6738 = vmatpush3.bf16.msra.mxu1 %v13873_v20  ;;  %v13893_v20 = vld [vmem:[#allocation29_spill] sm:$0xff] }
 0x48f   :  { %6739 = vmatprep.subr.bf16.mxu1 %v13878_v15 }
 0x492   :  { %6612 = vmatmul.mubr.bf16.gmra.mrb[212].mxu0 %v4383_v48  ;;  %6740 = vmatpush3.bf16.msra.mxu1 %v13878_v15 }
 0x493   :  { %6615 = vmatprep.mubr.bf16.mxu0 %v4384_v58  ;;  %6741 = vmatprep.subr.bf16.mxu1 %v13879_v17  ;;  %v13898_v58 = vpack.c.bf16 %v11455_v19, %v11451_v5 }
 0x496   :  { %6742 = vmatpush3.bf16.msra.mxu1 %v13879_v17 }
 0x497   :  { %6743 = vmatprep.subr.bf16.mxu1 %v13885_v45 }
 0x49a   :  { %6616 = vmatmul.mubr.bf16.gmra.mrb[216].mxu0 %v4385_v1  ;;  %v6661_v35 = vpop.f32.mrb[244].mxu1  ;;  %6744 = vmatpush3.bf16.msra.mxu1 %v13885_v45  ;;  %v13900_v1 = vld [vmem:[#allocation28_spill] sm:$0xff]  ;;  %v13901_v45 = vld [vmem:[#allocation30_spill] sm:$0xff] }
 0x49b   :  { %6619 = vmatprep.mubr.bf16.mxu0 %v13884_v47  ;;  %v5040_v28 = vadd.f32 %v6661_v35, %v11755_v0  ;;  %v5031_v57 = vpop.f32.mrb[245].mxu1  ;;  %6745 = vmatprep.subr.bf16.mxu1 %v11617_v32 }
 0x49c   :  { %v5032_v13 = vadd.f32 %v11755_v0, %v5031_v57  ;;  %v6662_v2 = vpop.f32.mrb[246].mxu1 }
 0x49d   :  { %v11808_v18 = vadd.f32 %v5040_v28, %v13886_v14  ;;  %v5043_v6 = vadd.f32 %v6662_v2, %v11755_v0  ;;  %v5034_v31 = vpop.f32.mrb[247].mxu1  ;;  %v13904_v28 = vpack.c.bf16 %v11119_v43, %v13777_v21 }
 0x49e   :  { %v11812_v36 = vadd.f32 %v5032_v13, %v13887_v39  ;;  %v5035_v7 = vadd.f32 %v11755_v0, %v5034_v31  ;;  %6746 = vmatpush3.bf16.msra.mxu1 %v11617_v32 }
 0x49f   :  { %v11819_v41 = vadd.f32 %v5043_v6, %v13889_v61  ;;  %6747 = vmatprep.subr.bf16.mxu1 %v11647_v38  ;;  %v13906_v61 = vld [vmem:[#allocation35_spill] sm:$0xff] }
 0x4a0   :  { %v11826_v52 = vadd.f32 %v5035_v7, %v13891_v55  ;;  %v13905_v7 = vld [vmem:[#allocation42_spill] sm:$0xff] }
 0x4a1   :  { %v5193_v4 = vpack.c.bf16 %v11819_v41, %v11808_v18 }
 0x4a2   :  { %6620 = vmatmul.mubr.bf16.gmra.mrb[220].mxu0 %v13888_v59  ;;  %v5192_v9 = vpack.c.bf16 %v11826_v52, %v11812_v36  ;;  %6748 = vmatpush3.bf16.msra.mxu1 %v11647_v38 }
 0x4a3   :  { %6623 = vmatprep.mubr.bf16.mxu0 %v13890_v50  ;;  %6749 = vmatprep.subr.bf16.mxu1 %v11663_v40 }
 0x4a4   :  { %6707 = vmatprep.mubr.bf16.mxu1 %v5192_v9  ;;  %v13907_v9 = vld [vmem:[#allocation44_spill] sm:$0xff] }
 0x4a5   :  { %6708 = vmatmul.mubr.bf16.gmra.mrb[20].mxu1 %v5193_v4 }
 0x4a6   :  { %6750 = vmatpush3.bf16.msra.mxu1 %v11663_v40 }
 0x4a9   :  { %v6665_v53 = vpop.f32.mrb[248].mxu1 }
 0x4aa   :  { %6624 = vmatmul.mubr.bf16.gmra.mrb[224].mxu0 %v13892_v12  ;;  %v5056_v32 = vadd.f32 %v6665_v53, %v11755_v0  ;;  %v5047_v54 = vpop.f32.mrb[249].mxu1  ;;  %v13908_v12 = vld [vmem:[#allocation39_spill] sm:$0xff] }
 0x4ab   :  { %6627 = vmatprep.mubr.bf16.mxu0 %v4390_v49  ;;  %v5048_v38 = vadd.f32 %v11755_v0, %v5047_v54  ;;  %v6666_v10 = vpop.f32.mrb[250].mxu1  ;;  %v13896_v49 = vld [vmem:[#allocation22_spill] sm:$0xff] }
 0x4ac   :  { %v11845_v51 = vadd.f32 %v5056_v32, %v13893_v20  ;;  %v5059_v60 = vadd.f32 %v6666_v10, %v11755_v0  ;;  %v5050_v44 = vpop.f32.mrb[251].mxu1 }
 0x4ad   :  { %v11849_v48 = vadd.f32 %v5048_v38, %v13894_v63  ;;  %v5051_v40 = vadd.f32 %v11755_v0, %v5050_v44  ;;  %v13909_v63 = vld [vmem:[#allocation50_spill] sm:$0xff] }
 0x4ae   :  { %v11853_v56 = vadd.f32 %v5059_v60, %v13895_v62 }
 0x4af   :  { %v11856_v46 = vadd.f32 %v5051_v40, %v13896_v49 }
 0x4b0   :  { %v5195_v17 = vpack.c.bf16 %v11853_v56, %v11845_v51 }
 0x4b1   :  { %v5194_v15 = vpack.c.bf16 %v11856_v46, %v11849_v48 }
 0x4b2   :  { %6628 = vmatmul.mubr.bf16.gmra.mrb[228].mxu0 %v13897_v29  ;;  %v13910_v29 = vld [vmem:[#allocation45_spill] sm:$0xff] }
 0x4b3   :  { %6631 = vmatprep.mubr.bf16.mxu0 %v13898_v58  ;;  %6711 = vmatprep.mubr.bf16.mxu1 %v5194_v15 }
 0x4b4   :  { %6712 = vmatmul.mubr.bf16.gmra.mrb[24].mxu1 %v5195_v17  ;;  %v13911_v17 = vld [vmem:[#allocation53_spill] sm:$0xff] }
 0x4ba   :  { %6632 = vmatmul.mubr.bf16.gmra.mrb[232].mxu0 %v4393_v33  ;;  %v6669_v27 = vpop.f32.mrb[252].mxu1  ;;  %v13903_v33 = vld [vmem:[#allocation31_spill] sm:$0xff] }
 0x4bb   :  { %6635 = vmatprep.mubr.bf16.mxu0 %v13899_v16  ;;  %v5072_v5 = vadd.f32 %v6669_v27, %v11755_v0  ;;  %v5063_v19 = vpop.f32.mrb[253].mxu1  ;;  %v13912_v27 = vld [vmem:[#allocation49_spill] sm:$0xff] }
 0x4bc   :  { %v5064_v25 = vadd.f32 %v11755_v0, %v5063_v19  ;;  %v6670_v22 = vpop.f32.mrb[254].mxu1 }
 0x4bd   :  { %v11877_v34 = vadd.f32 %v5072_v5, %v13900_v1  ;;  %v5075_v3 = vadd.f32 %v6670_v22, %v11755_v0  ;;  %v5066_v47 = vpop.f32.mrb[255].mxu1 }
 0x4be   :  { %v11881_v26 = vadd.f32 %v5064_v25, %v13901_v45  ;;  %v5067_v8 = vadd.f32 %v11755_v0, %v5066_v47 }
 0x4bf   :  { %v11885_v42 = vadd.f32 %v5075_v3, %v13902_v37 }
 0x4c0   :  { %v11888_v35 = vadd.f32 %v5067_v8, %v13903_v33  ;;  %v13913_v8 = vld [vmem:[#allocation55_spill] sm:$0xff] }
 0x4c1   :  { %v5197_v2 = vpack.c.bf16 %v11885_v42, %v11877_v34 }
 0x4c2   :  { %6636 = vmatmul.mubr.bf16.gmra.mrb[236].mxu0 %v13904_v28  ;;  %v5196_v13 = vpack.c.bf16 %v11888_v35, %v11881_v26 }
 0x4c4   :  { %v6673_v57 = vpop.f32.mrb[0].mxu1  ;;  %6715 = vmatprep.mubr.bf16.mxu1 %v5196_v13 }
 0x4c5   :  { %v5088_v14 = vadd.f32 %v6673_v57, %v11755_v0  ;;  %v5079_v6 = vpop.f32.mrb[1].mxu1  ;;  %6716 = vmatmul.mubr.bf16.gmra.mrb[28].mxu1 %v5197_v2  ;;  %v13914_v57 = vld [vmem:[#allocation13_spill] sm:$0xff] }
 0x4c6   :  { %v5080_v31 = vadd.f32 %v11755_v0, %v5079_v6  ;;  %v6674_v39 = vpop.f32.mrb[2].mxu1 }
 0x4c7   :  { %v11900_v59 = vadd.f32 %v5088_v14, %v13905_v7  ;;  %v5091_v43 = vadd.f32 %v6674_v39, %v11755_v0  ;;  %v5082_v21 = vpop.f32.mrb[3].mxu1  ;;  %v13915_v14 = vld [vmem:[#allocation76_spill] sm:$0xff] }
 0x4c8   :  { %v11904_v50 = vadd.f32 %v5080_v31, %v13906_v61  ;;  %v5083_v55 = vadd.f32 %v11755_v0, %v5082_v21  ;;  %v13916_v31 = vld [vmem:[#allocation74_spill] sm:$0xff] }
 0x4c9   :  { %v11908_v4 = vadd.f32 %v5091_v43, %v13907_v9 }
 0x4ca   :  { %v11911_v53 = vadd.f32 %v5083_v55, %v13908_v12 }
 0x4cb   :  { %v5199_v54 = vpack.c.bf16 %v11908_v4, %v11900_v59 }
 0x4cc   :  { %v5198_v32 = vpack.c.bf16 %v11911_v53, %v11904_v50 }
 0x4ce   :  { %6719 = vmatprep.mubr.bf16.mxu1 %v5198_v32  ;;  %v6677_v38 = vpop.f32.mrb[4].mxu1  ;;  %v13917_v32 = vld [vmem:[#allocation67_spill] sm:$0xff] }
 0x4cf   :  { %6720 = vmatmul.mubr.bf16.gmra.mrb[32].mxu1 %v5199_v54  ;;  %v5104_v10 = vadd.f32 %v6677_v38, %v11755_v0  ;;  %v5095_v20 = vpop.f32.mrb[5].mxu1 }
 0x4d0   :  { %v5096_v60 = vadd.f32 %v11755_v0, %v5095_v20  ;;  %v6678_v44 = vpop.f32.mrb[6].mxu1  ;;  %v13918_v20 = vld [vmem:[#allocation59_spill] sm:$0xff] }
 0x4d1   :  { %v11920_v40 = vadd.f32 %v5104_v10, %v13909_v63  ;;  %v5107_v62 = vadd.f32 %v6678_v44, %v11755_v0  ;;  %v5098_v49 = vpop.f32.mrb[7].mxu1  ;;  %v13919_v63 = vld [vmem:[#allocation78_spill] sm:$0xff] }
 0x4d2   :  { %v11924_v58 = vadd.f32 %v5096_v60, %v13910_v29  ;;  %v5099_v15 = vadd.f32 %v11755_v0, %v5098_v49  ;;  %v13920_v49 = vld [vmem:[#allocation21_spill] sm:$0xff] }
 0x4d3   :  { %v11928_v16 = vadd.f32 %v5107_v62, %v13911_v17 }
 0x4d4   :  { %v11931_v5 = vadd.f32 %v5099_v15, %v13912_v27 }
 0x4d5   :  { %v5201_v25 = vpack.c.bf16 %v11928_v16, %v11920_v40 }
 0x4d6   :  { %v5200_v19 = vpack.c.bf16 %v11931_v5, %v11924_v58 }
 0x4d8   :  { %6723 = vmatprep.mubr.bf16.mxu1 %v5200_v19 }
 0x4d9   :  { %6724 = vmatmul.mubr.bf16.gmra.mrb[36].mxu1 %v5201_v25 }
 0x4da   :  { %v6681_v22 = vpop.f32.mrb[8].mxu1 }
 0x4db   :  { %v5120_v1 = vadd.f32 %v6681_v22, %v11755_v0  ;;  %v5111_v3 = vpop.f32.mrb[9].mxu1 }
 0x4dc   :  { %v5112_v47 = vadd.f32 %v11755_v0, %v5111_v3  ;;  %v6682_v45 = vpop.f32.mrb[10].mxu1 }
 0x4dd   :  { %v11940_v37 = vadd.f32 %v5120_v1, %v13913_v8  ;;  %v5123_v33 = vadd.f32 %v6682_v45, %v11755_v0  ;;  %v5114_v28 = vpop.f32.mrb[11].mxu1 }
 0x4de   :  { %v11944_v13 = vadd.f32 %v5112_v47, %v13914_v57  ;;  %v5115_v2 = vadd.f32 %v11755_v0, %v5114_v28 }
 0x4df   :  { %v11948_v6 = vadd.f32 %v5123_v33, %v13915_v14 }
 0x4e0   :  { %v11951_v39 = vadd.f32 %v5115_v2, %v13916_v31 }
 0x4e1   :  { %v5203_v43 = vpack.c.bf16 %v11948_v6, %v11940_v37 }
 0x4e2   :  { %v5202_v7 = vpack.c.bf16 %v11951_v39, %v11944_v13 }
 0x4e4   :  { %v6685_v21 = vpop.f32.mrb[12].mxu1  ;;  %6727 = vmatprep.mubr.bf16.mxu1 %v5202_v7 }
 0x4e5   :  { %v5136_v61 = vadd.f32 %v6685_v21, %v11755_v0  ;;  %v5127_v55 = vpop.f32.mrb[13].mxu1  ;;  %6728 = vmatmul.mubr.bf16.gmra.mrb[40].mxu1 %v5203_v43 }
 0x4e6   :  { %v5128_v9 = vadd.f32 %v11755_v0, %v5127_v55  ;;  %v6686_v12 = vpop.f32.mrb[14].mxu1 }
 0x4e7   :  { %v11960_v54 = vadd.f32 %v5136_v61, %v13917_v32  ;;  %v5139_v38 = vadd.f32 %v6686_v12, %v11755_v0  ;;  %v5130_v10 = vpop.f32.mrb[15].mxu1 }
 0x4e8   :  { %v11964_v60 = vadd.f32 %v5128_v9, %v13918_v20  ;;  %v5131_v44 = vadd.f32 %v11755_v0, %v5130_v10 }
 0x4e9   :  { %v11968_v62 = vadd.f32 %v5139_v38, %v13919_v63 }
 0x4ea   :  { %v11971_v29 = vadd.f32 %v5131_v44, %v13920_v49 }
 0x4eb   :  { %v5205_v17 = vpack.c.bf16 %v11968_v62, %v11960_v54 }
 0x4ec   :  { %v5204_v15 = vpack.c.bf16 %v11971_v29, %v11964_v60 }
 0x4ee   :  { %6731 = vmatprep.mubr.bf16.mxu1 %v5204_v15 }
 0x4ef   :  { %6732 = vmatmul.mubr.bf16.gmra.mrb[44].mxu1 %v5205_v17 }
 0x55c   :  { %v6705_v22 = vpop.f32.mrb[16].mxu1 }
 0x55d   :  { %v6609_v27 = vpop.f32.mrb[208].mxu0  ;;  %v5288_v1 = vpop.f32.mrb[17].mxu1  ;;  %v11997_v45 = vsub.f32 %v11765_v11, %v6705_v22 }
 0x55e   :  { %4640 = vst.msk [vmem:[%s12393_s10 + $0x10] sm:$0xff] %vm4637_vm0, %v6609_v27  ;;  %v4478_v0 = vpop.f32.mrb[209].mxu0  ;;  %v11994_v3 = vsub.f32 %v11769_v24, %v5288_v1  ;;  %v6706_v47 = vpop.f32.mrb[18].mxu1 }
 0x55f   :  { %4638 = vst.msk [vmem:[%s12393_s10] sm:$0xff] %vm4637_vm0, %v4478_v0  ;;  %v6610_v19 = vpop.f32.mrb[210].mxu0  ;;  %v12000_v8 = vsub.f32 %v11773_v23, %v6706_v47  ;;  %v5291_v33 = vpop.f32.mrb[19].mxu1  ;;  %v5449_v14 = vmul.f32 %v11997_v45, %v11997_v45 }
 0x560   :  { %4641 = vst.msk [vmem:[%s12393_s10 + $0x18] sm:$0xff] %vm4637_vm0, %v6610_v19  ;;  %v4481_v25 = vpop.f32.mrb[211].mxu0  ;;  %v12003_v28 = vsub.f32 %v11778_v30, %v5291_v33  ;;  %v5447_v11 = vmul.f32 %v11994_v3, %v11994_v3 }
 0x561   :  { %4639 = vst.msk [vmem:[%s12393_s10 + $0x8] sm:$0xff] %vm4637_vm0, %v4481_v25  ;;  %v5450_v2 = vmul.f32 %v12000_v8, %v12000_v8 }
 0x562   :  { %v5448_v23 = vmul.f32 %v12003_v28, %v12003_v28 }
 0x563   :  { %v5480_v43 = vpack.c.bf16 %v5450_v2, %v5449_v14 }
 0x564   :  { %v5479_v7 = vpack.c.bf16 %v5448_v23, %v5447_v11 }
 0x565   :  { %v6613_v57 = vpop.f32.mrb[212].mxu0 }
 0x566   :  { %4644 = vst.msk [vmem:[%s12393_s10 + $0x30] sm:$0xff] %vm4637_vm0, %v6613_v57  ;;  %v4494_v24 = vpop.f32.mrb[213].mxu0  ;;  %6751 = vmatprep.mubr.bf16.mxu1 %v5479_v7 }
 0x567   :  { %4642 = vst.msk [vmem:[%s12393_s10 + $0x20] sm:$0xff] %vm4637_vm0, %v4494_v24  ;;  %v6614_v30 = vpop.f32.mrb[214].mxu0  ;;  %6752 = vmatmul.mubr.bf16.vlgmr.msra.gmra.mrb[48].mxu1 %v5480_v43 }
 0x568   :  { %4645 = vst.msk [vmem:[%s12393_s10 + $0x38] sm:$0xff] %vm4637_vm0, %v6614_v30  ;;  %v4497_v31 = vpop.f32.mrb[215].mxu0 }
 0x569   :  { %4643 = vst.msk [vmem:[%s12393_s10 + $0x28] sm:$0xff] %vm4637_vm0, %v4497_v31 }
 0x56d   :  { %v6617_v21 = vpop.f32.mrb[216].mxu0 }
 0x56e   :  { %4648 = vst.msk [vmem:[%s12393_s10 + $0x50] sm:$0xff] %vm4637_vm0, %v6617_v21  ;;  %v4510_v61 = vpop.f32.mrb[217].mxu0 }
 0x56f   :  { %4646 = vst.msk [vmem:[%s12393_s10 + $0x40] sm:$0xff] %vm4637_vm0, %v4510_v61  ;;  %v6618_v55 = vpop.f32.mrb[218].mxu0 }
 0x570   :  { %4649 = vst.msk [vmem:[%s12393_s10 + $0x58] sm:$0xff] %vm4637_vm0, %v6618_v55  ;;  %v4513_v9 = vpop.f32.mrb[219].mxu0 }
 0x571   :  { %4647 = vst.msk [vmem:[%s12393_s10 + $0x48] sm:$0xff] %vm4637_vm0, %v4513_v9 }
 0x575   :  { %v6621_v12 = vpop.f32.mrb[220].mxu0 }
 0x576   :  { %4652 = vst.msk [vmem:[%s12393_s10 + $0x70] sm:$0xff] %vm4637_vm0, %v6621_v12  ;;  %v4526_v32 = vpop.f32.mrb[221].mxu0 }
 0x577   :  { %4650 = vst.msk [vmem:[%s12393_s10 + $0x60] sm:$0xff] %vm4637_vm0, %v4526_v32  ;;  %v6622_v38 = vpop.f32.mrb[222].mxu0 }
 0x578   :  { %4653 = vst.msk [vmem:[%s12393_s10 + $0x78] sm:$0xff] %vm4637_vm0, %v6622_v38  ;;  %v4529_v10 = vpop.f32.mrb[223].mxu0  ;;  %v6709_v20 = vpop.f32.mrb[20].mxu1 }
 0x579   :  { %4651 = vst.msk [vmem:[%s12393_s10 + $0x68] sm:$0xff] %vm4637_vm0, %v4529_v10  ;;  %v5304_v44 = vpop.f32.mrb[21].mxu1  ;;  %v12069_v27 = vsub.f32 %v11808_v18, %v6709_v20 }
 0x57a   :  { %v12062_v49 = vsub.f32 %v11812_v36, %v5304_v44  ;;  %v6710_v15 = vpop.f32.mrb[22].mxu1 }
 0x57b   :  { %v12072_v0 = vsub.f32 %v11819_v41, %v6710_v15  ;;  %v5307_v19 = vpop.f32.mrb[23].mxu1  ;;  %v5453_v1 = vmul.f32 %v12069_v27, %v12069_v27 }
 0x57c   :  { %v12079_v25 = vsub.f32 %v11826_v52, %v5307_v19  ;;  %v5451_v22 = vmul.f32 %v12062_v49, %v12062_v49 }
 0x57d   :  { %v6625_v63 = vpop.f32.mrb[224].mxu0  ;;  %v5454_v41 = vmul.f32 %v12072_v0, %v12072_v0 }
 0x57e   :  { %4656 = vst.msk [vmem:[%s12393_s10 + $0x90] sm:$0xff] %vm4637_vm0, %v6625_v63  ;;  %v4542_v17 = vpop.f32.mrb[225].mxu0  ;;  %v5452_v52 = vmul.f32 %v12079_v25, %v12079_v25 }
 0x57f   :  { %4654 = vst.msk [vmem:[%s12393_s10 + $0x80] sm:$0xff] %vm4637_vm0, %v4542_v17  ;;  %v6626_v36 = vpop.f32.mrb[226].mxu0  ;;  %v5482_v33 = vpack.c.bf16 %v5454_v41, %v5453_v1 }
 0x580   :  { %4657 = vst.msk [vmem:[%s12393_s10 + $0x98] sm:$0xff] %vm4637_vm0, %v6626_v36  ;;  %v4545_v18 = vpop.f32.mrb[227].mxu0  ;;  %v5481_v47 = vpack.c.bf16 %v5452_v52, %v5451_v22 }
 0x581   :  { %4655 = vst.msk [vmem:[%s12393_s10 + $0x88] sm:$0xff] %vm4637_vm0, %v4545_v18 }
 0x582   :  { %6755 = vmatprep.mubr.bf16.mxu1 %v5481_v47 }
 0x583   :  { %6756 = vmatmul.mubr.bf16.gmra.mrb[52].mxu1 %v5482_v33 }
 0x585   :  { %v6629_v57 = vpop.f32.mrb[228].mxu0 }
 0x586   :  { %4660 = vst.msk [vmem:[%s12393_s10 + $0xb0] sm:$0xff] %vm4637_vm0, %v6629_v57  ;;  %v4558_v2 = vpop.f32.mrb[229].mxu0 }
 0x587   :  { %4658 = vst.msk [vmem:[%s12393_s10 + $0xa0] sm:$0xff] %vm4637_vm0, %v4558_v2  ;;  %v6630_v24 = vpop.f32.mrb[230].mxu0  ;;  %v6713_v23 = vpop.f32.mrb[24].mxu1 }
 0x588   :  { %4661 = vst.msk [vmem:[%s12393_s10 + $0xb8] sm:$0xff] %vm4637_vm0, %v6630_v24  ;;  %v4561_v11 = vpop.f32.mrb[231].mxu0  ;;  %v5320_v30 = vpop.f32.mrb[25].mxu1  ;;  %v12117_v7 = vsub.f32 %v11845_v51, %v6713_v23 }
 0x589   :  { %4659 = vst.msk [vmem:[%s12393_s10 + $0xa8] sm:$0xff] %vm4637_vm0, %v4561_v11  ;;  %v12114_v14 = vsub.f32 %v11849_v48, %v5320_v30  ;;  %v6714_v31 = vpop.f32.mrb[26].mxu1 }
 0x58a   :  { %v12120_v43 = vsub.f32 %v11853_v56, %v6714_v31  ;;  %v5323_v21 = vpop.f32.mrb[27].mxu1  ;;  %v5457_v32 = vmul.f32 %v12117_v7, %v12117_v7 }
 0x58b   :  { %v12123_v55 = vsub.f32 %v11856_v46, %v5323_v21  ;;  %v5455_v56 = vmul.f32 %v12114_v14, %v12114_v14 }
 0x58c   :  { %v5458_v48 = vmul.f32 %v12120_v43, %v12120_v43 }
 0x58d   :  { %v6633_v61 = vpop.f32.mrb[232].mxu0  ;;  %v5456_v46 = vmul.f32 %v12123_v55, %v12123_v55 }
 0x58e   :  { %4664 = vst.msk [vmem:[%s12393_s10 + $0xd0] sm:$0xff] %vm4637_vm0, %v6633_v61  ;;  %v4574_v9 = vpop.f32.mrb[233].mxu0  ;;  %v5484_v10 = vpack.c.bf16 %v5458_v48, %v5457_v32 }
 0x58f   :  { %4662 = vst.msk [vmem:[%s12393_s10 + $0xc0] sm:$0xff] %vm4637_vm0, %v4574_v9  ;;  %v6634_v51 = vpop.f32.mrb[234].mxu0  ;;  %v5483_v38 = vpack.c.bf16 %v5456_v46, %v5455_v56 }
 0x590   :  { %4665 = vst.msk [vmem:[%s12393_s10 + $0xd8] sm:$0xff] %vm4637_vm0, %v6634_v51  ;;  %v4577_v12 = vpop.f32.mrb[235].mxu0 }
 0x591   :  { %4663 = vst.msk [vmem:[%s12393_s10 + $0xc8] sm:$0xff] %vm4637_vm0, %v4577_v12  ;;  %6759 = vmatprep.mubr.bf16.mxu1 %v5483_v38 }
 0x592   :  { %6760 = vmatmul.mubr.bf16.gmra.mrb[56].mxu1 %v5484_v10 }
 0x595   :  { %v6637_v20 = vpop.f32.mrb[236].mxu0 }
 0x596   :  { %4668 = vst.msk [vmem:[%s12393_s10 + $0xf0] sm:$0xff] %vm4637_vm0, %v6637_v20  ;;  %v4590_v44 = vpop.f32.mrb[237].mxu0 }
 0x597   :  { %4666 = vst.msk [vmem:[%s12393_s10 + $0xe0] sm:$0xff] %vm4637_vm0, %v4590_v44  ;;  %v6638_v63 = vpop.f32.mrb[238].mxu0 }
 0x598   :  { %4669 = vst.msk [vmem:[%s12393_s10 + $0xf8] sm:$0xff] %vm4637_vm0, %v6638_v63  ;;  %v4593_v15 = vpop.f32.mrb[239].mxu0  ;;  %v6717_v17 = vpop.f32.mrb[28].mxu1 }
 0x599   :  { %4667 = vst.msk [vmem:[%s12393_s10 + $0xe8] sm:$0xff] %vm4637_vm0, %v4593_v15  ;;  %v5336_v19 = vpop.f32.mrb[29].mxu1  ;;  %v12169_v41 = vsub.f32 %v11877_v34, %v6717_v17 }
 0x59a   :  { %v12166_v36 = vsub.f32 %v11881_v26, %v5336_v19  ;;  %v6718_v18 = vpop.f32.mrb[30].mxu1 }
 0x59b   :  { %v12172_v22 = vsub.f32 %v11885_v42, %v6718_v18  ;;  %v5339_v52 = vpop.f32.mrb[31].mxu1  ;;  %v5461_v34 = vmul.f32 %v12169_v41, %v12169_v41 }
 0x59c   :  { %v12175_v1 = vsub.f32 %v11888_v35, %v5339_v52  ;;  %v5459_v33 = vmul.f32 %v12166_v36, %v12166_v36 }
 0x59d   :  { %v5462_v47 = vmul.f32 %v12172_v22, %v12172_v22 }
 0x59e   :  { %v5460_v26 = vmul.f32 %v12175_v1, %v12175_v1 }
 0x59f   :  { %v5486_v42 = vpack.c.bf16 %v5462_v47, %v5461_v34 }
 0x5a0   :  { %v5485_v2 = vpack.c.bf16 %v5460_v26, %v5459_v33 }
 0x5a2   :  { %v6721_v57 = vpop.f32.mrb[32].mxu1  ;;  %6763 = vmatprep.mubr.bf16.mxu1 %v5485_v2 }
 0x5a3   :  { %v5352_v24 = vpop.f32.mrb[33].mxu1  ;;  %v12189_v23 = vsub.f32 %v11900_v59, %v6721_v57  ;;  %6764 = vmatmul.mubr.bf16.gmra.mrb[60].mxu1 %v5486_v42 }
 0x5a4   :  { %v12186_v11 = vsub.f32 %v11904_v50, %v5352_v24  ;;  %v6722_v35 = vpop.f32.mrb[34].mxu1 }
 0x5a5   :  { %v12192_v30 = vsub.f32 %v11908_v4, %v6722_v35  ;;  %v5355_v31 = vpop.f32.mrb[35].mxu1  ;;  %v5465_v59 = vmul.f32 %v12189_v23, %v12189_v23 }
 0x5a6   :  { %v12195_v21 = vsub.f32 %v11911_v53, %v5355_v31  ;;  %v5463_v50 = vmul.f32 %v12186_v11, %v12186_v11 }
 0x5a7   :  { %v5466_v61 = vmul.f32 %v12192_v30, %v12192_v30 }
 0x5a8   :  { %v5464_v9 = vmul.f32 %v12195_v21, %v12195_v21 }
 0x5a9   :  { %v5488_v4 = vpack.c.bf16 %v5466_v61, %v5465_v59 }
 0x5aa   :  { %v5487_v48 = vpack.c.bf16 %v5464_v9, %v5463_v50 }
 0x5ac   :  { %6767 = vmatprep.mubr.bf16.mxu1 %v5487_v48  ;;  %v6725_v51 = vpop.f32.mrb[36].mxu1 }
 0x5ad   :  { %6768 = vmatmul.mubr.bf16.gmra.mrb[64].mxu1 %v5488_v4  ;;  %v5368_v56 = vpop.f32.mrb[37].mxu1  ;;  %v12209_v12 = vsub.f32 %v11920_v40, %v6725_v51 }
 0x5ae   :  { %v12206_v53 = vsub.f32 %v11924_v58, %v5368_v56  ;;  %v6726_v46 = vpop.f32.mrb[38].mxu1 }
 0x5af   :  { %v12212_v32 = vsub.f32 %v11928_v16, %v6726_v46  ;;  %v5371_v38 = vpop.f32.mrb[39].mxu1  ;;  %v5469_v40 = vmul.f32 %v12209_v12, %v12209_v12 }
 0x5b0   :  { %v12215_v10 = vsub.f32 %v11931_v5, %v5371_v38  ;;  %v5467_v44 = vmul.f32 %v12206_v53, %v12206_v53 }
 0x5b1   :  { %v5470_v20 = vmul.f32 %v12212_v32, %v12212_v32 }
 0x5b2   :  { %v5468_v58 = vmul.f32 %v12215_v10, %v12215_v10 }
 0x5b3   :  { %v5490_v15 = vpack.c.bf16 %v5470_v20, %v5469_v40  ;;  %v12268_v40 = vld [vmem:[%s12390_s7] ss:$0 sm:$0xff]  ;;  %s7609_s7 = smov [#allocation7]  }
 0x5b4   :  { %v5489_v63 = vpack.c.bf16 %v5468_v58, %v5467_v44 }
 0x5b6   :  { %6771 = vmatprep.mubr.bf16.mxu1 %v5489_v63 }
 0x5b7   :  { %6772 = vmatmul.mubr.bf16.gmra.mrb[68].mxu1 %v5490_v15 }
 0x5b8   :  { %v6729_v16 = vpop.f32.mrb[40].mxu1 }
 0x5b9   :  { %v5384_v17 = vpop.f32.mrb[41].mxu1  ;;  %v12229_v18 = vsub.f32 %v11940_v37, %v6729_v16 }
 0x5ba   :  { %v12226_v5 = vsub.f32 %v11944_v13, %v5384_v17  ;;  %v6730_v19 = vpop.f32.mrb[42].mxu1  ;;  %v12274_v17 = vld [vmem:[%s12391_s8] ss:$0 sm:$0xff]  ;;  %s5835_s8 = sshll.u32 %s7609_s7, 4  ;;  %s5836_s8 = int_to_ptr.vmem [resolvable:$true] %s5835_s8 }
 0x5bb   :  { %v12232_v52 = vsub.f32 %v11948_v6, %v6730_v19  ;;  %v5387_v47 = vpop.f32.mrb[43].mxu1  ;;  %v5473_v37 = vmul.f32 %v12229_v18, %v12229_v18  ;;  %s7574_s28 = scalar_lea.vmem %s5836_s8, 4096  ;;  %p7579_p3 = scmp.lt.s32.totalorder %s5836_s8, %s5836_s8 }
 0x5bc   :  { %v12235_v33 = vsub.f32 %v11951_v39, %v5387_v47  ;;  %v5471_v34 = vmul.f32 %v12226_v5, %v12226_v5  ;;  %p7575_p2 = scmp.ne.s32.totalorder %s5836_s8, %s7574_s28  ;;  %p7580_p4 = scmp.lt.s32.totalorder %s7574_s28, %s7574_s28 }
 0x5bd   :  { %v5474_v26 = vmul.f32 %v12232_v52, %v12232_v52 }
 0x5be   :  { %v5472_v13 = vmul.f32 %v12235_v33, %v12235_v33  ;;  %p7581_p5 = por %p7580_p4, %p7579_p3 }
 0x5bf   :  { %v5492_v2 = vpack.c.bf16 %v5474_v26, %v5473_v37 }
 0x5c0   :  { %v5491_v57 = vpack.c.bf16 %v5472_v13, %v5471_v34  ;;  %p7582_p6 = pnand %p7581_p5, %p7575_p2 }
 0x5c2   :  { %v6733_v6 = vpop.f32.mrb[44].mxu1  ;;  %6775 = vmatprep.mubr.bf16.mxu1 %v5491_v57 }
 0x5c3   :  { %v5400_v42 = vpop.f32.mrb[45].mxu1  ;;  %6776 = vmatmul.mubr.bf16.gmra.mrb[72].mxu1 %v5492_v2  ;;  %v12249_v35 = vsub.f32 %v11960_v54, %v6733_v6 }
 0x5c4   :  { %v12246_v39 = vsub.f32 %v11964_v60, %v5400_v42  ;;  %v6734_v24 = vpop.f32.mrb[46].mxu1 }
 0x5c5   :  { %v12252_v31 = vsub.f32 %v11968_v62, %v6734_v24  ;;  %v5403_v61 = vpop.f32.mrb[47].mxu1  ;;  %v5477_v54 = vmul.f32 %v12249_v35, %v12249_v35 }
 0x5c6   :  { %v12255_v50 = vsub.f32 %v11971_v29, %v5403_v61  ;;  %v5475_v59 = vmul.f32 %v12246_v39, %v12246_v39 }
 0x5c7   :  { %v5478_v9 = vmul.f32 %v12252_v31, %v12252_v31 }
 0x5c8   :  { %v5476_v60 = vmul.f32 %v12255_v50, %v12255_v50 }
 0x5c9   :  { %v5494_v4 = vpack.c.bf16 %v5478_v9, %v5477_v54 }
 0x5ca   :  { %v5493_v48 = vpack.c.bf16 %v5476_v60, %v5475_v59 }
 0x5cc   :  { %6779 = vmatprep.mubr.bf16.mxu1 %v5493_v48 }
 0x5cd   :  { %6780 = vmatmul.mubr.bf16.gmra.mrb[76].mxu1 %v5494_v4 }
 0x63a   :  { %v6753_v62 = vpop.f32.mrb[48].mxu1 }
 0x63b   :  { %v5538_v51 = vadd.f32 1e-06, %v6753_v62  ;;  %v5529_v29 = vpop.f32.mrb[49].mxu1 }
 0x63c   :  { %v5530_v56 = vadd.f32 1e-06, %v5529_v29  ;;  %v6754_v46 = vpop.f32.mrb[50].mxu1 }
 0x63d   :  { %7465 = vrsqrt.f32 %v5538_v51  ;;  %v5541_v38 = vadd.f32 1e-06, %v6754_v46  ;;  %v5532_v20 = vpop.f32.mrb[51].mxu1 }
 0x63e   :  { %7467 = vrsqrt.f32 %v5530_v56  ;;  %v5533_v44 = vadd.f32 1e-06, %v5532_v20 }
 0x63f   :  { %7469 = vrsqrt.f32 %v5541_v38 }
 0x640   :  { %7471 = vrsqrt.f32 %v5533_v44 }
 0x647   :  { %v7466_v58 = vpop.eup %7465 }
 0x648   :  { %v7468_v63 = vpop.eup %7467  ;;  %v5690_v15 = vmul.f32 %v7466_v58, %v11997_v45 }
 0x649   :  { %v7470_v16 = vpop.eup %7469  ;;  %v5688_v19 = vmul.f32 %v7468_v63, %v11994_v3 }
 0x64a   :  { %v7472_v47 = vpop.eup %7471  ;;  %v5729_v26 = vmul.f32 %v12268_v40, %v5690_v15  ;;  %v5691_v34 = vmul.f32 %v7470_v16, %v12000_v8 }
 0x64b   :  { %v5727_v13 = vmul.f32 %v12268_v40, %v5688_v19  ;;  %v5689_v37 = vmul.f32 %v7472_v47, %v12003_v28 }
 0x64c   :  { %v5768_v57 = vadd.f32 %v12274_v17, %v5729_v26  ;;  %v5730_v45 = vmul.f32 %v12268_v40, %v5691_v34 }
 0x64d   :  { %v5766_v2 = vadd.f32 %v12274_v17, %v5727_v13  ;;  %v5728_v6 = vmul.f32 %v12268_v40, %v5689_v37 }
 0x64e   :  { %5800 = vst [vmem:[#allocation7 + $0x10] sm:$0xff] %v5768_v57  ;;  %v5769_v3 = vadd.f32 %v12274_v17, %v5730_v45 }
 0x64f   :  { %5798 = vst [vmem:[#allocation7] sm:$0xff] %v5766_v2  ;;  %v5767_v42 = vadd.f32 %v12274_v17, %v5728_v6 }
 0x650   :  { %5801 = vst [vmem:[#allocation7 + $0x18] sm:$0xff] %v5769_v3 }
 0x651   :  { %5799 = vst [vmem:[#allocation7 + $0x8] sm:$0xff] %v5767_v42 }
 0x656   :  { %v6757_v8 = vpop.f32.mrb[52].mxu1 }
 0x657   :  { %v5554_v24 = vadd.f32 1e-06, %v6757_v8  ;;  %v5545_v61 = vpop.f32.mrb[53].mxu1 }
 0x658   :  { %v5546_v28 = vadd.f32 1e-06, %v5545_v61  ;;  %v6758_v9 = vpop.f32.mrb[54].mxu1 }
 0x659   :  { %7473 = vrsqrt.f32 %v5554_v24  ;;  %v5557_v59 = vadd.f32 1e-06, %v6758_v9  ;;  %v5548_v60 = vpop.f32.mrb[55].mxu1 }
 0x65a   :  { %7475 = vrsqrt.f32 %v5546_v28  ;;  %v5549_v54 = vadd.f32 1e-06, %v5548_v60 }
 0x65b   :  { %7477 = vrsqrt.f32 %v5557_v59 }
 0x65c   :  { %7479 = vrsqrt.f32 %v5549_v54 }
 0x663   :  { %v7474_v48 = vpop.eup %7473 }
 0x664   :  { %v7476_v4 = vpop.eup %7475  ;;  %v5694_v62 = vmul.f32 %v7474_v48, %v12069_v27 }
 0x665   :  { %v6761_v51 = vpop.f32.mrb[56].mxu1  ;;  %v7478_v29 = vpop.eup %7477  ;;  %v5692_v56 = vmul.f32 %v7476_v4, %v12062_v49 }
 0x666   :  { %v5570_v46 = vadd.f32 1e-06, %v6761_v51  ;;  %v5561_v38 = vpop.f32.mrb[57].mxu1  ;;  %v7480_v20 = vpop.eup %7479  ;;  %v5733_v44 = vmul.f32 %v12268_v40, %v5694_v62  ;;  %v5695_v58 = vmul.f32 %v7478_v29, %v12072_v0 }
 0x667   :  { %v5562_v63 = vadd.f32 1e-06, %v5561_v38  ;;  %v6762_v15 = vpop.f32.mrb[58].mxu1  ;;  %v5731_v16 = vmul.f32 %v12268_v40, %v5692_v56  ;;  %v5693_v19 = vmul.f32 %v7480_v20, %v12079_v25 }
 0x668   :  { %7481 = vrsqrt.f32 %v5570_v46  ;;  %v5573_v47 = vadd.f32 1e-06, %v6762_v15  ;;  %v5564_v27 = vpop.f32.mrb[59].mxu1  ;;  %v5772_v26 = vadd.f32 %v12274_v17, %v5733_v44  ;;  %v5734_v49 = vmul.f32 %v12268_v40, %v5695_v58 }
 0x669   :  { %7483 = vrsqrt.f32 %v5562_v63  ;;  %v5565_v34 = vadd.f32 1e-06, %v5564_v27  ;;  %v5770_v13 = vadd.f32 %v12274_v17, %v5731_v16  ;;  %v5732_v37 = vmul.f32 %v12268_v40, %v5693_v19 }
 0x66a   :  { %7485 = vrsqrt.f32 %v5573_v47  ;;  %5804 = vst [vmem:[#allocation7 + $0x30] sm:$0xff] %v5772_v26  ;;  %v5773_v0 = vadd.f32 %v12274_v17, %v5734_v49 }
 0x66b   :  { %7487 = vrsqrt.f32 %v5565_v34  ;;  %5802 = vst [vmem:[#allocation7 + $0x20] sm:$0xff] %v5770_v13  ;;  %v5771_v25 = vadd.f32 %v12274_v17, %v5732_v37 }
 0x66c   :  { %5805 = vst [vmem:[#allocation7 + $0x38] sm:$0xff] %v5773_v0 }
 0x66d   :  { %5803 = vst [vmem:[#allocation7 + $0x28] sm:$0xff] %v5771_v25 }
 0x672   :  { %v7482_v57 = vpop.eup %7481 }
 0x673   :  { %v7484_v45 = vpop.eup %7483  ;;  %v5698_v2 = vmul.f32 %v7482_v57, %v12117_v7 }
 0x674   :  { %v7486_v6 = vpop.eup %7485  ;;  %v5696_v3 = vmul.f32 %v7484_v45, %v12114_v14 }
 0x675   :  { %v7488_v42 = vpop.eup %7487  ;;  %v5737_v8 = vmul.f32 %v12268_v40, %v5698_v2  ;;  %v5699_v24 = vmul.f32 %v7486_v6, %v12120_v43 }
 0x676   :  { %v6765_v61 = vpop.f32.mrb[60].mxu1  ;;  %v5735_v28 = vmul.f32 %v12268_v40, %v5696_v3  ;;  %v5697_v9 = vmul.f32 %v7488_v42, %v12123_v55 }
 0x677   :  { %v5586_v59 = vadd.f32 1e-06, %v6765_v61  ;;  %v5577_v60 = vpop.f32.mrb[61].mxu1  ;;  %v5776_v54 = vadd.f32 %v12274_v17, %v5737_v8  ;;  %v5738_v48 = vmul.f32 %v12268_v40, %v5699_v24 }
 0x678   :  { %v5578_v7 = vadd.f32 1e-06, %v5577_v60  ;;  %v6766_v4 = vpop.f32.mrb[62].mxu1  ;;  %v5774_v14 = vadd.f32 %v12274_v17, %v5735_v28  ;;  %v5736_v62 = vmul.f32 %v12268_v40, %v5697_v9 }
 0x679   :  { %7489 = vrsqrt.f32 %v5586_v59  ;;  %v5589_v51 = vadd.f32 1e-06, %v6766_v4  ;;  %v5580_v43 = vpop.f32.mrb[63].mxu1  ;;  %5808 = vst [vmem:[#allocation7 + $0x50] sm:$0xff] %v5776_v54  ;;  %v5777_v29 = vadd.f32 %v12274_v17, %v5738_v48 }
 0x67a   :  { %7491 = vrsqrt.f32 %v5578_v7  ;;  %v5581_v55 = vadd.f32 1e-06, %v5580_v43  ;;  %5806 = vst [vmem:[#allocation7 + $0x40] sm:$0xff] %v5774_v14  ;;  %v5775_v56 = vadd.f32 %v12274_v17, %v5736_v62 }
 0x67b   :  { %7493 = vrsqrt.f32 %v5589_v51  ;;  %5809 = vst [vmem:[#allocation7 + $0x58] sm:$0xff] %v5777_v29 }
 0x67c   :  { %7495 = vrsqrt.f32 %v5581_v55  ;;  %5807 = vst [vmem:[#allocation7 + $0x48] sm:$0xff] %v5775_v56 }
 0x680   :  { %v6769_v46 = vpop.f32.mrb[64].mxu1 }
 0x681   :  { %v5602_v38 = vadd.f32 1e-06, %v6769_v46  ;;  %v5593_v20 = vpop.f32.mrb[65].mxu1 }
 0x682   :  { %v5594_v44 = vadd.f32 1e-06, %v5593_v20  ;;  %v6770_v58 = vpop.f32.mrb[66].mxu1 }
 0x683   :  { %7497 = vrsqrt.f32 %v5602_v38  ;;  %v5605_v63 = vadd.f32 1e-06, %v6770_v58  ;;  %v5596_v15 = vpop.f32.mrb[67].mxu1  ;;  %v7490_v19 = vpop.eup %7489 }
 0x684   :  { %7499 = vrsqrt.f32 %v5594_v44  ;;  %v5597_v16 = vadd.f32 1e-06, %v5596_v15  ;;  %v7492_v47 = vpop.eup %7491  ;;  %v5702_v27 = vmul.f32 %v7490_v19, %v12169_v41 }
 0x685   :  { %7501 = vrsqrt.f32 %v5605_v63  ;;  %v7494_v26 = vpop.eup %7493  ;;  %v5700_v49 = vmul.f32 %v7492_v47, %v12166_v36 }
 0x686   :  { %7503 = vrsqrt.f32 %v5597_v16  ;;  %v7496_v34 = vpop.eup %7495  ;;  %v5741_v13 = vmul.f32 %v12268_v40, %v5702_v27  ;;  %v5703_v37 = vmul.f32 %v7494_v26, %v12172_v22 }
 0x687   :  { %v5739_v0 = vmul.f32 %v12268_v40, %v5700_v49  ;;  %v5701_v25 = vmul.f32 %v7496_v34, %v12175_v1 }
 0x688   :  { %v5780_v57 = vadd.f32 %v12274_v17, %v5741_v13  ;;  %v5742_v45 = vmul.f32 %v12268_v40, %v5703_v37 }
 0x689   :  { %v5778_v2 = vadd.f32 %v12274_v17, %v5739_v0  ;;  %v5740_v41 = vmul.f32 %v12268_v40, %v5701_v25 }
 0x68a   :  { %v6773_v6 = vpop.f32.mrb[68].mxu1  ;;  %5812 = vst [vmem:[#allocation7 + $0x70] sm:$0xff] %v5780_v57  ;;  %v5781_v36 = vadd.f32 %v12274_v17, %v5742_v45 }
 0x68b   :  { %v5618_v3 = vadd.f32 1e-06, %v6773_v6  ;;  %v5609_v42 = vpop.f32.mrb[69].mxu1  ;;  %5810 = vst [vmem:[#allocation7 + $0x60] sm:$0xff] %v5778_v2  ;;  %v5779_v22 = vadd.f32 %v12274_v17, %v5740_v41 }
 0x68c   :  { %v5610_v24 = vadd.f32 1e-06, %v5609_v42  ;;  %v6774_v1 = vpop.f32.mrb[70].mxu1  ;;  %5813 = vst [vmem:[#allocation7 + $0x78] sm:$0xff] %v5781_v36 }
 0x68d   :  { %v7498_v8 = vpop.eup %7497  ;;  %7505 = vrsqrt.f32 %v5618_v3  ;;  %v5621_v9 = vadd.f32 1e-06, %v6774_v1  ;;  %v5612_v59 = vpop.f32.mrb[71].mxu1  ;;  %5811 = vst [vmem:[#allocation7 + $0x68] sm:$0xff] %v5779_v22 }
 0x68e   :  { %v7500_v61 = vpop.eup %7499  ;;  %v5706_v28 = vmul.f32 %v7498_v8, %v12189_v23  ;;  %7507 = vrsqrt.f32 %v5610_v24  ;;  %v5613_v48 = vadd.f32 1e-06, %v5612_v59 }
 0x68f   :  { %v7502_v60 = vpop.eup %7501  ;;  %v5704_v54 = vmul.f32 %v7500_v61, %v12186_v11  ;;  %7509 = vrsqrt.f32 %v5621_v9 }
 0x690   :  { %v7504_v7 = vpop.eup %7503  ;;  %v5745_v4 = vmul.f32 %v12268_v40, %v5706_v28  ;;  %v5707_v14 = vmul.f32 %v7502_v60, %v12192_v30  ;;  %7511 = vrsqrt.f32 %v5613_v48 }
 0x691   :  { %v5743_v62 = vmul.f32 %v12268_v40, %v5704_v54  ;;  %v5705_v51 = vmul.f32 %v7504_v7, %v12195_v21 }
 0x692   :  { %v5784_v23 = vadd.f32 %v12274_v17, %v5745_v4  ;;  %v5746_v43 = vmul.f32 %v12268_v40, %v5707_v14 }
 0x693   :  { %v5782_v29 = vadd.f32 %v12274_v17, %v5743_v62  ;;  %v5744_v11 = vmul.f32 %v12268_v40, %v5705_v51 }
 0x694   :  { %5816 = vst [vmem:[#allocation7 + $0x90] sm:$0xff] %v5784_v23  ;;  %v5785_v55 = vadd.f32 %v12274_v17, %v5746_v43 }
 0x695   :  { %5814 = vst [vmem:[#allocation7 + $0x80] sm:$0xff] %v5782_v29  ;;  %v5783_v30 = vadd.f32 %v12274_v17, %v5744_v11 }
 0x696   :  { %5817 = vst [vmem:[#allocation7 + $0x98] sm:$0xff] %v5785_v55  ;;  %v6777_v56 = vpop.f32.mrb[72].mxu1 }
 0x697   :  { %5815 = vst [vmem:[#allocation7 + $0x88] sm:$0xff] %v5783_v30  ;;  %v7506_v46 = vpop.eup %7505  ;;  %v5634_v21 = vadd.f32 1e-06, %v6777_v56  ;;  %v5625_v38 = vpop.f32.mrb[73].mxu1 }
 0x698   :  { %v7508_v20 = vpop.eup %7507  ;;  %v5710_v44 = vmul.f32 %v7506_v46, %v12209_v12  ;;  %v5626_v58 = vadd.f32 1e-06, %v5625_v38  ;;  %v6778_v63 = vpop.f32.mrb[74].mxu1 }
 0x699   :  { %v7510_v15 = vpop.eup %7509  ;;  %v5708_v16 = vmul.f32 %v7508_v20, %v12206_v53  ;;  %7513 = vrsqrt.f32 %v5634_v21  ;;  %v5637_v19 = vadd.f32 1e-06, %v6778_v63  ;;  %v5628_v47 = vpop.f32.mrb[75].mxu1 }
 0x69a   :  { %v7512_v27 = vpop.eup %7511  ;;  %v5749_v26 = vmul.f32 %v12268_v40, %v5710_v44  ;;  %v5711_v49 = vmul.f32 %v7510_v15, %v12212_v32  ;;  %7515 = vrsqrt.f32 %v5626_v58  ;;  %v5629_v34 = vadd.f32 1e-06, %v5628_v47 }
 0x69b   :  { %v5747_v13 = vmul.f32 %v12268_v40, %v5708_v16  ;;  %v5709_v37 = vmul.f32 %v7512_v27, %v12215_v10  ;;  %7517 = vrsqrt.f32 %v5637_v19 }
 0x69c   :  { %v5788_v12 = vadd.f32 %v12274_v17, %v5749_v26  ;;  %v5750_v0 = vmul.f32 %v12268_v40, %v5711_v49  ;;  %7519 = vrsqrt.f32 %v5629_v34 }
 0x69d   :  { %v5786_v53 = vadd.f32 %v12274_v17, %v5747_v13  ;;  %v5748_v25 = vmul.f32 %v12268_v40, %v5709_v37 }
 0x69e   :  { %5820 = vst [vmem:[#allocation7 + $0xb0] sm:$0xff] %v5788_v12  ;;  %v5789_v57 = vadd.f32 %v12274_v17, %v5750_v0 }
 0x69f   :  { %5818 = vst [vmem:[#allocation7 + $0xa0] sm:$0xff] %v5786_v53  ;;  %v5787_v32 = vadd.f32 %v12274_v17, %v5748_v25 }
 0x6a0   :  { %5821 = vst [vmem:[#allocation7 + $0xb8] sm:$0xff] %v5789_v57  ;;  %v6781_v45 = vpop.f32.mrb[76].mxu1 }
 0x6a1   :  { %5819 = vst [vmem:[#allocation7 + $0xa8] sm:$0xff] %v5787_v32  ;;  %v5650_v10 = vadd.f32 1e-06, %v6781_v45  ;;  %v5641_v2 = vpop.f32.mrb[77].mxu1 }
 0x6a2   :  { %v5642_v41 = vadd.f32 1e-06, %v5641_v2  ;;  %v6782_v6 = vpop.f32.mrb[78].mxu1 }
 0x6a3   :  { %v7514_v36 = vpop.eup %7513  ;;  %7521 = vrsqrt.f32 %v5650_v10  ;;  %v5653_v3 = vadd.f32 1e-06, %v6782_v6  ;;  %v5644_v42 = vpop.f32.mrb[79].mxu1 }
 0x6a4   :  { %v7516_v8 = vpop.eup %7515  ;;  %v5714_v22 = vmul.f32 %v7514_v36, %v12229_v18  ;;  %7523 = vrsqrt.f32 %v5642_v41  ;;  %v5645_v24 = vadd.f32 1e-06, %v5644_v42 }
 0x6a5   :  { %v7518_v1 = vpop.eup %7517  ;;  %v5712_v61 = vmul.f32 %v7516_v8, %v12226_v5  ;;  %7525 = vrsqrt.f32 %v5653_v3 }
 0x6a6   :  { %v7520_v28 = vpop.eup %7519  ;;  %v5753_v9 = vmul.f32 %v12268_v40, %v5714_v22  ;;  %v5715_v59 = vmul.f32 %v7518_v1, %v12232_v52  ;;  %7527 = vrsqrt.f32 %v5645_v24 }
 0x6a7   :  { %v5751_v60 = vmul.f32 %v12268_v40, %v5712_v61  ;;  %v5713_v54 = vmul.f32 %v7520_v28, %v12235_v33 }
 0x6a8   :  { %v5792_v48 = vadd.f32 %v12274_v17, %v5753_v9  ;;  %v5754_v18 = vmul.f32 %v12268_v40, %v5715_v59 }
 0x6a9   :  { %v5790_v7 = vadd.f32 %v12274_v17, %v5751_v60  ;;  %v5752_v4 = vmul.f32 %v12268_v40, %v5713_v54 }
 0x6aa   :  { %5824 = vst [vmem:[#allocation7 + $0xd0] sm:$0xff] %v5792_v48  ;;  %v5793_v5 = vadd.f32 %v12274_v17, %v5754_v18 }
 0x6ab   :  { %5822 = vst [vmem:[#allocation7 + $0xc0] sm:$0xff] %v5790_v7  ;;  %v5791_v14 = vadd.f32 %v12274_v17, %v5752_v4 }
 0x6ac   :  { %5825 = vst [vmem:[#allocation7 + $0xd8] sm:$0xff] %v5793_v5 }
 0x6ad   :  { %v7522_v52 = vpop.eup %7521  ;;  %5823 = vst [vmem:[#allocation7 + $0xc8] sm:$0xff] %v5791_v14 }
 0x6ae   :  { %v7524_v62 = vpop.eup %7523  ;;  %v5718_v33 = vmul.f32 %v7522_v52, %v12249_v35 }
 0x6af   :  { %v7526_v51 = vpop.eup %7525  ;;  %v5716_v23 = vmul.f32 %v7524_v62, %v12246_v39 }
 0x6b0   :  { %v7528_v43 = vpop.eup %7527  ;;  %v5757_v29 = vmul.f32 %v12268_v40, %v5718_v33  ;;  %v5719_v11 = vmul.f32 %v7526_v51, %v12252_v31 }
 0x6b1   :  { %v5755_v55 = vmul.f32 %v12268_v40, %v5716_v23  ;;  %v5717_v30 = vmul.f32 %v7528_v43, %v12255_v50 }
 0x6b2   :  { %v5796_v56 = vadd.f32 %v12274_v17, %v5757_v29  ;;  %v5758_v46 = vmul.f32 %v12268_v40, %v5719_v11 }
 0x6b3   :  { %v5794_v35 = vadd.f32 %v12274_v17, %v5755_v55  ;;  %v5756_v21 = vmul.f32 %v12268_v40, %v5717_v30 }
 0x6b4   :  { %5828 = vst [vmem:[#allocation7 + $0xf0] sm:$0xff] %v5796_v56  ;;  %v5797_v39 = vadd.f32 %v12274_v17, %v5758_v46 }
 0x6b5   :  { %5826 = vst [vmem:[#allocation7 + $0xe0] sm:$0xff] %v5794_v35  ;;  %v5795_v31 = vadd.f32 %v12274_v17, %v5756_v21 }
 0x6b6   :  { %5829 = vst [vmem:[#allocation7 + $0xf8] sm:$0xff] %v5797_v39 }
 0x6b7   :  { %5827 = vst [vmem:[#allocation7 + $0xe8] sm:$0xff] %v5795_v31 }
 0x6b8   :  { %7585 = shalt.err (!%p7582_p6)
}
 0x6b9   :  { %s7586_s11 = scalar_lea.hbm %s12392_s9, 4096 }
 0x6ba   :  { %p7587_p7 = scmp.ne.s32.totalorder %s12392_s9, %s7586_s11  ;;  %p7590_p8 = scmp.lt.u32.totalorder %s7586_s11, %s12392_s9 }
 0x6bc   :  { %p7592_p9 = pnand %p7590_p8, %p7587_p7 }
 0x6be   :  { %7595 = shalt.err (!%p7592_p9)
}
 0x6bf   :  { %s7610_s16 = smov 128   ;;  %s7611_s17 = smov 8  }
 0x6c0   :  { %5841 = dma.vmem_to_hbm [thread:$0]  %s5836_s8, 4096, %s12392_s9, [#allocation4], %s7610_s16, %s7610_s16, %s7611_s17  }
 0x6c1   :  { %7600 = dma.done.wait [#allocation4], 4096  }
 0x6c2   :  { %7601 = vsyncadd [#allocation4], 4294963200 }
 0x6c3   :  { %5849 = vsyncpa [#allocation3], 1 }
 0x6c4   :  { %5850 = vsyncpa [#allocation6], 1 }
 0x6c5   :  { %5851 = vsyncpa [#allocation4], 1 }

</bundles_post_ra>
